<compile_context>
chip_gen: v7x
topology: tpu7x:2x2x1
jax: 0.10.0
libtpu: 0.0.40
codegen_flags: <defaults>
</compile_context>

<pallas_src>
import jax
import jax.numpy as jnp
from jax.experimental import pallas as pl
from jax.experimental.pallas import tpu as pltpu

K1 = 84 * 84          # fc1 fan-in (7056)
TK = 3584             # fc1 K tile (2 grid steps over the padded K)
K1_PAD = 2 * TK       # 7168, divisible by TK and by 128
H1 = 1024             # fc1 out
H2 = 512              # fc2 out
N3 = 2                # fc3 out (actions)
N3_PAD = 128          # lane-dense output width


def _dqn_fused_kernel(x_ref, w1_ref, b1_ref, w2_ref, b2_ref, w3_ref, b3_ref,
                      o_ref, acc1_ref):
    """Grid axis 0 streams fc1's K dimension; fc2/fc3 run in the epilogue."""
    k = pl.program_id(0)

    @pl.when(k == 0)
    def _():
        acc1_ref[...] = jnp.zeros_like(acc1_ref)

    # fc1 partial: (B, tk)bf16 @ (tk, H1)bf16 -> f32 accumulator
    acc1_ref[...] += jnp.dot(
        x_ref[...], w1_ref[...], preferred_element_type=jnp.float32
    )

    @pl.when(k == pl.num_programs(0) - 1)
    def _():
        h1 = jnp.maximum(acc1_ref[...] + b1_ref[...], 0.0)          # f32
        h2 = jnp.dot(h1.astype(jnp.bfloat16), w2_ref[...],
                     preferred_element_type=jnp.float32)
        h2 = jnp.maximum(h2 + b2_ref[...], 0.0)                      # f32
        o = jnp.dot(h2.astype(jnp.bfloat16), w3_ref[...],
                    preferred_element_type=jnp.float32)
        o_ref[...] = (o + b3_ref[...]).astype(o_ref.dtype)


def dqn_fused(params, x):
    """x: (B, 7056) float32. Returns (B_pad, 128) f32 logits (padded)."""
    B, K = x.shape
    K_pad = params["fc1_w"].shape[0]
    # Pad batch to a multiple of 16 sublanes (bf16-native (16,128) packing).
    B_pad = max(16, ((B + 15) // 16) * 16)

    # Only the (tiny) activation is padded per call; weights are pre-padded.
    x_p = jnp.pad(x.astype(jnp.bfloat16), ((0, B_pad - B), (0, K_pad - K)))
    n_k = K_pad // TK

    return pl.pallas_call(
        _dqn_fused_kernel,
        out_shape=jax.ShapeDtypeStruct((B_pad, N3_PAD), jnp.float32),
        grid_spec=pltpu.PrefetchScalarGridSpec(
            num_scalar_prefetch=0,
            grid=(n_k,),
            in_specs=[
                pl.BlockSpec((B_pad, TK), lambda k: (0, k)),   # x tile
                pl.BlockSpec((TK, H1), lambda k: (k, 0)),      # fc1_w tile
                pl.BlockSpec((1, H1), lambda k: (0, 0)),       # fc1_b (resident)
                pl.BlockSpec((H1, H2), lambda k: (0, 0)),      # fc2_w (resident)
                pl.BlockSpec((1, H2), lambda k: (0, 0)),       # fc2_b (resident)
                pl.BlockSpec((H2, N3_PAD), lambda k: (0, 0)),  # fc3_w (resident)
                pl.BlockSpec((1, N3_PAD), lambda k: (0, 0)),   # fc3_b (resident)
            ],
            out_specs=pl.BlockSpec((B_pad, N3_PAD), lambda k: (0, 0)),
            scratch_shapes=[pltpu.VMEM((B_pad, H1), jnp.float32)],
        ),
        compiler_params=pltpu.CompilerParams(
            dimension_semantics=("arbitrary",),
            vmem_limit_bytes=32 * 1024 * 1024,
        ),
    )(x_p, params["fc1_w"], params["fc1_b"], params["fc2_w"],
      params["fc2_b"], params["fc3_w"], params["fc3_b"])


def init_dqn_params(key):
    """nn.Linear-style U(-1/sqrt(fan_in), 1/sqrt(fan_in)) init.

    Weights are stored as (in, out), zero-padded (fc1 K -> 7168, fc3 N -> 128)
    and cast to bf16 ONCE here, so the jitted forward does no weight copies.
    Biases stay f32 with shape (1, N).
    """
    specs = [("fc1", K1, H1), ("fc2", H1, H2), ("fc3", H2, N3)]
    raw = {}
    for name, fan_in, fan_out in specs:
        key, kw, kb = jax.random.split(key, 3)
        bound = 1.0 / jnp.sqrt(jnp.float32(fan_in))
        raw[name + "_w"] = jax.random.uniform(
            kw, (fan_in, fan_out), jnp.float32, -bound, bound)
        raw[name + "_b"] = jax.random.uniform(
            kb, (fan_out,), jnp.float32, -bound, bound)

    w1 = jnp.pad(raw["fc1_w"], ((0, K1_PAD - K1), (0, 0))).astype(jnp.bfloat16)
    w2 = raw["fc2_w"].astype(jnp.bfloat16)
    w3 = jnp.pad(raw["fc3_w"], ((0, 0), (0, N3_PAD - N3))).astype(jnp.bfloat16)
    b3 = jnp.pad(raw["fc3_b"], (0, N3_PAD - N3))

    return {
        "fc1_w": w1, "fc1_b": raw["fc1_b"].reshape(1, H1),
        "fc2_w": w2, "fc2_b": raw["fc2_b"].reshape(1, H2),
        "fc3_w": w3, "fc3_b": b3.reshape(1, N3_PAD),
    }


@jax.jit
def dqn_forward(params, state):
    # glue: flatten NCHW -> (B, 84*84), same as torch .view(B, -1)
    B = state.shape[0]
    x = state.reshape(B, -1).astype(jnp.float32)
    out = dqn_fused(params, x)
    return out[:B, :N3]


if __name__ == "__main__":
    key = jax.random.PRNGKey(0)
    k_params, k_input = jax.random.split(key)

    params = init_dqn_params(k_params)

    # Batch of 2 single-channel 84x84 "frames" (fc1 requires 84*84 inputs).
    state = jax.random.normal(k_input, (2, 1, 84, 84), dtype=jnp.float32)

    out = dqn_forward(params, state)
    out = jax.block_until_ready(out)
    assert out.shape == (2, 2)

    # Pure-JAX reference of the same bf16-weight / f32-accumulate computation.
    x = state.reshape(2, -1).astype(jnp.bfloat16)
    w1 = params["fc1_w"][:K1]
    h1 = jnp.maximum(
        jnp.dot(x, w1, preferred_element_type=jnp.float32) + params["fc1_b"], 0.0)
    h2 = jnp.maximum(
        jnp.dot(h1.astype(jnp.bfloat16), params["fc2_w"],
                preferred_element_type=jnp.float32) + params["fc2_b"], 0.0)
    ref = jnp.dot(h2.astype(jnp.bfloat16), params["fc3_w"],
                  preferred_element_type=jnp.float32) + params["fc3_b"]
    ref = ref[:, :N3]

    assert jnp.allclose(out, ref, atol=2e-2, rtol=2e-2), (out, ref)
    print("KERNEL_OK")
</pallas_src>

<mosaic_0001>
module attributes {stable_mosaic.version = 11 : i64} {
  func.func @_dqn_fused_kernel(%arg0: i32, %arg1: memref<16x3584xbf16, #tpu.memory_space<vmem>>, %arg2: memref<3584x1024xbf16, #tpu.memory_space<vmem>>, %arg3: memref<1x1024xf32, #tpu.memory_space<vmem>>, %arg4: memref<1024x512xbf16, #tpu.memory_space<vmem>>, %arg5: memref<1x512xf32, #tpu.memory_space<vmem>>, %arg6: memref<512x128xbf16, #tpu.memory_space<vmem>>, %arg7: memref<1x128xf32, #tpu.memory_space<vmem>>, %arg8: memref<16x128xf32, #tpu.memory_space<vmem>>, %arg9: memref<16x1024xf32, #tpu.memory_space<vmem>>) attributes {dimension_semantics = [#tpu.dimension_semantics<arbitrary>], iteration_bounds = array<i64: 2>, scalar_prefetch = 0 : i64, scratch_operands = 1 : i64, tpu.core_type = #tpu.core_type<tc>, window_params = [{transform_indices = @transform_0, window_bounds = array<i64: 16, 3584>}, {transform_indices = @transform_1, window_bounds = array<i64: 3584, 1024>}, {pipeline_mode = #tpu.pipeline_mode<synchronous>, transform_indices = @transform_2, window_bounds = array<i64: 1, 1024>}, {pipeline_mode = #tpu.pipeline_mode<synchronous>, transform_indices = @transform_3, window_bounds = array<i64: 1024, 512>}, {pipeline_mode = #tpu.pipeline_mode<synchronous>, transform_indices = @transform_4, window_bounds = array<i64: 1, 512>}, {pipeline_mode = #tpu.pipeline_mode<synchronous>, transform_indices = @transform_5, window_bounds = array<i64: 512, 128>}, {pipeline_mode = #tpu.pipeline_mode<synchronous>, transform_indices = @transform_6, window_bounds = array<i64: 1, 128>}, {pipeline_mode = #tpu.pipeline_mode<synchronous>, transform_indices = @transform_7, window_bounds = array<i64: 16, 128>}]} {
    %c0_i32 = arith.constant 0 : i32
    %0 = arith.cmpi eq, %arg0, %c0_i32 : i32
    %1 = arith.extui %0 : i1 to i32
    %c0_i32_0 = arith.constant 0 : i32
    %2 = arith.cmpi ne, %1, %c0_i32_0 : i32
    scf.if %2 {
      %cst_9 = arith.constant 0.000000e+00 : f32
      %12 = vector.broadcast %cst_9 : f32 to vector<16x1024xf32>
      %c0_10 = arith.constant 0 : index
      %c0_11 = arith.constant 0 : index
      %13 = vector.load %arg9[%c0_10, %c0_11] : memref<16x1024xf32, #tpu.memory_space<vmem>>, vector<16x1024xf32>
      tpu.vector_store %arg9[%c0_10, %c0_11], %12 {strides = array<i32>} : memref<16x1024xf32, #tpu.memory_space<vmem>>, vector<16x1024xf32>,
    } else {
    }
    %c0 = arith.constant 0 : index
    %c0_1 = arith.constant 0 : index
    %3 = vector.load %arg9[%c0, %c0_1] : memref<16x1024xf32, #tpu.memory_space<vmem>>, vector<16x1024xf32>
    %c0_2 = arith.constant 0 : index
    %c0_3 = arith.constant 0 : index
    %4 = vector.load %arg1[%c0_2, %c0_3] : memref<16x3584xbf16, #tpu.memory_space<vmem>>, vector<16x3584xbf16>
    %c0_4 = arith.constant 0 : index
    %c0_5 = arith.constant 0 : index
    %5 = vector.load %arg2[%c0_4, %c0_5] : memref<3584x1024xbf16, #tpu.memory_space<vmem>>, vector<3584x1024xbf16>
    %cst = arith.constant dense<0.000000e+00> : vector<16x1024xf32>
    %6 = tpu.matmul %4, %5, %cst {dimension_numbers = #tpu.dot_dimension_numbers<[1], [0], [0], [1], [0, 0, 1, 1], [], []>} : vector<16x3584xbf16>, vector<3584x1024xbf16>, vector<16x1024xf32> -> vector<16x1024xf32>
    %7 = arith.addf %3, %6 : vector<16x1024xf32>
    %c0_6 = arith.constant 0 : index
    %c0_7 = arith.constant 0 : index
    %8 = vector.load %arg9[%c0_6, %c0_7] : memref<16x1024xf32, #tpu.memory_space<vmem>>, vector<16x1024xf32>
    tpu.vector_store %arg9[%c0_6, %c0_7], %7 {strides = array<i32>} : memref<16x1024xf32, #tpu.memory_space<vmem>>, vector<16x1024xf32>,
    %c1_i32 = arith.constant 1 : i32
    %9 = arith.cmpi eq, %arg0, %c1_i32 : i32
    %10 = arith.extui %9 : i1 to i32
    %c0_i32_8 = arith.constant 0 : i32
    %11 = arith.cmpi ne, %10, %c0_i32_8 : i32
    scf.if %11 {
      %c0_9 = arith.constant 0 : index
      %c0_10 = arith.constant 0 : index
      %12 = vector.load %arg9[%c0_9, %c0_10] : memref<16x1024xf32, #tpu.memory_space<vmem>>, vector<16x1024xf32>
      %c0_11 = arith.constant 0 : index
      %c0_12 = arith.constant 0 : index
      %13 = vector.load %arg3[%c0_11, %c0_12] : memref<1x1024xf32, #tpu.memory_space<vmem>>, vector<1x1024xf32>
      %14 = vector.broadcast %13 : vector<1x1024xf32> to vector<16x1024xf32>
      %15 = arith.addf %12, %14 : vector<16x1024xf32>
      %cst_13 = arith.constant 0.000000e+00 : f32
      %16 = vector.broadcast %cst_13 : f32 to vector<16x1024xf32>
      %17 = arith.maximumf %15, %16 : vector<16x1024xf32>
      %18 = arith.truncf %17 : vector<16x1024xf32> to vector<16x1024xbf16>
      %c0_14 = arith.constant 0 : index
      %c0_15 = arith.constant 0 : index
      %19 = vector.load %arg4[%c0_14, %c0_15] : memref<1024x512xbf16, #tpu.memory_space<vmem>>, vector<1024x512xbf16>
      %cst_16 = arith.constant dense<0.000000e+00> : vector<16x512xf32>
      %20 = tpu.matmul %18, %19, %cst_16 {dimension_numbers = #tpu.dot_dimension_numbers<[1], [0], [0], [1], [0, 0, 1, 1], [], []>} : vector<16x1024xbf16>, vector<1024x512xbf16>, vector<16x512xf32> -> vector<16x512xf32>
      %c0_17 = arith.constant 0 : index
      %c0_18 = arith.constant 0 : index
      %21 = vector.load %arg5[%c0_17, %c0_18] : memref<1x512xf32, #tpu.memory_space<vmem>>, vector<1x512xf32>
      %22 = vector.broadcast %21 : vector<1x512xf32> to vector<16x512xf32>
      %23 = arith.addf %20, %22 : vector<16x512xf32>
      %cst_19 = arith.constant 0.000000e+00 : f32
      %24 = vector.broadcast %cst_19 : f32 to vector<16x512xf32>
      %25 = arith.maximumf %23, %24 : vector<16x512xf32>
      %26 = arith.truncf %25 : vector<16x512xf32> to vector<16x512xbf16>
      %c0_20 = arith.constant 0 : index
      %c0_21 = arith.constant 0 : index
      %27 = vector.load %arg6[%c0_20, %c0_21] : memref<512x128xbf16, #tpu.memory_space<vmem>>, vector<512x128xbf16>
      %cst_22 = arith.constant dense<0.000000e+00> : vector<16x128xf32>
      %28 = tpu.matmul %26, %27, %cst_22 {dimension_numbers = #tpu.dot_dimension_numbers<[1], [0], [0], [1], [0, 0, 1, 1], [], []>} : vector<16x512xbf16>, vector<512x128xbf16>, vector<16x128xf32> -> vector<16x128xf32>
      %c0_23 = arith.constant 0 : index
      %c0_24 = arith.constant 0 : index
      %29 = vector.load %arg7[%c0_23, %c0_24] : memref<1x128xf32, #tpu.memory_space<vmem>>, vector<1x128xf32>
      %30 = vector.broadcast %29 : vector<1x128xf32> to vector<16x128xf32>
      %31 = arith.addf %28, %30 : vector<16x128xf32>
      %c0_25 = arith.constant 0 : index
      %c0_26 = arith.constant 0 : index
      %32 = vector.load %arg8[%c0_25, %c0_26] : memref<16x128xf32, #tpu.memory_space<vmem>>, vector<16x128xf32>
      tpu.vector_store %arg8[%c0_25, %c0_26], %31 {strides = array<i32>} : memref<16x128xf32, #tpu.memory_space<vmem>>, vector<16x128xf32>,
    } else {
    }
    return
  }
  func.func @transform_0(%arg0: i32) -> (i32, i32) {
    %c0_i32 = arith.constant 0 : i32
    %c0_i32_0 = arith.constant 0 : i32
    return %c0_i32, %arg0 : i32, i32
  }
  func.func @transform_1(%arg0: i32) -> (i32, i32) {
    %c0_i32 = arith.constant 0 : i32
    %c0_i32_0 = arith.constant 0 : i32
    return %arg0, %c0_i32 : i32, i32
  }
  func.func @transform_2(%arg0: i32) -> (i32, i32) {
    %c0_i32 = arith.constant 0 : i32
    %c0_i32_0 = arith.constant 0 : i32
    %c0_i32_1 = arith.constant 0 : i32
    return %c0_i32, %c0_i32_0 : i32, i32
  }
  func.func @transform_3(%arg0: i32) -> (i32, i32) {
    %c0_i32 = arith.constant 0 : i32
    %c0_i32_0 = arith.constant 0 : i32
    %c0_i32_1 = arith.constant 0 : i32
    return %c0_i32, %c0_i32_0 : i32, i32
  }
  func.func @transform_4(%arg0: i32) -> (i32, i32) {
    %c0_i32 = arith.constant 0 : i32
    %c0_i32_0 = arith.constant 0 : i32
    %c0_i32_1 = arith.constant 0 : i32
    return %c0_i32, %c0_i32_0 : i32, i32
  }
  func.func @transform_5(%arg0: i32) -> (i32, i32) {
    %c0_i32 = arith.constant 0 : i32
    %c0_i32_0 = arith.constant 0 : i32
    %c0_i32_1 = arith.constant 0 : i32
    return %c0_i32, %c0_i32_0 : i32, i32
  }
  func.func @transform_6(%arg0: i32) -> (i32, i32) {
    %c0_i32 = arith.constant 0 : i32
    %c0_i32_0 = arith.constant 0 : i32
    %c0_i32_1 = arith.constant 0 : i32
    return %c0_i32, %c0_i32_0 : i32, i32
  }
  func.func @transform_7(%arg0: i32) -> (i32, i32) {
    %c0_i32 = arith.constant 0 : i32
    %c0_i32_0 = arith.constant 0 : i32
    %c0_i32_1 = arith.constant 0 : i32
    return %c0_i32, %c0_i32_0 : i32, i32
  }
}

</mosaic_0001>

<bundles_post_ra>
// kernel: dqn_forward.1
= control target key start
LH: loop header
LB: loop body
LE: loop exit
PB: predicated region body
PF: predicated region fallthrough
CT: control target
= control target key end

     0   :  { %s21785_s0 = inlined_call_operand.vmem [shape: bf16[16,7168], index: 0, kind: input, shape index: {}]   ;;  %s21786_s1 = inlined_call_operand.hbm [shape: bf16[7168,1024], index: 1, kind: input, shape index: {}]   ;;  %s21787_s2 = inlined_call_operand.hbm [shape: f32[1,1024], index: 2, kind: input, shape index: {}]   ;;  %s21788_s3 = inlined_call_operand.hbm [shape: bf16[1024,512], index: 3, kind: input, shape index: {}]   ;;  %s21789_s4 = inlined_call_operand.hbm [shape: f32[1,512], index: 4, kind: input, shape index: {}]   ;;  %s21790_s5 = inlined_call_operand.hbm [shape: bf16[512,128], index: 5, kind: input, shape index: {}]   ;;  %s21791_s6 = inlined_call_operand.hbm [shape: f32[1,128], index: 6, kind: input, shape index: {}]   ;;  %s21792_s7 = inlined_call_operand.vmem [shape: f32[16,128], index: 7, kind: output, shape index: {}]  }
   0x1   :  { %21797 = sst [smem:[#allocation18_spill]] %s21787_s2 }
   0x2   :  { %21798 = sst [smem:[#allocation19_spill]] %s21789_s4 }
   0x3   :  { %12 = vsyncpa [#allocation5], 0 }
   0x4   :  { %14 = vsyncpa [#allocation5 + $0x1], 0 }
   0x5   :  { %15 = vsyncpa [#allocation7], 0 }
   0x6   :  { %16 = vsyncpa [#allocation10], 0 }
   0x7   :  { %17 = vsyncpa [#allocation13], 0  ;;  %s19583_s24 = smov 0   ;;  %s19585_s25 = smov 0  }
   0x8   :  { %s19587_s26 = smov 0   ;;  %s19589_s27 = smov 0  }
   0x9 LB: > { %s19602_s28 = sadd.s32 4294967295, %s19528_s27   ;;  %s19605_s29 = sadd.s32 1, %s19528_s27   ;;  %s19528_s27 = sphi %s19589_s27, %s21820_s27   ;;  %s19524_s26 = sphi %s19587_s26, %s21819_s26   ;;  %s19520_s25 = sphi %s19585_s25, %s21818_s25   ;;  %s19516_s24 = sphi %s19583_s24, %s21817_s24  }
   0xa   : > { %s27_s30 = ssub.s32 %s19528_s27, %s19605_s29  ;;  %s30_s8 = sadd.s32 1, %s19524_s26 }
   0xb   : > { %p28_p0 = scmp.eq.s32.totalorder %s27_s30, 0  ;;  %p37_p1 = scmp.ne.s32.totalorder %s19524_s26, %s19520_s25 }
   0xc   : > { %p38_p2 = scmp.eq.s32.totalorder %s19528_s27, 0  ;;  %p69_p3 = scmp.ne.s32.totalorder %s19520_s25, %s19516_s24 }
   0xd   : > { %s19615_s9 = scalar_select %p28_p0, %s19524_s26, %s30_s8  }
   0xe   : > { %p19617_p4 = por %p38_p2, %p37_p1  ;;  %p21793_p5 = scmp.eq.s32.totalorder %s19602_s28, 0 }
   0xf   : > { %p16314_p6 = scmp.ge.s32.totalorder %s19528_s27, 1  ;;  %p206_p7 = scmp.lt.s32.totalorder %s19528_s27, 3 }
  0x10   : > { %s21799_s10 = scalar_select %p19617_p4, 1, 0 }
  0x11   : > { %p19626_p8 = por %p21793_p5, %p69_p3  ;;  %p19631_p10 = pnand %p16314_p6, %p206_p7 }
  0x12   : > { %s19530_s13 = smov [#allocation6]   ;;  %s19531_s15 = smov [#allocation9]  }
  0x13   : > { %s21800_s11 = scalar_select %p19626_p8, 1, 0 }
  0x14   : > { %s21801_s12 = scalar_select %p19631_p10, 1, 0 }
  0x15   : > { %s219_s14 = sshll.u32 %s19530_s13, 4  ;;  %p18757_p11 = pneg %p19631_p10  ;;  %s220_s14 = int_to_ptr.vmem [resolvable:$true] %s219_s14 }
  0x16   : > { %s243_s16 = sshll.u32 %s19531_s15, 4  ;;  %s19532_s18 = smov [#allocation8]   ;;  %s19643_s16 = int_to_ptr.vmem [resolvable:$true] %s243_s16 }
  0x17   : > { %p19639_p12 = pnand %p18757_p11, %p21793_p5  ;;  %s229_s19 = sshll.u32 %s19532_s18, 4  ;;  %s19645_s19 = int_to_ptr.vmem [resolvable:$true] %s229_s19 }
  0x18   : > { %s21803_s2 = sld [smem:[#allocation18_spill]] }
  0x19   : > { %p19655_p0 = pneg %p19639_p12 }
  0x1e   : > { %s19314_s22 = scalar_lea.hbm %s21803_s2, 128 }
  0x1f   : > { %p19315_p13 = scmp.ne.s32.totalorder %s21803_s2, %s19314_s22  ;;  %p19321_p3 = scmp.lt.u32.totalorder %s19314_s22, %s21803_s2 }
  0x21   : > { %p19317_p1 = pnand %p19655_p0, %p19315_p13 }
  0x23   : > { %p19318_p2 = pneg %p19317_p1 }
  0x25   : > { %p19323_p6 = pnand %p19321_p3, %p19318_p2 }
  0x27   : > { %19326 = shalt.err (!%p19323_p6)
}
  0x28   : > { %s19327_s15 = scalar_lea.vmem %s220_s14, 128  ;;  %p19335_p5 = scmp.lt.s32.totalorder %s220_s14, %s220_s14 }
  0x29   : > { %p19328_p7 = scmp.ne.s32.totalorder %s220_s14, %s19327_s15  ;;  %p19336_p8 = scmp.lt.s32.totalorder %s19327_s15, %s19327_s15 }
  0x2b   : > { %p19330_p11 = pnand %p19328_p7, %p19655_p0  ;;  %p19337_p10 = por %p19336_p8, %p19335_p5 }
  0x2d   : > { %p19331_p9 = pneg %p19330_p11 }
  0x2f   : > { %p19338_p4 = pnand %p19337_p10, %p19331_p9 }
  0x31   : > { %19341 = shalt.err (!%p19338_p4)
}
  0x32   : > { %18760 = dma.hbm_to_vmem [thread:$0]  (!%p19639_p12), %s21803_s2, 128, %s220_s14, [#allocation7]  }
  0x33   : > { %s21805_s4 = sld [smem:[#allocation19_spill]] }
  0x39   : > { %s19342_s23 = scalar_lea.hbm %s21805_s4, 64 }
  0x3a   : > { %p19343_p13 = scmp.ne.s32.totalorder %s21805_s4, %s19342_s23  ;;  %p19349_p4 = scmp.lt.u32.totalorder %s19342_s23, %s21805_s4 }
  0x3c   : > { %p19345_p1 = pnand %p19343_p13, %p19655_p0 }
  0x3e   : > { %p19346_p5 = pneg %p19345_p1 }
  0x40   : > { %p19351_p8 = pnand %p19349_p4, %p19346_p5 }
  0x42   : > { %19354 = shalt.err (!%p19351_p8)
}
  0x43   : > { %s19355_s14 = scalar_lea.vmem %s19643_s16, 64  ;;  %p19363_p3 = scmp.lt.s32.totalorder %s19643_s16, %s19643_s16 }
  0x44   : > { %p19356_p9 = scmp.ne.s32.totalorder %s19643_s16, %s19355_s14  ;;  %p19364_p6 = scmp.lt.s32.totalorder %s19355_s14, %s19355_s14 }
  0x46   : > { %p19358_p10 = pnand %p19356_p9, %p19655_p0  ;;  %p19365_p7 = por %p19364_p6, %p19363_p3 }
  0x48   : > { %p19359_p2 = pneg %p19358_p10 }
  0x4a   : > { %p19366_p11 = pnand %p19365_p7, %p19359_p2 }
  0x4c   : > { %19369 = shalt.err (!%p19366_p11)
}
  0x4d   : > { %18766 = dma.hbm_to_vmem [thread:$0]  (!%p19639_p12), %s21805_s4, 64, %s19643_s16, [#allocation10]  }
  0x4e   : > { %s19370_s23 = scalar_lea.hbm %s21788_s3, 32768 }
  0x4f   : > { %p19371_p13 = scmp.ne.s32.totalorder %s21788_s3, %s19370_s23  ;;  %p19377_p4 = scmp.lt.u32.totalorder %s19370_s23, %s21788_s3 }
  0x51   : > { %p19373_p1 = pnand %p19371_p13, %p19655_p0 }
  0x53   : > { %p19374_p5 = pneg %p19373_p1 }
  0x55   : > { %p19379_p8 = pnand %p19377_p4, %p19374_p5 }
  0x57   : > { %19382 = shalt.err (!%p19379_p8)
}
  0x58   : > { %s19383_s16 = scalar_lea.vmem %s19645_s19, 32768  ;;  %p19391_p3 = scmp.lt.s32.totalorder %s19645_s19, %s19645_s19 }
  0x59   : > { %p19384_p9 = scmp.ne.s32.totalorder %s19645_s19, %s19383_s16  ;;  %p19392_p6 = scmp.lt.s32.totalorder %s19383_s16, %s19383_s16 }
  0x5b   : > { %p19386_p10 = pnand %p19384_p9, %p19655_p0  ;;  %p19393_p7 = por %p19392_p6, %p19391_p3 }
  0x5d   : > { %p19387_p2 = pneg %p19386_p10 }
  0x5f   : > { %p19394_p11 = pnand %p19393_p7, %p19387_p2 }
  0x61   : > { %19397 = shalt.err (!%p19394_p11)
}
  0x62   : > { %s19533_s14 = smov 256   ;;  %s19534_s18 = smov 16  }
  0x63   : > { %18763 = dma.hbm_to_vmem [thread:$0]  (!%p19639_p12), %s21788_s3, 32768, %s19645_s19, [#allocation7], %s19533_s14, %s19533_s14, %s19534_s18  }
  0x64   : > { %s19535_s22 = smov [#allocation11]   ;;  %s19398_s13 = scalar_lea.hbm %s21790_s5, 4096 }
  0x65   : > { %s253_s23 = sshll.u32 %s19535_s22, 4  ;;  %p19399_p13 = scmp.ne.s32.totalorder %s21790_s5, %s19398_s13  ;;  %s254_s23 = int_to_ptr.vmem [resolvable:$true] %s253_s23 }
  0x66   : > { %p19405_p4 = scmp.lt.u32.totalorder %s19398_s13, %s21790_s5 }
  0x67   : > { %p19401_p1 = pnand %p19399_p13, %p19655_p0 }
  0x69   : > { %p19402_p5 = pneg %p19401_p1 }
  0x6b   : > { %p19407_p8 = pnand %p19405_p4, %p19402_p5 }
  0x6d   : > { %19410 = shalt.err (!%p19407_p8)
}
  0x6e   : > { %s19411_s19 = scalar_lea.vmem %s254_s23, 4096  ;;  %p19419_p3 = scmp.lt.s32.totalorder %s254_s23, %s254_s23 }
  0x6f   : > { %p19412_p9 = scmp.ne.s32.totalorder %s254_s23, %s19411_s19  ;;  %p19420_p6 = scmp.lt.s32.totalorder %s19411_s19, %s19411_s19 }
  0x71   : > { %p19414_p10 = pnand %p19412_p9, %p19655_p0  ;;  %p19421_p7 = por %p19420_p6, %p19419_p3 }
  0x73   : > { %p19415_p2 = pneg %p19414_p10 }
  0x75   : > { %p19422_p11 = pnand %p19421_p7, %p19415_p2 }
  0x77   : > { %19425 = shalt.err (!%p19422_p11)
}
  0x78   : > { %s19536_s14 = smov 64   ;;  %s19537_s18 = smov 4  }
  0x79   : > { %18769 = dma.hbm_to_vmem [thread:$0]  (!%p19639_p12), %s21790_s5, 4096, %s254_s23, [#allocation10], %s19536_s14, %s19536_s14, %s19537_s18  }
  0x7a   : > { %s19538_s20 = smov [#allocation12]   ;;  %s19426_s8 = scalar_lea.hbm %s21791_s6, 16 }
  0x7b   : > { %s267_s21 = sshll.u32 %s19538_s20, 4  ;;  %p19427_p13 = scmp.ne.s32.totalorder %s21791_s6, %s19426_s8  ;;  %s268_s21 = int_to_ptr.vmem [resolvable:$true] %s267_s21 }
  0x7c   : > { %p19433_p4 = scmp.lt.u32.totalorder %s19426_s8, %s21791_s6 }
  0x7d   : > { %p19429_p1 = pnand %p19427_p13, %p19655_p0 }
  0x7f   : > { %p19430_p5 = pneg %p19429_p1 }
  0x81   : > { %p19435_p8 = pnand %p19433_p4, %p19430_p5 }
  0x83   : > { %19438 = shalt.err (!%p19435_p8)
}
  0x84   : > { %s19439_s23 = scalar_lea.vmem %s268_s21, 16  ;;  %s19446_s14 = scalar_lea.vmem %s268_s21, 32 }
  0x85   : > { %p19440_p9 = scmp.ne.s32.totalorder %s268_s21, %s19439_s23  ;;  %p19447_p3 = scmp.lt.s32.totalorder %s268_s21, %s268_s21 }
  0x86   : > { %p19448_p6 = scmp.lt.s32.totalorder %s19446_s14, %s19439_s23 }
  0x87   : > { %p19442_p10 = pnand %p19440_p9, %p19655_p0 }
  0x88   : > { %p19449_p7 = por %p19448_p6, %p19447_p3 }
  0x89   : > { %p19443_p2 = pneg %p19442_p10 }
  0x8b   : > { %p19450_p11 = pnand %p19449_p7, %p19443_p2 }
  0x8d   : > { %19453 = shalt.err (!%p19450_p11)
}
  0x8e   : > { %18772 = dma.hbm_to_vmem [thread:$0]  (!%p19639_p12), %s21791_s6, 16, %s268_s21, [#allocation13]  }
  0x8f   : > { %p16320_p13 = scmp.ge.s32.totalorder %s19528_s27, 2 }
  0x90   : > { %p21806_p1 = scmp.ne.s32.totalorder (!%p16320_p13), %s21799_s10, 0 }
  0x91   : > { %274 = sbr.rel (%p16320_p13) target bundleno = 198 (0xc6), region = 36 }
  0x98   : > { %277 = sbr.rel (!%p21806_p1) target bundleno = 171 (0xab), region = 40  ;;  %s279_s30 = sand.u32 (%p21806_p1), 1, %s19524_s26  }
  0x99   : > { %s18443_s4 = smul.u32 (%p21806_p1), 112, %s19528_s27 }
  0x9a   : > { %s18731_s20 = smul.u32 (%p21806_p1), 224, %s279_s30 }
  0x9b   : > { %s19761_s8 = scalar_lea.vmem (%p21806_p1), %s21785_s0, %s18443_s4 }
  0x9c   : > { %v297_v0 = vld [vmem:[%s19761_s8] sm:$0xff] (%p21806_p1)  ;;  %v299_v1 = vld [vmem:[%s19761_s8 + $0x8] sm:$0xff] (%p21806_p1)  ;;  %v301_v2 = vld [vmem:[%s19761_s8 + $0x10] sm:$0xff] (%p21806_p1)  ;;  %s19766_s17 = scalar_lea.vmem (%p21806_p1), [#allocation3], %s18731_s20 }
  0x9d   : > { %298 = vst [vmem:[%s19766_s17] sm:$0xff] (%p21806_p1), %v297_v0  ;;  %300 = vst [vmem:[%s19766_s17 + $0x8] sm:$0xff] (%p21806_p1), %v299_v1  ;;  %v303_v3 = vld [vmem:[%s19761_s8 + $0x18] sm:$0xff] (%p21806_p1)  ;;  %v305_v4 = vld [vmem:[%s19761_s8 + $0x20] sm:$0xff] (%p21806_p1) }
  0x9e   : > { %302 = vst [vmem:[%s19766_s17 + $0x10] sm:$0xff] (%p21806_p1), %v301_v2  ;;  %v307_v5 = vld [vmem:[%s19761_s8 + $0x28] sm:$0xff] (%p21806_p1)  ;;  %304 = vst [vmem:[%s19766_s17 + $0x18] sm:$0xff] (%p21806_p1), %v303_v3  ;;  %v309_v6 = vld [vmem:[%s19761_s8 + $0x30] sm:$0xff] (%p21806_p1) }
  0x9f   : > { %306 = vst [vmem:[%s19766_s17 + $0x20] sm:$0xff] %v305_v4  ;;  %308 = vst [vmem:[%s19766_s17 + $0x28] sm:$0xff] %v307_v5  ;;  %v311_v7 = vld [vmem:[%s19761_s8 + $0x38] sm:$0xff]  ;;  %v313_v8 = vld [vmem:[%s19761_s8 + $0x40] sm:$0xff] }
  0xa0   : > { %310 = vst [vmem:[%s19766_s17 + $0x30] sm:$0xff] %v309_v6  ;;  %312 = vst [vmem:[%s19766_s17 + $0x38] sm:$0xff] %v311_v7  ;;  %v315_v9 = vld [vmem:[%s19761_s8 + $0x48] sm:$0xff]  ;;  %v317_v10 = vld [vmem:[%s19761_s8 + $0x50] sm:$0xff] }
  0xa1   : > { %314 = vst [vmem:[%s19766_s17 + $0x40] sm:$0xff] %v313_v8  ;;  %v319_v11 = vld [vmem:[%s19761_s8 + $0x58] sm:$0xff]  ;;  %316 = vst [vmem:[%s19766_s17 + $0x48] sm:$0xff] %v315_v9  ;;  %v321_v12 = vld [vmem:[%s19761_s8 + $0x60] sm:$0xff] }
  0xa2   : > { %318 = vst [vmem:[%s19766_s17 + $0x50] sm:$0xff] %v317_v10  ;;  %320 = vst [vmem:[%s19766_s17 + $0x58] sm:$0xff] %v319_v11  ;;  %v323_v13 = vld [vmem:[%s19761_s8 + $0x68] sm:$0xff]  ;;  %v325_v14 = vld [vmem:[%s19761_s8 + $0xe0] sm:$0xff] }
  0xa3   : > { %322 = vst [vmem:[%s19766_s17 + $0x60] sm:$0xff] %v321_v12  ;;  %324 = vst [vmem:[%s19766_s17 + $0x68] sm:$0xff] %v323_v13  ;;  %v327_v15 = vld [vmem:[%s19761_s8 + $0xe8] sm:$0xff]  ;;  %v329_v16 = vld [vmem:[%s19761_s8 + $0xf0] sm:$0xff] }
  0xa4   : > { %326 = vst [vmem:[%s19766_s17 + $0x70] sm:$0xff] %v325_v14  ;;  %v331_v17 = vld [vmem:[%s19761_s8 + $0xf8] sm:$0xff]  ;;  %328 = vst [vmem:[%s19766_s17 + $0x78] sm:$0xff] %v327_v15  ;;  %v333_v18 = vld [vmem:[%s19761_s8 + $0x100] sm:$0xff] }
  0xa5   : > { %330 = vst [vmem:[%s19766_s17 + $0x80] sm:$0xff] %v329_v16  ;;  %332 = vst [vmem:[%s19766_s17 + $0x88] sm:$0xff] %v331_v17  ;;  %v335_v19 = vld [vmem:[%s19761_s8 + $0x108] sm:$0xff]  ;;  %v337_v20 = vld [vmem:[%s19761_s8 + $0x110] sm:$0xff] }
  0xa6   : > { %334 = vst [vmem:[%s19766_s17 + $0x90] sm:$0xff] %v333_v18  ;;  %336 = vst [vmem:[%s19766_s17 + $0x98] sm:$0xff] %v335_v19  ;;  %v339_v21 = vld [vmem:[%s19761_s8 + $0x118] sm:$0xff]  ;;  %v341_v22 = vld [vmem:[%s19761_s8 + $0x120] sm:$0xff] }
  0xa7   : > { %338 = vst [vmem:[%s19766_s17 + $0xa0] sm:$0xff] %v337_v20  ;;  %v343_v23 = vld [vmem:[%s19761_s8 + $0x128] sm:$0xff]  ;;  %340 = vst [vmem:[%s19766_s17 + $0xa8] sm:$0xff] %v339_v21  ;;  %v345_v24 = vld [vmem:[%s19761_s8 + $0x130] sm:$0xff] }
  0xa8   : > { %342 = vst [vmem:[%s19766_s17 + $0xb0] sm:$0xff] %v341_v22  ;;  %344 = vst [vmem:[%s19766_s17 + $0xb8] sm:$0xff] %v343_v23  ;;  %v347_v25 = vld [vmem:[%s19761_s8 + $0x138] sm:$0xff]  ;;  %v349_v26 = vld [vmem:[%s19761_s8 + $0x140] sm:$0xff] }
  0xa9   : > { %346 = vst [vmem:[%s19766_s17 + $0xc0] sm:$0xff] %v345_v24  ;;  %348 = vst [vmem:[%s19766_s17 + $0xc8] sm:$0xff] %v347_v25  ;;  %v351_v27 = vld [vmem:[%s19761_s8 + $0x148] sm:$0xff] }
  0xaa   : > { %350 = vst [vmem:[%s19766_s17 + $0xd0] sm:$0xff] %v349_v26  ;;  %352 = vst [vmem:[%s19766_s17 + $0xd8] sm:$0xff] %v351_v27 }
  0xab PF: > { %s359_s21 = sand.u32 1, %s19524_s26   ;;  %s18446_s13 = smul.u32 229376, %s19528_s27 }
  0xac   : > { %s18732_s15 = smul.u32 14336, %s359_s21  ;;  %s19830_s2 = scalar_lea.sflag [#allocation5], %s359_s21 }
  0xad   : > { %s19826_s23 = scalar_lea.hbm %s21786_s1, %s18446_s13  ;;  %p21807_p0 = scmp.ne.s32.totalorder %s21799_s10, 0 }
  0xae   : > { %s363_s14 = scalar_lea.vmem [#allocation4], %s18732_s15  ;;  %s19454_s30 = scalar_lea.hbm %s19826_s23, 229376 }
  0xaf   : > { %s371_s18 = sshll.u32 %s363_s14, 4  ;;  %p19455_p12 = scmp.ne.s32.totalorder %s19826_s23, %s19454_s30  ;;  %s19828_s18 = int_to_ptr.vmem [resolvable:$true] %s371_s18 }
  0xb0   : > { %s19458_s20 = scalar_lea.hbm %s21786_s1, 458752  ;;  %p19459_p8 = scmp.lt.u32.totalorder %s19826_s23, %s21786_s1 }
  0xb1   : > { %p19456_p5 = pnand %p19455_p12, %p21807_p0  ;;  %p19460_p9 = scmp.lt.u32.totalorder %s19458_s20, %s19454_s30 }
  0xb2   : > { %p19462_p2 = scmp.lt.u32.totalorder %s19454_s30, %s19826_s23 }
  0xb3   : > { %p19457_p4 = pneg %p19456_p5  ;;  %p19461_p10 = por %p19460_p9, %p19459_p8 }
  0xb5   : > { %p19463_p3 = por %p19462_p2, %p19461_p10 }
  0xb7   : > { %p19464_p6 = pnand %p19463_p3, %p19457_p4 }
  0xb9   : > { %19467 = shalt.err (!%p19464_p6)
}
  0xba   : > { %s19468_s8 = scalar_lea.vmem %s19828_s18, 229376  ;;  %s19539_s17 = smov [#allocation4]  }
  0xbb   : > { %p19469_p7 = scmp.ne.s32.totalorder %s19828_s18, %s19468_s8  ;;  %s19472_s21 = sshll.u32 %s19539_s17, 4  ;;  %s19473_s21 = int_to_ptr.vmem [resolvable:$false] %s19472_s21 }
  0xbc   : > { %s19474_s13 = scalar_lea.vmem %s19473_s21, 458752  ;;  %p19475_p1 = scmp.lt.s32.totalorder %s19828_s18, %s19473_s21 }
  0xbd   : > { %p19470_p11 = pnand %p19469_p7, %p21807_p0  ;;  %p19476_p12 = scmp.lt.s32.totalorder %s19474_s13, %s19468_s8 }
  0xbf   : > { %p19471_p13 = pneg %p19470_p11  ;;  %p19477_p5 = por %p19476_p12, %p19475_p1 }
  0xc1   : > { %p19478_p8 = pnand %p19477_p5, %p19471_p13 }
  0xc3   : > { %19481 = shalt.err (!%p19478_p8)
}
  0xc4   : > { %s19540_s15 = smov 512   ;;  %s19541_s16 = smov 32  }
  0xc5   : > { %18745 = dma.hbm_to_vmem [thread:$0]  (%p21807_p0), %s19826_s23, 229376, %s19828_s18, %s19830_s2, %s19540_s15, %s19540_s15, %s19541_s16  }
  0xc6 PF: > { %p21808_p4 = scmp.ne.s32.totalorder %s21801_s12, 0 }
  0xc7   : > { %s386_s19 = sand.u32 (!%p21808_p4), 1, %s19520_s25   ;;  %p21809_p9 = scmp.ne.s32.totalorder (!%p21808_p4), %s21800_s11, 0 }
  0xc8   : > { %383 = sbr.rel (%p21808_p4) target bundleno = 2897 (0xb51), region = 67  ;;  %s393_s4 = scalar_lea.sflag (!%p21808_p4), [#allocation5], %s386_s19 }
  0xc9   : > { %s18733_s14 = smul.u32 (!%p21808_p4), 224, %s386_s19 }
  0xca   : > { %s18734_s30 = smul.u32 (!%p21808_p4), 14336, %s386_s19 }
  0xcb   : > { %s19857_s27 = scalar_lea.vmem (!%p21808_p4), [#allocation3], %s18733_s14 }
  0xcc   : > { %s19859_s20 = scalar_lea.vmem (!%p21808_p4), [#allocation4], %s18734_s30 }
  0xcf   : > { %19499 = dma.done.wait (%p21809_p9), %s393_s4, 229376  }
  0xd0   : > { %19501 = vsyncadd (%p21809_p9), %s393_s4, 4294737920  ;;  %p21810_p0 = scmp.eq.s32.totalorder %s19602_s28, 0 }
  0xd2   : > { %19503 = dma.done.wait (%p21810_p0), [#allocation7], 32896   ;;  %p21811_p10 = pmov %p21810_p0 }
  0xd3   : > { %p21812_p2 = pmov %p21810_p0 }
  0xd4   : > { %19505 = vsyncadd (%p21811_p10), [#allocation7], 4294934400 }
  0xd5   : > { %19507 = dma.done.wait (%p21812_p2), [#allocation10], 4160   ;;  %p21813_p3 = pmov %p21810_p0 }
  0xd6   : > { %p21814_p6 = pmov %p21810_p0 }
  0xd7   : > { %19509 = vsyncadd (%p21813_p3), [#allocation10], 4294963136 }
  0xd8   : > { %19511 = dma.done.wait (%p21814_p6), [#allocation13], 16   ;;  %p21815_p7 = pmov %p21810_p0 }
  0xd9   : > { %p21816_p11 = scmp.ne.s32.totalorder %s19602_s28, 0 }
  0xda   : > { %19513 = vsyncadd (%p21815_p7), [#allocation13], 4294967280  ;;  %v19542_v28 = vmov (!%p21816_p11), 0.0  }
  0xdb   : > { %452 = sbr.rel (%p21816_p11) target bundleno = 227 (0xe3), region = 99  ;;  %453 = vst [vmem:[#allocation2] sm:$0xff] (!%p21816_p11), %v19542_v28  ;;  %454 = vst [vmem:[#allocation2 + $0x8] sm:$0xff] (!%p21816_p11), %v19542_v28 }
  0xdc   : > { %455 = vst [vmem:[#allocation2 + $0x10] sm:$0xff] (!%p21816_p11), %v19542_v28  ;;  %456 = vst [vmem:[#allocation2 + $0x18] sm:$0xff] (!%p21816_p11), %v19542_v28 }
  0xdd   : > { %457 = vst [vmem:[#allocation2 + $0x20] sm:$0xff] (!%p21816_p11), %v19542_v28  ;;  %458 = vst [vmem:[#allocation2 + $0x28] sm:$0xff] (!%p21816_p11), %v19542_v28 }
  0xde   : > { %459 = vst [vmem:[#allocation2 + $0x30] sm:$0xff] (!%p21816_p11), %v19542_v28  ;;  %460 = vst [vmem:[#allocation2 + $0x38] sm:$0xff] (!%p21816_p11), %v19542_v28 }
  0xdf   : > { %461 = vst [vmem:[#allocation2 + $0x40] sm:$0xff] (!%p21816_p11), %v19542_v28  ;;  %462 = vst [vmem:[#allocation2 + $0x48] sm:$0xff] (!%p21816_p11), %v19542_v28 }
  0xe0   : > { %463 = vst [vmem:[#allocation2 + $0x50] sm:$0xff] (!%p21816_p11), %v19542_v28  ;;  %464 = vst [vmem:[#allocation2 + $0x58] sm:$0xff] (!%p21816_p11), %v19542_v28 }
  0xe1   : > { %465 = vst [vmem:[#allocation2 + $0x60] sm:$0xff] (!%p21816_p11), %v19542_v28  ;;  %466 = vst [vmem:[#allocation2 + $0x68] sm:$0xff] (!%p21816_p11), %v19542_v28 }
  0xe2   : > { %467 = vst [vmem:[#allocation2 + $0x70] sm:$0xff] %v19542_v28  ;;  %468 = vst [vmem:[#allocation2 + $0x78] sm:$0xff] %v19542_v28 }
  0xe3 PF: > { %v513_v29 = vld [vmem:[%s19859_s20] sm:$0xff]  ;;  %v514_v31 = vld [vmem:[%s19859_s20 + $0x8] sm:$0xff]  ;;  %p18151_p13 = scmp.ne.s32.totalorder %s19602_s28, 1 }
  0xe4   : > { %v517_v30 = vld [vmem:[%s19859_s20 + $0x20] sm:$0xff]  ;;  %v518_v33 = vld [vmem:[%s19859_s20 + $0x28] sm:$0xff] }
  0xe5   : > { %v16360_v32 = vcombine.high %v513_v29, %v517_v30  ;;  %v16359_v34 = vcombine.low %v513_v29, %v517_v30  ;;  %v521_v35 = vld [vmem:[%s19859_s20 + $0x40] sm:$0xff]  ;;  %v16362_v37 = vcombine.high %v514_v31, %v518_v33  ;;  %v16361_v38 = vcombine.low %v514_v31, %v518_v33  ;;  %v522_v40 = vld [vmem:[%s19859_s20 + $0x48] sm:$0xff] }
  0xe6   : > { %v525_v36 = vld [vmem:[%s19859_s20 + $0x60] sm:$0xff]  ;;  %v526_v41 = vld [vmem:[%s19859_s20 + $0x68] sm:$0xff] }
  0xe7   : > { %v16368_v39 = vcombine.high %v521_v35, %v525_v36  ;;  %v529_v42 = vld [vmem:[%s19859_s20 + $0x80] sm:$0xff]  ;;  %11405 = vmatprep.subr.bf16.mxu0 %v16360_v32  ;;  %v16370_v43 = vcombine.high %v522_v40, %v526_v41  ;;  %v530_v45 = vld [vmem:[%s19859_s20 + $0x88] sm:$0xff]  ;;  %12007 = vmatprep.subr.bf16.mxu1 %v16362_v37  ;;  %v16367_v47 = vcombine.low %v521_v35, %v525_v36 }
  0xe8   : > { %v533_v44 = vld [vmem:[%s19859_s20 + $0xa0] sm:$0xff]  ;;  %v534_v46 = vld [vmem:[%s19859_s20 + $0xa8] sm:$0xff]  ;;  %11406 = vmatpush1.bf16.msra.mxu0 %v16359_v34  ;;  %12008 = vmatpush1.bf16.msra.mxu1 %v16361_v38  ;;  %v16369_v48 = vcombine.low %v522_v40, %v526_v41 }
  0xe9   : > { %11407 = vmatprep.subr.bf16.mxu0 %v16368_v39  ;;  %v16376_v49 = vcombine.high %v529_v42, %v533_v44  ;;  %12009 = vmatprep.subr.bf16.mxu1 %v16370_v43  ;;  %v16378_v50 = vcombine.high %v530_v45, %v534_v46  ;;  %v537_v51 = vld [vmem:[%s19859_s20 + $0xc0] sm:$0xff]  ;;  %v538_v53 = vld [vmem:[%s19859_s20 + $0xc8] sm:$0xff]  ;;  %v16375_v55 = vcombine.low %v529_v42, %v533_v44 }
  0xea   : > { %v541_v52 = vld [vmem:[%s19859_s20 + $0xe0] sm:$0xff]  ;;  %v542_v54 = vld [vmem:[%s19859_s20 + $0xe8] sm:$0xff]  ;;  %v16377_v56 = vcombine.low %v530_v45, %v534_v46 }
  0xeb   : > { %v16384_v57 = vcombine.high %v537_v51, %v541_v52  ;;  %v16386_v58 = vcombine.high %v538_v53, %v542_v54  ;;  %v545_v59 = vld [vmem:[%s19859_s20 + $0x100] sm:$0xff]  ;;  %v546_v61 = vld [vmem:[%s19859_s20 + $0x108] sm:$0xff]  ;;  %v16383_v63 = vcombine.low %v537_v51, %v541_v52  ;;  %v16385_v0 = vcombine.low %v538_v53, %v542_v54 }
  0xec   : > { %11408 = vmatpush1.bf16.msra.mxu0 %v16367_v47  ;;  %12010 = vmatpush1.bf16.msra.mxu1 %v16369_v48  ;;  %v549_v60 = vld [vmem:[%s19859_s20 + $0x120] sm:$0xff]  ;;  %v550_v62 = vld [vmem:[%s19859_s20 + $0x128] sm:$0xff] }
  0xed   : > { %11409 = vmatprep.subr.bf16.mxu0 %v16376_v49  ;;  %12011 = vmatprep.subr.bf16.mxu1 %v16378_v50  ;;  %v16392_v1 = vcombine.high %v545_v59, %v549_v60  ;;  %v16394_v2 = vcombine.high %v546_v61, %v550_v62  ;;  %v553_v3 = vld [vmem:[%s19859_s20 + $0x140] sm:$0xff]  ;;  %v554_v5 = vld [vmem:[%s19859_s20 + $0x148] sm:$0xff]  ;;  %v16391_v7 = vcombine.low %v545_v59, %v549_v60 }
  0xee   : > { %v557_v4 = vld [vmem:[%s19859_s20 + $0x160] sm:$0xff]  ;;  %v558_v6 = vld [vmem:[%s19859_s20 + $0x168] sm:$0xff]  ;;  %v16393_v8 = vcombine.low %v546_v61, %v550_v62 }
  0xef   : > { %v16400_v9 = vcombine.high %v553_v3, %v557_v4  ;;  %v16402_v10 = vcombine.high %v554_v5, %v558_v6  ;;  %v561_v11 = vld [vmem:[%s19859_s20 + $0x180] sm:$0xff]  ;;  %v562_v13 = vld [vmem:[%s19859_s20 + $0x188] sm:$0xff]  ;;  %v16399_v15 = vcombine.low %v553_v3, %v557_v4  ;;  %v16401_v16 = vcombine.low %v554_v5, %v558_v6 }
  0xf0   : > { %11410 = vmatpush1.bf16.msra.mxu0 %v16375_v55  ;;  %12012 = vmatpush1.bf16.msra.mxu1 %v16377_v56  ;;  %v565_v12 = vld [vmem:[%s19859_s20 + $0x1a0] sm:$0xff]  ;;  %v566_v14 = vld [vmem:[%s19859_s20 + $0x1a8] sm:$0xff] }
  0xf1   : > { %11411 = vmatprep.subr.bf16.mxu0 %v16384_v57  ;;  %12013 = vmatprep.subr.bf16.mxu1 %v16386_v58  ;;  %v16408_v17 = vcombine.high %v561_v11, %v565_v12  ;;  %v16410_v18 = vcombine.high %v562_v13, %v566_v14  ;;  %v569_v19 = vld [vmem:[%s19859_s20 + $0x1c0] sm:$0xff]  ;;  %v570_v22 = vld [vmem:[%s19859_s20 + $0x1c8] sm:$0xff]  ;;  %v16407_v24 = vcombine.low %v561_v11, %v565_v12 }
  0xf2   : > { %v573_v20 = vld [vmem:[%s19859_s20 + $0x1e0] sm:$0xff]  ;;  %v574_v23 = vld [vmem:[%s19859_s20 + $0x1e8] sm:$0xff]  ;;  %v16409_v25 = vcombine.low %v562_v13, %v566_v14 }
  0xf3   : > { %v18827_v21 = vld [vmem:[%s19857_s27 + $0x4] ss:$112 sps:$4 sm:$0xff]   ;;  %v16416_v26 = vcombine.high %v569_v19, %v573_v20  ;;  %v16418_v27 = vcombine.high %v570_v22, %v574_v23  ;;  %v578_v30 = vld [vmem:[%s19859_s20 + $0x208] sm:$0xff]  ;;  %v16415_v32 = vcombine.low %v569_v19, %v573_v20  ;;  %v16417_v33 = vcombine.low %v570_v22, %v574_v23 }
  0xf4   : > { %11412 = vmatpush1.bf16.msra.mxu0 %v16383_v63  ;;  %12014 = vmatpush1.bf16.msra.mxu1 %v16385_v0  ;;  %v577_v28 = vld [vmem:[%s19859_s20 + $0x200] sm:$0xff]  ;;  %v582_v31 = vld [vmem:[%s19859_s20 + $0x228] sm:$0xff] }
  0xf5   : > { %11413 = vmatprep.subr.bf16.mxu0 %v16392_v1  ;;  %12015 = vmatprep.subr.bf16.mxu1 %v16394_v2  ;;  %v581_v29 = vld [vmem:[%s19859_s20 + $0x220] sm:$0xff]  ;;  %v16426_v35 = vcombine.high %v578_v30, %v582_v31  ;;  %v586_v38 = vld [vmem:[%s19859_s20 + $0x248] sm:$0xff]  ;;  %v16425_v41 = vcombine.low %v578_v30, %v582_v31 }
  0xf6   : > { %11437 = vmatprep.mubr.bf16.mxu0 %v18827_v21  ;;  %12039 = vmatprep.mubr.bf16.mxu1 %v18827_v21  ;;  %v16424_v34 = vcombine.high %v577_v28, %v581_v29  ;;  %v585_v36 = vld [vmem:[%s19859_s20 + $0x240] sm:$0xff]  ;;  %v590_v39 = vld [vmem:[%s19859_s20 + $0x268] sm:$0xff]  ;;  %v16423_v40 = vcombine.low %v577_v28, %v581_v29 }
  0xf7   : > { %v589_v37 = vld [vmem:[%s19859_s20 + $0x260] sm:$0xff]  ;;  %v16434_v43 = vcombine.high %v586_v38, %v590_v39  ;;  %v594_v46 = vld [vmem:[%s19859_s20 + $0x288] sm:$0xff]  ;;  %v16433_v49 = vcombine.low %v586_v38, %v590_v39 }
  0xf8   : > { %11414 = vmatpush1.bf16.msra.mxu0 %v16391_v7  ;;  %12016 = vmatpush1.bf16.msra.mxu1 %v16393_v8  ;;  %v16432_v42 = vcombine.high %v585_v36, %v589_v37  ;;  %v593_v44 = vld [vmem:[%s19859_s20 + $0x280] sm:$0xff]  ;;  %v598_v47 = vld [vmem:[%s19859_s20 + $0x2a8] sm:$0xff]  ;;  %v16431_v48 = vcombine.low %v585_v36, %v589_v37 }
  0xf9   : > { %11415 = vmatprep.subr.bf16.mxu0 %v16400_v9  ;;  %12017 = vmatprep.subr.bf16.mxu1 %v16402_v10  ;;  %v597_v45 = vld [vmem:[%s19859_s20 + $0x2a0] sm:$0xff]  ;;  %v16442_v51 = vcombine.high %v594_v46, %v598_v47  ;;  %v602_v54 = vld [vmem:[%s19859_s20 + $0x2c8] sm:$0xff]  ;;  %v16441_v57 = vcombine.low %v594_v46, %v598_v47 }
  0xfa   : > { %v16440_v50 = vcombine.high %v593_v44, %v597_v45  ;;  %v601_v52 = vld [vmem:[%s19859_s20 + $0x2c0] sm:$0xff]  ;;  %v606_v55 = vld [vmem:[%s19859_s20 + $0x2e8] sm:$0xff]  ;;  %v16439_v56 = vcombine.low %v593_v44, %v597_v45 }
  0xfb   : > { %v605_v53 = vld [vmem:[%s19859_s20 + $0x2e0] sm:$0xff]  ;;  %v16450_v59 = vcombine.high %v602_v54, %v606_v55  ;;  %v610_v62 = vld [vmem:[%s19859_s20 + $0x308] sm:$0xff]  ;;  %v16449_v1 = vcombine.low %v602_v54, %v606_v55 }
  0xfc   : > { %11416 = vmatpush1.bf16.msra.mxu0 %v16399_v15  ;;  %12018 = vmatpush1.bf16.msra.mxu1 %v16401_v16  ;;  %v16448_v58 = vcombine.high %v601_v52, %v605_v53  ;;  %v609_v60 = vld [vmem:[%s19859_s20 + $0x300] sm:$0xff]  ;;  %v614_v63 = vld [vmem:[%s19859_s20 + $0x328] sm:$0xff]  ;;  %v16447_v0 = vcombine.low %v601_v52, %v605_v53 }
  0xfd   : > { %11417 = vmatprep.subr.bf16.mxu0 %v16408_v17  ;;  %12019 = vmatprep.subr.bf16.mxu1 %v16410_v18  ;;  %v613_v61 = vld [vmem:[%s19859_s20 + $0x320] sm:$0xff]  ;;  %v16458_v3 = vcombine.high %v610_v62, %v614_v63  ;;  %v618_v6 = vld [vmem:[%s19859_s20 + $0x348] sm:$0xff]  ;;  %v16457_v9 = vcombine.low %v610_v62, %v614_v63 }
  0xfe   : > { %v16456_v2 = vcombine.high %v609_v60, %v613_v61  ;;  %v617_v4 = vld [vmem:[%s19859_s20 + $0x340] sm:$0xff]  ;;  %v622_v7 = vld [vmem:[%s19859_s20 + $0x368] sm:$0xff]  ;;  %v16455_v8 = vcombine.low %v609_v60, %v613_v61 }
  0xff   : > { %v621_v5 = vld [vmem:[%s19859_s20 + $0x360] sm:$0xff]  ;;  %v16466_v11 = vcombine.high %v618_v6, %v622_v7  ;;  %v626_v14 = vld [vmem:[%s19859_s20 + $0x388] sm:$0xff]  ;;  %v16465_v17 = vcombine.low %v618_v6, %v622_v7 }
 0x100   : > { %11418 = vmatpush1.bf16.msra.mxu0 %v16407_v24  ;;  %12020 = vmatpush1.bf16.msra.mxu1 %v16409_v25  ;;  %v16464_v10 = vcombine.high %v617_v4, %v621_v5  ;;  %v625_v12 = vld [vmem:[%s19859_s20 + $0x380] sm:$0xff]  ;;  %v630_v15 = vld [vmem:[%s19859_s20 + $0x3a8] sm:$0xff]  ;;  %v16463_v16 = vcombine.low %v617_v4, %v621_v5 }
 0x101   : > { %11419 = vmatprep.subr.bf16.mxu0 %v16416_v26  ;;  %12021 = vmatprep.subr.bf16.mxu1 %v16418_v27  ;;  %v629_v13 = vld [vmem:[%s19859_s20 + $0x3a0] sm:$0xff]  ;;  %v16474_v19 = vcombine.high %v626_v14, %v630_v15  ;;  %v634_v22 = vld [vmem:[%s19859_s20 + $0x3c8] sm:$0xff]  ;;  %v16473_v25 = vcombine.low %v626_v14, %v630_v15 }
 0x102   : > { %v16472_v18 = vcombine.high %v625_v12, %v629_v13  ;;  %v633_v20 = vld [vmem:[%s19859_s20 + $0x3c0] sm:$0xff]  ;;  %v638_v23 = vld [vmem:[%s19859_s20 + $0x3e8] sm:$0xff]  ;;  %v16471_v24 = vcombine.low %v625_v12, %v629_v13 }
 0x103   : > { %v637_v21 = vld [vmem:[%s19859_s20 + $0x3e0] sm:$0xff]  ;;  %v16482_v27 = vcombine.high %v634_v22, %v638_v23  ;;  %v642_v30 = vld [vmem:[%s19859_s20 + $0x408] sm:$0xff] }
 0x104   : > { %11420 = vmatpush1.bf16.msra.mxu0 %v16415_v32  ;;  %12022 = vmatpush1.bf16.msra.mxu1 %v16417_v33  ;;  %v16480_v26 = vcombine.high %v633_v20, %v637_v21  ;;  %v641_v28 = vld [vmem:[%s19859_s20 + $0x400] sm:$0xff]  ;;  %v646_v31 = vld [vmem:[%s19859_s20 + $0x428] sm:$0xff]  ;;  %v16479_v32 = vcombine.low %v633_v20, %v637_v21  ;;  %v16481_v33 = vcombine.low %v634_v22, %v638_v23 }
 0x105   : > { %11421 = vmatprep.subr.bf16.mxu0 %v16424_v34  ;;  %12023 = vmatprep.subr.bf16.mxu1 %v16426_v35  ;;  %v645_v29 = vld [vmem:[%s19859_s20 + $0x420] sm:$0xff]  ;;  %v16490_v35 = vcombine.high %v642_v30, %v646_v31  ;;  %v650_v39 = vld [vmem:[%s19859_s20 + $0x448] sm:$0xff] }
 0x106   : > { %v16488_v34 = vcombine.high %v641_v28, %v645_v29  ;;  %v649_v36 = vld [vmem:[%s19859_s20 + $0x440] sm:$0xff]  ;;  %v18830_v47 = vld [vmem:[%s19857_s27 + $0xc] ss:$112 sps:$4 sm:$0xff]  }
 0x107   : > { %v653_v37 = vld [vmem:[%s19859_s20 + $0x460] sm:$0xff]  ;;  %v674_v63 = vld [vmem:[%s19859_s20 + $0x508] sm:$0xff] }
 0x108   : > { %11422 = vmatpush1.bf16.msra.mxu0 %v16423_v40  ;;  %12024 = vmatpush1.bf16.msra.mxu1 %v16425_v41  ;;  %v18829_v38 = vld [vmem:[%s19857_s27] ss:$112 sps:$4 sm:$0xff]   ;;  %v654_v40 = vld [vmem:[%s19859_s20 + $0x468] sm:$0xff]  ;;  %v16487_v41 = vcombine.low %v641_v28, %v645_v29 }
 0x109   : > { %11423 = vmatprep.subr.bf16.mxu0 %v16432_v42  ;;  %12025 = vmatprep.subr.bf16.mxu1 %v16434_v43  ;;  %v16489_v42 = vcombine.low %v642_v30, %v646_v31  ;;  %v16496_v43 = vcombine.high %v649_v36, %v653_v37  ;;  %v657_v44 = vld [vmem:[%s19859_s20 + $0x480] sm:$0xff]  ;;  %v16498_v45 = vcombine.high %v650_v39, %v654_v40  ;;  %v682_v7 = vld [vmem:[%s19859_s20 + $0x548] sm:$0xff] }
 0x10a   : > { %v661_v46 = vld [vmem:[%s19859_s20 + $0x4a0] sm:$0xff] }
 0x10b   : > { %v16504_v52 = vcombine.high %v657_v44, %v661_v46  ;;  %v665_v53 = vld [vmem:[%s19859_s20 + $0x4c0] sm:$0xff] }
 0x10c   : > { %11424 = vmatpush1.bf16.msra.mxu0 %v16431_v48  ;;  %12026 = vmatpush1.bf16.msra.mxu1 %v16433_v49  ;;  %v658_v48 = vld [vmem:[%s19859_s20 + $0x488] sm:$0xff]  ;;  %v669_v54 = vld [vmem:[%s19859_s20 + $0x4e0] sm:$0xff] }
 0x10d   : > { %11425 = vmatprep.subr.bf16.mxu0 %v16440_v50  ;;  %12027 = vmatprep.subr.bf16.mxu1 %v16442_v51  ;;  %v662_v49 = vld [vmem:[%s19859_s20 + $0x4a8] sm:$0xff]  ;;  %v16495_v50 = vcombine.low %v649_v36, %v653_v37  ;;  %v16497_v51 = vcombine.low %v650_v39, %v654_v40  ;;  %v16512_v60 = vcombine.high %v665_v53, %v669_v54  ;;  %v673_v61 = vld [vmem:[%s19859_s20 + $0x500] sm:$0xff] }
 0x10e   : > { %v16506_v55 = vcombine.high %v658_v48, %v662_v49  ;;  %v677_v62 = vld [vmem:[%s19859_s20 + $0x520] sm:$0xff]  ;;  %v714_v40 = vld [vmem:[%s19859_s20 + $0x648] sm:$0xff] }
 0x10f   : > { %v16520_v4 = vcombine.high %v673_v61, %v677_v62  ;;  %v681_v5 = vld [vmem:[%s19859_s20 + $0x540] sm:$0xff] }
 0x110   : > { %11426 = vmatpush1.bf16.msra.mxu0 %v16439_v56  ;;  %12028 = vmatpush1.bf16.msra.mxu1 %v16441_v57  ;;  %v666_v56 = vld [vmem:[%s19859_s20 + $0x4c8] sm:$0xff]  ;;  %v685_v6 = vld [vmem:[%s19859_s20 + $0x560] sm:$0xff] }
 0x111   : > { %11427 = vmatprep.subr.bf16.mxu0 %v16448_v58  ;;  %12029 = vmatprep.subr.bf16.mxu1 %v16450_v59  ;;  %v670_v57 = vld [vmem:[%s19859_s20 + $0x4e8] sm:$0xff]  ;;  %v16503_v58 = vcombine.low %v657_v44, %v661_v46  ;;  %v16505_v59 = vcombine.low %v658_v48, %v662_v49  ;;  %v16528_v12 = vcombine.high %v681_v5, %v685_v6  ;;  %v689_v14 = vld [vmem:[%s19859_s20 + $0x580] sm:$0xff] }
 0x112   : > { %v693_v15 = vld [vmem:[%s19859_s20 + $0x5a0] sm:$0xff]  ;;  %v722_v48 = vld [vmem:[%s19859_s20 + $0x688] sm:$0xff] }
 0x113   : > { %v16536_v20 = vcombine.high %v689_v14, %v693_v15  ;;  %v697_v22 = vld [vmem:[%s19859_s20 + $0x5c0] sm:$0xff]  ;;  %v726_v49 = vld [vmem:[%s19859_s20 + $0x6a8] sm:$0xff] }
 0x114   : > { %11428 = vmatpush1.bf16.msra.mxu0 %v16447_v0  ;;  %12030 = vmatpush1.bf16.msra.mxu1 %v16449_v1  ;;  %v16514_v0 = vcombine.high %v666_v56, %v670_v57  ;;  %v678_v1 = vld [vmem:[%s19859_s20 + $0x528] sm:$0xff]  ;;  %v701_v23 = vld [vmem:[%s19859_s20 + $0x5e0] sm:$0xff] }
 0x115   : > { %11429 = vmatprep.subr.bf16.mxu0 %v16456_v2  ;;  %12031 = vmatprep.subr.bf16.mxu1 %v16458_v3  ;;  %v16511_v2 = vcombine.low %v665_v53, %v669_v54  ;;  %v16513_v3 = vcombine.low %v666_v56, %v670_v57  ;;  %v16544_v28 = vcombine.high %v697_v22, %v701_v23  ;;  %v705_v30 = vld [vmem:[%s19859_s20 + $0x600] sm:$0xff]  ;;  %v730_v56 = vld [vmem:[%s19859_s20 + $0x6c8] sm:$0xff] }
 0x116   : > { %v709_v31 = vld [vmem:[%s19859_s20 + $0x620] sm:$0xff]  ;;  %v16570_v53 = vcombine.high %v722_v48, %v726_v49  ;;  %v734_v57 = vld [vmem:[%s19859_s20 + $0x6e8] sm:$0xff] }
 0x117   : > { %v16552_v36 = vcombine.high %v705_v30, %v709_v31  ;;  %v717_v39 = vld [vmem:[%s19859_s20 + $0x660] sm:$0xff] }
 0x118   : > { %11430 = vmatpush1.bf16.msra.mxu0 %v16455_v8  ;;  %12032 = vmatpush1.bf16.msra.mxu1 %v16457_v9  ;;  %v16522_v8 = vcombine.high %v674_v63, %v678_v1  ;;  %v686_v9 = vld [vmem:[%s19859_s20 + $0x568] sm:$0xff]  ;;  %v721_v46 = vld [vmem:[%s19859_s20 + $0x680] sm:$0xff] }
 0x119   : > { %11431 = vmatprep.subr.bf16.mxu0 %v16464_v10  ;;  %12033 = vmatprep.subr.bf16.mxu1 %v16466_v11  ;;  %v16519_v10 = vcombine.low %v673_v61, %v677_v62  ;;  %v16521_v11 = vcombine.low %v674_v63, %v678_v1  ;;  %v16530_v13 = vcombine.high %v682_v7, %v686_v9  ;;  %v729_v54 = vld [vmem:[%s19859_s20 + $0x6c0] sm:$0xff]  ;;  %v742_v1 = vld [vmem:[%s19859_s20 + $0x728] sm:$0xff] }
 0x11a   : > { %v16578_v61 = vcombine.high %v730_v56, %v734_v57  ;;  %v737_v62 = vld [vmem:[%s19859_s20 + $0x700] sm:$0xff] }
 0x11b   : > { %v741_v63 = vld [vmem:[%s19859_s20 + $0x720] sm:$0xff] }
 0x11c   : > { %11432 = vmatpush1.bf16.msra.mxu0 %v16463_v16  ;;  %12034 = vmatpush1.bf16.msra.mxu1 %v16465_v17  ;;  %v690_v16 = vld [vmem:[%s19859_s20 + $0x588] sm:$0xff] }
 0x11d   : > { %11433 = vmatprep.subr.bf16.mxu0 %v16472_v18  ;;  %12035 = vmatprep.subr.bf16.mxu1 %v16474_v19  ;;  %v694_v17 = vld [vmem:[%s19859_s20 + $0x5a8] sm:$0xff]  ;;  %v16527_v18 = vcombine.low %v681_v5, %v685_v6  ;;  %v16529_v19 = vcombine.low %v682_v7, %v686_v9  ;;  %v745_v6 = vld [vmem:[%s19859_s20 + $0x740] sm:$0xff] }
 0x11e   : > { %v16538_v21 = vcombine.high %v690_v16, %v694_v17  ;;  %v749_v7 = vld [vmem:[%s19859_s20 + $0x760] sm:$0xff]  ;;  %v750_v9 = vld [vmem:[%s19859_s20 + $0x768] sm:$0xff] }
 0x120   : > { %11434 = vmatpush1.bf16.msra.mxu0 %v16471_v24  ;;  %12036 = vmatpush1.bf16.msra.mxu1 %v16473_v25  ;;  %v698_v24 = vld [vmem:[%s19859_s20 + $0x5c8] sm:$0xff] }
 0x121   : > { %11435 = vmatprep.subr.bf16.mxu0 %v16480_v26  ;;  %12037 = vmatprep.subr.bf16.mxu1 %v16482_v27  ;;  %v702_v25 = vld [vmem:[%s19859_s20 + $0x5e8] sm:$0xff]  ;;  %v16535_v26 = vcombine.low %v689_v14, %v693_v15  ;;  %v16537_v27 = vcombine.low %v690_v16, %v694_v17  ;;  %v753_v14 = vld [vmem:[%s19859_s20 + $0x780] sm:$0xff] }
 0x122   : > { %v16546_v29 = vcombine.high %v698_v24, %v702_v25  ;;  %v757_v15 = vld [vmem:[%s19859_s20 + $0x7a0] sm:$0xff]  ;;  %v754_v16 = vld [vmem:[%s19859_s20 + $0x788] sm:$0xff] }
 0x123   : > { %v758_v17 = vld [vmem:[%s19859_s20 + $0x7a8] sm:$0xff] }
 0x124   : > { %11436 = vmatpush1.bf16.msra.mxu0 %v16479_v32  ;;  %12038 = vmatpush1.bf16.msra.mxu1 %v16481_v33  ;;  %v706_v32 = vld [vmem:[%s19859_s20 + $0x608] sm:$0xff] }
 0x125   : > { %11448 = vmatprep.subr.bf16.mxu0 %v16488_v34  ;;  %12050 = vmatprep.subr.bf16.mxu1 %v16490_v35  ;;  %v710_v33 = vld [vmem:[%s19859_s20 + $0x628] sm:$0xff]  ;;  %v16543_v34 = vcombine.low %v697_v22, %v701_v23  ;;  %v16545_v35 = vcombine.low %v698_v24, %v702_v25  ;;  %v761_v22 = vld [vmem:[%s19859_s20 + $0x7c0] sm:$0xff] }
 0x126   : > { %v16554_v37 = vcombine.high %v706_v32, %v710_v33  ;;  %v765_v23 = vld [vmem:[%s19859_s20 + $0x7e0] sm:$0xff]  ;;  %v762_v24 = vld [vmem:[%s19859_s20 + $0x7c8] sm:$0xff] }
 0x127   : > { %11438 = vmatmul.mubr.bf16.vlgmr.msra.gmra.mrb[0].mxu0 %v18829_v38  ;;  %12040 = vmatmul.mubr.bf16.vlgmr.msra.gmra.mrb[0].mxu1 %v18829_v38  ;;  %v713_v38 = vld [vmem:[%s19859_s20 + $0x640] sm:$0xff]  ;;  %v766_v25 = vld [vmem:[%s19859_s20 + $0x7e8] sm:$0xff] }
 0x128   : > { %11449 = vmatpush1.bf16.msra.mxu0 %v16487_v41  ;;  %12051 = vmatpush1.bf16.msra.mxu1 %v16489_v42  ;;  %v718_v41 = vld [vmem:[%s19859_s20 + $0x668] sm:$0xff]  ;;  %v16551_v42 = vcombine.low %v705_v30, %v709_v31  ;;  %v16560_v44 = vcombine.high %v713_v38, %v717_v39  ;;  %v769_v30 = vld [vmem:[%s19859_s20 + $0x800] sm:$0xff] }
 0x129   : > { %11450 = vmatprep.subr.bf16.mxu0 %v16496_v43  ;;  %12052 = vmatprep.subr.bf16.mxu1 %v16498_v45  ;;  %v16553_v43 = vcombine.low %v706_v32, %v710_v33  ;;  %v16562_v45 = vcombine.high %v714_v40, %v718_v41  ;;  %v773_v31 = vld [vmem:[%s19859_s20 + $0x820] sm:$0xff]  ;;  %v770_v32 = vld [vmem:[%s19859_s20 + $0x808] sm:$0xff] }
 0x12a   : > { %11480 = vmatprep.mubr.bf16.mxu0 %v18830_v47  ;;  %12082 = vmatprep.mubr.bf16.mxu1 %v18830_v47  ;;  %v725_v47 = vld [vmem:[%s19859_s20 + $0x6a0] sm:$0xff]  ;;  %v774_v33 = vld [vmem:[%s19859_s20 + $0x828] sm:$0xff] }
 0x12c   : > { %11451 = vmatpush1.bf16.msra.mxu0 %v16495_v50  ;;  %12053 = vmatpush1.bf16.msra.mxu1 %v16497_v51  ;;  %v16559_v50 = vcombine.low %v713_v38, %v717_v39  ;;  %v16561_v51 = vcombine.low %v714_v40, %v718_v41  ;;  %v777_v38 = vld [vmem:[%s19859_s20 + $0x840] sm:$0xff]  ;;  %v18832_v40 = vld [vmem:[%s19857_s27 + $0x8] ss:$112 sps:$4 sm:$0xff]  }
 0x12d   : > { %11452 = vmatprep.subr.bf16.mxu0 %v16504_v52  ;;  %12054 = vmatprep.subr.bf16.mxu1 %v16506_v55  ;;  %v16568_v52 = vcombine.high %v721_v46, %v725_v47  ;;  %v733_v55 = vld [vmem:[%s19859_s20 + $0x6e0] sm:$0xff]  ;;  %v778_v41 = vld [vmem:[%s19859_s20 + $0x848] sm:$0xff] }
 0x12e   : > { %v781_v39 = vld [vmem:[%s19859_s20 + $0x860] sm:$0xff] }
 0x130   : > { %11453 = vmatpush1.bf16.msra.mxu0 %v16503_v58  ;;  %12055 = vmatpush1.bf16.msra.mxu1 %v16505_v59  ;;  %v16567_v58 = vcombine.low %v721_v46, %v725_v47  ;;  %v16569_v59 = vcombine.low %v722_v48, %v726_v49  ;;  %v785_v47 = vld [vmem:[%s19859_s20 + $0x880] sm:$0xff] }
 0x131   : > { %11454 = vmatprep.subr.bf16.mxu0 %v16512_v60  ;;  %12056 = vmatprep.subr.bf16.mxu1 %v16514_v0  ;;  %v16576_v60 = vcombine.high %v729_v54, %v733_v55  ;;  %v738_v0 = vld [vmem:[%s19859_s20 + $0x708] sm:$0xff]  ;;  %v789_v48 = vld [vmem:[%s19859_s20 + $0x8a0] sm:$0xff] }
 0x132   : > { %v16586_v5 = vcombine.high %v738_v0, %v742_v1  ;;  %v18833_v49 = vld [vmem:[%s19857_s27 + $0x14] ss:$112 sps:$4 sm:$0xff]  }
 0x134   : > { %11455 = vmatpush1.bf16.msra.mxu0 %v16511_v2  ;;  %12057 = vmatpush1.bf16.msra.mxu1 %v16513_v3  ;;  %v16575_v2 = vcombine.low %v729_v54, %v733_v55  ;;  %v16577_v3 = vcombine.low %v730_v56, %v734_v57  ;;  %v16632_v54 = vcombine.high %v785_v47, %v789_v48  ;;  %v793_v56 = vld [vmem:[%s19859_s20 + $0x8c0] sm:$0xff] }
 0x135   : > { %11456 = vmatprep.subr.bf16.mxu0 %v16520_v4  ;;  %12058 = vmatprep.subr.bf16.mxu1 %v16522_v8  ;;  %v16584_v4 = vcombine.high %v737_v62, %v741_v63  ;;  %v746_v8 = vld [vmem:[%s19859_s20 + $0x748] sm:$0xff]  ;;  %v797_v57 = vld [vmem:[%s19859_s20 + $0x8e0] sm:$0xff] }
 0x138   : > { %11457 = vmatpush1.bf16.msra.mxu0 %v16519_v10  ;;  %12059 = vmatpush1.bf16.msra.mxu1 %v16521_v11  ;;  %v16583_v10 = vcombine.low %v737_v62, %v741_v63  ;;  %v16585_v11 = vcombine.low %v738_v0, %v742_v1  ;;  %v16640_v62 = vcombine.high %v793_v56, %v797_v57  ;;  %v801_v0 = vld [vmem:[%s19859_s20 + $0x900] sm:$0xff] }
 0x139   : > { %11458 = vmatprep.subr.bf16.mxu0 %v16528_v12  ;;  %12060 = vmatprep.subr.bf16.mxu1 %v16530_v13  ;;  %v16592_v12 = vcombine.high %v745_v6, %v749_v7  ;;  %v16594_v13 = vcombine.high %v746_v8, %v750_v9  ;;  %v805_v1 = vld [vmem:[%s19859_s20 + $0x920] sm:$0xff] }
 0x13c   : > { %11459 = vmatpush1.bf16.msra.mxu0 %v16527_v18  ;;  %12061 = vmatpush1.bf16.msra.mxu1 %v16529_v19  ;;  %v16591_v18 = vcombine.low %v745_v6, %v749_v7  ;;  %v16593_v19 = vcombine.low %v746_v8, %v750_v9  ;;  %v16648_v6 = vcombine.high %v801_v0, %v805_v1  ;;  %v809_v8 = vld [vmem:[%s19859_s20 + $0x940] sm:$0xff] }
 0x13d   : > { %11460 = vmatprep.subr.bf16.mxu0 %v16536_v20  ;;  %12062 = vmatprep.subr.bf16.mxu1 %v16538_v21  ;;  %v16600_v20 = vcombine.high %v753_v14, %v757_v15  ;;  %v16602_v21 = vcombine.high %v754_v16, %v758_v17  ;;  %v813_v9 = vld [vmem:[%s19859_s20 + $0x960] sm:$0xff] }
 0x140   : > { %11461 = vmatpush1.bf16.msra.mxu0 %v16535_v26  ;;  %12063 = vmatpush1.bf16.msra.mxu1 %v16537_v27  ;;  %v16599_v26 = vcombine.low %v753_v14, %v757_v15  ;;  %v16601_v27 = vcombine.low %v754_v16, %v758_v17  ;;  %v16656_v14 = vcombine.high %v809_v8, %v813_v9  ;;  %v817_v16 = vld [vmem:[%s19859_s20 + $0x980] sm:$0xff] }
 0x141   : > { %11462 = vmatprep.subr.bf16.mxu0 %v16544_v28  ;;  %12064 = vmatprep.subr.bf16.mxu1 %v16546_v29  ;;  %v16608_v28 = vcombine.high %v761_v22, %v765_v23  ;;  %v16610_v29 = vcombine.high %v762_v24, %v766_v25  ;;  %v821_v17 = vld [vmem:[%s19859_s20 + $0x9a0] sm:$0xff] }
 0x144   : > { %11463 = vmatpush1.bf16.msra.mxu0 %v16543_v34  ;;  %12065 = vmatpush1.bf16.msra.mxu1 %v16545_v35  ;;  %v16607_v34 = vcombine.low %v761_v22, %v765_v23  ;;  %v16609_v35 = vcombine.low %v762_v24, %v766_v25  ;;  %v16664_v22 = vcombine.high %v817_v16, %v821_v17  ;;  %v825_v24 = vld [vmem:[%s19859_s20 + $0x9c0] sm:$0xff] }
 0x145   : > { %11464 = vmatprep.subr.bf16.mxu0 %v16552_v36  ;;  %12066 = vmatprep.subr.bf16.mxu1 %v16554_v37  ;;  %v16616_v36 = vcombine.high %v769_v30, %v773_v31  ;;  %v16618_v37 = vcombine.high %v770_v32, %v774_v33  ;;  %v829_v25 = vld [vmem:[%s19859_s20 + $0x9e0] sm:$0xff] }
 0x148   : > { %11465 = vmatpush1.bf16.msra.mxu0 %v16551_v42  ;;  %12067 = vmatpush1.bf16.msra.mxu1 %v16553_v43  ;;  %v782_v42 = vld [vmem:[%s19859_s20 + $0x868] sm:$0xff]  ;;  %v16615_v43 = vcombine.low %v769_v30, %v773_v31  ;;  %v16672_v30 = vcombine.high %v825_v24, %v829_v25 }
 0x149   : > { %11466 = vmatprep.subr.bf16.mxu0 %v16560_v44  ;;  %12068 = vmatprep.subr.bf16.mxu1 %v16562_v45  ;;  %v16617_v44 = vcombine.low %v770_v32, %v774_v33  ;;  %v16624_v45 = vcombine.high %v777_v38, %v781_v39  ;;  %v16626_v46 = vcombine.high %v778_v41, %v782_v42  ;;  %v833_v32 = vld [vmem:[%s19859_s20 + $0xa00] sm:$0xff] }
 0x14a   : > { %v837_v33 = vld [vmem:[%s19859_s20 + $0xa20] sm:$0xff] }
 0x14c   : > { %11467 = vmatpush1.bf16.msra.mxu0 %v16559_v50  ;;  %12069 = vmatpush1.bf16.msra.mxu1 %v16561_v51  ;;  %v786_v50 = vld [vmem:[%s19859_s20 + $0x888] sm:$0xff] }
 0x14d   : > { %11468 = vmatprep.subr.bf16.mxu0 %v16568_v52  ;;  %12070 = vmatprep.subr.bf16.mxu1 %v16570_v53  ;;  %v790_v51 = vld [vmem:[%s19859_s20 + $0x8a8] sm:$0xff]  ;;  %v16623_v52 = vcombine.low %v777_v38, %v781_v39  ;;  %v16625_v53 = vcombine.low %v778_v41, %v782_v42  ;;  %v16680_v38 = vcombine.high %v833_v32, %v837_v33  ;;  %v845_v41 = vld [vmem:[%s19859_s20 + $0xa60] sm:$0xff] }
 0x14e   : > { %v16634_v55 = vcombine.high %v786_v50, %v790_v51  ;;  %v842_v42 = vld [vmem:[%s19859_s20 + $0xa48] sm:$0xff] }
 0x150   : > { %11469 = vmatpush1.bf16.msra.mxu0 %v16567_v58  ;;  %12071 = vmatpush1.bf16.msra.mxu1 %v16569_v59  ;;  %v794_v58 = vld [vmem:[%s19859_s20 + $0x8c8] sm:$0xff] }
 0x151   : > { %11470 = vmatprep.subr.bf16.mxu0 %v16576_v60  ;;  %12072 = vmatprep.subr.bf16.mxu1 %v16578_v61  ;;  %v798_v59 = vld [vmem:[%s19859_s20 + $0x8e8] sm:$0xff]  ;;  %v16631_v60 = vcombine.low %v785_v47, %v789_v48  ;;  %v16633_v61 = vcombine.low %v786_v50, %v790_v51  ;;  %v849_v48 = vld [vmem:[%s19859_s20 + $0xa80] sm:$0xff] }
 0x152   : > { %v16642_v63 = vcombine.high %v794_v58, %v798_v59  ;;  %v850_v50 = vld [vmem:[%s19859_s20 + $0xa88] sm:$0xff] }
 0x153   : > { %v854_v51 = vld [vmem:[%s19859_s20 + $0xaa8] sm:$0xff] }
 0x154   : > { %11471 = vmatpush1.bf16.msra.mxu0 %v16575_v2  ;;  %12073 = vmatpush1.bf16.msra.mxu1 %v16577_v3  ;;  %v802_v2 = vld [vmem:[%s19859_s20 + $0x908] sm:$0xff] }
 0x155   : > { %11472 = vmatprep.subr.bf16.mxu0 %v16584_v4  ;;  %12074 = vmatprep.subr.bf16.mxu1 %v16586_v5  ;;  %v806_v3 = vld [vmem:[%s19859_s20 + $0x928] sm:$0xff]  ;;  %v16639_v4 = vcombine.low %v793_v56, %v797_v57  ;;  %v16641_v5 = vcombine.low %v794_v58, %v798_v59  ;;  %v857_v56 = vld [vmem:[%s19859_s20 + $0xac0] sm:$0xff] }
 0x156   : > { %v16650_v7 = vcombine.high %v802_v2, %v806_v3  ;;  %v861_v57 = vld [vmem:[%s19859_s20 + $0xae0] sm:$0xff]  ;;  %v858_v58 = vld [vmem:[%s19859_s20 + $0xac8] sm:$0xff] }
 0x157   : > { %v862_v59 = vld [vmem:[%s19859_s20 + $0xae8] sm:$0xff] }
 0x158   : > { %11473 = vmatpush1.bf16.msra.mxu0 %v16583_v10  ;;  %12075 = vmatpush1.bf16.msra.mxu1 %v16585_v11  ;;  %v810_v10 = vld [vmem:[%s19859_s20 + $0x948] sm:$0xff] }
 0x159   : > { %11474 = vmatprep.subr.bf16.mxu0 %v16592_v12  ;;  %12076 = vmatprep.subr.bf16.mxu1 %v16594_v13  ;;  %v814_v11 = vld [vmem:[%s19859_s20 + $0x968] sm:$0xff]  ;;  %v16647_v12 = vcombine.low %v801_v0, %v805_v1  ;;  %v16649_v13 = vcombine.low %v802_v2, %v806_v3  ;;  %v865_v0 = vld [vmem:[%s19859_s20 + $0xb00] sm:$0xff] }
 0x15a   : > { %v16658_v15 = vcombine.high %v810_v10, %v814_v11  ;;  %v869_v1 = vld [vmem:[%s19859_s20 + $0xb20] sm:$0xff]  ;;  %v866_v2 = vld [vmem:[%s19859_s20 + $0xb08] sm:$0xff] }
 0x15b   : > { %v870_v3 = vld [vmem:[%s19859_s20 + $0xb28] sm:$0xff] }
 0x15c   : > { %11475 = vmatpush1.bf16.msra.mxu0 %v16591_v18  ;;  %12077 = vmatpush1.bf16.msra.mxu1 %v16593_v19  ;;  %v818_v18 = vld [vmem:[%s19859_s20 + $0x988] sm:$0xff] }
 0x15d   : > { %11476 = vmatprep.subr.bf16.mxu0 %v16600_v20  ;;  %12078 = vmatprep.subr.bf16.mxu1 %v16602_v21  ;;  %v822_v19 = vld [vmem:[%s19859_s20 + $0x9a8] sm:$0xff]  ;;  %v16655_v20 = vcombine.low %v809_v8, %v813_v9  ;;  %v16657_v21 = vcombine.low %v810_v10, %v814_v11  ;;  %v873_v8 = vld [vmem:[%s19859_s20 + $0xb40] sm:$0xff] }
 0x15e   : > { %v16666_v23 = vcombine.high %v818_v18, %v822_v19  ;;  %v877_v9 = vld [vmem:[%s19859_s20 + $0xb60] sm:$0xff]  ;;  %v874_v10 = vld [vmem:[%s19859_s20 + $0xb48] sm:$0xff] }
 0x15f   : > { %v878_v11 = vld [vmem:[%s19859_s20 + $0xb68] sm:$0xff] }
 0x160   : > { %11477 = vmatpush1.bf16.msra.mxu0 %v16599_v26  ;;  %12079 = vmatpush1.bf16.msra.mxu1 %v16601_v27  ;;  %v826_v26 = vld [vmem:[%s19859_s20 + $0x9c8] sm:$0xff] }
 0x161   : > { %11478 = vmatprep.subr.bf16.mxu0 %v16608_v28  ;;  %12080 = vmatprep.subr.bf16.mxu1 %v16610_v29  ;;  %v830_v27 = vld [vmem:[%s19859_s20 + $0x9e8] sm:$0xff]  ;;  %v16663_v28 = vcombine.low %v817_v16, %v821_v17  ;;  %v16665_v29 = vcombine.low %v818_v18, %v822_v19  ;;  %v881_v16 = vld [vmem:[%s19859_s20 + $0xb80] sm:$0xff] }
 0x162   : > { %v16674_v31 = vcombine.high %v826_v26, %v830_v27  ;;  %v885_v17 = vld [vmem:[%s19859_s20 + $0xba0] sm:$0xff]  ;;  %v882_v18 = vld [vmem:[%s19859_s20 + $0xb88] sm:$0xff] }
 0x163   : > { %v886_v19 = vld [vmem:[%s19859_s20 + $0xba8] sm:$0xff] }
 0x164   : > { %11479 = vmatpush1.bf16.msra.mxu0 %v16607_v34  ;;  %12081 = vmatpush1.bf16.msra.mxu1 %v16609_v35  ;;  %v834_v34 = vld [vmem:[%s19859_s20 + $0xa08] sm:$0xff] }
 0x165   : > { %11491 = vmatprep.subr.bf16.mxu0 %v16616_v36  ;;  %12093 = vmatprep.subr.bf16.mxu1 %v16618_v37  ;;  %v838_v35 = vld [vmem:[%s19859_s20 + $0xa28] sm:$0xff]  ;;  %v16671_v36 = vcombine.low %v825_v24, %v829_v25  ;;  %v16673_v37 = vcombine.low %v826_v26, %v830_v27  ;;  %v889_v24 = vld [vmem:[%s19859_s20 + $0xbc0] sm:$0xff] }
 0x166   : > { %v16682_v39 = vcombine.high %v834_v34, %v838_v35  ;;  %v893_v25 = vld [vmem:[%s19859_s20 + $0xbe0] sm:$0xff]  ;;  %v890_v26 = vld [vmem:[%s19859_s20 + $0xbc8] sm:$0xff] }
 0x167   : > { %11481 = vmatmul.mubr.bf16.vlgmr.msra.gmra.mrb[0].mxu0 %v18832_v40  ;;  %12083 = vmatmul.mubr.bf16.vlgmr.msra.gmra.mrb[0].mxu1 %v18832_v40  ;;  %v841_v40 = vld [vmem:[%s19859_s20 + $0xa40] sm:$0xff]  ;;  %v894_v27 = vld [vmem:[%s19859_s20 + $0xbe8] sm:$0xff] }
 0x168   : > { %11492 = vmatpush1.bf16.msra.mxu0 %v16615_v43  ;;  %12094 = vmatpush1.bf16.msra.mxu1 %v16617_v44  ;;  %v846_v43 = vld [vmem:[%s19859_s20 + $0xa68] sm:$0xff]  ;;  %v16679_v44 = vcombine.low %v833_v32, %v837_v33  ;;  %v897_v32 = vld [vmem:[%s19859_s20 + $0xc00] sm:$0xff] }
 0x169   : > { %11493 = vmatprep.subr.bf16.mxu0 %v16624_v45  ;;  %12095 = vmatprep.subr.bf16.mxu1 %v16626_v46  ;;  %v16681_v45 = vcombine.low %v834_v34, %v838_v35  ;;  %v16688_v46 = vcombine.high %v841_v40, %v845_v41  ;;  %v16690_v47 = vcombine.high %v842_v42, %v846_v43  ;;  %v901_v33 = vld [vmem:[%s19859_s20 + $0xc20] sm:$0xff]  ;;  %v898_v34 = vld [vmem:[%s19859_s20 + $0xc08] sm:$0xff] }
 0x16a   : > { %11523 = vmatprep.mubr.bf16.mxu0 %v18833_v49  ;;  %12125 = vmatprep.mubr.bf16.mxu1 %v18833_v49  ;;  %v853_v49 = vld [vmem:[%s19859_s20 + $0xaa0] sm:$0xff]  ;;  %v902_v35 = vld [vmem:[%s19859_s20 + $0xc28] sm:$0xff] }
 0x16c   : > { %11494 = vmatpush1.bf16.msra.mxu0 %v16623_v52  ;;  %12096 = vmatpush1.bf16.msra.mxu1 %v16625_v53  ;;  %v16687_v52 = vcombine.low %v841_v40, %v845_v41  ;;  %v16689_v53 = vcombine.low %v842_v42, %v846_v43  ;;  %v905_v40 = vld [vmem:[%s19859_s20 + $0xc40] sm:$0xff]  ;;  %v906_v43 = vld [vmem:[%s19859_s20 + $0xc48] sm:$0xff] }
 0x16d   : > { %11495 = vmatprep.subr.bf16.mxu0 %v16632_v54  ;;  %12097 = vmatprep.subr.bf16.mxu1 %v16634_v55  ;;  %v16696_v54 = vcombine.high %v849_v48, %v853_v49  ;;  %v16698_v55 = vcombine.high %v850_v50, %v854_v51  ;;  %v909_v41 = vld [vmem:[%s19859_s20 + $0xc60] sm:$0xff] }
 0x16e   : > { %v18835_v42 = vld [vmem:[%s19857_s27 + $0x10] ss:$112 sps:$4 sm:$0xff]  }
 0x170   : > { %11496 = vmatpush1.bf16.msra.mxu0 %v16631_v60  ;;  %12098 = vmatpush1.bf16.msra.mxu1 %v16633_v61  ;;  %v16695_v60 = vcombine.low %v849_v48, %v853_v49  ;;  %v16697_v61 = vcombine.low %v850_v50, %v854_v51  ;;  %v913_v49 = vld [vmem:[%s19859_s20 + $0xc80] sm:$0xff]  ;;  %v18836_v51 = vld [vmem:[%s19857_s27 + $0x1c] ss:$112 sps:$4 sm:$0xff]  }
 0x171   : > { %11497 = vmatprep.subr.bf16.mxu0 %v16640_v62  ;;  %12099 = vmatprep.subr.bf16.mxu1 %v16642_v63  ;;  %v16704_v62 = vcombine.high %v857_v56, %v861_v57  ;;  %v16706_v63 = vcombine.high %v858_v58, %v862_v59  ;;  %v917_v50 = vld [vmem:[%s19859_s20 + $0xca0] sm:$0xff] }
 0x174   : > { %11498 = vmatpush1.bf16.msra.mxu0 %v16639_v4  ;;  %12100 = vmatpush1.bf16.msra.mxu1 %v16641_v5  ;;  %v16703_v4 = vcombine.low %v857_v56, %v861_v57  ;;  %v16705_v5 = vcombine.low %v858_v58, %v862_v59  ;;  %v16760_v56 = vcombine.high %v913_v49, %v917_v50  ;;  %v921_v58 = vld [vmem:[%s19859_s20 + $0xcc0] sm:$0xff] }
 0x175   : > { %11499 = vmatprep.subr.bf16.mxu0 %v16648_v6  ;;  %12101 = vmatprep.subr.bf16.mxu1 %v16650_v7  ;;  %v16712_v6 = vcombine.high %v865_v0, %v869_v1  ;;  %v16714_v7 = vcombine.high %v866_v2, %v870_v3  ;;  %v925_v59 = vld [vmem:[%s19859_s20 + $0xce0] sm:$0xff] }
 0x178   : > { %11500 = vmatpush1.bf16.msra.mxu0 %v16647_v12  ;;  %12102 = vmatpush1.bf16.msra.mxu1 %v16649_v13  ;;  %v16711_v12 = vcombine.low %v865_v0, %v869_v1  ;;  %v16713_v13 = vcombine.low %v866_v2, %v870_v3  ;;  %v16768_v0 = vcombine.high %v921_v58, %v925_v59  ;;  %v929_v2 = vld [vmem:[%s19859_s20 + $0xd00] sm:$0xff] }
 0x179   : > { %11501 = vmatprep.subr.bf16.mxu0 %v16656_v14  ;;  %12103 = vmatprep.subr.bf16.mxu1 %v16658_v15  ;;  %v16720_v14 = vcombine.high %v873_v8, %v877_v9  ;;  %v16722_v15 = vcombine.high %v874_v10, %v878_v11  ;;  %v933_v3 = vld [vmem:[%s19859_s20 + $0xd20] sm:$0xff] }
 0x17c   : > { %11502 = vmatpush1.bf16.msra.mxu0 %v16655_v20  ;;  %12104 = vmatpush1.bf16.msra.mxu1 %v16657_v21  ;;  %v16719_v20 = vcombine.low %v873_v8, %v877_v9  ;;  %v16721_v21 = vcombine.low %v874_v10, %v878_v11  ;;  %v16776_v8 = vcombine.high %v929_v2, %v933_v3  ;;  %v937_v10 = vld [vmem:[%s19859_s20 + $0xd40] sm:$0xff] }
 0x17d   : > { %11503 = vmatprep.subr.bf16.mxu0 %v16664_v22  ;;  %12105 = vmatprep.subr.bf16.mxu1 %v16666_v23  ;;  %v16728_v22 = vcombine.high %v881_v16, %v885_v17  ;;  %v16730_v23 = vcombine.high %v882_v18, %v886_v19  ;;  %v941_v11 = vld [vmem:[%s19859_s20 + $0xd60] sm:$0xff] }
 0x180   : > { %11504 = vmatpush1.bf16.msra.mxu0 %v16663_v28  ;;  %12106 = vmatpush1.bf16.msra.mxu1 %v16665_v29  ;;  %v16727_v28 = vcombine.low %v881_v16, %v885_v17  ;;  %v16729_v29 = vcombine.low %v882_v18, %v886_v19  ;;  %v16784_v16 = vcombine.high %v937_v10, %v941_v11  ;;  %v945_v18 = vld [vmem:[%s19859_s20 + $0xd80] sm:$0xff] }
 0x181   : > { %11505 = vmatprep.subr.bf16.mxu0 %v16672_v30  ;;  %12107 = vmatprep.subr.bf16.mxu1 %v16674_v31  ;;  %v16736_v30 = vcombine.high %v889_v24, %v893_v25  ;;  %v16738_v31 = vcombine.high %v890_v26, %v894_v27  ;;  %v949_v19 = vld [vmem:[%s19859_s20 + $0xda0] sm:$0xff] }
 0x184   : > { %11506 = vmatpush1.bf16.msra.mxu0 %v16671_v36  ;;  %12108 = vmatpush1.bf16.msra.mxu1 %v16673_v37  ;;  %v16735_v36 = vcombine.low %v889_v24, %v893_v25  ;;  %v16737_v37 = vcombine.low %v890_v26, %v894_v27  ;;  %v16792_v24 = vcombine.high %v945_v18, %v949_v19  ;;  %v953_v26 = vld [vmem:[%s19859_s20 + $0xdc0] sm:$0xff] }
 0x185   : > { %11507 = vmatprep.subr.bf16.mxu0 %v16680_v38  ;;  %12109 = vmatprep.subr.bf16.mxu1 %v16682_v39  ;;  %v16744_v38 = vcombine.high %v897_v32, %v901_v33  ;;  %v16746_v39 = vcombine.high %v898_v34, %v902_v35  ;;  %v957_v27 = vld [vmem:[%s19859_s20 + $0xde0] sm:$0xff] }
 0x188   : > { %11508 = vmatpush1.bf16.msra.mxu0 %v16679_v44  ;;  %12110 = vmatpush1.bf16.msra.mxu1 %v16681_v45  ;;  %v910_v44 = vld [vmem:[%s19859_s20 + $0xc68] sm:$0xff]  ;;  %v16743_v45 = vcombine.low %v897_v32, %v901_v33  ;;  %v16800_v32 = vcombine.high %v953_v26, %v957_v27 }
 0x189   : > { %11509 = vmatprep.subr.bf16.mxu0 %v16688_v46  ;;  %12111 = vmatprep.subr.bf16.mxu1 %v16690_v47  ;;  %v16745_v46 = vcombine.low %v898_v34, %v902_v35  ;;  %v16752_v47 = vcombine.high %v905_v40, %v909_v41  ;;  %v16754_v48 = vcombine.high %v906_v43, %v910_v44  ;;  %v961_v34 = vld [vmem:[%s19859_s20 + $0xe00] sm:$0xff] }
 0x18a   : > { %v965_v35 = vld [vmem:[%s19859_s20 + $0xe20] sm:$0xff] }
 0x18c   : > { %11510 = vmatpush1.bf16.msra.mxu0 %v16687_v52  ;;  %12112 = vmatpush1.bf16.msra.mxu1 %v16689_v53  ;;  %v914_v52 = vld [vmem:[%s19859_s20 + $0xc88] sm:$0xff] }
 0x18d   : > { %11511 = vmatprep.subr.bf16.mxu0 %v16696_v54  ;;  %12113 = vmatprep.subr.bf16.mxu1 %v16698_v55  ;;  %v918_v53 = vld [vmem:[%s19859_s20 + $0xca8] sm:$0xff]  ;;  %v16751_v54 = vcombine.low %v905_v40, %v909_v41  ;;  %v16753_v55 = vcombine.low %v906_v43, %v910_v44  ;;  %v16808_v40 = vcombine.high %v961_v34, %v965_v35  ;;  %v973_v43 = vld [vmem:[%s19859_s20 + $0xe60] sm:$0xff] }
 0x18e   : > { %v16762_v57 = vcombine.high %v914_v52, %v918_v53  ;;  %v970_v44 = vld [vmem:[%s19859_s20 + $0xe48] sm:$0xff] }
 0x190   : > { %11512 = vmatpush1.bf16.msra.mxu0 %v16695_v60  ;;  %12114 = vmatpush1.bf16.msra.mxu1 %v16697_v61  ;;  %v922_v60 = vld [vmem:[%s19859_s20 + $0xcc8] sm:$0xff] }
 0x191   : > { %11513 = vmatprep.subr.bf16.mxu0 %v16704_v62  ;;  %12115 = vmatprep.subr.bf16.mxu1 %v16706_v63  ;;  %v926_v61 = vld [vmem:[%s19859_s20 + $0xce8] sm:$0xff]  ;;  %v16759_v62 = vcombine.low %v913_v49, %v917_v50  ;;  %v16761_v63 = vcombine.low %v914_v52, %v918_v53  ;;  %v977_v50 = vld [vmem:[%s19859_s20 + $0xe80] sm:$0xff] }
 0x192   : > { %v16770_v1 = vcombine.high %v922_v60, %v926_v61  ;;  %v978_v52 = vld [vmem:[%s19859_s20 + $0xe88] sm:$0xff] }
 0x193   : > { %v982_v53 = vld [vmem:[%s19859_s20 + $0xea8] sm:$0xff] }
 0x194   : > { %11514 = vmatpush1.bf16.msra.mxu0 %v16703_v4  ;;  %12116 = vmatpush1.bf16.msra.mxu1 %v16705_v5  ;;  %v930_v4 = vld [vmem:[%s19859_s20 + $0xd08] sm:$0xff] }
 0x195   : > { %11515 = vmatprep.subr.bf16.mxu0 %v16712_v6  ;;  %12117 = vmatprep.subr.bf16.mxu1 %v16714_v7  ;;  %v934_v5 = vld [vmem:[%s19859_s20 + $0xd28] sm:$0xff]  ;;  %v16767_v6 = vcombine.low %v921_v58, %v925_v59  ;;  %v16769_v7 = vcombine.low %v922_v60, %v926_v61  ;;  %v985_v58 = vld [vmem:[%s19859_s20 + $0xec0] sm:$0xff] }
 0x196   : > { %v16778_v9 = vcombine.high %v930_v4, %v934_v5  ;;  %v989_v59 = vld [vmem:[%s19859_s20 + $0xee0] sm:$0xff]  ;;  %v986_v60 = vld [vmem:[%s19859_s20 + $0xec8] sm:$0xff] }
 0x197   : > { %v990_v61 = vld [vmem:[%s19859_s20 + $0xee8] sm:$0xff] }
 0x198   : > { %11516 = vmatpush1.bf16.msra.mxu0 %v16711_v12  ;;  %12118 = vmatpush1.bf16.msra.mxu1 %v16713_v13  ;;  %v938_v12 = vld [vmem:[%s19859_s20 + $0xd48] sm:$0xff] }
 0x199   : > { %11517 = vmatprep.subr.bf16.mxu0 %v16720_v14  ;;  %12119 = vmatprep.subr.bf16.mxu1 %v16722_v15  ;;  %v942_v13 = vld [vmem:[%s19859_s20 + $0xd68] sm:$0xff]  ;;  %v16775_v14 = vcombine.low %v929_v2, %v933_v3  ;;  %v16777_v15 = vcombine.low %v930_v4, %v934_v5  ;;  %v993_v2 = vld [vmem:[%s19859_s20 + $0xf00] sm:$0xff] }
 0x19a   : > { %v16786_v17 = vcombine.high %v938_v12, %v942_v13  ;;  %v997_v3 = vld [vmem:[%s19859_s20 + $0xf20] sm:$0xff]  ;;  %v994_v4 = vld [vmem:[%s19859_s20 + $0xf08] sm:$0xff] }
 0x19b   : > { %v998_v5 = vld [vmem:[%s19859_s20 + $0xf28] sm:$0xff] }
 0x19c   : > { %11518 = vmatpush1.bf16.msra.mxu0 %v16719_v20  ;;  %12120 = vmatpush1.bf16.msra.mxu1 %v16721_v21  ;;  %v946_v20 = vld [vmem:[%s19859_s20 + $0xd88] sm:$0xff] }
 0x19d   : > { %11519 = vmatprep.subr.bf16.mxu0 %v16728_v22  ;;  %12121 = vmatprep.subr.bf16.mxu1 %v16730_v23  ;;  %v950_v21 = vld [vmem:[%s19859_s20 + $0xda8] sm:$0xff]  ;;  %v16783_v22 = vcombine.low %v937_v10, %v941_v11  ;;  %v16785_v23 = vcombine.low %v938_v12, %v942_v13  ;;  %v1001_v10 = vld [vmem:[%s19859_s20 + $0xf40] sm:$0xff] }
 0x19e   : > { %v16794_v25 = vcombine.high %v946_v20, %v950_v21  ;;  %v1005_v11 = vld [vmem:[%s19859_s20 + $0xf60] sm:$0xff]  ;;  %v1002_v12 = vld [vmem:[%s19859_s20 + $0xf48] sm:$0xff] }
 0x19f   : > { %v1006_v13 = vld [vmem:[%s19859_s20 + $0xf68] sm:$0xff] }
 0x1a0   : > { %11520 = vmatpush1.bf16.msra.mxu0 %v16727_v28  ;;  %12122 = vmatpush1.bf16.msra.mxu1 %v16729_v29  ;;  %v954_v28 = vld [vmem:[%s19859_s20 + $0xdc8] sm:$0xff] }
 0x1a1   : > { %11521 = vmatprep.subr.bf16.mxu0 %v16736_v30  ;;  %12123 = vmatprep.subr.bf16.mxu1 %v16738_v31  ;;  %v958_v29 = vld [vmem:[%s19859_s20 + $0xde8] sm:$0xff]  ;;  %v16791_v30 = vcombine.low %v945_v18, %v949_v19  ;;  %v16793_v31 = vcombine.low %v946_v20, %v950_v21  ;;  %v1009_v18 = vld [vmem:[%s19859_s20 + $0xf80] sm:$0xff] }
 0x1a2   : > { %v16802_v33 = vcombine.high %v954_v28, %v958_v29  ;;  %v1013_v19 = vld [vmem:[%s19859_s20 + $0xfa0] sm:$0xff]  ;;  %v1010_v20 = vld [vmem:[%s19859_s20 + $0xf88] sm:$0xff] }
 0x1a3   : > { %v1014_v21 = vld [vmem:[%s19859_s20 + $0xfa8] sm:$0xff] }
 0x1a4   : > { %11522 = vmatpush1.bf16.msra.mxu0 %v16735_v36  ;;  %12124 = vmatpush1.bf16.msra.mxu1 %v16737_v37  ;;  %v962_v36 = vld [vmem:[%s19859_s20 + $0xe08] sm:$0xff] }
 0x1a5   : > { %11534 = vmatprep.subr.bf16.mxu0 %v16744_v38  ;;  %12136 = vmatprep.subr.bf16.mxu1 %v16746_v39  ;;  %v966_v37 = vld [vmem:[%s19859_s20 + $0xe28] sm:$0xff]  ;;  %v16799_v38 = vcombine.low %v953_v26, %v957_v27  ;;  %v16801_v39 = vcombine.low %v954_v28, %v958_v29  ;;  %v1017_v26 = vld [vmem:[%s19859_s20 + $0xfc0] sm:$0xff] }
 0x1a6   : > { %v16810_v41 = vcombine.high %v962_v36, %v966_v37  ;;  %v1021_v27 = vld [vmem:[%s19859_s20 + $0xfe0] sm:$0xff]  ;;  %v1018_v28 = vld [vmem:[%s19859_s20 + $0xfc8] sm:$0xff] }
 0x1a7   : > { %11524 = vmatmul.mubr.bf16.vlgmr.msra.gmra.mrb[0].mxu0 %v18835_v42  ;;  %12126 = vmatmul.mubr.bf16.vlgmr.msra.gmra.mrb[0].mxu1 %v18835_v42  ;;  %v969_v42 = vld [vmem:[%s19859_s20 + $0xe40] sm:$0xff]  ;;  %v1022_v29 = vld [vmem:[%s19859_s20 + $0xfe8] sm:$0xff] }
 0x1a8   : > { %11535 = vmatpush1.bf16.msra.mxu0 %v16743_v45  ;;  %12137 = vmatpush1.bf16.msra.mxu1 %v16745_v46  ;;  %v974_v45 = vld [vmem:[%s19859_s20 + $0xe68] sm:$0xff]  ;;  %v16807_v46 = vcombine.low %v961_v34, %v965_v35  ;;  %v1025_v34 = vld [vmem:[%s19859_s20 + $0x1000] sm:$0xff] }
 0x1a9   : > { %11536 = vmatprep.subr.bf16.mxu0 %v16752_v47  ;;  %12138 = vmatprep.subr.bf16.mxu1 %v16754_v48  ;;  %v16809_v47 = vcombine.low %v962_v36, %v966_v37  ;;  %v16816_v48 = vcombine.high %v969_v42, %v973_v43  ;;  %v16818_v49 = vcombine.high %v970_v44, %v974_v45  ;;  %v1029_v35 = vld [vmem:[%s19859_s20 + $0x1020] sm:$0xff]  ;;  %v1026_v36 = vld [vmem:[%s19859_s20 + $0x1008] sm:$0xff] }
 0x1aa   : > { %11566 = vmatprep.mubr.bf16.mxu0 %v18836_v51  ;;  %12168 = vmatprep.mubr.bf16.mxu1 %v18836_v51  ;;  %v981_v51 = vld [vmem:[%s19859_s20 + $0xea0] sm:$0xff]  ;;  %v1030_v37 = vld [vmem:[%s19859_s20 + $0x1028] sm:$0xff] }
 0x1ac   : > { %11537 = vmatpush1.bf16.msra.mxu0 %v16751_v54  ;;  %12139 = vmatpush1.bf16.msra.mxu1 %v16753_v55  ;;  %v16815_v54 = vcombine.low %v969_v42, %v973_v43  ;;  %v16817_v55 = vcombine.low %v970_v44, %v974_v45  ;;  %v1033_v42 = vld [vmem:[%s19859_s20 + $0x1040] sm:$0xff]  ;;  %v18838_v44 = vld [vmem:[%s19857_s27 + $0x18] ss:$112 sps:$4 sm:$0xff]  }
 0x1ad   : > { %11538 = vmatprep.subr.bf16.mxu0 %v16760_v56  ;;  %12140 = vmatprep.subr.bf16.mxu1 %v16762_v57  ;;  %v16824_v56 = vcombine.high %v977_v50, %v981_v51  ;;  %v16826_v57 = vcombine.high %v978_v52, %v982_v53  ;;  %v1037_v43 = vld [vmem:[%s19859_s20 + $0x1060] sm:$0xff]  ;;  %v1034_v45 = vld [vmem:[%s19859_s20 + $0x1048] sm:$0xff] }
 0x1b0   : > { %11539 = vmatpush1.bf16.msra.mxu0 %v16759_v62  ;;  %12141 = vmatpush1.bf16.msra.mxu1 %v16761_v63  ;;  %v16823_v62 = vcombine.low %v977_v50, %v981_v51  ;;  %v16825_v63 = vcombine.low %v978_v52, %v982_v53  ;;  %v1041_v51 = vld [vmem:[%s19859_s20 + $0x1080] sm:$0xff] }
 0x1b1   : > { %11540 = vmatprep.subr.bf16.mxu0 %v16768_v0  ;;  %12142 = vmatprep.subr.bf16.mxu1 %v16770_v1  ;;  %v16832_v0 = vcombine.high %v985_v58, %v989_v59  ;;  %v16834_v1 = vcombine.high %v986_v60, %v990_v61  ;;  %v1045_v52 = vld [vmem:[%s19859_s20 + $0x10a0] sm:$0xff] }
 0x1b2   : > { %v18839_v53 = vld [vmem:[%s19857_s27 + $0x24] ss:$112 sps:$4 sm:$0xff]  }
 0x1b4   : > { %11541 = vmatpush1.bf16.msra.mxu0 %v16767_v6  ;;  %12143 = vmatpush1.bf16.msra.mxu1 %v16769_v7  ;;  %v16831_v6 = vcombine.low %v985_v58, %v989_v59  ;;  %v16833_v7 = vcombine.low %v986_v60, %v990_v61  ;;  %v16888_v58 = vcombine.high %v1041_v51, %v1045_v52  ;;  %v1049_v60 = vld [vmem:[%s19859_s20 + $0x10c0] sm:$0xff] }
 0x1b5   : > { %11542 = vmatprep.subr.bf16.mxu0 %v16776_v8  ;;  %12144 = vmatprep.subr.bf16.mxu1 %v16778_v9  ;;  %v16840_v8 = vcombine.high %v993_v2, %v997_v3  ;;  %v16842_v9 = vcombine.high %v994_v4, %v998_v5  ;;  %v1053_v61 = vld [vmem:[%s19859_s20 + $0x10e0] sm:$0xff] }
 0x1b8   : > { %11543 = vmatpush1.bf16.msra.mxu0 %v16775_v14  ;;  %12145 = vmatpush1.bf16.msra.mxu1 %v16777_v15  ;;  %v16839_v14 = vcombine.low %v993_v2, %v997_v3  ;;  %v16841_v15 = vcombine.low %v994_v4, %v998_v5  ;;  %v16896_v2 = vcombine.high %v1049_v60, %v1053_v61  ;;  %v1057_v4 = vld [vmem:[%s19859_s20 + $0x1100] sm:$0xff] }
 0x1b9   : > { %11544 = vmatprep.subr.bf16.mxu0 %v16784_v16  ;;  %12146 = vmatprep.subr.bf16.mxu1 %v16786_v17  ;;  %v16848_v16 = vcombine.high %v1001_v10, %v1005_v11  ;;  %v16850_v17 = vcombine.high %v1002_v12, %v1006_v13  ;;  %v1061_v5 = vld [vmem:[%s19859_s20 + $0x1120] sm:$0xff] }
 0x1bc   : > { %11545 = vmatpush1.bf16.msra.mxu0 %v16783_v22  ;;  %12147 = vmatpush1.bf16.msra.mxu1 %v16785_v23  ;;  %v16847_v22 = vcombine.low %v1001_v10, %v1005_v11  ;;  %v16849_v23 = vcombine.low %v1002_v12, %v1006_v13  ;;  %v16904_v10 = vcombine.high %v1057_v4, %v1061_v5  ;;  %v1065_v12 = vld [vmem:[%s19859_s20 + $0x1140] sm:$0xff] }
 0x1bd   : > { %11546 = vmatprep.subr.bf16.mxu0 %v16792_v24  ;;  %12148 = vmatprep.subr.bf16.mxu1 %v16794_v25  ;;  %v16856_v24 = vcombine.high %v1009_v18, %v1013_v19  ;;  %v16858_v25 = vcombine.high %v1010_v20, %v1014_v21  ;;  %v1069_v13 = vld [vmem:[%s19859_s20 + $0x1160] sm:$0xff] }
 0x1c0   : > { %11547 = vmatpush1.bf16.msra.mxu0 %v16791_v30  ;;  %12149 = vmatpush1.bf16.msra.mxu1 %v16793_v31  ;;  %v16855_v30 = vcombine.low %v1009_v18, %v1013_v19  ;;  %v16857_v31 = vcombine.low %v1010_v20, %v1014_v21  ;;  %v16912_v18 = vcombine.high %v1065_v12, %v1069_v13  ;;  %v1073_v20 = vld [vmem:[%s19859_s20 + $0x1180] sm:$0xff] }
 0x1c1   : > { %11548 = vmatprep.subr.bf16.mxu0 %v16800_v32  ;;  %12150 = vmatprep.subr.bf16.mxu1 %v16802_v33  ;;  %v16864_v32 = vcombine.high %v1017_v26, %v1021_v27  ;;  %v16866_v33 = vcombine.high %v1018_v28, %v1022_v29  ;;  %v1077_v21 = vld [vmem:[%s19859_s20 + $0x11a0] sm:$0xff] }
 0x1c4   : > { %11549 = vmatpush1.bf16.msra.mxu0 %v16799_v38  ;;  %12151 = vmatpush1.bf16.msra.mxu1 %v16801_v39  ;;  %v16863_v38 = vcombine.low %v1017_v26, %v1021_v27  ;;  %v16865_v39 = vcombine.low %v1018_v28, %v1022_v29  ;;  %v16920_v26 = vcombine.high %v1073_v20, %v1077_v21  ;;  %v1081_v28 = vld [vmem:[%s19859_s20 + $0x11c0] sm:$0xff] }
 0x1c5   : > { %11550 = vmatprep.subr.bf16.mxu0 %v16808_v40  ;;  %12152 = vmatprep.subr.bf16.mxu1 %v16810_v41  ;;  %v16872_v40 = vcombine.high %v1025_v34, %v1029_v35  ;;  %v16874_v41 = vcombine.high %v1026_v36, %v1030_v37  ;;  %v1085_v29 = vld [vmem:[%s19859_s20 + $0x11e0] sm:$0xff] }
 0x1c8   : > { %11551 = vmatpush1.bf16.msra.mxu0 %v16807_v46  ;;  %12153 = vmatpush1.bf16.msra.mxu1 %v16809_v47  ;;  %v1038_v46 = vld [vmem:[%s19859_s20 + $0x1068] sm:$0xff]  ;;  %v16871_v47 = vcombine.low %v1025_v34, %v1029_v35  ;;  %v16928_v34 = vcombine.high %v1081_v28, %v1085_v29 }
 0x1c9   : > { %11552 = vmatprep.subr.bf16.mxu0 %v16816_v48  ;;  %12154 = vmatprep.subr.bf16.mxu1 %v16818_v49  ;;  %v16873_v48 = vcombine.low %v1026_v36, %v1030_v37  ;;  %v16880_v49 = vcombine.high %v1033_v42, %v1037_v43  ;;  %v16882_v50 = vcombine.high %v1034_v45, %v1038_v46  ;;  %v1089_v36 = vld [vmem:[%s19859_s20 + $0x1200] sm:$0xff] }
 0x1ca   : > { %v1093_v37 = vld [vmem:[%s19859_s20 + $0x1220] sm:$0xff] }
 0x1cc   : > { %11553 = vmatpush1.bf16.msra.mxu0 %v16815_v54  ;;  %12155 = vmatpush1.bf16.msra.mxu1 %v16817_v55  ;;  %v1042_v54 = vld [vmem:[%s19859_s20 + $0x1088] sm:$0xff] }
 0x1cd   : > { %11554 = vmatprep.subr.bf16.mxu0 %v16824_v56  ;;  %12156 = vmatprep.subr.bf16.mxu1 %v16826_v57  ;;  %v1046_v55 = vld [vmem:[%s19859_s20 + $0x10a8] sm:$0xff]  ;;  %v16879_v56 = vcombine.low %v1033_v42, %v1037_v43  ;;  %v16881_v57 = vcombine.low %v1034_v45, %v1038_v46  ;;  %v16936_v42 = vcombine.high %v1089_v36, %v1093_v37  ;;  %v1101_v45 = vld [vmem:[%s19859_s20 + $0x1260] sm:$0xff] }
 0x1ce   : > { %v16890_v59 = vcombine.high %v1042_v54, %v1046_v55  ;;  %v1098_v46 = vld [vmem:[%s19859_s20 + $0x1248] sm:$0xff] }
 0x1d0   : > { %11555 = vmatpush1.bf16.msra.mxu0 %v16823_v62  ;;  %12157 = vmatpush1.bf16.msra.mxu1 %v16825_v63  ;;  %v1050_v62 = vld [vmem:[%s19859_s20 + $0x10c8] sm:$0xff] }
 0x1d1   : > { %11556 = vmatprep.subr.bf16.mxu0 %v16832_v0  ;;  %12158 = vmatprep.subr.bf16.mxu1 %v16834_v1  ;;  %v1054_v63 = vld [vmem:[%s19859_s20 + $0x10e8] sm:$0xff]  ;;  %v16887_v0 = vcombine.low %v1041_v51, %v1045_v52  ;;  %v16889_v1 = vcombine.low %v1042_v54, %v1046_v55  ;;  %v1105_v52 = vld [vmem:[%s19859_s20 + $0x1280] sm:$0xff] }
 0x1d2   : > { %v16898_v3 = vcombine.high %v1050_v62, %v1054_v63  ;;  %v1106_v54 = vld [vmem:[%s19859_s20 + $0x1288] sm:$0xff] }
 0x1d3   : > { %v1110_v55 = vld [vmem:[%s19859_s20 + $0x12a8] sm:$0xff] }
 0x1d4   : > { %11557 = vmatpush1.bf16.msra.mxu0 %v16831_v6  ;;  %12159 = vmatpush1.bf16.msra.mxu1 %v16833_v7  ;;  %v1058_v6 = vld [vmem:[%s19859_s20 + $0x1108] sm:$0xff] }
 0x1d5   : > { %11558 = vmatprep.subr.bf16.mxu0 %v16840_v8  ;;  %12160 = vmatprep.subr.bf16.mxu1 %v16842_v9  ;;  %v1062_v7 = vld [vmem:[%s19859_s20 + $0x1128] sm:$0xff]  ;;  %v16895_v8 = vcombine.low %v1049_v60, %v1053_v61  ;;  %v16897_v9 = vcombine.low %v1050_v62, %v1054_v63  ;;  %v1113_v60 = vld [vmem:[%s19859_s20 + $0x12c0] sm:$0xff] }
 0x1d6   : > { %v16906_v11 = vcombine.high %v1058_v6, %v1062_v7  ;;  %v1117_v61 = vld [vmem:[%s19859_s20 + $0x12e0] sm:$0xff]  ;;  %v1114_v62 = vld [vmem:[%s19859_s20 + $0x12c8] sm:$0xff] }
 0x1d7   : > { %v1118_v63 = vld [vmem:[%s19859_s20 + $0x12e8] sm:$0xff] }
 0x1d8   : > { %11559 = vmatpush1.bf16.msra.mxu0 %v16839_v14  ;;  %12161 = vmatpush1.bf16.msra.mxu1 %v16841_v15  ;;  %v1066_v14 = vld [vmem:[%s19859_s20 + $0x1148] sm:$0xff] }
 0x1d9   : > { %11560 = vmatprep.subr.bf16.mxu0 %v16848_v16  ;;  %12162 = vmatprep.subr.bf16.mxu1 %v16850_v17  ;;  %v1070_v15 = vld [vmem:[%s19859_s20 + $0x1168] sm:$0xff]  ;;  %v16903_v16 = vcombine.low %v1057_v4, %v1061_v5  ;;  %v16905_v17 = vcombine.low %v1058_v6, %v1062_v7  ;;  %v1121_v4 = vld [vmem:[%s19859_s20 + $0x1300] sm:$0xff] }
 0x1da   : > { %v16914_v19 = vcombine.high %v1066_v14, %v1070_v15  ;;  %v1125_v5 = vld [vmem:[%s19859_s20 + $0x1320] sm:$0xff]  ;;  %v1122_v6 = vld [vmem:[%s19859_s20 + $0x1308] sm:$0xff] }
 0x1db   : > { %v1126_v7 = vld [vmem:[%s19859_s20 + $0x1328] sm:$0xff] }
 0x1dc   : > { %11561 = vmatpush1.bf16.msra.mxu0 %v16847_v22  ;;  %12163 = vmatpush1.bf16.msra.mxu1 %v16849_v23  ;;  %v1074_v22 = vld [vmem:[%s19859_s20 + $0x1188] sm:$0xff] }
 0x1dd   : > { %11562 = vmatprep.subr.bf16.mxu0 %v16856_v24  ;;  %12164 = vmatprep.subr.bf16.mxu1 %v16858_v25  ;;  %v1078_v23 = vld [vmem:[%s19859_s20 + $0x11a8] sm:$0xff]  ;;  %v16911_v24 = vcombine.low %v1065_v12, %v1069_v13  ;;  %v16913_v25 = vcombine.low %v1066_v14, %v1070_v15  ;;  %v1129_v12 = vld [vmem:[%s19859_s20 + $0x1340] sm:$0xff] }
 0x1de   : > { %v16922_v27 = vcombine.high %v1074_v22, %v1078_v23  ;;  %v1133_v13 = vld [vmem:[%s19859_s20 + $0x1360] sm:$0xff]  ;;  %v1130_v14 = vld [vmem:[%s19859_s20 + $0x1348] sm:$0xff] }
 0x1df   : > { %v1134_v15 = vld [vmem:[%s19859_s20 + $0x1368] sm:$0xff] }
 0x1e0   : > { %11563 = vmatpush1.bf16.msra.mxu0 %v16855_v30  ;;  %12165 = vmatpush1.bf16.msra.mxu1 %v16857_v31  ;;  %v1082_v30 = vld [vmem:[%s19859_s20 + $0x11c8] sm:$0xff] }
 0x1e1   : > { %11564 = vmatprep.subr.bf16.mxu0 %v16864_v32  ;;  %12166 = vmatprep.subr.bf16.mxu1 %v16866_v33  ;;  %v1086_v31 = vld [vmem:[%s19859_s20 + $0x11e8] sm:$0xff]  ;;  %v16919_v32 = vcombine.low %v1073_v20, %v1077_v21  ;;  %v16921_v33 = vcombine.low %v1074_v22, %v1078_v23  ;;  %v1137_v20 = vld [vmem:[%s19859_s20 + $0x1380] sm:$0xff] }
 0x1e2   : > { %v16930_v35 = vcombine.high %v1082_v30, %v1086_v31  ;;  %v1141_v21 = vld [vmem:[%s19859_s20 + $0x13a0] sm:$0xff]  ;;  %v1138_v22 = vld [vmem:[%s19859_s20 + $0x1388] sm:$0xff] }
 0x1e3   : > { %v1142_v23 = vld [vmem:[%s19859_s20 + $0x13a8] sm:$0xff] }
 0x1e4   : > { %11565 = vmatpush1.bf16.msra.mxu0 %v16863_v38  ;;  %12167 = vmatpush1.bf16.msra.mxu1 %v16865_v39  ;;  %v1090_v38 = vld [vmem:[%s19859_s20 + $0x1208] sm:$0xff] }
 0x1e5   : > { %11577 = vmatprep.subr.bf16.mxu0 %v16872_v40  ;;  %12179 = vmatprep.subr.bf16.mxu1 %v16874_v41  ;;  %v1094_v39 = vld [vmem:[%s19859_s20 + $0x1228] sm:$0xff]  ;;  %v16927_v40 = vcombine.low %v1081_v28, %v1085_v29  ;;  %v16929_v41 = vcombine.low %v1082_v30, %v1086_v31  ;;  %v1145_v28 = vld [vmem:[%s19859_s20 + $0x13c0] sm:$0xff] }
 0x1e6   : > { %v16938_v43 = vcombine.high %v1090_v38, %v1094_v39  ;;  %v1149_v29 = vld [vmem:[%s19859_s20 + $0x13e0] sm:$0xff]  ;;  %v1146_v30 = vld [vmem:[%s19859_s20 + $0x13c8] sm:$0xff] }
 0x1e7   : > { %11567 = vmatmul.mubr.bf16.vlgmr.msra.gmra.mrb[0].mxu0 %v18838_v44  ;;  %12169 = vmatmul.mubr.bf16.vlgmr.msra.gmra.mrb[0].mxu1 %v18838_v44  ;;  %v1097_v44 = vld [vmem:[%s19859_s20 + $0x1240] sm:$0xff]  ;;  %v1150_v31 = vld [vmem:[%s19859_s20 + $0x13e8] sm:$0xff] }
 0x1e8   : > { %11578 = vmatpush1.bf16.msra.mxu0 %v16871_v47  ;;  %12180 = vmatpush1.bf16.msra.mxu1 %v16873_v48  ;;  %v1102_v47 = vld [vmem:[%s19859_s20 + $0x1268] sm:$0xff]  ;;  %v16935_v48 = vcombine.low %v1089_v36, %v1093_v37  ;;  %v1153_v36 = vld [vmem:[%s19859_s20 + $0x1400] sm:$0xff] }
 0x1e9   : > { %11579 = vmatprep.subr.bf16.mxu0 %v16880_v49  ;;  %12181 = vmatprep.subr.bf16.mxu1 %v16882_v50  ;;  %v16937_v49 = vcombine.low %v1090_v38, %v1094_v39  ;;  %v16944_v50 = vcombine.high %v1097_v44, %v1101_v45  ;;  %v16946_v51 = vcombine.high %v1098_v46, %v1102_v47  ;;  %v1157_v37 = vld [vmem:[%s19859_s20 + $0x1420] sm:$0xff]  ;;  %v1154_v38 = vld [vmem:[%s19859_s20 + $0x1408] sm:$0xff] }
 0x1ea   : > { %11609 = vmatprep.mubr.bf16.mxu0 %v18839_v53  ;;  %12211 = vmatprep.mubr.bf16.mxu1 %v18839_v53  ;;  %v1109_v53 = vld [vmem:[%s19859_s20 + $0x12a0] sm:$0xff]  ;;  %v1158_v39 = vld [vmem:[%s19859_s20 + $0x1428] sm:$0xff] }
 0x1ec   : > { %11580 = vmatpush1.bf16.msra.mxu0 %v16879_v56  ;;  %12182 = vmatpush1.bf16.msra.mxu1 %v16881_v57  ;;  %v16943_v56 = vcombine.low %v1097_v44, %v1101_v45  ;;  %v16945_v57 = vcombine.low %v1098_v46, %v1102_v47  ;;  %v1161_v44 = vld [vmem:[%s19859_s20 + $0x1440] sm:$0xff]  ;;  %v1162_v47 = vld [vmem:[%s19859_s20 + $0x1448] sm:$0xff] }
 0x1ed   : > { %11581 = vmatprep.subr.bf16.mxu0 %v16888_v58  ;;  %12183 = vmatprep.subr.bf16.mxu1 %v16890_v59  ;;  %v16952_v58 = vcombine.high %v1105_v52, %v1109_v53  ;;  %v16954_v59 = vcombine.high %v1106_v54, %v1110_v55  ;;  %v1165_v45 = vld [vmem:[%s19859_s20 + $0x1460] sm:$0xff] }
 0x1ee   : > { %v18841_v46 = vld [vmem:[%s19857_s27 + $0x20] ss:$112 sps:$4 sm:$0xff]  }
 0x1f0   : > { %11582 = vmatpush1.bf16.msra.mxu0 %v16887_v0  ;;  %12184 = vmatpush1.bf16.msra.mxu1 %v16889_v1  ;;  %v16951_v0 = vcombine.low %v1105_v52, %v1109_v53  ;;  %v16953_v1 = vcombine.low %v1106_v54, %v1110_v55  ;;  %v1169_v53 = vld [vmem:[%s19859_s20 + $0x1480] sm:$0xff]  ;;  %v18842_v55 = vld [vmem:[%s19857_s27 + $0x2c] ss:$112 sps:$4 sm:$0xff]  }
 0x1f1   : > { %11583 = vmatprep.subr.bf16.mxu0 %v16896_v2  ;;  %12185 = vmatprep.subr.bf16.mxu1 %v16898_v3  ;;  %v16960_v2 = vcombine.high %v1113_v60, %v1117_v61  ;;  %v16962_v3 = vcombine.high %v1114_v62, %v1118_v63  ;;  %v1173_v54 = vld [vmem:[%s19859_s20 + $0x14a0] sm:$0xff] }
 0x1f4   : > { %11584 = vmatpush1.bf16.msra.mxu0 %v16895_v8  ;;  %12186 = vmatpush1.bf16.msra.mxu1 %v16897_v9  ;;  %v16959_v8 = vcombine.low %v1113_v60, %v1117_v61  ;;  %v16961_v9 = vcombine.low %v1114_v62, %v1118_v63  ;;  %v17016_v60 = vcombine.high %v1169_v53, %v1173_v54  ;;  %v1177_v62 = vld [vmem:[%s19859_s20 + $0x14c0] sm:$0xff] }
 0x1f5   : > { %11585 = vmatprep.subr.bf16.mxu0 %v16904_v10  ;;  %12187 = vmatprep.subr.bf16.mxu1 %v16906_v11  ;;  %v16968_v10 = vcombine.high %v1121_v4, %v1125_v5  ;;  %v16970_v11 = vcombine.high %v1122_v6, %v1126_v7  ;;  %v1181_v63 = vld [vmem:[%s19859_s20 + $0x14e0] sm:$0xff] }
 0x1f8   : > { %11586 = vmatpush1.bf16.msra.mxu0 %v16903_v16  ;;  %12188 = vmatpush1.bf16.msra.mxu1 %v16905_v17  ;;  %v16967_v16 = vcombine.low %v1121_v4, %v1125_v5  ;;  %v16969_v17 = vcombine.low %v1122_v6, %v1126_v7  ;;  %v17024_v4 = vcombine.high %v1177_v62, %v1181_v63  ;;  %v1185_v6 = vld [vmem:[%s19859_s20 + $0x1500] sm:$0xff] }
 0x1f9   : > { %11587 = vmatprep.subr.bf16.mxu0 %v16912_v18  ;;  %12189 = vmatprep.subr.bf16.mxu1 %v16914_v19  ;;  %v16976_v18 = vcombine.high %v1129_v12, %v1133_v13  ;;  %v16978_v19 = vcombine.high %v1130_v14, %v1134_v15  ;;  %v1189_v7 = vld [vmem:[%s19859_s20 + $0x1520] sm:$0xff] }
 0x1fc   : > { %11588 = vmatpush1.bf16.msra.mxu0 %v16911_v24  ;;  %12190 = vmatpush1.bf16.msra.mxu1 %v16913_v25  ;;  %v16975_v24 = vcombine.low %v1129_v12, %v1133_v13  ;;  %v16977_v25 = vcombine.low %v1130_v14, %v1134_v15  ;;  %v17032_v12 = vcombine.high %v1185_v6, %v1189_v7  ;;  %v1193_v14 = vld [vmem:[%s19859_s20 + $0x1540] sm:$0xff] }
 0x1fd   : > { %11589 = vmatprep.subr.bf16.mxu0 %v16920_v26  ;;  %12191 = vmatprep.subr.bf16.mxu1 %v16922_v27  ;;  %v16984_v26 = vcombine.high %v1137_v20, %v1141_v21  ;;  %v16986_v27 = vcombine.high %v1138_v22, %v1142_v23  ;;  %v1197_v15 = vld [vmem:[%s19859_s20 + $0x1560] sm:$0xff] }
 0x200   : > { %11590 = vmatpush1.bf16.msra.mxu0 %v16919_v32  ;;  %12192 = vmatpush1.bf16.msra.mxu1 %v16921_v33  ;;  %v16983_v32 = vcombine.low %v1137_v20, %v1141_v21  ;;  %v16985_v33 = vcombine.low %v1138_v22, %v1142_v23  ;;  %v17040_v20 = vcombine.high %v1193_v14, %v1197_v15  ;;  %v1201_v22 = vld [vmem:[%s19859_s20 + $0x1580] sm:$0xff] }
 0x201   : > { %11591 = vmatprep.subr.bf16.mxu0 %v16928_v34  ;;  %12193 = vmatprep.subr.bf16.mxu1 %v16930_v35  ;;  %v16992_v34 = vcombine.high %v1145_v28, %v1149_v29  ;;  %v16994_v35 = vcombine.high %v1146_v30, %v1150_v31  ;;  %v1205_v23 = vld [vmem:[%s19859_s20 + $0x15a0] sm:$0xff] }
 0x204   : > { %11592 = vmatpush1.bf16.msra.mxu0 %v16927_v40  ;;  %12194 = vmatpush1.bf16.msra.mxu1 %v16929_v41  ;;  %v16991_v40 = vcombine.low %v1145_v28, %v1149_v29  ;;  %v16993_v41 = vcombine.low %v1146_v30, %v1150_v31  ;;  %v17048_v28 = vcombine.high %v1201_v22, %v1205_v23  ;;  %v1209_v30 = vld [vmem:[%s19859_s20 + $0x15c0] sm:$0xff] }
 0x205   : > { %11593 = vmatprep.subr.bf16.mxu0 %v16936_v42  ;;  %12195 = vmatprep.subr.bf16.mxu1 %v16938_v43  ;;  %v17000_v42 = vcombine.high %v1153_v36, %v1157_v37  ;;  %v17002_v43 = vcombine.high %v1154_v38, %v1158_v39  ;;  %v1213_v31 = vld [vmem:[%s19859_s20 + $0x15e0] sm:$0xff] }
 0x208   : > { %11594 = vmatpush1.bf16.msra.mxu0 %v16935_v48  ;;  %12196 = vmatpush1.bf16.msra.mxu1 %v16937_v49  ;;  %v1166_v48 = vld [vmem:[%s19859_s20 + $0x1468] sm:$0xff]  ;;  %v16999_v49 = vcombine.low %v1153_v36, %v1157_v37  ;;  %v17056_v36 = vcombine.high %v1209_v30, %v1213_v31 }
 0x209   : > { %11595 = vmatprep.subr.bf16.mxu0 %v16944_v50  ;;  %12197 = vmatprep.subr.bf16.mxu1 %v16946_v51  ;;  %v17001_v50 = vcombine.low %v1154_v38, %v1158_v39  ;;  %v17008_v51 = vcombine.high %v1161_v44, %v1165_v45  ;;  %v17010_v52 = vcombine.high %v1162_v47, %v1166_v48  ;;  %v1217_v38 = vld [vmem:[%s19859_s20 + $0x1600] sm:$0xff] }
 0x20a   : > { %v1221_v39 = vld [vmem:[%s19859_s20 + $0x1620] sm:$0xff] }
 0x20c   : > { %11596 = vmatpush1.bf16.msra.mxu0 %v16943_v56  ;;  %12198 = vmatpush1.bf16.msra.mxu1 %v16945_v57  ;;  %v1170_v56 = vld [vmem:[%s19859_s20 + $0x1488] sm:$0xff] }
 0x20d   : > { %11597 = vmatprep.subr.bf16.mxu0 %v16952_v58  ;;  %12199 = vmatprep.subr.bf16.mxu1 %v16954_v59  ;;  %v1174_v57 = vld [vmem:[%s19859_s20 + $0x14a8] sm:$0xff]  ;;  %v17007_v58 = vcombine.low %v1161_v44, %v1165_v45  ;;  %v17009_v59 = vcombine.low %v1162_v47, %v1166_v48  ;;  %v17064_v44 = vcombine.high %v1217_v38, %v1221_v39  ;;  %v1229_v47 = vld [vmem:[%s19859_s20 + $0x1660] sm:$0xff] }
 0x20e   : > { %v17018_v61 = vcombine.high %v1170_v56, %v1174_v57  ;;  %v1226_v48 = vld [vmem:[%s19859_s20 + $0x1648] sm:$0xff] }
 0x210   : > { %11598 = vmatpush1.bf16.msra.mxu0 %v16951_v0  ;;  %12200 = vmatpush1.bf16.msra.mxu1 %v16953_v1  ;;  %v1178_v0 = vld [vmem:[%s19859_s20 + $0x14c8] sm:$0xff] }
 0x211   : > { %11599 = vmatprep.subr.bf16.mxu0 %v16960_v2  ;;  %12201 = vmatprep.subr.bf16.mxu1 %v16962_v3  ;;  %v1182_v1 = vld [vmem:[%s19859_s20 + $0x14e8] sm:$0xff]  ;;  %v17015_v2 = vcombine.low %v1169_v53, %v1173_v54  ;;  %v17017_v3 = vcombine.low %v1170_v56, %v1174_v57  ;;  %v1233_v54 = vld [vmem:[%s19859_s20 + $0x1680] sm:$0xff] }
 0x212   : > { %v17026_v5 = vcombine.high %v1178_v0, %v1182_v1  ;;  %v1234_v56 = vld [vmem:[%s19859_s20 + $0x1688] sm:$0xff] }
 0x213   : > { %v1238_v57 = vld [vmem:[%s19859_s20 + $0x16a8] sm:$0xff] }
 0x214   : > { %11600 = vmatpush1.bf16.msra.mxu0 %v16959_v8  ;;  %12202 = vmatpush1.bf16.msra.mxu1 %v16961_v9  ;;  %v1186_v8 = vld [vmem:[%s19859_s20 + $0x1508] sm:$0xff] }
 0x215   : > { %11601 = vmatprep.subr.bf16.mxu0 %v16968_v10  ;;  %12203 = vmatprep.subr.bf16.mxu1 %v16970_v11  ;;  %v1190_v9 = vld [vmem:[%s19859_s20 + $0x1528] sm:$0xff]  ;;  %v17023_v10 = vcombine.low %v1177_v62, %v1181_v63  ;;  %v17025_v11 = vcombine.low %v1178_v0, %v1182_v1  ;;  %v1241_v62 = vld [vmem:[%s19859_s20 + $0x16c0] sm:$0xff] }
 0x216   : > { %v17034_v13 = vcombine.high %v1186_v8, %v1190_v9  ;;  %v1245_v63 = vld [vmem:[%s19859_s20 + $0x16e0] sm:$0xff]  ;;  %v1242_v0 = vld [vmem:[%s19859_s20 + $0x16c8] sm:$0xff] }
 0x217   : > { %v1246_v1 = vld [vmem:[%s19859_s20 + $0x16e8] sm:$0xff] }
 0x218   : > { %11602 = vmatpush1.bf16.msra.mxu0 %v16967_v16  ;;  %12204 = vmatpush1.bf16.msra.mxu1 %v16969_v17  ;;  %v1194_v16 = vld [vmem:[%s19859_s20 + $0x1548] sm:$0xff] }
 0x219   : > { %11603 = vmatprep.subr.bf16.mxu0 %v16976_v18  ;;  %12205 = vmatprep.subr.bf16.mxu1 %v16978_v19  ;;  %v1198_v17 = vld [vmem:[%s19859_s20 + $0x1568] sm:$0xff]  ;;  %v17031_v18 = vcombine.low %v1185_v6, %v1189_v7  ;;  %v17033_v19 = vcombine.low %v1186_v8, %v1190_v9  ;;  %v1249_v6 = vld [vmem:[%s19859_s20 + $0x1700] sm:$0xff] }
 0x21a   : > { %v17042_v21 = vcombine.high %v1194_v16, %v1198_v17  ;;  %v1253_v7 = vld [vmem:[%s19859_s20 + $0x1720] sm:$0xff]  ;;  %v1250_v8 = vld [vmem:[%s19859_s20 + $0x1708] sm:$0xff] }
 0x21b   : > { %v1254_v9 = vld [vmem:[%s19859_s20 + $0x1728] sm:$0xff] }
 0x21c   : > { %11604 = vmatpush1.bf16.msra.mxu0 %v16975_v24  ;;  %12206 = vmatpush1.bf16.msra.mxu1 %v16977_v25  ;;  %v1202_v24 = vld [vmem:[%s19859_s20 + $0x1588] sm:$0xff] }
 0x21d   : > { %11605 = vmatprep.subr.bf16.mxu0 %v16984_v26  ;;  %12207 = vmatprep.subr.bf16.mxu1 %v16986_v27  ;;  %v1206_v25 = vld [vmem:[%s19859_s20 + $0x15a8] sm:$0xff]  ;;  %v17039_v26 = vcombine.low %v1193_v14, %v1197_v15  ;;  %v17041_v27 = vcombine.low %v1194_v16, %v1198_v17  ;;  %v1257_v14 = vld [vmem:[%s19859_s20 + $0x1740] sm:$0xff] }
 0x21e   : > { %v17050_v29 = vcombine.high %v1202_v24, %v1206_v25  ;;  %v1261_v15 = vld [vmem:[%s19859_s20 + $0x1760] sm:$0xff]  ;;  %v1258_v16 = vld [vmem:[%s19859_s20 + $0x1748] sm:$0xff] }
 0x21f   : > { %v1262_v17 = vld [vmem:[%s19859_s20 + $0x1768] sm:$0xff] }
 0x220   : > { %11606 = vmatpush1.bf16.msra.mxu0 %v16983_v32  ;;  %12208 = vmatpush1.bf16.msra.mxu1 %v16985_v33  ;;  %v1210_v32 = vld [vmem:[%s19859_s20 + $0x15c8] sm:$0xff] }
 0x221   : > { %11607 = vmatprep.subr.bf16.mxu0 %v16992_v34  ;;  %12209 = vmatprep.subr.bf16.mxu1 %v16994_v35  ;;  %v1214_v33 = vld [vmem:[%s19859_s20 + $0x15e8] sm:$0xff]  ;;  %v17047_v34 = vcombine.low %v1201_v22, %v1205_v23  ;;  %v17049_v35 = vcombine.low %v1202_v24, %v1206_v25  ;;  %v1265_v22 = vld [vmem:[%s19859_s20 + $0x1780] sm:$0xff] }
 0x222   : > { %v17058_v37 = vcombine.high %v1210_v32, %v1214_v33  ;;  %v1269_v23 = vld [vmem:[%s19859_s20 + $0x17a0] sm:$0xff]  ;;  %v1266_v24 = vld [vmem:[%s19859_s20 + $0x1788] sm:$0xff] }
 0x223   : > { %v1270_v25 = vld [vmem:[%s19859_s20 + $0x17a8] sm:$0xff] }
 0x224   : > { %11608 = vmatpush1.bf16.msra.mxu0 %v16991_v40  ;;  %12210 = vmatpush1.bf16.msra.mxu1 %v16993_v41  ;;  %v1218_v40 = vld [vmem:[%s19859_s20 + $0x1608] sm:$0xff] }
 0x225   : > { %11620 = vmatprep.subr.bf16.mxu0 %v17000_v42  ;;  %12222 = vmatprep.subr.bf16.mxu1 %v17002_v43  ;;  %v1222_v41 = vld [vmem:[%s19859_s20 + $0x1628] sm:$0xff]  ;;  %v17055_v42 = vcombine.low %v1209_v30, %v1213_v31  ;;  %v17057_v43 = vcombine.low %v1210_v32, %v1214_v33  ;;  %v1273_v30 = vld [vmem:[%s19859_s20 + $0x17c0] sm:$0xff] }
 0x226   : > { %v17066_v45 = vcombine.high %v1218_v40, %v1222_v41  ;;  %v1277_v31 = vld [vmem:[%s19859_s20 + $0x17e0] sm:$0xff]  ;;  %v1274_v32 = vld [vmem:[%s19859_s20 + $0x17c8] sm:$0xff] }
 0x227   : > { %11610 = vmatmul.mubr.bf16.vlgmr.msra.gmra.mrb[0].mxu0 %v18841_v46  ;;  %12212 = vmatmul.mubr.bf16.vlgmr.msra.gmra.mrb[0].mxu1 %v18841_v46  ;;  %v1225_v46 = vld [vmem:[%s19859_s20 + $0x1640] sm:$0xff]  ;;  %v1278_v33 = vld [vmem:[%s19859_s20 + $0x17e8] sm:$0xff] }
 0x228   : > { %11621 = vmatpush1.bf16.msra.mxu0 %v16999_v49  ;;  %12223 = vmatpush1.bf16.msra.mxu1 %v17001_v50  ;;  %v1230_v49 = vld [vmem:[%s19859_s20 + $0x1668] sm:$0xff]  ;;  %v17063_v50 = vcombine.low %v1217_v38, %v1221_v39  ;;  %v1281_v38 = vld [vmem:[%s19859_s20 + $0x1800] sm:$0xff] }
 0x229   : > { %11622 = vmatprep.subr.bf16.mxu0 %v17008_v51  ;;  %12224 = vmatprep.subr.bf16.mxu1 %v17010_v52  ;;  %v17065_v51 = vcombine.low %v1218_v40, %v1222_v41  ;;  %v17072_v52 = vcombine.high %v1225_v46, %v1229_v47  ;;  %v17074_v53 = vcombine.high %v1226_v48, %v1230_v49  ;;  %v1285_v39 = vld [vmem:[%s19859_s20 + $0x1820] sm:$0xff]  ;;  %v1282_v40 = vld [vmem:[%s19859_s20 + $0x1808] sm:$0xff] }
 0x22a   : > { %11652 = vmatprep.mubr.bf16.mxu0 %v18842_v55  ;;  %12254 = vmatprep.mubr.bf16.mxu1 %v18842_v55  ;;  %v1237_v55 = vld [vmem:[%s19859_s20 + $0x16a0] sm:$0xff]  ;;  %v1286_v41 = vld [vmem:[%s19859_s20 + $0x1828] sm:$0xff] }
 0x22c   : > { %11623 = vmatpush1.bf16.msra.mxu0 %v17007_v58  ;;  %12225 = vmatpush1.bf16.msra.mxu1 %v17009_v59  ;;  %v17071_v58 = vcombine.low %v1225_v46, %v1229_v47  ;;  %v17073_v59 = vcombine.low %v1226_v48, %v1230_v49  ;;  %v1289_v46 = vld [vmem:[%s19859_s20 + $0x1840] sm:$0xff]  ;;  %v18844_v48 = vld [vmem:[%s19857_s27 + $0x28] ss:$112 sps:$4 sm:$0xff]  }
 0x22d   : > { %11624 = vmatprep.subr.bf16.mxu0 %v17016_v60  ;;  %12226 = vmatprep.subr.bf16.mxu1 %v17018_v61  ;;  %v17080_v60 = vcombine.high %v1233_v54, %v1237_v55  ;;  %v17082_v61 = vcombine.high %v1234_v56, %v1238_v57  ;;  %v1293_v47 = vld [vmem:[%s19859_s20 + $0x1860] sm:$0xff]  ;;  %v1290_v49 = vld [vmem:[%s19859_s20 + $0x1848] sm:$0xff] }
 0x230   : > { %11625 = vmatpush1.bf16.msra.mxu0 %v17015_v2  ;;  %12227 = vmatpush1.bf16.msra.mxu1 %v17017_v3  ;;  %v17079_v2 = vcombine.low %v1233_v54, %v1237_v55  ;;  %v17081_v3 = vcombine.low %v1234_v56, %v1238_v57  ;;  %v1297_v55 = vld [vmem:[%s19859_s20 + $0x1880] sm:$0xff] }
 0x231   : > { %11626 = vmatprep.subr.bf16.mxu0 %v17024_v4  ;;  %12228 = vmatprep.subr.bf16.mxu1 %v17026_v5  ;;  %v17088_v4 = vcombine.high %v1241_v62, %v1245_v63  ;;  %v17090_v5 = vcombine.high %v1242_v0, %v1246_v1  ;;  %v1301_v56 = vld [vmem:[%s19859_s20 + $0x18a0] sm:$0xff] }
 0x232   : > { %v18845_v57 = vld [vmem:[%s19857_s27 + $0x34] ss:$112 sps:$4 sm:$0xff]  }
 0x234   : > { %11627 = vmatpush1.bf16.msra.mxu0 %v17023_v10  ;;  %12229 = vmatpush1.bf16.msra.mxu1 %v17025_v11  ;;  %v17087_v10 = vcombine.low %v1241_v62, %v1245_v63  ;;  %v17089_v11 = vcombine.low %v1242_v0, %v1246_v1  ;;  %v17144_v62 = vcombine.high %v1297_v55, %v1301_v56  ;;  %v1305_v0 = vld [vmem:[%s19859_s20 + $0x18c0] sm:$0xff] }
 0x235   : > { %11628 = vmatprep.subr.bf16.mxu0 %v17032_v12  ;;  %12230 = vmatprep.subr.bf16.mxu1 %v17034_v13  ;;  %v17096_v12 = vcombine.high %v1249_v6, %v1253_v7  ;;  %v17098_v13 = vcombine.high %v1250_v8, %v1254_v9  ;;  %v1309_v1 = vld [vmem:[%s19859_s20 + $0x18e0] sm:$0xff] }
 0x238   : > { %11629 = vmatpush1.bf16.msra.mxu0 %v17031_v18  ;;  %12231 = vmatpush1.bf16.msra.mxu1 %v17033_v19  ;;  %v17095_v18 = vcombine.low %v1249_v6, %v1253_v7  ;;  %v17097_v19 = vcombine.low %v1250_v8, %v1254_v9  ;;  %v17152_v6 = vcombine.high %v1305_v0, %v1309_v1  ;;  %v1313_v8 = vld [vmem:[%s19859_s20 + $0x1900] sm:$0xff] }
 0x239   : > { %11630 = vmatprep.subr.bf16.mxu0 %v17040_v20  ;;  %12232 = vmatprep.subr.bf16.mxu1 %v17042_v21  ;;  %v17104_v20 = vcombine.high %v1257_v14, %v1261_v15  ;;  %v17106_v21 = vcombine.high %v1258_v16, %v1262_v17  ;;  %v1317_v9 = vld [vmem:[%s19859_s20 + $0x1920] sm:$0xff] }
 0x23c   : > { %11631 = vmatpush1.bf16.msra.mxu0 %v17039_v26  ;;  %12233 = vmatpush1.bf16.msra.mxu1 %v17041_v27  ;;  %v17103_v26 = vcombine.low %v1257_v14, %v1261_v15  ;;  %v17105_v27 = vcombine.low %v1258_v16, %v1262_v17  ;;  %v17160_v14 = vcombine.high %v1313_v8, %v1317_v9  ;;  %v1321_v16 = vld [vmem:[%s19859_s20 + $0x1940] sm:$0xff] }
 0x23d   : > { %11632 = vmatprep.subr.bf16.mxu0 %v17048_v28  ;;  %12234 = vmatprep.subr.bf16.mxu1 %v17050_v29  ;;  %v17112_v28 = vcombine.high %v1265_v22, %v1269_v23  ;;  %v17114_v29 = vcombine.high %v1266_v24, %v1270_v25  ;;  %v1325_v17 = vld [vmem:[%s19859_s20 + $0x1960] sm:$0xff] }
 0x240   : > { %11633 = vmatpush1.bf16.msra.mxu0 %v17047_v34  ;;  %12235 = vmatpush1.bf16.msra.mxu1 %v17049_v35  ;;  %v17111_v34 = vcombine.low %v1265_v22, %v1269_v23  ;;  %v17113_v35 = vcombine.low %v1266_v24, %v1270_v25  ;;  %v17168_v22 = vcombine.high %v1321_v16, %v1325_v17  ;;  %v1329_v24 = vld [vmem:[%s19859_s20 + $0x1980] sm:$0xff] }
 0x241   : > { %11634 = vmatprep.subr.bf16.mxu0 %v17056_v36  ;;  %12236 = vmatprep.subr.bf16.mxu1 %v17058_v37  ;;  %v17120_v36 = vcombine.high %v1273_v30, %v1277_v31  ;;  %v17122_v37 = vcombine.high %v1274_v32, %v1278_v33  ;;  %v1333_v25 = vld [vmem:[%s19859_s20 + $0x19a0] sm:$0xff] }
 0x244   : > { %11635 = vmatpush1.bf16.msra.mxu0 %v17055_v42  ;;  %12237 = vmatpush1.bf16.msra.mxu1 %v17057_v43  ;;  %v17119_v42 = vcombine.low %v1273_v30, %v1277_v31  ;;  %v17121_v43 = vcombine.low %v1274_v32, %v1278_v33  ;;  %v17176_v30 = vcombine.high %v1329_v24, %v1333_v25  ;;  %v1337_v32 = vld [vmem:[%s19859_s20 + $0x19c0] sm:$0xff] }
 0x245   : > { %11636 = vmatprep.subr.bf16.mxu0 %v17064_v44  ;;  %12238 = vmatprep.subr.bf16.mxu1 %v17066_v45  ;;  %v17128_v44 = vcombine.high %v1281_v38, %v1285_v39  ;;  %v17130_v45 = vcombine.high %v1282_v40, %v1286_v41  ;;  %v1341_v33 = vld [vmem:[%s19859_s20 + $0x19e0] sm:$0xff] }
 0x248   : > { %11637 = vmatpush1.bf16.msra.mxu0 %v17063_v50  ;;  %12239 = vmatpush1.bf16.msra.mxu1 %v17065_v51  ;;  %v1294_v50 = vld [vmem:[%s19859_s20 + $0x1868] sm:$0xff]  ;;  %v17127_v51 = vcombine.low %v1281_v38, %v1285_v39  ;;  %v17184_v38 = vcombine.high %v1337_v32, %v1341_v33 }
 0x249   : > { %11638 = vmatprep.subr.bf16.mxu0 %v17072_v52  ;;  %12240 = vmatprep.subr.bf16.mxu1 %v17074_v53  ;;  %v17129_v52 = vcombine.low %v1282_v40, %v1286_v41  ;;  %v17136_v53 = vcombine.high %v1289_v46, %v1293_v47  ;;  %v17138_v54 = vcombine.high %v1290_v49, %v1294_v50  ;;  %v1345_v40 = vld [vmem:[%s19859_s20 + $0x1a00] sm:$0xff] }
 0x24a   : > { %v1349_v41 = vld [vmem:[%s19859_s20 + $0x1a20] sm:$0xff] }
 0x24c   : > { %11639 = vmatpush1.bf16.msra.mxu0 %v17071_v58  ;;  %12241 = vmatpush1.bf16.msra.mxu1 %v17073_v59  ;;  %v1298_v58 = vld [vmem:[%s19859_s20 + $0x1888] sm:$0xff] }
 0x24d   : > { %11640 = vmatprep.subr.bf16.mxu0 %v17080_v60  ;;  %12242 = vmatprep.subr.bf16.mxu1 %v17082_v61  ;;  %v1302_v59 = vld [vmem:[%s19859_s20 + $0x18a8] sm:$0xff]  ;;  %v17135_v60 = vcombine.low %v1289_v46, %v1293_v47  ;;  %v17137_v61 = vcombine.low %v1290_v49, %v1294_v50  ;;  %v17192_v46 = vcombine.high %v1345_v40, %v1349_v41  ;;  %v1357_v49 = vld [vmem:[%s19859_s20 + $0x1a60] sm:$0xff] }
 0x24e   : > { %v17146_v63 = vcombine.high %v1298_v58, %v1302_v59  ;;  %v1354_v50 = vld [vmem:[%s19859_s20 + $0x1a48] sm:$0xff] }
 0x250   : > { %11641 = vmatpush1.bf16.msra.mxu0 %v17079_v2  ;;  %12243 = vmatpush1.bf16.msra.mxu1 %v17081_v3  ;;  %v1306_v2 = vld [vmem:[%s19859_s20 + $0x18c8] sm:$0xff] }
 0x251   : > { %11642 = vmatprep.subr.bf16.mxu0 %v17088_v4  ;;  %12244 = vmatprep.subr.bf16.mxu1 %v17090_v5  ;;  %v1310_v3 = vld [vmem:[%s19859_s20 + $0x18e8] sm:$0xff]  ;;  %v17143_v4 = vcombine.low %v1297_v55, %v1301_v56  ;;  %v17145_v5 = vcombine.low %v1298_v58, %v1302_v59  ;;  %v1361_v56 = vld [vmem:[%s19859_s20 + $0x1a80] sm:$0xff] }
 0x252   : > { %v17154_v7 = vcombine.high %v1306_v2, %v1310_v3  ;;  %v1362_v58 = vld [vmem:[%s19859_s20 + $0x1a88] sm:$0xff] }
 0x253   : > { %v1366_v59 = vld [vmem:[%s19859_s20 + $0x1aa8] sm:$0xff] }
 0x254   : > { %11643 = vmatpush1.bf16.msra.mxu0 %v17087_v10  ;;  %12245 = vmatpush1.bf16.msra.mxu1 %v17089_v11  ;;  %v1314_v10 = vld [vmem:[%s19859_s20 + $0x1908] sm:$0xff] }
 0x255   : > { %11644 = vmatprep.subr.bf16.mxu0 %v17096_v12  ;;  %12246 = vmatprep.subr.bf16.mxu1 %v17098_v13  ;;  %v1318_v11 = vld [vmem:[%s19859_s20 + $0x1928] sm:$0xff]  ;;  %v17151_v12 = vcombine.low %v1305_v0, %v1309_v1  ;;  %v17153_v13 = vcombine.low %v1306_v2, %v1310_v3  ;;  %v1369_v0 = vld [vmem:[%s19859_s20 + $0x1ac0] sm:$0xff] }
 0x256   : > { %v17162_v15 = vcombine.high %v1314_v10, %v1318_v11  ;;  %v1373_v1 = vld [vmem:[%s19859_s20 + $0x1ae0] sm:$0xff]  ;;  %v1370_v2 = vld [vmem:[%s19859_s20 + $0x1ac8] sm:$0xff] }
 0x257   : > { %v1374_v3 = vld [vmem:[%s19859_s20 + $0x1ae8] sm:$0xff] }
 0x258   : > { %11645 = vmatpush1.bf16.msra.mxu0 %v17095_v18  ;;  %12247 = vmatpush1.bf16.msra.mxu1 %v17097_v19  ;;  %v1322_v18 = vld [vmem:[%s19859_s20 + $0x1948] sm:$0xff] }
 0x259   : > { %11646 = vmatprep.subr.bf16.mxu0 %v17104_v20  ;;  %12248 = vmatprep.subr.bf16.mxu1 %v17106_v21  ;;  %v1326_v19 = vld [vmem:[%s19859_s20 + $0x1968] sm:$0xff]  ;;  %v17159_v20 = vcombine.low %v1313_v8, %v1317_v9  ;;  %v17161_v21 = vcombine.low %v1314_v10, %v1318_v11  ;;  %v1377_v8 = vld [vmem:[%s19859_s20 + $0x1b00] sm:$0xff] }
 0x25a   : > { %v17170_v23 = vcombine.high %v1322_v18, %v1326_v19  ;;  %v1381_v9 = vld [vmem:[%s19859_s20 + $0x1b20] sm:$0xff]  ;;  %v1378_v10 = vld [vmem:[%s19859_s20 + $0x1b08] sm:$0xff] }
 0x25b   : > { %v1382_v11 = vld [vmem:[%s19859_s20 + $0x1b28] sm:$0xff] }
 0x25c   : > { %11647 = vmatpush1.bf16.msra.mxu0 %v17103_v26  ;;  %12249 = vmatpush1.bf16.msra.mxu1 %v17105_v27  ;;  %v1330_v26 = vld [vmem:[%s19859_s20 + $0x1988] sm:$0xff] }
 0x25d   : > { %11648 = vmatprep.subr.bf16.mxu0 %v17112_v28  ;;  %12250 = vmatprep.subr.bf16.mxu1 %v17114_v29  ;;  %v1334_v27 = vld [vmem:[%s19859_s20 + $0x19a8] sm:$0xff]  ;;  %v17167_v28 = vcombine.low %v1321_v16, %v1325_v17  ;;  %v17169_v29 = vcombine.low %v1322_v18, %v1326_v19  ;;  %v1385_v16 = vld [vmem:[%s19859_s20 + $0x1b40] sm:$0xff] }
 0x25e   : > { %v17178_v31 = vcombine.high %v1330_v26, %v1334_v27  ;;  %v1389_v17 = vld [vmem:[%s19859_s20 + $0x1b60] sm:$0xff]  ;;  %v1386_v18 = vld [vmem:[%s19859_s20 + $0x1b48] sm:$0xff] }
 0x25f   : > { %v1390_v19 = vld [vmem:[%s19859_s20 + $0x1b68] sm:$0xff] }
 0x260   : > { %11649 = vmatpush1.bf16.msra.mxu0 %v17111_v34  ;;  %12251 = vmatpush1.bf16.msra.mxu1 %v17113_v35  ;;  %v1338_v34 = vld [vmem:[%s19859_s20 + $0x19c8] sm:$0xff] }
 0x261   : > { %11650 = vmatprep.subr.bf16.mxu0 %v17120_v36  ;;  %12252 = vmatprep.subr.bf16.mxu1 %v17122_v37  ;;  %v1342_v35 = vld [vmem:[%s19859_s20 + $0x19e8] sm:$0xff]  ;;  %v17175_v36 = vcombine.low %v1329_v24, %v1333_v25  ;;  %v17177_v37 = vcombine.low %v1330_v26, %v1334_v27  ;;  %v1393_v24 = vld [vmem:[%s19859_s20 + $0x1b80] sm:$0xff] }
 0x262   : > { %v17186_v39 = vcombine.high %v1338_v34, %v1342_v35  ;;  %v1397_v25 = vld [vmem:[%s19859_s20 + $0x1ba0] sm:$0xff]  ;;  %v1394_v26 = vld [vmem:[%s19859_s20 + $0x1b88] sm:$0xff] }
 0x263   : > { %v1398_v27 = vld [vmem:[%s19859_s20 + $0x1ba8] sm:$0xff] }
 0x264   : > { %11651 = vmatpush1.bf16.msra.mxu0 %v17119_v42  ;;  %12253 = vmatpush1.bf16.msra.mxu1 %v17121_v43  ;;  %v1346_v42 = vld [vmem:[%s19859_s20 + $0x1a08] sm:$0xff] }
 0x265   : > { %11663 = vmatprep.subr.bf16.mxu0 %v17128_v44  ;;  %12265 = vmatprep.subr.bf16.mxu1 %v17130_v45  ;;  %v1350_v43 = vld [vmem:[%s19859_s20 + $0x1a28] sm:$0xff]  ;;  %v17183_v44 = vcombine.low %v1337_v32, %v1341_v33  ;;  %v17185_v45 = vcombine.low %v1338_v34, %v1342_v35  ;;  %v1401_v32 = vld [vmem:[%s19859_s20 + $0x1bc0] sm:$0xff] }
 0x266   : > { %v17194_v47 = vcombine.high %v1346_v42, %v1350_v43  ;;  %v1405_v33 = vld [vmem:[%s19859_s20 + $0x1be0] sm:$0xff]  ;;  %v1402_v34 = vld [vmem:[%s19859_s20 + $0x1bc8] sm:$0xff] }
 0x267   : > { %11653 = vmatmul.mubr.bf16.vlgmr.msra.gmra.mrb[0].mxu0 %v18844_v48  ;;  %12255 = vmatmul.mubr.bf16.vlgmr.msra.gmra.mrb[0].mxu1 %v18844_v48  ;;  %v1353_v48 = vld [vmem:[%s19859_s20 + $0x1a40] sm:$0xff]  ;;  %v1406_v35 = vld [vmem:[%s19859_s20 + $0x1be8] sm:$0xff] }
 0x268   : > { %11664 = vmatpush1.bf16.msra.mxu0 %v17127_v51  ;;  %12266 = vmatpush1.bf16.msra.mxu1 %v17129_v52  ;;  %v1358_v51 = vld [vmem:[%s19859_s20 + $0x1a68] sm:$0xff]  ;;  %v17191_v52 = vcombine.low %v1345_v40, %v1349_v41  ;;  %v1409_v40 = vld [vmem:[%s19859_s20 + $0x1c00] sm:$0xff] }
 0x269   : > { %11665 = vmatprep.subr.bf16.mxu0 %v17136_v53  ;;  %12267 = vmatprep.subr.bf16.mxu1 %v17138_v54  ;;  %v17193_v53 = vcombine.low %v1346_v42, %v1350_v43  ;;  %v17200_v54 = vcombine.high %v1353_v48, %v1357_v49  ;;  %v17202_v55 = vcombine.high %v1354_v50, %v1358_v51  ;;  %v1413_v41 = vld [vmem:[%s19859_s20 + $0x1c20] sm:$0xff]  ;;  %v1410_v42 = vld [vmem:[%s19859_s20 + $0x1c08] sm:$0xff] }
 0x26a   : > { %11695 = vmatprep.mubr.bf16.mxu0 %v18845_v57  ;;  %12297 = vmatprep.mubr.bf16.mxu1 %v18845_v57  ;;  %v1365_v57 = vld [vmem:[%s19859_s20 + $0x1aa0] sm:$0xff]  ;;  %v1414_v43 = vld [vmem:[%s19859_s20 + $0x1c28] sm:$0xff] }
 0x26c   : > { %11666 = vmatpush1.bf16.msra.mxu0 %v17135_v60  ;;  %12268 = vmatpush1.bf16.msra.mxu1 %v17137_v61  ;;  %v17199_v60 = vcombine.low %v1353_v48, %v1357_v49  ;;  %v17201_v61 = vcombine.low %v1354_v50, %v1358_v51  ;;  %v1417_v48 = vld [vmem:[%s19859_s20 + $0x1c40] sm:$0xff]  ;;  %v1418_v51 = vld [vmem:[%s19859_s20 + $0x1c48] sm:$0xff] }
 0x26d   : > { %11667 = vmatprep.subr.bf16.mxu0 %v17144_v62  ;;  %12269 = vmatprep.subr.bf16.mxu1 %v17146_v63  ;;  %v17208_v62 = vcombine.high %v1361_v56, %v1365_v57  ;;  %v17210_v63 = vcombine.high %v1362_v58, %v1366_v59  ;;  %v1421_v49 = vld [vmem:[%s19859_s20 + $0x1c60] sm:$0xff] }
 0x26e   : > { %v18847_v50 = vld [vmem:[%s19857_s27 + $0x30] ss:$112 sps:$4 sm:$0xff]  }
 0x270   : > { %11668 = vmatpush1.bf16.msra.mxu0 %v17143_v4  ;;  %12270 = vmatpush1.bf16.msra.mxu1 %v17145_v5  ;;  %v17207_v4 = vcombine.low %v1361_v56, %v1365_v57  ;;  %v17209_v5 = vcombine.low %v1362_v58, %v1366_v59  ;;  %v1425_v57 = vld [vmem:[%s19859_s20 + $0x1c80] sm:$0xff]  ;;  %v18848_v59 = vld [vmem:[%s19857_s27 + $0x3c] ss:$112 sps:$4 sm:$0xff]  }
 0x271   : > { %11669 = vmatprep.subr.bf16.mxu0 %v17152_v6  ;;  %12271 = vmatprep.subr.bf16.mxu1 %v17154_v7  ;;  %v17216_v6 = vcombine.high %v1369_v0, %v1373_v1  ;;  %v17218_v7 = vcombine.high %v1370_v2, %v1374_v3  ;;  %v1429_v58 = vld [vmem:[%s19859_s20 + $0x1ca0] sm:$0xff] }
 0x274   : > { %11670 = vmatpush1.bf16.msra.mxu0 %v17151_v12  ;;  %12272 = vmatpush1.bf16.msra.mxu1 %v17153_v13  ;;  %v17215_v12 = vcombine.low %v1369_v0, %v1373_v1  ;;  %v17217_v13 = vcombine.low %v1370_v2, %v1374_v3  ;;  %v17272_v0 = vcombine.high %v1425_v57, %v1429_v58  ;;  %v1433_v2 = vld [vmem:[%s19859_s20 + $0x1cc0] sm:$0xff] }
 0x275   : > { %11671 = vmatprep.subr.bf16.mxu0 %v17160_v14  ;;  %12273 = vmatprep.subr.bf16.mxu1 %v17162_v15  ;;  %v17224_v14 = vcombine.high %v1377_v8, %v1381_v9  ;;  %v17226_v15 = vcombine.high %v1378_v10, %v1382_v11  ;;  %v1437_v3 = vld [vmem:[%s19859_s20 + $0x1ce0] sm:$0xff] }
 0x278   : > { %11672 = vmatpush1.bf16.msra.mxu0 %v17159_v20  ;;  %12274 = vmatpush1.bf16.msra.mxu1 %v17161_v21  ;;  %v17223_v20 = vcombine.low %v1377_v8, %v1381_v9  ;;  %v17225_v21 = vcombine.low %v1378_v10, %v1382_v11  ;;  %v17280_v8 = vcombine.high %v1433_v2, %v1437_v3  ;;  %v1441_v10 = vld [vmem:[%s19859_s20 + $0x1d00] sm:$0xff] }
 0x279   : > { %11673 = vmatprep.subr.bf16.mxu0 %v17168_v22  ;;  %12275 = vmatprep.subr.bf16.mxu1 %v17170_v23  ;;  %v17232_v22 = vcombine.high %v1385_v16, %v1389_v17  ;;  %v17234_v23 = vcombine.high %v1386_v18, %v1390_v19  ;;  %v1445_v11 = vld [vmem:[%s19859_s20 + $0x1d20] sm:$0xff] }
 0x27c   : > { %11674 = vmatpush1.bf16.msra.mxu0 %v17167_v28  ;;  %12276 = vmatpush1.bf16.msra.mxu1 %v17169_v29  ;;  %v17231_v28 = vcombine.low %v1385_v16, %v1389_v17  ;;  %v17233_v29 = vcombine.low %v1386_v18, %v1390_v19  ;;  %v17288_v16 = vcombine.high %v1441_v10, %v1445_v11  ;;  %v1449_v18 = vld [vmem:[%s19859_s20 + $0x1d40] sm:$0xff] }
 0x27d   : > { %11675 = vmatprep.subr.bf16.mxu0 %v17176_v30  ;;  %12277 = vmatprep.subr.bf16.mxu1 %v17178_v31  ;;  %v17240_v30 = vcombine.high %v1393_v24, %v1397_v25  ;;  %v17242_v31 = vcombine.high %v1394_v26, %v1398_v27  ;;  %v1453_v19 = vld [vmem:[%s19859_s20 + $0x1d60] sm:$0xff] }
 0x280   : > { %11676 = vmatpush1.bf16.msra.mxu0 %v17175_v36  ;;  %12278 = vmatpush1.bf16.msra.mxu1 %v17177_v37  ;;  %v17239_v36 = vcombine.low %v1393_v24, %v1397_v25  ;;  %v17241_v37 = vcombine.low %v1394_v26, %v1398_v27  ;;  %v17296_v24 = vcombine.high %v1449_v18, %v1453_v19  ;;  %v1457_v26 = vld [vmem:[%s19859_s20 + $0x1d80] sm:$0xff] }
 0x281   : > { %11677 = vmatprep.subr.bf16.mxu0 %v17184_v38  ;;  %12279 = vmatprep.subr.bf16.mxu1 %v17186_v39  ;;  %v17248_v38 = vcombine.high %v1401_v32, %v1405_v33  ;;  %v17250_v39 = vcombine.high %v1402_v34, %v1406_v35  ;;  %v1461_v27 = vld [vmem:[%s19859_s20 + $0x1da0] sm:$0xff] }
 0x284   : > { %11678 = vmatpush1.bf16.msra.mxu0 %v17183_v44  ;;  %12280 = vmatpush1.bf16.msra.mxu1 %v17185_v45  ;;  %v17247_v44 = vcombine.low %v1401_v32, %v1405_v33  ;;  %v17249_v45 = vcombine.low %v1402_v34, %v1406_v35  ;;  %v17304_v32 = vcombine.high %v1457_v26, %v1461_v27  ;;  %v1465_v34 = vld [vmem:[%s19859_s20 + $0x1dc0] sm:$0xff] }
 0x285   : > { %11679 = vmatprep.subr.bf16.mxu0 %v17192_v46  ;;  %12281 = vmatprep.subr.bf16.mxu1 %v17194_v47  ;;  %v17256_v46 = vcombine.high %v1409_v40, %v1413_v41  ;;  %v17258_v47 = vcombine.high %v1410_v42, %v1414_v43  ;;  %v1469_v35 = vld [vmem:[%s19859_s20 + $0x1de0] sm:$0xff] }
 0x288   : > { %11680 = vmatpush1.bf16.msra.mxu0 %v17191_v52  ;;  %12282 = vmatpush1.bf16.msra.mxu1 %v17193_v53  ;;  %v1422_v52 = vld [vmem:[%s19859_s20 + $0x1c68] sm:$0xff]  ;;  %v17255_v53 = vcombine.low %v1409_v40, %v1413_v41  ;;  %v17312_v40 = vcombine.high %v1465_v34, %v1469_v35 }
 0x289   : > { %11681 = vmatprep.subr.bf16.mxu0 %v17200_v54  ;;  %12283 = vmatprep.subr.bf16.mxu1 %v17202_v55  ;;  %v17257_v54 = vcombine.low %v1410_v42, %v1414_v43  ;;  %v17264_v55 = vcombine.high %v1417_v48, %v1421_v49  ;;  %v17266_v56 = vcombine.high %v1418_v51, %v1422_v52  ;;  %v1473_v42 = vld [vmem:[%s19859_s20 + $0x1e00] sm:$0xff] }
 0x28a   : > { %v1477_v43 = vld [vmem:[%s19859_s20 + $0x1e20] sm:$0xff] }
 0x28c   : > { %11682 = vmatpush1.bf16.msra.mxu0 %v17199_v60  ;;  %12284 = vmatpush1.bf16.msra.mxu1 %v17201_v61  ;;  %v1426_v60 = vld [vmem:[%s19859_s20 + $0x1c88] sm:$0xff] }
 0x28d   : > { %11683 = vmatprep.subr.bf16.mxu0 %v17208_v62  ;;  %12285 = vmatprep.subr.bf16.mxu1 %v17210_v63  ;;  %v1430_v61 = vld [vmem:[%s19859_s20 + $0x1ca8] sm:$0xff]  ;;  %v17263_v62 = vcombine.low %v1417_v48, %v1421_v49  ;;  %v17265_v63 = vcombine.low %v1418_v51, %v1422_v52  ;;  %v17320_v48 = vcombine.high %v1473_v42, %v1477_v43  ;;  %v1485_v51 = vld [vmem:[%s19859_s20 + $0x1e60] sm:$0xff] }
 0x28e   : > { %v17274_v1 = vcombine.high %v1426_v60, %v1430_v61  ;;  %v1482_v52 = vld [vmem:[%s19859_s20 + $0x1e48] sm:$0xff] }
 0x290   : > { %11684 = vmatpush1.bf16.msra.mxu0 %v17207_v4  ;;  %12286 = vmatpush1.bf16.msra.mxu1 %v17209_v5  ;;  %v1434_v4 = vld [vmem:[%s19859_s20 + $0x1cc8] sm:$0xff] }
 0x291   : > { %11685 = vmatprep.subr.bf16.mxu0 %v17216_v6  ;;  %12287 = vmatprep.subr.bf16.mxu1 %v17218_v7  ;;  %v1438_v5 = vld [vmem:[%s19859_s20 + $0x1ce8] sm:$0xff]  ;;  %v17271_v6 = vcombine.low %v1425_v57, %v1429_v58  ;;  %v17273_v7 = vcombine.low %v1426_v60, %v1430_v61  ;;  %v1489_v58 = vld [vmem:[%s19859_s20 + $0x1e80] sm:$0xff] }
 0x292   : > { %v17282_v9 = vcombine.high %v1434_v4, %v1438_v5  ;;  %v1490_v60 = vld [vmem:[%s19859_s20 + $0x1e88] sm:$0xff] }
 0x293   : > { %v1494_v61 = vld [vmem:[%s19859_s20 + $0x1ea8] sm:$0xff] }
 0x294   : > { %11686 = vmatpush1.bf16.msra.mxu0 %v17215_v12  ;;  %12288 = vmatpush1.bf16.msra.mxu1 %v17217_v13  ;;  %v1442_v12 = vld [vmem:[%s19859_s20 + $0x1d08] sm:$0xff] }
 0x295   : > { %11687 = vmatprep.subr.bf16.mxu0 %v17224_v14  ;;  %12289 = vmatprep.subr.bf16.mxu1 %v17226_v15  ;;  %v1446_v13 = vld [vmem:[%s19859_s20 + $0x1d28] sm:$0xff]  ;;  %v17279_v14 = vcombine.low %v1433_v2, %v1437_v3  ;;  %v17281_v15 = vcombine.low %v1434_v4, %v1438_v5  ;;  %v1497_v2 = vld [vmem:[%s19859_s20 + $0x1ec0] sm:$0xff] }
 0x296   : > { %v17290_v17 = vcombine.high %v1442_v12, %v1446_v13  ;;  %v1501_v3 = vld [vmem:[%s19859_s20 + $0x1ee0] sm:$0xff]  ;;  %v1498_v4 = vld [vmem:[%s19859_s20 + $0x1ec8] sm:$0xff] }
 0x297   : > { %v1502_v5 = vld [vmem:[%s19859_s20 + $0x1ee8] sm:$0xff] }
 0x298   : > { %11688 = vmatpush1.bf16.msra.mxu0 %v17223_v20  ;;  %12290 = vmatpush1.bf16.msra.mxu1 %v17225_v21  ;;  %v1450_v20 = vld [vmem:[%s19859_s20 + $0x1d48] sm:$0xff] }
 0x299   : > { %11689 = vmatprep.subr.bf16.mxu0 %v17232_v22  ;;  %12291 = vmatprep.subr.bf16.mxu1 %v17234_v23  ;;  %v1454_v21 = vld [vmem:[%s19859_s20 + $0x1d68] sm:$0xff]  ;;  %v17287_v22 = vcombine.low %v1441_v10, %v1445_v11  ;;  %v17289_v23 = vcombine.low %v1442_v12, %v1446_v13  ;;  %v1505_v10 = vld [vmem:[%s19859_s20 + $0x1f00] sm:$0xff] }
 0x29a   : > { %v17298_v25 = vcombine.high %v1450_v20, %v1454_v21  ;;  %v1509_v11 = vld [vmem:[%s19859_s20 + $0x1f20] sm:$0xff]  ;;  %v1506_v12 = vld [vmem:[%s19859_s20 + $0x1f08] sm:$0xff] }
 0x29b   : > { %v1510_v13 = vld [vmem:[%s19859_s20 + $0x1f28] sm:$0xff] }
 0x29c   : > { %11690 = vmatpush1.bf16.msra.mxu0 %v17231_v28  ;;  %12292 = vmatpush1.bf16.msra.mxu1 %v17233_v29  ;;  %v1458_v28 = vld [vmem:[%s19859_s20 + $0x1d88] sm:$0xff] }
 0x29d   : > { %11691 = vmatprep.subr.bf16.mxu0 %v17240_v30  ;;  %12293 = vmatprep.subr.bf16.mxu1 %v17242_v31  ;;  %v1462_v29 = vld [vmem:[%s19859_s20 + $0x1da8] sm:$0xff]  ;;  %v17295_v30 = vcombine.low %v1449_v18, %v1453_v19  ;;  %v17297_v31 = vcombine.low %v1450_v20, %v1454_v21  ;;  %v1513_v18 = vld [vmem:[%s19859_s20 + $0x1f40] sm:$0xff] }
 0x29e   : > { %v17306_v33 = vcombine.high %v1458_v28, %v1462_v29  ;;  %v1517_v19 = vld [vmem:[%s19859_s20 + $0x1f60] sm:$0xff]  ;;  %v1514_v20 = vld [vmem:[%s19859_s20 + $0x1f48] sm:$0xff] }
 0x29f   : > { %v1518_v21 = vld [vmem:[%s19859_s20 + $0x1f68] sm:$0xff] }
 0x2a0   : > { %11692 = vmatpush1.bf16.msra.mxu0 %v17239_v36  ;;  %12294 = vmatpush1.bf16.msra.mxu1 %v17241_v37  ;;  %v1466_v36 = vld [vmem:[%s19859_s20 + $0x1dc8] sm:$0xff] }
 0x2a1   : > { %11693 = vmatprep.subr.bf16.mxu0 %v17248_v38  ;;  %12295 = vmatprep.subr.bf16.mxu1 %v17250_v39  ;;  %v1470_v37 = vld [vmem:[%s19859_s20 + $0x1de8] sm:$0xff]  ;;  %v17303_v38 = vcombine.low %v1457_v26, %v1461_v27  ;;  %v17305_v39 = vcombine.low %v1458_v28, %v1462_v29  ;;  %v1521_v26 = vld [vmem:[%s19859_s20 + $0x1f80] sm:$0xff] }
 0x2a2   : > { %v17314_v41 = vcombine.high %v1466_v36, %v1470_v37  ;;  %v1525_v27 = vld [vmem:[%s19859_s20 + $0x1fa0] sm:$0xff]  ;;  %v1522_v28 = vld [vmem:[%s19859_s20 + $0x1f88] sm:$0xff] }
 0x2a3   : > { %v1526_v29 = vld [vmem:[%s19859_s20 + $0x1fa8] sm:$0xff] }
 0x2a4   : > { %11694 = vmatpush1.bf16.msra.mxu0 %v17247_v44  ;;  %12296 = vmatpush1.bf16.msra.mxu1 %v17249_v45  ;;  %v1474_v44 = vld [vmem:[%s19859_s20 + $0x1e08] sm:$0xff] }
 0x2a5   : > { %11706 = vmatprep.subr.bf16.mxu0 %v17256_v46  ;;  %12308 = vmatprep.subr.bf16.mxu1 %v17258_v47  ;;  %v1478_v45 = vld [vmem:[%s19859_s20 + $0x1e28] sm:$0xff]  ;;  %v17311_v46 = vcombine.low %v1465_v34, %v1469_v35  ;;  %v17313_v47 = vcombine.low %v1466_v36, %v1470_v37  ;;  %v1529_v34 = vld [vmem:[%s19859_s20 + $0x1fc0] sm:$0xff] }
 0x2a6   : > { %v17322_v49 = vcombine.high %v1474_v44, %v1478_v45  ;;  %v1533_v35 = vld [vmem:[%s19859_s20 + $0x1fe0] sm:$0xff]  ;;  %v1530_v36 = vld [vmem:[%s19859_s20 + $0x1fc8] sm:$0xff] }
 0x2a7   : > { %11696 = vmatmul.mubr.bf16.vlgmr.msra.gmra.mrb[0].mxu0 %v18847_v50  ;;  %12298 = vmatmul.mubr.bf16.vlgmr.msra.gmra.mrb[0].mxu1 %v18847_v50  ;;  %v1481_v50 = vld [vmem:[%s19859_s20 + $0x1e40] sm:$0xff]  ;;  %v1534_v37 = vld [vmem:[%s19859_s20 + $0x1fe8] sm:$0xff] }
 0x2a8   : > { %11707 = vmatpush1.bf16.msra.mxu0 %v17255_v53  ;;  %12309 = vmatpush1.bf16.msra.mxu1 %v17257_v54  ;;  %v1486_v53 = vld [vmem:[%s19859_s20 + $0x1e68] sm:$0xff]  ;;  %v17319_v54 = vcombine.low %v1473_v42, %v1477_v43  ;;  %v1537_v42 = vld [vmem:[%s19859_s20 + $0x2000] sm:$0xff] }
 0x2a9   : > { %11708 = vmatprep.subr.bf16.mxu0 %v17264_v55  ;;  %12310 = vmatprep.subr.bf16.mxu1 %v17266_v56  ;;  %v17321_v55 = vcombine.low %v1474_v44, %v1478_v45  ;;  %v17328_v56 = vcombine.high %v1481_v50, %v1485_v51  ;;  %v17330_v57 = vcombine.high %v1482_v52, %v1486_v53  ;;  %v1541_v43 = vld [vmem:[%s19859_s20 + $0x2020] sm:$0xff]  ;;  %v1538_v44 = vld [vmem:[%s19859_s20 + $0x2008] sm:$0xff] }
 0x2aa   : > { %11738 = vmatprep.mubr.bf16.mxu0 %v18848_v59  ;;  %12340 = vmatprep.mubr.bf16.mxu1 %v18848_v59  ;;  %v1493_v59 = vld [vmem:[%s19859_s20 + $0x1ea0] sm:$0xff]  ;;  %v1542_v45 = vld [vmem:[%s19859_s20 + $0x2028] sm:$0xff] }
 0x2ac   : > { %11709 = vmatpush1.bf16.msra.mxu0 %v17263_v62  ;;  %12311 = vmatpush1.bf16.msra.mxu1 %v17265_v63  ;;  %v17327_v62 = vcombine.low %v1481_v50, %v1485_v51  ;;  %v17329_v63 = vcombine.low %v1482_v52, %v1486_v53  ;;  %v1545_v50 = vld [vmem:[%s19859_s20 + $0x2040] sm:$0xff]  ;;  %v18850_v52 = vld [vmem:[%s19857_s27 + $0x38] ss:$112 sps:$4 sm:$0xff]  }
 0x2ad   : > { %11710 = vmatprep.subr.bf16.mxu0 %v17272_v0  ;;  %12312 = vmatprep.subr.bf16.mxu1 %v17274_v1  ;;  %v17336_v0 = vcombine.high %v1489_v58, %v1493_v59  ;;  %v17338_v1 = vcombine.high %v1490_v60, %v1494_v61  ;;  %v1549_v51 = vld [vmem:[%s19859_s20 + $0x2060] sm:$0xff]  ;;  %v1546_v53 = vld [vmem:[%s19859_s20 + $0x2048] sm:$0xff] }
 0x2b0   : > { %11711 = vmatpush1.bf16.msra.mxu0 %v17271_v6  ;;  %12313 = vmatpush1.bf16.msra.mxu1 %v17273_v7  ;;  %v17335_v6 = vcombine.low %v1489_v58, %v1493_v59  ;;  %v17337_v7 = vcombine.low %v1490_v60, %v1494_v61  ;;  %v1553_v59 = vld [vmem:[%s19859_s20 + $0x2080] sm:$0xff] }
 0x2b1   : > { %11712 = vmatprep.subr.bf16.mxu0 %v17280_v8  ;;  %12314 = vmatprep.subr.bf16.mxu1 %v17282_v9  ;;  %v17344_v8 = vcombine.high %v1497_v2, %v1501_v3  ;;  %v17346_v9 = vcombine.high %v1498_v4, %v1502_v5  ;;  %v1557_v60 = vld [vmem:[%s19859_s20 + $0x20a0] sm:$0xff] }
 0x2b2   : > { %v18851_v61 = vld [vmem:[%s19857_s27 + $0x44] ss:$112 sps:$4 sm:$0xff]  }
 0x2b4   : > { %11713 = vmatpush1.bf16.msra.mxu0 %v17279_v14  ;;  %12315 = vmatpush1.bf16.msra.mxu1 %v17281_v15  ;;  %v17343_v14 = vcombine.low %v1497_v2, %v1501_v3  ;;  %v17345_v15 = vcombine.low %v1498_v4, %v1502_v5  ;;  %v17400_v2 = vcombine.high %v1553_v59, %v1557_v60  ;;  %v1561_v4 = vld [vmem:[%s19859_s20 + $0x20c0] sm:$0xff] }
 0x2b5   : > { %11714 = vmatprep.subr.bf16.mxu0 %v17288_v16  ;;  %12316 = vmatprep.subr.bf16.mxu1 %v17290_v17  ;;  %v17352_v16 = vcombine.high %v1505_v10, %v1509_v11  ;;  %v17354_v17 = vcombine.high %v1506_v12, %v1510_v13  ;;  %v1565_v5 = vld [vmem:[%s19859_s20 + $0x20e0] sm:$0xff] }
 0x2b8   : > { %11715 = vmatpush1.bf16.msra.mxu0 %v17287_v22  ;;  %12317 = vmatpush1.bf16.msra.mxu1 %v17289_v23  ;;  %v17351_v22 = vcombine.low %v1505_v10, %v1509_v11  ;;  %v17353_v23 = vcombine.low %v1506_v12, %v1510_v13  ;;  %v17408_v10 = vcombine.high %v1561_v4, %v1565_v5  ;;  %v1569_v12 = vld [vmem:[%s19859_s20 + $0x2100] sm:$0xff] }
 0x2b9   : > { %11716 = vmatprep.subr.bf16.mxu0 %v17296_v24  ;;  %12318 = vmatprep.subr.bf16.mxu1 %v17298_v25  ;;  %v17360_v24 = vcombine.high %v1513_v18, %v1517_v19  ;;  %v17362_v25 = vcombine.high %v1514_v20, %v1518_v21  ;;  %v1573_v13 = vld [vmem:[%s19859_s20 + $0x2120] sm:$0xff] }
 0x2bc   : > { %11717 = vmatpush1.bf16.msra.mxu0 %v17295_v30  ;;  %12319 = vmatpush1.bf16.msra.mxu1 %v17297_v31  ;;  %v17359_v30 = vcombine.low %v1513_v18, %v1517_v19  ;;  %v17361_v31 = vcombine.low %v1514_v20, %v1518_v21  ;;  %v17416_v18 = vcombine.high %v1569_v12, %v1573_v13  ;;  %v1577_v20 = vld [vmem:[%s19859_s20 + $0x2140] sm:$0xff] }
 0x2bd   : > { %11718 = vmatprep.subr.bf16.mxu0 %v17304_v32  ;;  %12320 = vmatprep.subr.bf16.mxu1 %v17306_v33  ;;  %v17368_v32 = vcombine.high %v1521_v26, %v1525_v27  ;;  %v17370_v33 = vcombine.high %v1522_v28, %v1526_v29  ;;  %v1581_v21 = vld [vmem:[%s19859_s20 + $0x2160] sm:$0xff] }
 0x2c0   : > { %11719 = vmatpush1.bf16.msra.mxu0 %v17303_v38  ;;  %12321 = vmatpush1.bf16.msra.mxu1 %v17305_v39  ;;  %v17367_v38 = vcombine.low %v1521_v26, %v1525_v27  ;;  %v17369_v39 = vcombine.low %v1522_v28, %v1526_v29  ;;  %v17424_v26 = vcombine.high %v1577_v20, %v1581_v21  ;;  %v1585_v28 = vld [vmem:[%s19859_s20 + $0x2180] sm:$0xff] }
 0x2c1   : > { %11720 = vmatprep.subr.bf16.mxu0 %v17312_v40  ;;  %12322 = vmatprep.subr.bf16.mxu1 %v17314_v41  ;;  %v17376_v40 = vcombine.high %v1529_v34, %v1533_v35  ;;  %v17378_v41 = vcombine.high %v1530_v36, %v1534_v37  ;;  %v1589_v29 = vld [vmem:[%s19859_s20 + $0x21a0] sm:$0xff] }
 0x2c4   : > { %11721 = vmatpush1.bf16.msra.mxu0 %v17311_v46  ;;  %12323 = vmatpush1.bf16.msra.mxu1 %v17313_v47  ;;  %v17375_v46 = vcombine.low %v1529_v34, %v1533_v35  ;;  %v17377_v47 = vcombine.low %v1530_v36, %v1534_v37  ;;  %v17432_v34 = vcombine.high %v1585_v28, %v1589_v29  ;;  %v1593_v36 = vld [vmem:[%s19859_s20 + $0x21c0] sm:$0xff] }
 0x2c5   : > { %11722 = vmatprep.subr.bf16.mxu0 %v17320_v48  ;;  %12324 = vmatprep.subr.bf16.mxu1 %v17322_v49  ;;  %v17384_v48 = vcombine.high %v1537_v42, %v1541_v43  ;;  %v17386_v49 = vcombine.high %v1538_v44, %v1542_v45  ;;  %v1597_v37 = vld [vmem:[%s19859_s20 + $0x21e0] sm:$0xff] }
 0x2c8   : > { %11723 = vmatpush1.bf16.msra.mxu0 %v17319_v54  ;;  %12325 = vmatpush1.bf16.msra.mxu1 %v17321_v55  ;;  %v1550_v54 = vld [vmem:[%s19859_s20 + $0x2068] sm:$0xff]  ;;  %v17383_v55 = vcombine.low %v1537_v42, %v1541_v43  ;;  %v17440_v42 = vcombine.high %v1593_v36, %v1597_v37 }
 0x2c9   : > { %11724 = vmatprep.subr.bf16.mxu0 %v17328_v56  ;;  %12326 = vmatprep.subr.bf16.mxu1 %v17330_v57  ;;  %v17385_v56 = vcombine.low %v1538_v44, %v1542_v45  ;;  %v17392_v57 = vcombine.high %v1545_v50, %v1549_v51  ;;  %v17394_v58 = vcombine.high %v1546_v53, %v1550_v54  ;;  %v1601_v44 = vld [vmem:[%s19859_s20 + $0x2200] sm:$0xff] }
 0x2ca   : > { %v1605_v45 = vld [vmem:[%s19859_s20 + $0x2220] sm:$0xff] }
 0x2cc   : > { %11725 = vmatpush1.bf16.msra.mxu0 %v17327_v62  ;;  %12327 = vmatpush1.bf16.msra.mxu1 %v17329_v63  ;;  %v1554_v62 = vld [vmem:[%s19859_s20 + $0x2088] sm:$0xff] }
 0x2cd   : > { %11726 = vmatprep.subr.bf16.mxu0 %v17336_v0  ;;  %12328 = vmatprep.subr.bf16.mxu1 %v17338_v1  ;;  %v1558_v63 = vld [vmem:[%s19859_s20 + $0x20a8] sm:$0xff]  ;;  %v17391_v0 = vcombine.low %v1545_v50, %v1549_v51  ;;  %v17393_v1 = vcombine.low %v1546_v53, %v1550_v54  ;;  %v17448_v50 = vcombine.high %v1601_v44, %v1605_v45  ;;  %v1613_v53 = vld [vmem:[%s19859_s20 + $0x2260] sm:$0xff] }
 0x2ce   : > { %v17402_v3 = vcombine.high %v1554_v62, %v1558_v63  ;;  %v1610_v54 = vld [vmem:[%s19859_s20 + $0x2248] sm:$0xff] }
 0x2d0   : > { %11727 = vmatpush1.bf16.msra.mxu0 %v17335_v6  ;;  %12329 = vmatpush1.bf16.msra.mxu1 %v17337_v7  ;;  %v1562_v6 = vld [vmem:[%s19859_s20 + $0x20c8] sm:$0xff] }
 0x2d1   : > { %11728 = vmatprep.subr.bf16.mxu0 %v17344_v8  ;;  %12330 = vmatprep.subr.bf16.mxu1 %v17346_v9  ;;  %v1566_v7 = vld [vmem:[%s19859_s20 + $0x20e8] sm:$0xff]  ;;  %v17399_v8 = vcombine.low %v1553_v59, %v1557_v60  ;;  %v17401_v9 = vcombine.low %v1554_v62, %v1558_v63  ;;  %v1617_v60 = vld [vmem:[%s19859_s20 + $0x2280] sm:$0xff] }
 0x2d2   : > { %v17410_v11 = vcombine.high %v1562_v6, %v1566_v7  ;;  %v1618_v62 = vld [vmem:[%s19859_s20 + $0x2288] sm:$0xff] }
 0x2d3   : > { %v1622_v63 = vld [vmem:[%s19859_s20 + $0x22a8] sm:$0xff] }
 0x2d4   : > { %11729 = vmatpush1.bf16.msra.mxu0 %v17343_v14  ;;  %12331 = vmatpush1.bf16.msra.mxu1 %v17345_v15  ;;  %v1570_v14 = vld [vmem:[%s19859_s20 + $0x2108] sm:$0xff] }
 0x2d5   : > { %11730 = vmatprep.subr.bf16.mxu0 %v17352_v16  ;;  %12332 = vmatprep.subr.bf16.mxu1 %v17354_v17  ;;  %v1574_v15 = vld [vmem:[%s19859_s20 + $0x2128] sm:$0xff]  ;;  %v17407_v16 = vcombine.low %v1561_v4, %v1565_v5  ;;  %v17409_v17 = vcombine.low %v1562_v6, %v1566_v7  ;;  %v1625_v4 = vld [vmem:[%s19859_s20 + $0x22c0] sm:$0xff] }
 0x2d6   : > { %v17418_v19 = vcombine.high %v1570_v14, %v1574_v15  ;;  %v1629_v5 = vld [vmem:[%s19859_s20 + $0x22e0] sm:$0xff]  ;;  %v1626_v6 = vld [vmem:[%s19859_s20 + $0x22c8] sm:$0xff] }
 0x2d7   : > { %v1630_v7 = vld [vmem:[%s19859_s20 + $0x22e8] sm:$0xff] }
 0x2d8   : > { %11731 = vmatpush1.bf16.msra.mxu0 %v17351_v22  ;;  %12333 = vmatpush1.bf16.msra.mxu1 %v17353_v23  ;;  %v1578_v22 = vld [vmem:[%s19859_s20 + $0x2148] sm:$0xff] }
 0x2d9   : > { %11732 = vmatprep.subr.bf16.mxu0 %v17360_v24  ;;  %12334 = vmatprep.subr.bf16.mxu1 %v17362_v25  ;;  %v1582_v23 = vld [vmem:[%s19859_s20 + $0x2168] sm:$0xff]  ;;  %v17415_v24 = vcombine.low %v1569_v12, %v1573_v13  ;;  %v17417_v25 = vcombine.low %v1570_v14, %v1574_v15  ;;  %v1633_v12 = vld [vmem:[%s19859_s20 + $0x2300] sm:$0xff] }
 0x2da   : > { %v17426_v27 = vcombine.high %v1578_v22, %v1582_v23  ;;  %v1637_v13 = vld [vmem:[%s19859_s20 + $0x2320] sm:$0xff]  ;;  %v1634_v14 = vld [vmem:[%s19859_s20 + $0x2308] sm:$0xff] }
 0x2db   : > { %v1638_v15 = vld [vmem:[%s19859_s20 + $0x2328] sm:$0xff] }
 0x2dc   : > { %11733 = vmatpush1.bf16.msra.mxu0 %v17359_v30  ;;  %12335 = vmatpush1.bf16.msra.mxu1 %v17361_v31  ;;  %v1586_v30 = vld [vmem:[%s19859_s20 + $0x2188] sm:$0xff] }
 0x2dd   : > { %11734 = vmatprep.subr.bf16.mxu0 %v17368_v32  ;;  %12336 = vmatprep.subr.bf16.mxu1 %v17370_v33  ;;  %v1590_v31 = vld [vmem:[%s19859_s20 + $0x21a8] sm:$0xff]  ;;  %v17423_v32 = vcombine.low %v1577_v20, %v1581_v21  ;;  %v17425_v33 = vcombine.low %v1578_v22, %v1582_v23  ;;  %v1641_v20 = vld [vmem:[%s19859_s20 + $0x2340] sm:$0xff] }
 0x2de   : > { %v17434_v35 = vcombine.high %v1586_v30, %v1590_v31  ;;  %v1645_v21 = vld [vmem:[%s19859_s20 + $0x2360] sm:$0xff]  ;;  %v1642_v22 = vld [vmem:[%s19859_s20 + $0x2348] sm:$0xff] }
 0x2df   : > { %v1646_v23 = vld [vmem:[%s19859_s20 + $0x2368] sm:$0xff] }
 0x2e0   : > { %11735 = vmatpush1.bf16.msra.mxu0 %v17367_v38  ;;  %12337 = vmatpush1.bf16.msra.mxu1 %v17369_v39  ;;  %v1594_v38 = vld [vmem:[%s19859_s20 + $0x21c8] sm:$0xff] }
 0x2e1   : > { %11736 = vmatprep.subr.bf16.mxu0 %v17376_v40  ;;  %12338 = vmatprep.subr.bf16.mxu1 %v17378_v41  ;;  %v1598_v39 = vld [vmem:[%s19859_s20 + $0x21e8] sm:$0xff]  ;;  %v17431_v40 = vcombine.low %v1585_v28, %v1589_v29  ;;  %v17433_v41 = vcombine.low %v1586_v30, %v1590_v31  ;;  %v1649_v28 = vld [vmem:[%s19859_s20 + $0x2380] sm:$0xff] }
 0x2e2   : > { %v17442_v43 = vcombine.high %v1594_v38, %v1598_v39  ;;  %v1653_v29 = vld [vmem:[%s19859_s20 + $0x23a0] sm:$0xff]  ;;  %v1650_v30 = vld [vmem:[%s19859_s20 + $0x2388] sm:$0xff] }
 0x2e3   : > { %v1654_v31 = vld [vmem:[%s19859_s20 + $0x23a8] sm:$0xff] }
 0x2e4   : > { %11737 = vmatpush1.bf16.msra.mxu0 %v17375_v46  ;;  %12339 = vmatpush1.bf16.msra.mxu1 %v17377_v47  ;;  %v1602_v46 = vld [vmem:[%s19859_s20 + $0x2208] sm:$0xff] }
 0x2e5   : > { %11749 = vmatprep.subr.bf16.mxu0 %v17384_v48  ;;  %12351 = vmatprep.subr.bf16.mxu1 %v17386_v49  ;;  %v1606_v47 = vld [vmem:[%s19859_s20 + $0x2228] sm:$0xff]  ;;  %v17439_v48 = vcombine.low %v1593_v36, %v1597_v37  ;;  %v17441_v49 = vcombine.low %v1594_v38, %v1598_v39  ;;  %v1657_v36 = vld [vmem:[%s19859_s20 + $0x23c0] sm:$0xff] }
 0x2e6   : > { %v17450_v51 = vcombine.high %v1602_v46, %v1606_v47  ;;  %v1661_v37 = vld [vmem:[%s19859_s20 + $0x23e0] sm:$0xff]  ;;  %v1658_v38 = vld [vmem:[%s19859_s20 + $0x23c8] sm:$0xff] }
 0x2e7   : > { %11739 = vmatmul.mubr.bf16.vlgmr.msra.gmra.mrb[0].mxu0 %v18850_v52  ;;  %12341 = vmatmul.mubr.bf16.vlgmr.msra.gmra.mrb[0].mxu1 %v18850_v52  ;;  %v1609_v52 = vld [vmem:[%s19859_s20 + $0x2240] sm:$0xff]  ;;  %v1662_v39 = vld [vmem:[%s19859_s20 + $0x23e8] sm:$0xff] }
 0x2e8   : > { %11750 = vmatpush1.bf16.msra.mxu0 %v17383_v55  ;;  %12352 = vmatpush1.bf16.msra.mxu1 %v17385_v56  ;;  %v1614_v55 = vld [vmem:[%s19859_s20 + $0x2268] sm:$0xff]  ;;  %v17447_v56 = vcombine.low %v1601_v44, %v1605_v45  ;;  %v1665_v44 = vld [vmem:[%s19859_s20 + $0x2400] sm:$0xff] }
 0x2e9   : > { %11751 = vmatprep.subr.bf16.mxu0 %v17392_v57  ;;  %12353 = vmatprep.subr.bf16.mxu1 %v17394_v58  ;;  %v17449_v57 = vcombine.low %v1602_v46, %v1606_v47  ;;  %v17456_v58 = vcombine.high %v1609_v52, %v1613_v53  ;;  %v17458_v59 = vcombine.high %v1610_v54, %v1614_v55  ;;  %v1669_v45 = vld [vmem:[%s19859_s20 + $0x2420] sm:$0xff]  ;;  %v1666_v46 = vld [vmem:[%s19859_s20 + $0x2408] sm:$0xff] }
 0x2ea   : > { %11781 = vmatprep.mubr.bf16.mxu0 %v18851_v61  ;;  %12383 = vmatprep.mubr.bf16.mxu1 %v18851_v61  ;;  %v1621_v61 = vld [vmem:[%s19859_s20 + $0x22a0] sm:$0xff]  ;;  %v1670_v47 = vld [vmem:[%s19859_s20 + $0x2428] sm:$0xff] }
 0x2ec   : > { %11752 = vmatpush1.bf16.msra.mxu0 %v17391_v0  ;;  %12354 = vmatpush1.bf16.msra.mxu1 %v17393_v1  ;;  %v17455_v0 = vcombine.low %v1609_v52, %v1613_v53  ;;  %v17457_v1 = vcombine.low %v1610_v54, %v1614_v55  ;;  %v1673_v52 = vld [vmem:[%s19859_s20 + $0x2440] sm:$0xff]  ;;  %v1674_v55 = vld [vmem:[%s19859_s20 + $0x2448] sm:$0xff] }
 0x2ed   : > { %11753 = vmatprep.subr.bf16.mxu0 %v17400_v2  ;;  %12355 = vmatprep.subr.bf16.mxu1 %v17402_v3  ;;  %v17464_v2 = vcombine.high %v1617_v60, %v1621_v61  ;;  %v17466_v3 = vcombine.high %v1618_v62, %v1622_v63  ;;  %v1677_v53 = vld [vmem:[%s19859_s20 + $0x2460] sm:$0xff] }
 0x2ee   : > { %v18853_v54 = vld [vmem:[%s19857_s27 + $0x40] ss:$112 sps:$4 sm:$0xff]  }
 0x2f0   : > { %11754 = vmatpush1.bf16.msra.mxu0 %v17399_v8  ;;  %12356 = vmatpush1.bf16.msra.mxu1 %v17401_v9  ;;  %v17463_v8 = vcombine.low %v1617_v60, %v1621_v61  ;;  %v17465_v9 = vcombine.low %v1618_v62, %v1622_v63  ;;  %v1681_v61 = vld [vmem:[%s19859_s20 + $0x2480] sm:$0xff]  ;;  %v18854_v63 = vld [vmem:[%s19857_s27 + $0x4c] ss:$112 sps:$4 sm:$0xff]  }
 0x2f1   : > { %11755 = vmatprep.subr.bf16.mxu0 %v17408_v10  ;;  %12357 = vmatprep.subr.bf16.mxu1 %v17410_v11  ;;  %v17472_v10 = vcombine.high %v1625_v4, %v1629_v5  ;;  %v17474_v11 = vcombine.high %v1626_v6, %v1630_v7  ;;  %v1685_v62 = vld [vmem:[%s19859_s20 + $0x24a0] sm:$0xff] }
 0x2f4   : > { %11756 = vmatpush1.bf16.msra.mxu0 %v17407_v16  ;;  %12358 = vmatpush1.bf16.msra.mxu1 %v17409_v17  ;;  %v17471_v16 = vcombine.low %v1625_v4, %v1629_v5  ;;  %v17473_v17 = vcombine.low %v1626_v6, %v1630_v7  ;;  %v17528_v4 = vcombine.high %v1681_v61, %v1685_v62  ;;  %v1689_v6 = vld [vmem:[%s19859_s20 + $0x24c0] sm:$0xff] }
 0x2f5   : > { %11757 = vmatprep.subr.bf16.mxu0 %v17416_v18  ;;  %12359 = vmatprep.subr.bf16.mxu1 %v17418_v19  ;;  %v17480_v18 = vcombine.high %v1633_v12, %v1637_v13  ;;  %v17482_v19 = vcombine.high %v1634_v14, %v1638_v15  ;;  %v1693_v7 = vld [vmem:[%s19859_s20 + $0x24e0] sm:$0xff] }
 0x2f8   : > { %11758 = vmatpush1.bf16.msra.mxu0 %v17415_v24  ;;  %12360 = vmatpush1.bf16.msra.mxu1 %v17417_v25  ;;  %v17479_v24 = vcombine.low %v1633_v12, %v1637_v13  ;;  %v17481_v25 = vcombine.low %v1634_v14, %v1638_v15  ;;  %v17536_v12 = vcombine.high %v1689_v6, %v1693_v7  ;;  %v1697_v14 = vld [vmem:[%s19859_s20 + $0x2500] sm:$0xff] }
 0x2f9   : > { %11759 = vmatprep.subr.bf16.mxu0 %v17424_v26  ;;  %12361 = vmatprep.subr.bf16.mxu1 %v17426_v27  ;;  %v17488_v26 = vcombine.high %v1641_v20, %v1645_v21  ;;  %v17490_v27 = vcombine.high %v1642_v22, %v1646_v23  ;;  %v1701_v15 = vld [vmem:[%s19859_s20 + $0x2520] sm:$0xff] }
 0x2fc   : > { %11760 = vmatpush1.bf16.msra.mxu0 %v17423_v32  ;;  %12362 = vmatpush1.bf16.msra.mxu1 %v17425_v33  ;;  %v17487_v32 = vcombine.low %v1641_v20, %v1645_v21  ;;  %v17489_v33 = vcombine.low %v1642_v22, %v1646_v23  ;;  %v17544_v20 = vcombine.high %v1697_v14, %v1701_v15  ;;  %v1705_v22 = vld [vmem:[%s19859_s20 + $0x2540] sm:$0xff] }
 0x2fd   : > { %11761 = vmatprep.subr.bf16.mxu0 %v17432_v34  ;;  %12363 = vmatprep.subr.bf16.mxu1 %v17434_v35  ;;  %v17496_v34 = vcombine.high %v1649_v28, %v1653_v29  ;;  %v17498_v35 = vcombine.high %v1650_v30, %v1654_v31  ;;  %v1709_v23 = vld [vmem:[%s19859_s20 + $0x2560] sm:$0xff] }
 0x300   : > { %11762 = vmatpush1.bf16.msra.mxu0 %v17431_v40  ;;  %12364 = vmatpush1.bf16.msra.mxu1 %v17433_v41  ;;  %v17495_v40 = vcombine.low %v1649_v28, %v1653_v29  ;;  %v17497_v41 = vcombine.low %v1650_v30, %v1654_v31  ;;  %v17552_v28 = vcombine.high %v1705_v22, %v1709_v23  ;;  %v1713_v30 = vld [vmem:[%s19859_s20 + $0x2580] sm:$0xff] }
 0x301   : > { %11763 = vmatprep.subr.bf16.mxu0 %v17440_v42  ;;  %12365 = vmatprep.subr.bf16.mxu1 %v17442_v43  ;;  %v17504_v42 = vcombine.high %v1657_v36, %v1661_v37  ;;  %v17506_v43 = vcombine.high %v1658_v38, %v1662_v39  ;;  %v1717_v31 = vld [vmem:[%s19859_s20 + $0x25a0] sm:$0xff] }
 0x304   : > { %11764 = vmatpush1.bf16.msra.mxu0 %v17439_v48  ;;  %12366 = vmatpush1.bf16.msra.mxu1 %v17441_v49  ;;  %v17503_v48 = vcombine.low %v1657_v36, %v1661_v37  ;;  %v17505_v49 = vcombine.low %v1658_v38, %v1662_v39  ;;  %v17560_v36 = vcombine.high %v1713_v30, %v1717_v31  ;;  %v1721_v38 = vld [vmem:[%s19859_s20 + $0x25c0] sm:$0xff] }
 0x305   : > { %11765 = vmatprep.subr.bf16.mxu0 %v17448_v50  ;;  %12367 = vmatprep.subr.bf16.mxu1 %v17450_v51  ;;  %v17512_v50 = vcombine.high %v1665_v44, %v1669_v45  ;;  %v17514_v51 = vcombine.high %v1666_v46, %v1670_v47  ;;  %v1725_v39 = vld [vmem:[%s19859_s20 + $0x25e0] sm:$0xff] }
 0x308   : > { %11766 = vmatpush1.bf16.msra.mxu0 %v17447_v56  ;;  %12368 = vmatpush1.bf16.msra.mxu1 %v17449_v57  ;;  %v1678_v56 = vld [vmem:[%s19859_s20 + $0x2468] sm:$0xff]  ;;  %v17511_v57 = vcombine.low %v1665_v44, %v1669_v45  ;;  %v17568_v44 = vcombine.high %v1721_v38, %v1725_v39 }
 0x309   : > { %11767 = vmatprep.subr.bf16.mxu0 %v17456_v58  ;;  %12369 = vmatprep.subr.bf16.mxu1 %v17458_v59  ;;  %v17513_v58 = vcombine.low %v1666_v46, %v1670_v47  ;;  %v17520_v59 = vcombine.high %v1673_v52, %v1677_v53  ;;  %v17522_v60 = vcombine.high %v1674_v55, %v1678_v56  ;;  %v1729_v46 = vld [vmem:[%s19859_s20 + $0x2600] sm:$0xff] }
 0x30a   : > { %v1733_v47 = vld [vmem:[%s19859_s20 + $0x2620] sm:$0xff] }
 0x30c   : > { %11768 = vmatpush1.bf16.msra.mxu0 %v17455_v0  ;;  %12370 = vmatpush1.bf16.msra.mxu1 %v17457_v1  ;;  %v1682_v0 = vld [vmem:[%s19859_s20 + $0x2488] sm:$0xff] }
 0x30d   : > { %11769 = vmatprep.subr.bf16.mxu0 %v17464_v2  ;;  %12371 = vmatprep.subr.bf16.mxu1 %v17466_v3  ;;  %v1686_v1 = vld [vmem:[%s19859_s20 + $0x24a8] sm:$0xff]  ;;  %v17519_v2 = vcombine.low %v1673_v52, %v1677_v53  ;;  %v17521_v3 = vcombine.low %v1674_v55, %v1678_v56  ;;  %v17576_v52 = vcombine.high %v1729_v46, %v1733_v47  ;;  %v1741_v55 = vld [vmem:[%s19859_s20 + $0x2660] sm:$0xff] }
 0x30e   : > { %v17530_v5 = vcombine.high %v1682_v0, %v1686_v1  ;;  %v1738_v56 = vld [vmem:[%s19859_s20 + $0x2648] sm:$0xff] }
 0x310   : > { %11770 = vmatpush1.bf16.msra.mxu0 %v17463_v8  ;;  %12372 = vmatpush1.bf16.msra.mxu1 %v17465_v9  ;;  %v1690_v8 = vld [vmem:[%s19859_s20 + $0x24c8] sm:$0xff] }
 0x311   : > { %11771 = vmatprep.subr.bf16.mxu0 %v17472_v10  ;;  %12373 = vmatprep.subr.bf16.mxu1 %v17474_v11  ;;  %v1694_v9 = vld [vmem:[%s19859_s20 + $0x24e8] sm:$0xff]  ;;  %v17527_v10 = vcombine.low %v1681_v61, %v1685_v62  ;;  %v17529_v11 = vcombine.low %v1682_v0, %v1686_v1  ;;  %v1745_v62 = vld [vmem:[%s19859_s20 + $0x2680] sm:$0xff] }
 0x312   : > { %v17538_v13 = vcombine.high %v1690_v8, %v1694_v9  ;;  %v1746_v0 = vld [vmem:[%s19859_s20 + $0x2688] sm:$0xff] }
 0x313   : > { %v1750_v1 = vld [vmem:[%s19859_s20 + $0x26a8] sm:$0xff] }
 0x314   : > { %11772 = vmatpush1.bf16.msra.mxu0 %v17471_v16  ;;  %12374 = vmatpush1.bf16.msra.mxu1 %v17473_v17  ;;  %v1698_v16 = vld [vmem:[%s19859_s20 + $0x2508] sm:$0xff] }
 0x315   : > { %11773 = vmatprep.subr.bf16.mxu0 %v17480_v18  ;;  %12375 = vmatprep.subr.bf16.mxu1 %v17482_v19  ;;  %v1702_v17 = vld [vmem:[%s19859_s20 + $0x2528] sm:$0xff]  ;;  %v17535_v18 = vcombine.low %v1689_v6, %v1693_v7  ;;  %v17537_v19 = vcombine.low %v1690_v8, %v1694_v9  ;;  %v1753_v6 = vld [vmem:[%s19859_s20 + $0x26c0] sm:$0xff] }
 0x316   : > { %v17546_v21 = vcombine.high %v1698_v16, %v1702_v17  ;;  %v1757_v7 = vld [vmem:[%s19859_s20 + $0x26e0] sm:$0xff]  ;;  %v1754_v8 = vld [vmem:[%s19859_s20 + $0x26c8] sm:$0xff] }
 0x317   : > { %v1758_v9 = vld [vmem:[%s19859_s20 + $0x26e8] sm:$0xff] }
 0x318   : > { %11774 = vmatpush1.bf16.msra.mxu0 %v17479_v24  ;;  %12376 = vmatpush1.bf16.msra.mxu1 %v17481_v25  ;;  %v1706_v24 = vld [vmem:[%s19859_s20 + $0x2548] sm:$0xff] }
 0x319   : > { %11775 = vmatprep.subr.bf16.mxu0 %v17488_v26  ;;  %12377 = vmatprep.subr.bf16.mxu1 %v17490_v27  ;;  %v1710_v25 = vld [vmem:[%s19859_s20 + $0x2568] sm:$0xff]  ;;  %v17543_v26 = vcombine.low %v1697_v14, %v1701_v15  ;;  %v17545_v27 = vcombine.low %v1698_v16, %v1702_v17  ;;  %v1761_v14 = vld [vmem:[%s19859_s20 + $0x2700] sm:$0xff] }
 0x31a   : > { %v17554_v29 = vcombine.high %v1706_v24, %v1710_v25  ;;  %v1765_v15 = vld [vmem:[%s19859_s20 + $0x2720] sm:$0xff]  ;;  %v1762_v16 = vld [vmem:[%s19859_s20 + $0x2708] sm:$0xff] }
 0x31b   : > { %v1766_v17 = vld [vmem:[%s19859_s20 + $0x2728] sm:$0xff] }
 0x31c   : > { %11776 = vmatpush1.bf16.msra.mxu0 %v17487_v32  ;;  %12378 = vmatpush1.bf16.msra.mxu1 %v17489_v33  ;;  %v1714_v32 = vld [vmem:[%s19859_s20 + $0x2588] sm:$0xff] }
 0x31d   : > { %11777 = vmatprep.subr.bf16.mxu0 %v17496_v34  ;;  %12379 = vmatprep.subr.bf16.mxu1 %v17498_v35  ;;  %v1718_v33 = vld [vmem:[%s19859_s20 + $0x25a8] sm:$0xff]  ;;  %v17551_v34 = vcombine.low %v1705_v22, %v1709_v23  ;;  %v17553_v35 = vcombine.low %v1706_v24, %v1710_v25  ;;  %v1769_v22 = vld [vmem:[%s19859_s20 + $0x2740] sm:$0xff] }
 0x31e   : > { %v17562_v37 = vcombine.high %v1714_v32, %v1718_v33  ;;  %v1773_v23 = vld [vmem:[%s19859_s20 + $0x2760] sm:$0xff]  ;;  %v1770_v24 = vld [vmem:[%s19859_s20 + $0x2748] sm:$0xff] }
 0x31f   : > { %v1774_v25 = vld [vmem:[%s19859_s20 + $0x2768] sm:$0xff] }
 0x320   : > { %11778 = vmatpush1.bf16.msra.mxu0 %v17495_v40  ;;  %12380 = vmatpush1.bf16.msra.mxu1 %v17497_v41  ;;  %v1722_v40 = vld [vmem:[%s19859_s20 + $0x25c8] sm:$0xff] }
 0x321   : > { %11779 = vmatprep.subr.bf16.mxu0 %v17504_v42  ;;  %12381 = vmatprep.subr.bf16.mxu1 %v17506_v43  ;;  %v1726_v41 = vld [vmem:[%s19859_s20 + $0x25e8] sm:$0xff]  ;;  %v17559_v42 = vcombine.low %v1713_v30, %v1717_v31  ;;  %v17561_v43 = vcombine.low %v1714_v32, %v1718_v33  ;;  %v1777_v30 = vld [vmem:[%s19859_s20 + $0x2780] sm:$0xff] }
 0x322   : > { %v17570_v45 = vcombine.high %v1722_v40, %v1726_v41  ;;  %v1781_v31 = vld [vmem:[%s19859_s20 + $0x27a0] sm:$0xff]  ;;  %v1778_v32 = vld [vmem:[%s19859_s20 + $0x2788] sm:$0xff] }
 0x323   : > { %v1782_v33 = vld [vmem:[%s19859_s20 + $0x27a8] sm:$0xff] }
 0x324   : > { %11780 = vmatpush1.bf16.msra.mxu0 %v17503_v48  ;;  %12382 = vmatpush1.bf16.msra.mxu1 %v17505_v49  ;;  %v1730_v48 = vld [vmem:[%s19859_s20 + $0x2608] sm:$0xff] }
 0x325   : > { %11792 = vmatprep.subr.bf16.mxu0 %v17512_v50  ;;  %12394 = vmatprep.subr.bf16.mxu1 %v17514_v51  ;;  %v1734_v49 = vld [vmem:[%s19859_s20 + $0x2628] sm:$0xff]  ;;  %v17567_v50 = vcombine.low %v1721_v38, %v1725_v39  ;;  %v17569_v51 = vcombine.low %v1722_v40, %v1726_v41  ;;  %v1785_v38 = vld [vmem:[%s19859_s20 + $0x27c0] sm:$0xff] }
 0x326   : > { %v17578_v53 = vcombine.high %v1730_v48, %v1734_v49  ;;  %v1789_v39 = vld [vmem:[%s19859_s20 + $0x27e0] sm:$0xff]  ;;  %v1786_v40 = vld [vmem:[%s19859_s20 + $0x27c8] sm:$0xff] }
 0x327   : > { %11782 = vmatmul.mubr.bf16.vlgmr.msra.gmra.mrb[0].mxu0 %v18853_v54  ;;  %12384 = vmatmul.mubr.bf16.vlgmr.msra.gmra.mrb[0].mxu1 %v18853_v54  ;;  %v1737_v54 = vld [vmem:[%s19859_s20 + $0x2640] sm:$0xff]  ;;  %v1790_v41 = vld [vmem:[%s19859_s20 + $0x27e8] sm:$0xff] }
 0x328   : > { %11793 = vmatpush1.bf16.msra.mxu0 %v17511_v57  ;;  %12395 = vmatpush1.bf16.msra.mxu1 %v17513_v58  ;;  %v1742_v57 = vld [vmem:[%s19859_s20 + $0x2668] sm:$0xff]  ;;  %v17575_v58 = vcombine.low %v1729_v46, %v1733_v47  ;;  %v1793_v46 = vld [vmem:[%s19859_s20 + $0x2800] sm:$0xff] }
 0x329   : > { %11794 = vmatprep.subr.bf16.mxu0 %v17520_v59  ;;  %12396 = vmatprep.subr.bf16.mxu1 %v17522_v60  ;;  %v17577_v59 = vcombine.low %v1730_v48, %v1734_v49  ;;  %v17584_v60 = vcombine.high %v1737_v54, %v1741_v55  ;;  %v17586_v61 = vcombine.high %v1738_v56, %v1742_v57  ;;  %v1797_v47 = vld [vmem:[%s19859_s20 + $0x2820] sm:$0xff]  ;;  %v1794_v48 = vld [vmem:[%s19859_s20 + $0x2808] sm:$0xff] }
 0x32a   : > { %11824 = vmatprep.mubr.bf16.mxu0 %v18854_v63  ;;  %12426 = vmatprep.mubr.bf16.mxu1 %v18854_v63  ;;  %v1749_v63 = vld [vmem:[%s19859_s20 + $0x26a0] sm:$0xff]  ;;  %v1798_v49 = vld [vmem:[%s19859_s20 + $0x2828] sm:$0xff] }
 0x32c   : > { %11795 = vmatpush1.bf16.msra.mxu0 %v17519_v2  ;;  %12397 = vmatpush1.bf16.msra.mxu1 %v17521_v3  ;;  %v17583_v2 = vcombine.low %v1737_v54, %v1741_v55  ;;  %v17585_v3 = vcombine.low %v1738_v56, %v1742_v57  ;;  %v1801_v54 = vld [vmem:[%s19859_s20 + $0x2840] sm:$0xff]  ;;  %v18856_v56 = vld [vmem:[%s19857_s27 + $0x48] ss:$112 sps:$4 sm:$0xff]  }
 0x32d   : > { %11796 = vmatprep.subr.bf16.mxu0 %v17528_v4  ;;  %12398 = vmatprep.subr.bf16.mxu1 %v17530_v5  ;;  %v17592_v4 = vcombine.high %v1745_v62, %v1749_v63  ;;  %v17594_v5 = vcombine.high %v1746_v0, %v1750_v1  ;;  %v1805_v55 = vld [vmem:[%s19859_s20 + $0x2860] sm:$0xff]  ;;  %v1802_v57 = vld [vmem:[%s19859_s20 + $0x2848] sm:$0xff] }
 0x330   : > { %11797 = vmatpush1.bf16.msra.mxu0 %v17527_v10  ;;  %12399 = vmatpush1.bf16.msra.mxu1 %v17529_v11  ;;  %v17591_v10 = vcombine.low %v1745_v62, %v1749_v63  ;;  %v17593_v11 = vcombine.low %v1746_v0, %v1750_v1  ;;  %v1809_v63 = vld [vmem:[%s19859_s20 + $0x2880] sm:$0xff] }
 0x331   : > { %11798 = vmatprep.subr.bf16.mxu0 %v17536_v12  ;;  %12400 = vmatprep.subr.bf16.mxu1 %v17538_v13  ;;  %v17600_v12 = vcombine.high %v1753_v6, %v1757_v7  ;;  %v17602_v13 = vcombine.high %v1754_v8, %v1758_v9  ;;  %v1813_v0 = vld [vmem:[%s19859_s20 + $0x28a0] sm:$0xff] }
 0x332   : > { %v18857_v1 = vld [vmem:[%s19857_s27 + $0x54] ss:$112 sps:$4 sm:$0xff]  }
 0x334   : > { %11799 = vmatpush1.bf16.msra.mxu0 %v17535_v18  ;;  %12401 = vmatpush1.bf16.msra.mxu1 %v17537_v19  ;;  %v17599_v18 = vcombine.low %v1753_v6, %v1757_v7  ;;  %v17601_v19 = vcombine.low %v1754_v8, %v1758_v9  ;;  %v17656_v6 = vcombine.high %v1809_v63, %v1813_v0  ;;  %v1817_v8 = vld [vmem:[%s19859_s20 + $0x28c0] sm:$0xff] }
 0x335   : > { %11800 = vmatprep.subr.bf16.mxu0 %v17544_v20  ;;  %12402 = vmatprep.subr.bf16.mxu1 %v17546_v21  ;;  %v17608_v20 = vcombine.high %v1761_v14, %v1765_v15  ;;  %v17610_v21 = vcombine.high %v1762_v16, %v1766_v17  ;;  %v1821_v9 = vld [vmem:[%s19859_s20 + $0x28e0] sm:$0xff] }
 0x338   : > { %11801 = vmatpush1.bf16.msra.mxu0 %v17543_v26  ;;  %12403 = vmatpush1.bf16.msra.mxu1 %v17545_v27  ;;  %v17607_v26 = vcombine.low %v1761_v14, %v1765_v15  ;;  %v17609_v27 = vcombine.low %v1762_v16, %v1766_v17  ;;  %v17664_v14 = vcombine.high %v1817_v8, %v1821_v9  ;;  %v1825_v16 = vld [vmem:[%s19859_s20 + $0x2900] sm:$0xff] }
 0x339   : > { %11802 = vmatprep.subr.bf16.mxu0 %v17552_v28  ;;  %12404 = vmatprep.subr.bf16.mxu1 %v17554_v29  ;;  %v17616_v28 = vcombine.high %v1769_v22, %v1773_v23  ;;  %v17618_v29 = vcombine.high %v1770_v24, %v1774_v25  ;;  %v1829_v17 = vld [vmem:[%s19859_s20 + $0x2920] sm:$0xff] }
 0x33c   : > { %11803 = vmatpush1.bf16.msra.mxu0 %v17551_v34  ;;  %12405 = vmatpush1.bf16.msra.mxu1 %v17553_v35  ;;  %v17615_v34 = vcombine.low %v1769_v22, %v1773_v23  ;;  %v17617_v35 = vcombine.low %v1770_v24, %v1774_v25  ;;  %v17672_v22 = vcombine.high %v1825_v16, %v1829_v17  ;;  %v1833_v24 = vld [vmem:[%s19859_s20 + $0x2940] sm:$0xff] }
 0x33d   : > { %11804 = vmatprep.subr.bf16.mxu0 %v17560_v36  ;;  %12406 = vmatprep.subr.bf16.mxu1 %v17562_v37  ;;  %v17624_v36 = vcombine.high %v1777_v30, %v1781_v31  ;;  %v17626_v37 = vcombine.high %v1778_v32, %v1782_v33  ;;  %v1837_v25 = vld [vmem:[%s19859_s20 + $0x2960] sm:$0xff] }
 0x340   : > { %11805 = vmatpush1.bf16.msra.mxu0 %v17559_v42  ;;  %12407 = vmatpush1.bf16.msra.mxu1 %v17561_v43  ;;  %v17623_v42 = vcombine.low %v1777_v30, %v1781_v31  ;;  %v17625_v43 = vcombine.low %v1778_v32, %v1782_v33  ;;  %v17680_v30 = vcombine.high %v1833_v24, %v1837_v25  ;;  %v1841_v32 = vld [vmem:[%s19859_s20 + $0x2980] sm:$0xff] }
 0x341   : > { %11806 = vmatprep.subr.bf16.mxu0 %v17568_v44  ;;  %12408 = vmatprep.subr.bf16.mxu1 %v17570_v45  ;;  %v17632_v44 = vcombine.high %v1785_v38, %v1789_v39  ;;  %v17634_v45 = vcombine.high %v1786_v40, %v1790_v41  ;;  %v1845_v33 = vld [vmem:[%s19859_s20 + $0x29a0] sm:$0xff] }
 0x344   : > { %11807 = vmatpush1.bf16.msra.mxu0 %v17567_v50  ;;  %12409 = vmatpush1.bf16.msra.mxu1 %v17569_v51  ;;  %v17631_v50 = vcombine.low %v1785_v38, %v1789_v39  ;;  %v17633_v51 = vcombine.low %v1786_v40, %v1790_v41  ;;  %v17688_v38 = vcombine.high %v1841_v32, %v1845_v33  ;;  %v1849_v40 = vld [vmem:[%s19859_s20 + $0x29c0] sm:$0xff] }
 0x345   : > { %11808 = vmatprep.subr.bf16.mxu0 %v17576_v52  ;;  %12410 = vmatprep.subr.bf16.mxu1 %v17578_v53  ;;  %v17640_v52 = vcombine.high %v1793_v46, %v1797_v47  ;;  %v17642_v53 = vcombine.high %v1794_v48, %v1798_v49  ;;  %v1853_v41 = vld [vmem:[%s19859_s20 + $0x29e0] sm:$0xff] }
 0x348   : > { %11809 = vmatpush1.bf16.msra.mxu0 %v17575_v58  ;;  %12411 = vmatpush1.bf16.msra.mxu1 %v17577_v59  ;;  %v1806_v58 = vld [vmem:[%s19859_s20 + $0x2868] sm:$0xff]  ;;  %v17639_v59 = vcombine.low %v1793_v46, %v1797_v47  ;;  %v17696_v46 = vcombine.high %v1849_v40, %v1853_v41 }
 0x349   : > { %11810 = vmatprep.subr.bf16.mxu0 %v17584_v60  ;;  %12412 = vmatprep.subr.bf16.mxu1 %v17586_v61  ;;  %v17641_v60 = vcombine.low %v1794_v48, %v1798_v49  ;;  %v17648_v61 = vcombine.high %v1801_v54, %v1805_v55  ;;  %v17650_v62 = vcombine.high %v1802_v57, %v1806_v58  ;;  %v1857_v48 = vld [vmem:[%s19859_s20 + $0x2a00] sm:$0xff] }
 0x34a   : > { %v1861_v49 = vld [vmem:[%s19859_s20 + $0x2a20] sm:$0xff] }
 0x34c   : > { %11811 = vmatpush1.bf16.msra.mxu0 %v17583_v2  ;;  %12413 = vmatpush1.bf16.msra.mxu1 %v17585_v3  ;;  %v1810_v2 = vld [vmem:[%s19859_s20 + $0x2888] sm:$0xff] }
 0x34d   : > { %11812 = vmatprep.subr.bf16.mxu0 %v17592_v4  ;;  %12414 = vmatprep.subr.bf16.mxu1 %v17594_v5  ;;  %v1814_v3 = vld [vmem:[%s19859_s20 + $0x28a8] sm:$0xff]  ;;  %v17647_v4 = vcombine.low %v1801_v54, %v1805_v55  ;;  %v17649_v5 = vcombine.low %v1802_v57, %v1806_v58  ;;  %v17704_v54 = vcombine.high %v1857_v48, %v1861_v49  ;;  %v1869_v57 = vld [vmem:[%s19859_s20 + $0x2a60] sm:$0xff] }
 0x34e   : > { %v17658_v7 = vcombine.high %v1810_v2, %v1814_v3  ;;  %v1866_v58 = vld [vmem:[%s19859_s20 + $0x2a48] sm:$0xff] }
 0x350   : > { %11813 = vmatpush1.bf16.msra.mxu0 %v17591_v10  ;;  %12415 = vmatpush1.bf16.msra.mxu1 %v17593_v11  ;;  %v1818_v10 = vld [vmem:[%s19859_s20 + $0x28c8] sm:$0xff] }
 0x351   : > { %11814 = vmatprep.subr.bf16.mxu0 %v17600_v12  ;;  %12416 = vmatprep.subr.bf16.mxu1 %v17602_v13  ;;  %v1822_v11 = vld [vmem:[%s19859_s20 + $0x28e8] sm:$0xff]  ;;  %v17655_v12 = vcombine.low %v1809_v63, %v1813_v0  ;;  %v17657_v13 = vcombine.low %v1810_v2, %v1814_v3  ;;  %v1873_v0 = vld [vmem:[%s19859_s20 + $0x2a80] sm:$0xff] }
 0x352   : > { %v17666_v15 = vcombine.high %v1818_v10, %v1822_v11  ;;  %v1874_v2 = vld [vmem:[%s19859_s20 + $0x2a88] sm:$0xff] }
 0x353   : > { %v1878_v3 = vld [vmem:[%s19859_s20 + $0x2aa8] sm:$0xff] }
 0x354   : > { %11815 = vmatpush1.bf16.msra.mxu0 %v17599_v18  ;;  %12417 = vmatpush1.bf16.msra.mxu1 %v17601_v19  ;;  %v1826_v18 = vld [vmem:[%s19859_s20 + $0x2908] sm:$0xff] }
 0x355   : > { %11816 = vmatprep.subr.bf16.mxu0 %v17608_v20  ;;  %12418 = vmatprep.subr.bf16.mxu1 %v17610_v21  ;;  %v1830_v19 = vld [vmem:[%s19859_s20 + $0x2928] sm:$0xff]  ;;  %v17663_v20 = vcombine.low %v1817_v8, %v1821_v9  ;;  %v17665_v21 = vcombine.low %v1818_v10, %v1822_v11  ;;  %v1881_v8 = vld [vmem:[%s19859_s20 + $0x2ac0] sm:$0xff] }
 0x356   : > { %v17674_v23 = vcombine.high %v1826_v18, %v1830_v19  ;;  %v1885_v9 = vld [vmem:[%s19859_s20 + $0x2ae0] sm:$0xff]  ;;  %v1882_v10 = vld [vmem:[%s19859_s20 + $0x2ac8] sm:$0xff] }
 0x357   : > { %v1886_v11 = vld [vmem:[%s19859_s20 + $0x2ae8] sm:$0xff] }
 0x358   : > { %11817 = vmatpush1.bf16.msra.mxu0 %v17607_v26  ;;  %12419 = vmatpush1.bf16.msra.mxu1 %v17609_v27  ;;  %v1834_v26 = vld [vmem:[%s19859_s20 + $0x2948] sm:$0xff] }
 0x359   : > { %11818 = vmatprep.subr.bf16.mxu0 %v17616_v28  ;;  %12420 = vmatprep.subr.bf16.mxu1 %v17618_v29  ;;  %v1838_v27 = vld [vmem:[%s19859_s20 + $0x2968] sm:$0xff]  ;;  %v17671_v28 = vcombine.low %v1825_v16, %v1829_v17  ;;  %v17673_v29 = vcombine.low %v1826_v18, %v1830_v19  ;;  %v1889_v16 = vld [vmem:[%s19859_s20 + $0x2b00] sm:$0xff] }
 0x35a   : > { %v17682_v31 = vcombine.high %v1834_v26, %v1838_v27  ;;  %v1893_v17 = vld [vmem:[%s19859_s20 + $0x2b20] sm:$0xff]  ;;  %v1890_v18 = vld [vmem:[%s19859_s20 + $0x2b08] sm:$0xff] }
 0x35b   : > { %v1894_v19 = vld [vmem:[%s19859_s20 + $0x2b28] sm:$0xff] }
 0x35c   : > { %11819 = vmatpush1.bf16.msra.mxu0 %v17615_v34  ;;  %12421 = vmatpush1.bf16.msra.mxu1 %v17617_v35  ;;  %v1842_v34 = vld [vmem:[%s19859_s20 + $0x2988] sm:$0xff] }
 0x35d   : > { %11820 = vmatprep.subr.bf16.mxu0 %v17624_v36  ;;  %12422 = vmatprep.subr.bf16.mxu1 %v17626_v37  ;;  %v1846_v35 = vld [vmem:[%s19859_s20 + $0x29a8] sm:$0xff]  ;;  %v17679_v36 = vcombine.low %v1833_v24, %v1837_v25  ;;  %v17681_v37 = vcombine.low %v1834_v26, %v1838_v27  ;;  %v1897_v24 = vld [vmem:[%s19859_s20 + $0x2b40] sm:$0xff] }
 0x35e   : > { %v17690_v39 = vcombine.high %v1842_v34, %v1846_v35  ;;  %v1901_v25 = vld [vmem:[%s19859_s20 + $0x2b60] sm:$0xff]  ;;  %v1898_v26 = vld [vmem:[%s19859_s20 + $0x2b48] sm:$0xff] }
 0x35f   : > { %v1902_v27 = vld [vmem:[%s19859_s20 + $0x2b68] sm:$0xff] }
 0x360   : > { %11821 = vmatpush1.bf16.msra.mxu0 %v17623_v42  ;;  %12423 = vmatpush1.bf16.msra.mxu1 %v17625_v43  ;;  %v1850_v42 = vld [vmem:[%s19859_s20 + $0x29c8] sm:$0xff] }
 0x361   : > { %11822 = vmatprep.subr.bf16.mxu0 %v17632_v44  ;;  %12424 = vmatprep.subr.bf16.mxu1 %v17634_v45  ;;  %v1854_v43 = vld [vmem:[%s19859_s20 + $0x29e8] sm:$0xff]  ;;  %v17687_v44 = vcombine.low %v1841_v32, %v1845_v33  ;;  %v17689_v45 = vcombine.low %v1842_v34, %v1846_v35  ;;  %v1905_v32 = vld [vmem:[%s19859_s20 + $0x2b80] sm:$0xff] }
 0x362   : > { %v17698_v47 = vcombine.high %v1850_v42, %v1854_v43  ;;  %v1909_v33 = vld [vmem:[%s19859_s20 + $0x2ba0] sm:$0xff]  ;;  %v1906_v34 = vld [vmem:[%s19859_s20 + $0x2b88] sm:$0xff] }
 0x363   : > { %v1910_v35 = vld [vmem:[%s19859_s20 + $0x2ba8] sm:$0xff] }
 0x364   : > { %11823 = vmatpush1.bf16.msra.mxu0 %v17631_v50  ;;  %12425 = vmatpush1.bf16.msra.mxu1 %v17633_v51  ;;  %v1858_v50 = vld [vmem:[%s19859_s20 + $0x2a08] sm:$0xff] }
 0x365   : > { %11835 = vmatprep.subr.bf16.mxu0 %v17640_v52  ;;  %12437 = vmatprep.subr.bf16.mxu1 %v17642_v53  ;;  %v1862_v51 = vld [vmem:[%s19859_s20 + $0x2a28] sm:$0xff]  ;;  %v17695_v52 = vcombine.low %v1849_v40, %v1853_v41  ;;  %v17697_v53 = vcombine.low %v1850_v42, %v1854_v43  ;;  %v1913_v40 = vld [vmem:[%s19859_s20 + $0x2bc0] sm:$0xff] }
 0x366   : > { %v17706_v55 = vcombine.high %v1858_v50, %v1862_v51  ;;  %v1917_v41 = vld [vmem:[%s19859_s20 + $0x2be0] sm:$0xff]  ;;  %v1914_v42 = vld [vmem:[%s19859_s20 + $0x2bc8] sm:$0xff] }
 0x367   : > { %11825 = vmatmul.mubr.bf16.vlgmr.msra.gmra.mrb[0].mxu0 %v18856_v56  ;;  %12427 = vmatmul.mubr.bf16.vlgmr.msra.gmra.mrb[0].mxu1 %v18856_v56  ;;  %v1865_v56 = vld [vmem:[%s19859_s20 + $0x2a40] sm:$0xff]  ;;  %v1918_v43 = vld [vmem:[%s19859_s20 + $0x2be8] sm:$0xff] }
 0x368   : > { %11836 = vmatpush1.bf16.msra.mxu0 %v17639_v59  ;;  %12438 = vmatpush1.bf16.msra.mxu1 %v17641_v60  ;;  %v1870_v59 = vld [vmem:[%s19859_s20 + $0x2a68] sm:$0xff]  ;;  %v17703_v60 = vcombine.low %v1857_v48, %v1861_v49  ;;  %v1921_v48 = vld [vmem:[%s19859_s20 + $0x2c00] sm:$0xff] }
 0x369   : > { %11837 = vmatprep.subr.bf16.mxu0 %v17648_v61  ;;  %12439 = vmatprep.subr.bf16.mxu1 %v17650_v62  ;;  %v17705_v61 = vcombine.low %v1858_v50, %v1862_v51  ;;  %v17712_v62 = vcombine.high %v1865_v56, %v1869_v57  ;;  %v17714_v63 = vcombine.high %v1866_v58, %v1870_v59  ;;  %v1925_v49 = vld [vmem:[%s19859_s20 + $0x2c20] sm:$0xff]  ;;  %v1922_v50 = vld [vmem:[%s19859_s20 + $0x2c08] sm:$0xff] }
 0x36a   : > { %11867 = vmatprep.mubr.bf16.mxu0 %v18857_v1  ;;  %12469 = vmatprep.mubr.bf16.mxu1 %v18857_v1  ;;  %v1877_v1 = vld [vmem:[%s19859_s20 + $0x2aa0] sm:$0xff]  ;;  %v1926_v51 = vld [vmem:[%s19859_s20 + $0x2c28] sm:$0xff] }
 0x36c   : > { %11838 = vmatpush1.bf16.msra.mxu0 %v17647_v4  ;;  %12440 = vmatpush1.bf16.msra.mxu1 %v17649_v5  ;;  %v17711_v4 = vcombine.low %v1865_v56, %v1869_v57  ;;  %v17713_v5 = vcombine.low %v1866_v58, %v1870_v59  ;;  %v1929_v56 = vld [vmem:[%s19859_s20 + $0x2c40] sm:$0xff]  ;;  %v1930_v59 = vld [vmem:[%s19859_s20 + $0x2c48] sm:$0xff] }
 0x36d   : > { %11839 = vmatprep.subr.bf16.mxu0 %v17656_v6  ;;  %12441 = vmatprep.subr.bf16.mxu1 %v17658_v7  ;;  %v17720_v6 = vcombine.high %v1873_v0, %v1877_v1  ;;  %v17722_v7 = vcombine.high %v1874_v2, %v1878_v3  ;;  %v1933_v57 = vld [vmem:[%s19859_s20 + $0x2c60] sm:$0xff] }
 0x36e   : > { %v18859_v58 = vld [vmem:[%s19857_s27 + $0x50] ss:$112 sps:$4 sm:$0xff]  }
 0x370   : > { %11840 = vmatpush1.bf16.msra.mxu0 %v17655_v12  ;;  %12442 = vmatpush1.bf16.msra.mxu1 %v17657_v13  ;;  %v17719_v12 = vcombine.low %v1873_v0, %v1877_v1  ;;  %v17721_v13 = vcombine.low %v1874_v2, %v1878_v3  ;;  %v1937_v1 = vld [vmem:[%s19859_s20 + $0x2c80] sm:$0xff]  ;;  %v18860_v3 = vld [vmem:[%s19857_s27 + $0x5c] ss:$112 sps:$4 sm:$0xff]  }
 0x371   : > { %11841 = vmatprep.subr.bf16.mxu0 %v17664_v14  ;;  %12443 = vmatprep.subr.bf16.mxu1 %v17666_v15  ;;  %v17728_v14 = vcombine.high %v1881_v8, %v1885_v9  ;;  %v17730_v15 = vcombine.high %v1882_v10, %v1886_v11  ;;  %v1941_v2 = vld [vmem:[%s19859_s20 + $0x2ca0] sm:$0xff] }
 0x374   : > { %11842 = vmatpush1.bf16.msra.mxu0 %v17663_v20  ;;  %12444 = vmatpush1.bf16.msra.mxu1 %v17665_v21  ;;  %v17727_v20 = vcombine.low %v1881_v8, %v1885_v9  ;;  %v17729_v21 = vcombine.low %v1882_v10, %v1886_v11  ;;  %v17784_v8 = vcombine.high %v1937_v1, %v1941_v2  ;;  %v1945_v10 = vld [vmem:[%s19859_s20 + $0x2cc0] sm:$0xff] }
 0x375   : > { %11843 = vmatprep.subr.bf16.mxu0 %v17672_v22  ;;  %12445 = vmatprep.subr.bf16.mxu1 %v17674_v23  ;;  %v17736_v22 = vcombine.high %v1889_v16, %v1893_v17  ;;  %v17738_v23 = vcombine.high %v1890_v18, %v1894_v19  ;;  %v1949_v11 = vld [vmem:[%s19859_s20 + $0x2ce0] sm:$0xff] }
 0x378   : > { %11844 = vmatpush1.bf16.msra.mxu0 %v17671_v28  ;;  %12446 = vmatpush1.bf16.msra.mxu1 %v17673_v29  ;;  %v17735_v28 = vcombine.low %v1889_v16, %v1893_v17  ;;  %v17737_v29 = vcombine.low %v1890_v18, %v1894_v19  ;;  %v17792_v16 = vcombine.high %v1945_v10, %v1949_v11  ;;  %v1953_v18 = vld [vmem:[%s19859_s20 + $0x2d00] sm:$0xff] }
 0x379   : > { %11845 = vmatprep.subr.bf16.mxu0 %v17680_v30  ;;  %12447 = vmatprep.subr.bf16.mxu1 %v17682_v31  ;;  %v17744_v30 = vcombine.high %v1897_v24, %v1901_v25  ;;  %v17746_v31 = vcombine.high %v1898_v26, %v1902_v27  ;;  %v1957_v19 = vld [vmem:[%s19859_s20 + $0x2d20] sm:$0xff] }
 0x37c   : > { %11846 = vmatpush1.bf16.msra.mxu0 %v17679_v36  ;;  %12448 = vmatpush1.bf16.msra.mxu1 %v17681_v37  ;;  %v17743_v36 = vcombine.low %v1897_v24, %v1901_v25  ;;  %v17745_v37 = vcombine.low %v1898_v26, %v1902_v27  ;;  %v17800_v24 = vcombine.high %v1953_v18, %v1957_v19  ;;  %v1961_v26 = vld [vmem:[%s19859_s20 + $0x2d40] sm:$0xff] }
 0x37d   : > { %11847 = vmatprep.subr.bf16.mxu0 %v17688_v38  ;;  %12449 = vmatprep.subr.bf16.mxu1 %v17690_v39  ;;  %v17752_v38 = vcombine.high %v1905_v32, %v1909_v33  ;;  %v17754_v39 = vcombine.high %v1906_v34, %v1910_v35  ;;  %v1965_v27 = vld [vmem:[%s19859_s20 + $0x2d60] sm:$0xff] }
 0x380   : > { %11848 = vmatpush1.bf16.msra.mxu0 %v17687_v44  ;;  %12450 = vmatpush1.bf16.msra.mxu1 %v17689_v45  ;;  %v17751_v44 = vcombine.low %v1905_v32, %v1909_v33  ;;  %v17753_v45 = vcombine.low %v1906_v34, %v1910_v35  ;;  %v17808_v32 = vcombine.high %v1961_v26, %v1965_v27  ;;  %v1969_v34 = vld [vmem:[%s19859_s20 + $0x2d80] sm:$0xff] }
 0x381   : > { %11849 = vmatprep.subr.bf16.mxu0 %v17696_v46  ;;  %12451 = vmatprep.subr.bf16.mxu1 %v17698_v47  ;;  %v17760_v46 = vcombine.high %v1913_v40, %v1917_v41  ;;  %v17762_v47 = vcombine.high %v1914_v42, %v1918_v43  ;;  %v1973_v35 = vld [vmem:[%s19859_s20 + $0x2da0] sm:$0xff] }
 0x384   : > { %11850 = vmatpush1.bf16.msra.mxu0 %v17695_v52  ;;  %12452 = vmatpush1.bf16.msra.mxu1 %v17697_v53  ;;  %v17759_v52 = vcombine.low %v1913_v40, %v1917_v41  ;;  %v17761_v53 = vcombine.low %v1914_v42, %v1918_v43  ;;  %v17816_v40 = vcombine.high %v1969_v34, %v1973_v35  ;;  %v1977_v42 = vld [vmem:[%s19859_s20 + $0x2dc0] sm:$0xff] }
 0x385   : > { %11851 = vmatprep.subr.bf16.mxu0 %v17704_v54  ;;  %12453 = vmatprep.subr.bf16.mxu1 %v17706_v55  ;;  %v17768_v54 = vcombine.high %v1921_v48, %v1925_v49  ;;  %v17770_v55 = vcombine.high %v1922_v50, %v1926_v51  ;;  %v1981_v43 = vld [vmem:[%s19859_s20 + $0x2de0] sm:$0xff] }
 0x388   : > { %11852 = vmatpush1.bf16.msra.mxu0 %v17703_v60  ;;  %12454 = vmatpush1.bf16.msra.mxu1 %v17705_v61  ;;  %v1934_v60 = vld [vmem:[%s19859_s20 + $0x2c68] sm:$0xff]  ;;  %v17767_v61 = vcombine.low %v1921_v48, %v1925_v49  ;;  %v17824_v48 = vcombine.high %v1977_v42, %v1981_v43 }
 0x389   : > { %11853 = vmatprep.subr.bf16.mxu0 %v17712_v62  ;;  %12455 = vmatprep.subr.bf16.mxu1 %v17714_v63  ;;  %v17769_v62 = vcombine.low %v1922_v50, %v1926_v51  ;;  %v17776_v63 = vcombine.high %v1929_v56, %v1933_v57  ;;  %v17778_v0 = vcombine.high %v1930_v59, %v1934_v60  ;;  %v1985_v50 = vld [vmem:[%s19859_s20 + $0x2e00] sm:$0xff] }
 0x38a   : > { %v1989_v51 = vld [vmem:[%s19859_s20 + $0x2e20] sm:$0xff] }
 0x38c   : > { %11854 = vmatpush1.bf16.msra.mxu0 %v17711_v4  ;;  %12456 = vmatpush1.bf16.msra.mxu1 %v17713_v5  ;;  %v1938_v4 = vld [vmem:[%s19859_s20 + $0x2c88] sm:$0xff] }
 0x38d   : > { %11855 = vmatprep.subr.bf16.mxu0 %v17720_v6  ;;  %12457 = vmatprep.subr.bf16.mxu1 %v17722_v7  ;;  %v1942_v5 = vld [vmem:[%s19859_s20 + $0x2ca8] sm:$0xff]  ;;  %v17775_v6 = vcombine.low %v1929_v56, %v1933_v57  ;;  %v17777_v7 = vcombine.low %v1930_v59, %v1934_v60  ;;  %v17832_v56 = vcombine.high %v1985_v50, %v1989_v51  ;;  %v1997_v59 = vld [vmem:[%s19859_s20 + $0x2e60] sm:$0xff] }
 0x38e   : > { %v17786_v9 = vcombine.high %v1938_v4, %v1942_v5  ;;  %v1994_v60 = vld [vmem:[%s19859_s20 + $0x2e48] sm:$0xff] }
 0x390   : > { %11856 = vmatpush1.bf16.msra.mxu0 %v17719_v12  ;;  %12458 = vmatpush1.bf16.msra.mxu1 %v17721_v13  ;;  %v1946_v12 = vld [vmem:[%s19859_s20 + $0x2cc8] sm:$0xff] }
 0x391   : > { %11857 = vmatprep.subr.bf16.mxu0 %v17728_v14  ;;  %12459 = vmatprep.subr.bf16.mxu1 %v17730_v15  ;;  %v1950_v13 = vld [vmem:[%s19859_s20 + $0x2ce8] sm:$0xff]  ;;  %v17783_v14 = vcombine.low %v1937_v1, %v1941_v2  ;;  %v17785_v15 = vcombine.low %v1938_v4, %v1942_v5  ;;  %v2001_v2 = vld [vmem:[%s19859_s20 + $0x2e80] sm:$0xff] }
 0x392   : > { %v17794_v17 = vcombine.high %v1946_v12, %v1950_v13  ;;  %v2002_v4 = vld [vmem:[%s19859_s20 + $0x2e88] sm:$0xff] }
 0x393   : > { %v2006_v5 = vld [vmem:[%s19859_s20 + $0x2ea8] sm:$0xff] }
 0x394   : > { %11858 = vmatpush1.bf16.msra.mxu0 %v17727_v20  ;;  %12460 = vmatpush1.bf16.msra.mxu1 %v17729_v21  ;;  %v1954_v20 = vld [vmem:[%s19859_s20 + $0x2d08] sm:$0xff] }
 0x395   : > { %11859 = vmatprep.subr.bf16.mxu0 %v17736_v22  ;;  %12461 = vmatprep.subr.bf16.mxu1 %v17738_v23  ;;  %v1958_v21 = vld [vmem:[%s19859_s20 + $0x2d28] sm:$0xff]  ;;  %v17791_v22 = vcombine.low %v1945_v10, %v1949_v11  ;;  %v17793_v23 = vcombine.low %v1946_v12, %v1950_v13  ;;  %v2009_v10 = vld [vmem:[%s19859_s20 + $0x2ec0] sm:$0xff] }
 0x396   : > { %v17802_v25 = vcombine.high %v1954_v20, %v1958_v21  ;;  %v2013_v11 = vld [vmem:[%s19859_s20 + $0x2ee0] sm:$0xff]  ;;  %v2010_v12 = vld [vmem:[%s19859_s20 + $0x2ec8] sm:$0xff] }
 0x397   : > { %v2014_v13 = vld [vmem:[%s19859_s20 + $0x2ee8] sm:$0xff] }
 0x398   : > { %11860 = vmatpush1.bf16.msra.mxu0 %v17735_v28  ;;  %12462 = vmatpush1.bf16.msra.mxu1 %v17737_v29  ;;  %v1962_v28 = vld [vmem:[%s19859_s20 + $0x2d48] sm:$0xff] }
 0x399   : > { %11861 = vmatprep.subr.bf16.mxu0 %v17744_v30  ;;  %12463 = vmatprep.subr.bf16.mxu1 %v17746_v31  ;;  %v1966_v29 = vld [vmem:[%s19859_s20 + $0x2d68] sm:$0xff]  ;;  %v17799_v30 = vcombine.low %v1953_v18, %v1957_v19  ;;  %v17801_v31 = vcombine.low %v1954_v20, %v1958_v21  ;;  %v2017_v18 = vld [vmem:[%s19859_s20 + $0x2f00] sm:$0xff] }
 0x39a   : > { %v17810_v33 = vcombine.high %v1962_v28, %v1966_v29  ;;  %v2021_v19 = vld [vmem:[%s19859_s20 + $0x2f20] sm:$0xff]  ;;  %v2018_v20 = vld [vmem:[%s19859_s20 + $0x2f08] sm:$0xff] }
 0x39b   : > { %v2022_v21 = vld [vmem:[%s19859_s20 + $0x2f28] sm:$0xff] }
 0x39c   : > { %11862 = vmatpush1.bf16.msra.mxu0 %v17743_v36  ;;  %12464 = vmatpush1.bf16.msra.mxu1 %v17745_v37  ;;  %v1970_v36 = vld [vmem:[%s19859_s20 + $0x2d88] sm:$0xff] }
 0x39d   : > { %11863 = vmatprep.subr.bf16.mxu0 %v17752_v38  ;;  %12465 = vmatprep.subr.bf16.mxu1 %v17754_v39  ;;  %v1974_v37 = vld [vmem:[%s19859_s20 + $0x2da8] sm:$0xff]  ;;  %v17807_v38 = vcombine.low %v1961_v26, %v1965_v27  ;;  %v17809_v39 = vcombine.low %v1962_v28, %v1966_v29  ;;  %v2025_v26 = vld [vmem:[%s19859_s20 + $0x2f40] sm:$0xff] }
 0x39e   : > { %v17818_v41 = vcombine.high %v1970_v36, %v1974_v37  ;;  %v2029_v27 = vld [vmem:[%s19859_s20 + $0x2f60] sm:$0xff]  ;;  %v2026_v28 = vld [vmem:[%s19859_s20 + $0x2f48] sm:$0xff] }
 0x39f   : > { %v2030_v29 = vld [vmem:[%s19859_s20 + $0x2f68] sm:$0xff] }
 0x3a0   : > { %11864 = vmatpush1.bf16.msra.mxu0 %v17751_v44  ;;  %12466 = vmatpush1.bf16.msra.mxu1 %v17753_v45  ;;  %v1978_v44 = vld [vmem:[%s19859_s20 + $0x2dc8] sm:$0xff] }
 0x3a1   : > { %11865 = vmatprep.subr.bf16.mxu0 %v17760_v46  ;;  %12467 = vmatprep.subr.bf16.mxu1 %v17762_v47  ;;  %v1982_v45 = vld [vmem:[%s19859_s20 + $0x2de8] sm:$0xff]  ;;  %v17815_v46 = vcombine.low %v1969_v34, %v1973_v35  ;;  %v17817_v47 = vcombine.low %v1970_v36, %v1974_v37  ;;  %v2033_v34 = vld [vmem:[%s19859_s20 + $0x2f80] sm:$0xff] }
 0x3a2   : > { %v17826_v49 = vcombine.high %v1978_v44, %v1982_v45  ;;  %v2037_v35 = vld [vmem:[%s19859_s20 + $0x2fa0] sm:$0xff]  ;;  %v2034_v36 = vld [vmem:[%s19859_s20 + $0x2f88] sm:$0xff] }
 0x3a3   : > { %v2038_v37 = vld [vmem:[%s19859_s20 + $0x2fa8] sm:$0xff] }
 0x3a4   : > { %11866 = vmatpush1.bf16.msra.mxu0 %v17759_v52  ;;  %12468 = vmatpush1.bf16.msra.mxu1 %v17761_v53  ;;  %v1986_v52 = vld [vmem:[%s19859_s20 + $0x2e08] sm:$0xff] }
 0x3a5   : > { %11878 = vmatprep.subr.bf16.mxu0 %v17768_v54  ;;  %12480 = vmatprep.subr.bf16.mxu1 %v17770_v55  ;;  %v1990_v53 = vld [vmem:[%s19859_s20 + $0x2e28] sm:$0xff]  ;;  %v17823_v54 = vcombine.low %v1977_v42, %v1981_v43  ;;  %v17825_v55 = vcombine.low %v1978_v44, %v1982_v45  ;;  %v2041_v42 = vld [vmem:[%s19859_s20 + $0x2fc0] sm:$0xff] }
 0x3a6   : > { %v17834_v57 = vcombine.high %v1986_v52, %v1990_v53  ;;  %v2045_v43 = vld [vmem:[%s19859_s20 + $0x2fe0] sm:$0xff]  ;;  %v2042_v44 = vld [vmem:[%s19859_s20 + $0x2fc8] sm:$0xff] }
 0x3a7   : > { %11868 = vmatmul.mubr.bf16.vlgmr.msra.gmra.mrb[0].mxu0 %v18859_v58  ;;  %12470 = vmatmul.mubr.bf16.vlgmr.msra.gmra.mrb[0].mxu1 %v18859_v58  ;;  %v1993_v58 = vld [vmem:[%s19859_s20 + $0x2e40] sm:$0xff]  ;;  %v2046_v45 = vld [vmem:[%s19859_s20 + $0x2fe8] sm:$0xff] }
 0x3a8   : > { %11879 = vmatpush1.bf16.msra.mxu0 %v17767_v61  ;;  %12481 = vmatpush1.bf16.msra.mxu1 %v17769_v62  ;;  %v1998_v61 = vld [vmem:[%s19859_s20 + $0x2e68] sm:$0xff]  ;;  %v17831_v62 = vcombine.low %v1985_v50, %v1989_v51  ;;  %v2049_v50 = vld [vmem:[%s19859_s20 + $0x3000] sm:$0xff] }
 0x3a9   : > { %11880 = vmatprep.subr.bf16.mxu0 %v17776_v63  ;;  %12482 = vmatprep.subr.bf16.mxu1 %v17778_v0  ;;  %v17833_v63 = vcombine.low %v1986_v52, %v1990_v53  ;;  %v17840_v0 = vcombine.high %v1993_v58, %v1997_v59  ;;  %v17842_v1 = vcombine.high %v1994_v60, %v1998_v61  ;;  %v2053_v51 = vld [vmem:[%s19859_s20 + $0x3020] sm:$0xff]  ;;  %v2050_v52 = vld [vmem:[%s19859_s20 + $0x3008] sm:$0xff] }
 0x3aa   : > { %11910 = vmatprep.mubr.bf16.mxu0 %v18860_v3  ;;  %12512 = vmatprep.mubr.bf16.mxu1 %v18860_v3  ;;  %v2005_v3 = vld [vmem:[%s19859_s20 + $0x2ea0] sm:$0xff]  ;;  %v2054_v53 = vld [vmem:[%s19859_s20 + $0x3028] sm:$0xff] }
 0x3ac   : > { %11881 = vmatpush1.bf16.msra.mxu0 %v17775_v6  ;;  %12483 = vmatpush1.bf16.msra.mxu1 %v17777_v7  ;;  %v17839_v6 = vcombine.low %v1993_v58, %v1997_v59  ;;  %v17841_v7 = vcombine.low %v1994_v60, %v1998_v61  ;;  %v2057_v58 = vld [vmem:[%s19859_s20 + $0x3040] sm:$0xff]  ;;  %v18862_v60 = vld [vmem:[%s19857_s27 + $0x58] ss:$112 sps:$4 sm:$0xff]  }
 0x3ad   : > { %11882 = vmatprep.subr.bf16.mxu0 %v17784_v8  ;;  %12484 = vmatprep.subr.bf16.mxu1 %v17786_v9  ;;  %v17848_v8 = vcombine.high %v2001_v2, %v2005_v3  ;;  %v17850_v9 = vcombine.high %v2002_v4, %v2006_v5  ;;  %v2061_v59 = vld [vmem:[%s19859_s20 + $0x3060] sm:$0xff]  ;;  %v2058_v61 = vld [vmem:[%s19859_s20 + $0x3048] sm:$0xff] }
 0x3b0   : > { %11883 = vmatpush1.bf16.msra.mxu0 %v17783_v14  ;;  %12485 = vmatpush1.bf16.msra.mxu1 %v17785_v15  ;;  %v17847_v14 = vcombine.low %v2001_v2, %v2005_v3  ;;  %v17849_v15 = vcombine.low %v2002_v4, %v2006_v5  ;;  %v2065_v3 = vld [vmem:[%s19859_s20 + $0x3080] sm:$0xff] }
 0x3b1   : > { %11884 = vmatprep.subr.bf16.mxu0 %v17792_v16  ;;  %12486 = vmatprep.subr.bf16.mxu1 %v17794_v17  ;;  %v17856_v16 = vcombine.high %v2009_v10, %v2013_v11  ;;  %v17858_v17 = vcombine.high %v2010_v12, %v2014_v13  ;;  %v2069_v4 = vld [vmem:[%s19859_s20 + $0x30a0] sm:$0xff] }
 0x3b2   : > { %v18863_v5 = vld [vmem:[%s19857_s27 + $0x64] ss:$112 sps:$4 sm:$0xff]  }
 0x3b4   : > { %11885 = vmatpush1.bf16.msra.mxu0 %v17791_v22  ;;  %12487 = vmatpush1.bf16.msra.mxu1 %v17793_v23  ;;  %v17855_v22 = vcombine.low %v2009_v10, %v2013_v11  ;;  %v17857_v23 = vcombine.low %v2010_v12, %v2014_v13  ;;  %v17912_v10 = vcombine.high %v2065_v3, %v2069_v4  ;;  %v2073_v12 = vld [vmem:[%s19859_s20 + $0x30c0] sm:$0xff] }
 0x3b5   : > { %11886 = vmatprep.subr.bf16.mxu0 %v17800_v24  ;;  %12488 = vmatprep.subr.bf16.mxu1 %v17802_v25  ;;  %v17864_v24 = vcombine.high %v2017_v18, %v2021_v19  ;;  %v17866_v25 = vcombine.high %v2018_v20, %v2022_v21  ;;  %v2077_v13 = vld [vmem:[%s19859_s20 + $0x30e0] sm:$0xff] }
 0x3b8   : > { %11887 = vmatpush1.bf16.msra.mxu0 %v17799_v30  ;;  %12489 = vmatpush1.bf16.msra.mxu1 %v17801_v31  ;;  %v17863_v30 = vcombine.low %v2017_v18, %v2021_v19  ;;  %v17865_v31 = vcombine.low %v2018_v20, %v2022_v21  ;;  %v17920_v18 = vcombine.high %v2073_v12, %v2077_v13  ;;  %v2081_v20 = vld [vmem:[%s19859_s20 + $0x3100] sm:$0xff] }
 0x3b9   : > { %11888 = vmatprep.subr.bf16.mxu0 %v17808_v32  ;;  %12490 = vmatprep.subr.bf16.mxu1 %v17810_v33  ;;  %v17872_v32 = vcombine.high %v2025_v26, %v2029_v27  ;;  %v17874_v33 = vcombine.high %v2026_v28, %v2030_v29  ;;  %v2085_v21 = vld [vmem:[%s19859_s20 + $0x3120] sm:$0xff] }
 0x3bc   : > { %11889 = vmatpush1.bf16.msra.mxu0 %v17807_v38  ;;  %12491 = vmatpush1.bf16.msra.mxu1 %v17809_v39  ;;  %v17871_v38 = vcombine.low %v2025_v26, %v2029_v27  ;;  %v17873_v39 = vcombine.low %v2026_v28, %v2030_v29  ;;  %v17928_v26 = vcombine.high %v2081_v20, %v2085_v21  ;;  %v2089_v28 = vld [vmem:[%s19859_s20 + $0x3140] sm:$0xff] }
 0x3bd   : > { %11890 = vmatprep.subr.bf16.mxu0 %v17816_v40  ;;  %12492 = vmatprep.subr.bf16.mxu1 %v17818_v41  ;;  %v17880_v40 = vcombine.high %v2033_v34, %v2037_v35  ;;  %v17882_v41 = vcombine.high %v2034_v36, %v2038_v37  ;;  %v2093_v29 = vld [vmem:[%s19859_s20 + $0x3160] sm:$0xff] }
 0x3c0   : > { %11891 = vmatpush1.bf16.msra.mxu0 %v17815_v46  ;;  %12493 = vmatpush1.bf16.msra.mxu1 %v17817_v47  ;;  %v17879_v46 = vcombine.low %v2033_v34, %v2037_v35  ;;  %v17881_v47 = vcombine.low %v2034_v36, %v2038_v37  ;;  %v17936_v34 = vcombine.high %v2089_v28, %v2093_v29  ;;  %v2097_v36 = vld [vmem:[%s19859_s20 + $0x3180] sm:$0xff] }
 0x3c1   : > { %11892 = vmatprep.subr.bf16.mxu0 %v17824_v48  ;;  %12494 = vmatprep.subr.bf16.mxu1 %v17826_v49  ;;  %v17888_v48 = vcombine.high %v2041_v42, %v2045_v43  ;;  %v17890_v49 = vcombine.high %v2042_v44, %v2046_v45  ;;  %v2101_v37 = vld [vmem:[%s19859_s20 + $0x31a0] sm:$0xff] }
 0x3c4   : > { %11893 = vmatpush1.bf16.msra.mxu0 %v17823_v54  ;;  %12495 = vmatpush1.bf16.msra.mxu1 %v17825_v55  ;;  %v17887_v54 = vcombine.low %v2041_v42, %v2045_v43  ;;  %v17889_v55 = vcombine.low %v2042_v44, %v2046_v45  ;;  %v17944_v42 = vcombine.high %v2097_v36, %v2101_v37  ;;  %v2105_v44 = vld [vmem:[%s19859_s20 + $0x31c0] sm:$0xff] }
 0x3c5   : > { %11894 = vmatprep.subr.bf16.mxu0 %v17832_v56  ;;  %12496 = vmatprep.subr.bf16.mxu1 %v17834_v57  ;;  %v17896_v56 = vcombine.high %v2049_v50, %v2053_v51  ;;  %v17898_v57 = vcombine.high %v2050_v52, %v2054_v53  ;;  %v2109_v45 = vld [vmem:[%s19859_s20 + $0x31e0] sm:$0xff] }
 0x3c8   : > { %11895 = vmatpush1.bf16.msra.mxu0 %v17831_v62  ;;  %12497 = vmatpush1.bf16.msra.mxu1 %v17833_v63  ;;  %v2062_v62 = vld [vmem:[%s19859_s20 + $0x3068] sm:$0xff]  ;;  %v17895_v63 = vcombine.low %v2049_v50, %v2053_v51  ;;  %v17952_v50 = vcombine.high %v2105_v44, %v2109_v45 }
 0x3c9   : > { %11896 = vmatprep.subr.bf16.mxu0 %v17840_v0  ;;  %12498 = vmatprep.subr.bf16.mxu1 %v17842_v1  ;;  %v17897_v0 = vcombine.low %v2050_v52, %v2054_v53  ;;  %v17904_v1 = vcombine.high %v2057_v58, %v2061_v59  ;;  %v17906_v2 = vcombine.high %v2058_v61, %v2062_v62  ;;  %v2113_v52 = vld [vmem:[%s19859_s20 + $0x3200] sm:$0xff] }
 0x3ca   : > { %v2117_v53 = vld [vmem:[%s19859_s20 + $0x3220] sm:$0xff] }
 0x3cc   : > { %11897 = vmatpush1.bf16.msra.mxu0 %v17839_v6  ;;  %12499 = vmatpush1.bf16.msra.mxu1 %v17841_v7  ;;  %v2066_v6 = vld [vmem:[%s19859_s20 + $0x3088] sm:$0xff] }
 0x3cd   : > { %11898 = vmatprep.subr.bf16.mxu0 %v17848_v8  ;;  %12500 = vmatprep.subr.bf16.mxu1 %v17850_v9  ;;  %v2070_v7 = vld [vmem:[%s19859_s20 + $0x30a8] sm:$0xff]  ;;  %v17903_v8 = vcombine.low %v2057_v58, %v2061_v59  ;;  %v17905_v9 = vcombine.low %v2058_v61, %v2062_v62  ;;  %v17960_v58 = vcombine.high %v2113_v52, %v2117_v53  ;;  %v2125_v61 = vld [vmem:[%s19859_s20 + $0x3260] sm:$0xff] }
 0x3ce   : > { %v17914_v11 = vcombine.high %v2066_v6, %v2070_v7  ;;  %v2122_v62 = vld [vmem:[%s19859_s20 + $0x3248] sm:$0xff] }
 0x3d0   : > { %11899 = vmatpush1.bf16.msra.mxu0 %v17847_v14  ;;  %12501 = vmatpush1.bf16.msra.mxu1 %v17849_v15  ;;  %v2074_v14 = vld [vmem:[%s19859_s20 + $0x30c8] sm:$0xff] }
 0x3d1   : > { %11900 = vmatprep.subr.bf16.mxu0 %v17856_v16  ;;  %12502 = vmatprep.subr.bf16.mxu1 %v17858_v17  ;;  %v2078_v15 = vld [vmem:[%s19859_s20 + $0x30e8] sm:$0xff]  ;;  %v17911_v16 = vcombine.low %v2065_v3, %v2069_v4  ;;  %v17913_v17 = vcombine.low %v2066_v6, %v2070_v7  ;;  %v2129_v4 = vld [vmem:[%s19859_s20 + $0x3280] sm:$0xff] }
 0x3d2   : > { %v17922_v19 = vcombine.high %v2074_v14, %v2078_v15  ;;  %v2130_v6 = vld [vmem:[%s19859_s20 + $0x3288] sm:$0xff] }
 0x3d3   : > { %v2134_v7 = vld [vmem:[%s19859_s20 + $0x32a8] sm:$0xff] }
 0x3d4   : > { %11901 = vmatpush1.bf16.msra.mxu0 %v17855_v22  ;;  %12503 = vmatpush1.bf16.msra.mxu1 %v17857_v23  ;;  %v2082_v22 = vld [vmem:[%s19859_s20 + $0x3108] sm:$0xff] }
 0x3d5   : > { %11902 = vmatprep.subr.bf16.mxu0 %v17864_v24  ;;  %12504 = vmatprep.subr.bf16.mxu1 %v17866_v25  ;;  %v2086_v23 = vld [vmem:[%s19859_s20 + $0x3128] sm:$0xff]  ;;  %v17919_v24 = vcombine.low %v2073_v12, %v2077_v13  ;;  %v17921_v25 = vcombine.low %v2074_v14, %v2078_v15  ;;  %v2137_v12 = vld [vmem:[%s19859_s20 + $0x32c0] sm:$0xff] }
 0x3d6   : > { %v17930_v27 = vcombine.high %v2082_v22, %v2086_v23  ;;  %v2141_v13 = vld [vmem:[%s19859_s20 + $0x32e0] sm:$0xff]  ;;  %v2138_v14 = vld [vmem:[%s19859_s20 + $0x32c8] sm:$0xff] }
 0x3d7   : > { %v2142_v15 = vld [vmem:[%s19859_s20 + $0x32e8] sm:$0xff] }
 0x3d8   : > { %11903 = vmatpush1.bf16.msra.mxu0 %v17863_v30  ;;  %12505 = vmatpush1.bf16.msra.mxu1 %v17865_v31  ;;  %v2090_v30 = vld [vmem:[%s19859_s20 + $0x3148] sm:$0xff] }
 0x3d9   : > { %11904 = vmatprep.subr.bf16.mxu0 %v17872_v32  ;;  %12506 = vmatprep.subr.bf16.mxu1 %v17874_v33  ;;  %v2094_v31 = vld [vmem:[%s19859_s20 + $0x3168] sm:$0xff]  ;;  %v17927_v32 = vcombine.low %v2081_v20, %v2085_v21  ;;  %v17929_v33 = vcombine.low %v2082_v22, %v2086_v23  ;;  %v2145_v20 = vld [vmem:[%s19859_s20 + $0x3300] sm:$0xff] }
 0x3da   : > { %v17938_v35 = vcombine.high %v2090_v30, %v2094_v31  ;;  %v2149_v21 = vld [vmem:[%s19859_s20 + $0x3320] sm:$0xff]  ;;  %v2146_v22 = vld [vmem:[%s19859_s20 + $0x3308] sm:$0xff] }
 0x3db   : > { %v2150_v23 = vld [vmem:[%s19859_s20 + $0x3328] sm:$0xff] }
 0x3dc   : > { %11905 = vmatpush1.bf16.msra.mxu0 %v17871_v38  ;;  %12507 = vmatpush1.bf16.msra.mxu1 %v17873_v39  ;;  %v2098_v38 = vld [vmem:[%s19859_s20 + $0x3188] sm:$0xff] }
 0x3dd   : > { %11906 = vmatprep.subr.bf16.mxu0 %v17880_v40  ;;  %12508 = vmatprep.subr.bf16.mxu1 %v17882_v41  ;;  %v2102_v39 = vld [vmem:[%s19859_s20 + $0x31a8] sm:$0xff]  ;;  %v17935_v40 = vcombine.low %v2089_v28, %v2093_v29  ;;  %v17937_v41 = vcombine.low %v2090_v30, %v2094_v31  ;;  %v2153_v28 = vld [vmem:[%s19859_s20 + $0x3340] sm:$0xff] }
 0x3de   : > { %v17946_v43 = vcombine.high %v2098_v38, %v2102_v39  ;;  %v2157_v29 = vld [vmem:[%s19859_s20 + $0x3360] sm:$0xff]  ;;  %v2154_v30 = vld [vmem:[%s19859_s20 + $0x3348] sm:$0xff] }
 0x3df   : > { %v2158_v31 = vld [vmem:[%s19859_s20 + $0x3368] sm:$0xff] }
 0x3e0   : > { %11907 = vmatpush1.bf16.msra.mxu0 %v17879_v46  ;;  %12509 = vmatpush1.bf16.msra.mxu1 %v17881_v47  ;;  %v2106_v46 = vld [vmem:[%s19859_s20 + $0x31c8] sm:$0xff] }
 0x3e1   : > { %11908 = vmatprep.subr.bf16.mxu0 %v17888_v48  ;;  %12510 = vmatprep.subr.bf16.mxu1 %v17890_v49  ;;  %v2110_v47 = vld [vmem:[%s19859_s20 + $0x31e8] sm:$0xff]  ;;  %v17943_v48 = vcombine.low %v2097_v36, %v2101_v37  ;;  %v17945_v49 = vcombine.low %v2098_v38, %v2102_v39  ;;  %v2161_v36 = vld [vmem:[%s19859_s20 + $0x3380] sm:$0xff] }
 0x3e2   : > { %v17954_v51 = vcombine.high %v2106_v46, %v2110_v47  ;;  %v2165_v37 = vld [vmem:[%s19859_s20 + $0x33a0] sm:$0xff]  ;;  %v2162_v38 = vld [vmem:[%s19859_s20 + $0x3388] sm:$0xff] }
 0x3e3   : > { %v2166_v39 = vld [vmem:[%s19859_s20 + $0x33a8] sm:$0xff] }
 0x3e4   : > { %11909 = vmatpush1.bf16.msra.mxu0 %v17887_v54  ;;  %12511 = vmatpush1.bf16.msra.mxu1 %v17889_v55  ;;  %v2114_v54 = vld [vmem:[%s19859_s20 + $0x3208] sm:$0xff] }
 0x3e5   : > { %11921 = vmatprep.subr.bf16.mxu0 %v17896_v56  ;;  %12523 = vmatprep.subr.bf16.mxu1 %v17898_v57  ;;  %v2118_v55 = vld [vmem:[%s19859_s20 + $0x3228] sm:$0xff]  ;;  %v17951_v56 = vcombine.low %v2105_v44, %v2109_v45  ;;  %v17953_v57 = vcombine.low %v2106_v46, %v2110_v47  ;;  %v2169_v44 = vld [vmem:[%s19859_s20 + $0x33c0] sm:$0xff] }
 0x3e6   : > { %v17962_v59 = vcombine.high %v2114_v54, %v2118_v55  ;;  %v2173_v45 = vld [vmem:[%s19859_s20 + $0x33e0] sm:$0xff]  ;;  %v2170_v46 = vld [vmem:[%s19859_s20 + $0x33c8] sm:$0xff] }
 0x3e7   : > { %11911 = vmatmul.mubr.bf16.vlgmr.msra.gmra.mrb[0].mxu0 %v18862_v60  ;;  %12513 = vmatmul.mubr.bf16.vlgmr.msra.gmra.mrb[0].mxu1 %v18862_v60  ;;  %v2121_v60 = vld [vmem:[%s19859_s20 + $0x3240] sm:$0xff]  ;;  %v2174_v47 = vld [vmem:[%s19859_s20 + $0x33e8] sm:$0xff] }
 0x3e8   : > { %11922 = vmatpush1.bf16.msra.mxu0 %v17895_v63  ;;  %12524 = vmatpush1.bf16.msra.mxu1 %v17897_v0  ;;  %v2126_v63 = vld [vmem:[%s19859_s20 + $0x3268] sm:$0xff]  ;;  %v17959_v0 = vcombine.low %v2113_v52, %v2117_v53  ;;  %v2177_v52 = vld [vmem:[%s19859_s20 + $0x3400] sm:$0xff] }
 0x3e9   : > { %11923 = vmatprep.subr.bf16.mxu0 %v17904_v1  ;;  %12525 = vmatprep.subr.bf16.mxu1 %v17906_v2  ;;  %v17961_v1 = vcombine.low %v2114_v54, %v2118_v55  ;;  %v17968_v2 = vcombine.high %v2121_v60, %v2125_v61  ;;  %v17970_v3 = vcombine.high %v2122_v62, %v2126_v63  ;;  %v2181_v53 = vld [vmem:[%s19859_s20 + $0x3420] sm:$0xff]  ;;  %v2178_v54 = vld [vmem:[%s19859_s20 + $0x3408] sm:$0xff] }
 0x3ea   : > { %11953 = vmatprep.mubr.bf16.mxu0 %v18863_v5  ;;  %12555 = vmatprep.mubr.bf16.mxu1 %v18863_v5  ;;  %v2133_v5 = vld [vmem:[%s19859_s20 + $0x32a0] sm:$0xff]  ;;  %v2182_v55 = vld [vmem:[%s19859_s20 + $0x3428] sm:$0xff] }
 0x3ec   : > { %11924 = vmatpush1.bf16.msra.mxu0 %v17903_v8  ;;  %12526 = vmatpush1.bf16.msra.mxu1 %v17905_v9  ;;  %v17967_v8 = vcombine.low %v2121_v60, %v2125_v61  ;;  %v17969_v9 = vcombine.low %v2122_v62, %v2126_v63  ;;  %v2185_v60 = vld [vmem:[%s19859_s20 + $0x3440] sm:$0xff]  ;;  %v2186_v63 = vld [vmem:[%s19859_s20 + $0x3448] sm:$0xff] }
 0x3ed   : > { %11925 = vmatprep.subr.bf16.mxu0 %v17912_v10  ;;  %12527 = vmatprep.subr.bf16.mxu1 %v17914_v11  ;;  %v17976_v10 = vcombine.high %v2129_v4, %v2133_v5  ;;  %v17978_v11 = vcombine.high %v2130_v6, %v2134_v7  ;;  %v2189_v61 = vld [vmem:[%s19859_s20 + $0x3460] sm:$0xff] }
 0x3ee   : > { %v18865_v62 = vld [vmem:[%s19857_s27 + $0x60] ss:$112 sps:$4 sm:$0xff]  }
 0x3f0   : > { %11926 = vmatpush1.bf16.msra.mxu0 %v17911_v16  ;;  %12528 = vmatpush1.bf16.msra.mxu1 %v17913_v17  ;;  %v17975_v16 = vcombine.low %v2129_v4, %v2133_v5  ;;  %v17977_v17 = vcombine.low %v2130_v6, %v2134_v7  ;;  %v2193_v5 = vld [vmem:[%s19859_s20 + $0x3480] sm:$0xff]  ;;  %v18866_v7 = vld [vmem:[%s19857_s27 + $0x6c] ss:$112 sps:$4 sm:$0xff]  }
 0x3f1   : > { %11927 = vmatprep.subr.bf16.mxu0 %v17920_v18  ;;  %12529 = vmatprep.subr.bf16.mxu1 %v17922_v19  ;;  %v17984_v18 = vcombine.high %v2137_v12, %v2141_v13  ;;  %v17986_v19 = vcombine.high %v2138_v14, %v2142_v15  ;;  %v2197_v6 = vld [vmem:[%s19859_s20 + $0x34a0] sm:$0xff] }
 0x3f4   : > { %11928 = vmatpush1.bf16.msra.mxu0 %v17919_v24  ;;  %12530 = vmatpush1.bf16.msra.mxu1 %v17921_v25  ;;  %v17983_v24 = vcombine.low %v2137_v12, %v2141_v13  ;;  %v17985_v25 = vcombine.low %v2138_v14, %v2142_v15  ;;  %v18040_v12 = vcombine.high %v2193_v5, %v2197_v6  ;;  %v2201_v14 = vld [vmem:[%s19859_s20 + $0x34c0] sm:$0xff] }
 0x3f5   : > { %11929 = vmatprep.subr.bf16.mxu0 %v17928_v26  ;;  %12531 = vmatprep.subr.bf16.mxu1 %v17930_v27  ;;  %v17992_v26 = vcombine.high %v2145_v20, %v2149_v21  ;;  %v17994_v27 = vcombine.high %v2146_v22, %v2150_v23  ;;  %v2205_v15 = vld [vmem:[%s19859_s20 + $0x34e0] sm:$0xff] }
 0x3f8   : > { %11930 = vmatpush1.bf16.msra.mxu0 %v17927_v32  ;;  %12532 = vmatpush1.bf16.msra.mxu1 %v17929_v33  ;;  %v17991_v32 = vcombine.low %v2145_v20, %v2149_v21  ;;  %v17993_v33 = vcombine.low %v2146_v22, %v2150_v23  ;;  %v18048_v20 = vcombine.high %v2201_v14, %v2205_v15  ;;  %v2209_v22 = vld [vmem:[%s19859_s20 + $0x3500] sm:$0xff] }
 0x3f9   : > { %11931 = vmatprep.subr.bf16.mxu0 %v17936_v34  ;;  %12533 = vmatprep.subr.bf16.mxu1 %v17938_v35  ;;  %v18000_v34 = vcombine.high %v2153_v28, %v2157_v29  ;;  %v18002_v35 = vcombine.high %v2154_v30, %v2158_v31  ;;  %v2213_v23 = vld [vmem:[%s19859_s20 + $0x3520] sm:$0xff] }
 0x3fc   : > { %11932 = vmatpush1.bf16.msra.mxu0 %v17935_v40  ;;  %12534 = vmatpush1.bf16.msra.mxu1 %v17937_v41  ;;  %v17999_v40 = vcombine.low %v2153_v28, %v2157_v29  ;;  %v18001_v41 = vcombine.low %v2154_v30, %v2158_v31  ;;  %v18056_v28 = vcombine.high %v2209_v22, %v2213_v23  ;;  %v2217_v30 = vld [vmem:[%s19859_s20 + $0x3540] sm:$0xff] }
 0x3fd   : > { %11933 = vmatprep.subr.bf16.mxu0 %v17944_v42  ;;  %12535 = vmatprep.subr.bf16.mxu1 %v17946_v43  ;;  %v18008_v42 = vcombine.high %v2161_v36, %v2165_v37  ;;  %v18010_v43 = vcombine.high %v2162_v38, %v2166_v39  ;;  %v2221_v31 = vld [vmem:[%s19859_s20 + $0x3560] sm:$0xff] }
 0x400   : > { %11934 = vmatpush1.bf16.msra.mxu0 %v17943_v48  ;;  %12536 = vmatpush1.bf16.msra.mxu1 %v17945_v49  ;;  %v18007_v48 = vcombine.low %v2161_v36, %v2165_v37  ;;  %v18009_v49 = vcombine.low %v2162_v38, %v2166_v39  ;;  %v18064_v36 = vcombine.high %v2217_v30, %v2221_v31  ;;  %v2225_v38 = vld [vmem:[%s19859_s20 + $0x3580] sm:$0xff] }
 0x401   : > { %11935 = vmatprep.subr.bf16.mxu0 %v17952_v50  ;;  %12537 = vmatprep.subr.bf16.mxu1 %v17954_v51  ;;  %v18016_v50 = vcombine.high %v2169_v44, %v2173_v45  ;;  %v18018_v51 = vcombine.high %v2170_v46, %v2174_v47  ;;  %v2229_v39 = vld [vmem:[%s19859_s20 + $0x35a0] sm:$0xff] }
 0x404   : > { %11936 = vmatpush1.bf16.msra.mxu0 %v17951_v56  ;;  %12538 = vmatpush1.bf16.msra.mxu1 %v17953_v57  ;;  %v18015_v56 = vcombine.low %v2169_v44, %v2173_v45  ;;  %v18017_v57 = vcombine.low %v2170_v46, %v2174_v47  ;;  %v18072_v44 = vcombine.high %v2225_v38, %v2229_v39  ;;  %v2233_v46 = vld [vmem:[%s19859_s20 + $0x35c0] sm:$0xff] }
 0x405   : > { %11937 = vmatprep.subr.bf16.mxu0 %v17960_v58  ;;  %12539 = vmatprep.subr.bf16.mxu1 %v17962_v59  ;;  %v18024_v58 = vcombine.high %v2177_v52, %v2181_v53  ;;  %v18026_v59 = vcombine.high %v2178_v54, %v2182_v55  ;;  %v2237_v47 = vld [vmem:[%s19859_s20 + $0x35e0] sm:$0xff] }
 0x408   : > { %11938 = vmatpush1.bf16.msra.mxu0 %v17959_v0  ;;  %12540 = vmatpush1.bf16.msra.mxu1 %v17961_v1  ;;  %v2190_v0 = vld [vmem:[%s19859_s20 + $0x3468] sm:$0xff]  ;;  %v18023_v1 = vcombine.low %v2177_v52, %v2181_v53  ;;  %v18080_v52 = vcombine.high %v2233_v46, %v2237_v47 }
 0x409   : > { %11939 = vmatprep.subr.bf16.mxu0 %v17968_v2  ;;  %12541 = vmatprep.subr.bf16.mxu1 %v17970_v3  ;;  %v18025_v2 = vcombine.low %v2178_v54, %v2182_v55  ;;  %v18032_v3 = vcombine.high %v2185_v60, %v2189_v61  ;;  %v18034_v4 = vcombine.high %v2186_v63, %v2190_v0  ;;  %v2241_v54 = vld [vmem:[%s19859_s20 + $0x3600] sm:$0xff] }
 0x40a   : > { %v2245_v55 = vld [vmem:[%s19859_s20 + $0x3620] sm:$0xff] }
 0x40c   : > { %11940 = vmatpush1.bf16.msra.mxu0 %v17967_v8  ;;  %12542 = vmatpush1.bf16.msra.mxu1 %v17969_v9  ;;  %v2194_v8 = vld [vmem:[%s19859_s20 + $0x3488] sm:$0xff] }
 0x40d   : > { %11941 = vmatprep.subr.bf16.mxu0 %v17976_v10  ;;  %12543 = vmatprep.subr.bf16.mxu1 %v17978_v11  ;;  %v2198_v9 = vld [vmem:[%s19859_s20 + $0x34a8] sm:$0xff]  ;;  %v18031_v10 = vcombine.low %v2185_v60, %v2189_v61  ;;  %v18033_v11 = vcombine.low %v2186_v63, %v2190_v0  ;;  %v18088_v60 = vcombine.high %v2241_v54, %v2245_v55  ;;  %v2253_v63 = vld [vmem:[%s19859_s20 + $0x3660] sm:$0xff] }
 0x40e   : > { %v18042_v13 = vcombine.high %v2194_v8, %v2198_v9  ;;  %v2250_v0 = vld [vmem:[%s19859_s20 + $0x3648] sm:$0xff] }
 0x410   : > { %11942 = vmatpush1.bf16.msra.mxu0 %v17975_v16  ;;  %12544 = vmatpush1.bf16.msra.mxu1 %v17977_v17  ;;  %v2202_v16 = vld [vmem:[%s19859_s20 + $0x34c8] sm:$0xff] }
 0x411   : > { %11943 = vmatprep.subr.bf16.mxu0 %v17984_v18  ;;  %12545 = vmatprep.subr.bf16.mxu1 %v17986_v19  ;;  %v2206_v17 = vld [vmem:[%s19859_s20 + $0x34e8] sm:$0xff]  ;;  %v18039_v18 = vcombine.low %v2193_v5, %v2197_v6  ;;  %v18041_v19 = vcombine.low %v2194_v8, %v2198_v9  ;;  %v2257_v6 = vld [vmem:[%s19859_s20 + $0x3680] sm:$0xff] }
 0x412   : > { %v18050_v21 = vcombine.high %v2202_v16, %v2206_v17  ;;  %v2258_v8 = vld [vmem:[%s19859_s20 + $0x3688] sm:$0xff] }
 0x413   : > { %v2262_v9 = vld [vmem:[%s19859_s20 + $0x36a8] sm:$0xff] }
 0x414   : > { %11944 = vmatpush1.bf16.msra.mxu0 %v17983_v24  ;;  %12546 = vmatpush1.bf16.msra.mxu1 %v17985_v25  ;;  %v2210_v24 = vld [vmem:[%s19859_s20 + $0x3508] sm:$0xff] }
 0x415   : > { %11945 = vmatprep.subr.bf16.mxu0 %v17992_v26  ;;  %12547 = vmatprep.subr.bf16.mxu1 %v17994_v27  ;;  %v2214_v25 = vld [vmem:[%s19859_s20 + $0x3528] sm:$0xff]  ;;  %v18047_v26 = vcombine.low %v2201_v14, %v2205_v15  ;;  %v18049_v27 = vcombine.low %v2202_v16, %v2206_v17  ;;  %v2265_v14 = vld [vmem:[%s19859_s20 + $0x36c0] sm:$0xff] }
 0x416   : > { %v18058_v29 = vcombine.high %v2210_v24, %v2214_v25  ;;  %v2269_v15 = vld [vmem:[%s19859_s20 + $0x36e0] sm:$0xff]  ;;  %v2266_v16 = vld [vmem:[%s19859_s20 + $0x36c8] sm:$0xff] }
 0x417   : > { %v2270_v17 = vld [vmem:[%s19859_s20 + $0x36e8] sm:$0xff] }
 0x418   : > { %11946 = vmatpush1.bf16.msra.mxu0 %v17991_v32  ;;  %12548 = vmatpush1.bf16.msra.mxu1 %v17993_v33  ;;  %v2218_v32 = vld [vmem:[%s19859_s20 + $0x3548] sm:$0xff] }
 0x419   : > { %11947 = vmatprep.subr.bf16.mxu0 %v18000_v34  ;;  %12549 = vmatprep.subr.bf16.mxu1 %v18002_v35  ;;  %v2222_v33 = vld [vmem:[%s19859_s20 + $0x3568] sm:$0xff]  ;;  %v18055_v34 = vcombine.low %v2209_v22, %v2213_v23  ;;  %v18057_v35 = vcombine.low %v2210_v24, %v2214_v25  ;;  %v2273_v22 = vld [vmem:[%s19859_s20 + $0x3700] sm:$0xff] }
 0x41a   : > { %v18066_v37 = vcombine.high %v2218_v32, %v2222_v33  ;;  %v2277_v23 = vld [vmem:[%s19859_s20 + $0x3720] sm:$0xff]  ;;  %v2274_v24 = vld [vmem:[%s19859_s20 + $0x3708] sm:$0xff] }
 0x41b   : > { %v2278_v25 = vld [vmem:[%s19859_s20 + $0x3728] sm:$0xff] }
 0x41c   : > { %11948 = vmatpush1.bf16.msra.mxu0 %v17999_v40  ;;  %12550 = vmatpush1.bf16.msra.mxu1 %v18001_v41  ;;  %v2226_v40 = vld [vmem:[%s19859_s20 + $0x3588] sm:$0xff] }
 0x41d   : > { %11949 = vmatprep.subr.bf16.mxu0 %v18008_v42  ;;  %12551 = vmatprep.subr.bf16.mxu1 %v18010_v43  ;;  %v2230_v41 = vld [vmem:[%s19859_s20 + $0x35a8] sm:$0xff]  ;;  %v18063_v42 = vcombine.low %v2217_v30, %v2221_v31  ;;  %v18065_v43 = vcombine.low %v2218_v32, %v2222_v33  ;;  %v2281_v30 = vld [vmem:[%s19859_s20 + $0x3740] sm:$0xff] }
 0x41e   : > { %v18074_v45 = vcombine.high %v2226_v40, %v2230_v41  ;;  %v2285_v31 = vld [vmem:[%s19859_s20 + $0x3760] sm:$0xff]  ;;  %v2282_v32 = vld [vmem:[%s19859_s20 + $0x3748] sm:$0xff] }
 0x41f   : > { %v2286_v33 = vld [vmem:[%s19859_s20 + $0x3768] sm:$0xff] }
 0x420   : > { %11950 = vmatpush1.bf16.msra.mxu0 %v18007_v48  ;;  %12552 = vmatpush1.bf16.msra.mxu1 %v18009_v49  ;;  %v2234_v48 = vld [vmem:[%s19859_s20 + $0x35c8] sm:$0xff] }
 0x421   : > { %11951 = vmatprep.subr.bf16.mxu0 %v18016_v50  ;;  %12553 = vmatprep.subr.bf16.mxu1 %v18018_v51  ;;  %v2238_v49 = vld [vmem:[%s19859_s20 + $0x35e8] sm:$0xff]  ;;  %v18071_v50 = vcombine.low %v2225_v38, %v2229_v39  ;;  %v18073_v51 = vcombine.low %v2226_v40, %v2230_v41  ;;  %v2289_v38 = vld [vmem:[%s19859_s20 + $0x3780] sm:$0xff] }
 0x422   : > { %v18082_v53 = vcombine.high %v2234_v48, %v2238_v49  ;;  %v2293_v39 = vld [vmem:[%s19859_s20 + $0x37a0] sm:$0xff]  ;;  %v2290_v40 = vld [vmem:[%s19859_s20 + $0x3788] sm:$0xff] }
 0x423   : > { %v2294_v41 = vld [vmem:[%s19859_s20 + $0x37a8] sm:$0xff] }
 0x424   : > { %11952 = vmatpush1.bf16.msra.mxu0 %v18015_v56  ;;  %12554 = vmatpush1.bf16.msra.mxu1 %v18017_v57  ;;  %v2242_v56 = vld [vmem:[%s19859_s20 + $0x3608] sm:$0xff] }
 0x425   : > { %11964 = vmatprep.subr.bf16.mxu0 %v18024_v58  ;;  %12566 = vmatprep.subr.bf16.mxu1 %v18026_v59  ;;  %v2246_v57 = vld [vmem:[%s19859_s20 + $0x3628] sm:$0xff]  ;;  %v18079_v58 = vcombine.low %v2233_v46, %v2237_v47  ;;  %v18081_v59 = vcombine.low %v2234_v48, %v2238_v49  ;;  %v2297_v46 = vld [vmem:[%s19859_s20 + $0x37c0] sm:$0xff] }
 0x426   : > { %v18090_v61 = vcombine.high %v2242_v56, %v2246_v57  ;;  %v2301_v47 = vld [vmem:[%s19859_s20 + $0x37e0] sm:$0xff]  ;;  %v2298_v48 = vld [vmem:[%s19859_s20 + $0x37c8] sm:$0xff] }
 0x427   : > { %11954 = vmatmul.mubr.bf16.vlgmr.msra.gmra.mrb[0].mxu0 %v18865_v62  ;;  %12556 = vmatmul.mubr.bf16.vlgmr.msra.gmra.mrb[0].mxu1 %v18865_v62  ;;  %v2249_v62 = vld [vmem:[%s19859_s20 + $0x3640] sm:$0xff]  ;;  %v2302_v49 = vld [vmem:[%s19859_s20 + $0x37e8] sm:$0xff] }
 0x428   : > { %11965 = vmatpush1.bf16.msra.mxu0 %v18023_v1  ;;  %12567 = vmatpush1.bf16.msra.mxu1 %v18025_v2  ;;  %v2254_v1 = vld [vmem:[%s19859_s20 + $0x3668] sm:$0xff]  ;;  %v18087_v2 = vcombine.low %v2241_v54, %v2245_v55  ;;  %v515_v54 = vld [vmem:[%s19859_s20 + $0x10] sm:$0xff] }
 0x429   : > { %11966 = vmatprep.subr.bf16.mxu0 %v18032_v3  ;;  %12568 = vmatprep.subr.bf16.mxu1 %v18034_v4  ;;  %v18089_v3 = vcombine.low %v2242_v56, %v2246_v57  ;;  %v18096_v4 = vcombine.high %v2249_v62, %v2253_v63  ;;  %v18098_v5 = vcombine.high %v2250_v0, %v2254_v1  ;;  %v519_v55 = vld [vmem:[%s19859_s20 + $0x30] sm:$0xff]  ;;  %v516_v56 = vld [vmem:[%s19859_s20 + $0x18] sm:$0xff] }
 0x42a   : > { %11996 = vmatprep.mubr.bf16.mxu0 %v18866_v7  ;;  %12598 = vmatprep.mubr.bf16.mxu1 %v18866_v7  ;;  %v2261_v7 = vld [vmem:[%s19859_s20 + $0x36a0] sm:$0xff]  ;;  %v520_v57 = vld [vmem:[%s19859_s20 + $0x38] sm:$0xff] }
 0x42c   : > { %11967 = vmatpush1.bf16.msra.mxu0 %v18031_v10  ;;  %12569 = vmatpush1.bf16.msra.mxu1 %v18033_v11  ;;  %v18095_v10 = vcombine.low %v2249_v62, %v2253_v63  ;;  %v18097_v11 = vcombine.low %v2250_v0, %v2254_v1  ;;  %v523_v62 = vld [vmem:[%s19859_s20 + $0x50] sm:$0xff]  ;;  %v18868_v0 = vld [vmem:[%s19857_s27 + $0x68] ss:$112 sps:$4 sm:$0xff]  }
 0x42d   : > { %11968 = vmatprep.subr.bf16.mxu0 %v18040_v12  ;;  %12570 = vmatprep.subr.bf16.mxu1 %v18042_v13  ;;  %v18104_v12 = vcombine.high %v2257_v6, %v2261_v7  ;;  %v18106_v13 = vcombine.high %v2258_v8, %v2262_v9  ;;  %v527_v63 = vld [vmem:[%s19859_s20 + $0x70] sm:$0xff]  ;;  %v524_v1 = vld [vmem:[%s19859_s20 + $0x58] sm:$0xff] }
 0x430   : > { %11969 = vmatpush1.bf16.msra.mxu0 %v18039_v18  ;;  %12571 = vmatpush1.bf16.msra.mxu1 %v18041_v19  ;;  %v18103_v18 = vcombine.low %v2257_v6, %v2261_v7  ;;  %v18105_v19 = vcombine.low %v2258_v8, %v2262_v9  ;;  %v531_v7 = vld [vmem:[%s19859_s20 + $0x90] sm:$0xff]  ;;  %v532_v9 = vld [vmem:[%s19859_s20 + $0x98] sm:$0xff] }
 0x431   : > { %11970 = vmatprep.subr.bf16.mxu0 %v18048_v20  ;;  %12572 = vmatprep.subr.bf16.mxu1 %v18050_v21  ;;  %v18112_v20 = vcombine.high %v2265_v14, %v2269_v15  ;;  %v18114_v21 = vcombine.high %v2266_v16, %v2270_v17  ;;  %v535_v8 = vld [vmem:[%s19859_s20 + $0xb0] sm:$0xff] }
 0x434   : > { %11971 = vmatpush1.bf16.msra.mxu0 %v18047_v26  ;;  %12573 = vmatpush1.bf16.msra.mxu1 %v18049_v27  ;;  %v18111_v26 = vcombine.low %v2265_v14, %v2269_v15  ;;  %v18113_v27 = vcombine.low %v2266_v16, %v2270_v17  ;;  %v539_v15 = vld [vmem:[%s19859_s20 + $0xd0] sm:$0xff] }
 0x435   : > { %11972 = vmatprep.subr.bf16.mxu0 %v18056_v28  ;;  %12574 = vmatprep.subr.bf16.mxu1 %v18058_v29  ;;  %v18120_v28 = vcombine.high %v2273_v22, %v2277_v23  ;;  %v18122_v29 = vcombine.high %v2274_v24, %v2278_v25  ;;  %v543_v16 = vld [vmem:[%s19859_s20 + $0xf0] sm:$0xff] }
 0x436   : > { %v18869_v17 = vld [vmem:[%s19857_s27 + $0x4] ss:$112 sps:$4 sm:$0xff]  }
 0x438   : > { %11973 = vmatpush1.bf16.msra.mxu0 %v18055_v34  ;;  %12575 = vmatpush1.bf16.msra.mxu1 %v18057_v35  ;;  %v18119_v34 = vcombine.low %v2273_v22, %v2277_v23  ;;  %v18121_v35 = vcombine.low %v2274_v24, %v2278_v25  ;;  %v16388_v22 = vcombine.high %v539_v15, %v543_v16  ;;  %v547_v24 = vld [vmem:[%s19859_s20 + $0x110] sm:$0xff] }
 0x439   : > { %11974 = vmatprep.subr.bf16.mxu0 %v18064_v36  ;;  %12576 = vmatprep.subr.bf16.mxu1 %v18066_v37  ;;  %v18128_v36 = vcombine.high %v2281_v30, %v2285_v31  ;;  %v18130_v37 = vcombine.high %v2282_v32, %v2286_v33  ;;  %v551_v25 = vld [vmem:[%s19859_s20 + $0x130] sm:$0xff] }
 0x43c   : > { %11975 = vmatpush1.bf16.msra.mxu0 %v18063_v42  ;;  %12577 = vmatpush1.bf16.msra.mxu1 %v18065_v43  ;;  %v18127_v42 = vcombine.low %v2281_v30, %v2285_v31  ;;  %v18129_v43 = vcombine.low %v2282_v32, %v2286_v33  ;;  %v16396_v30 = vcombine.high %v547_v24, %v551_v25  ;;  %v555_v32 = vld [vmem:[%s19859_s20 + $0x150] sm:$0xff] }
 0x43d   : > { %11976 = vmatprep.subr.bf16.mxu0 %v18072_v44  ;;  %12578 = vmatprep.subr.bf16.mxu1 %v18074_v45  ;;  %v18136_v44 = vcombine.high %v2289_v38, %v2293_v39  ;;  %v18138_v45 = vcombine.high %v2290_v40, %v2294_v41  ;;  %v559_v33 = vld [vmem:[%s19859_s20 + $0x170] sm:$0xff] }
 0x440   : > { %11977 = vmatpush1.bf16.msra.mxu0 %v18071_v50  ;;  %12579 = vmatpush1.bf16.msra.mxu1 %v18073_v51  ;;  %v18135_v50 = vcombine.low %v2289_v38, %v2293_v39  ;;  %v18137_v51 = vcombine.low %v2290_v40, %v2294_v41  ;;  %v16404_v38 = vcombine.high %v555_v32, %v559_v33  ;;  %v563_v40 = vld [vmem:[%s19859_s20 + $0x190] sm:$0xff] }
 0x441   : > { %11978 = vmatprep.subr.bf16.mxu0 %v18080_v52  ;;  %12580 = vmatprep.subr.bf16.mxu1 %v18082_v53  ;;  %v18144_v52 = vcombine.high %v2297_v46, %v2301_v47  ;;  %v18146_v53 = vcombine.high %v2298_v48, %v2302_v49  ;;  %v567_v41 = vld [vmem:[%s19859_s20 + $0x1b0] sm:$0xff] }
 0x444   : > { %11979 = vmatpush1.bf16.msra.mxu0 %v18079_v58  ;;  %12581 = vmatpush1.bf16.msra.mxu1 %v18081_v59  ;;  %v18143_v58 = vcombine.low %v2297_v46, %v2301_v47  ;;  %v18145_v59 = vcombine.low %v2298_v48, %v2302_v49  ;;  %v16412_v46 = vcombine.high %v563_v40, %v567_v41  ;;  %v571_v48 = vld [vmem:[%s19859_s20 + $0x1d0] sm:$0xff] }
 0x445   : > { %11980 = vmatprep.subr.bf16.mxu0 %v18088_v60  ;;  %12582 = vmatprep.subr.bf16.mxu1 %v18090_v61  ;;  %v16364_v60 = vcombine.high %v515_v54, %v519_v55  ;;  %v16366_v61 = vcombine.high %v516_v56, %v520_v57  ;;  %v575_v49 = vld [vmem:[%s19859_s20 + $0x1f0] sm:$0xff] }
 0x448   : > { %11981 = vmatpush1.bf16.msra.mxu0 %v18087_v2  ;;  %12583 = vmatpush1.bf16.msra.mxu1 %v18089_v3  ;;  %v528_v2 = vld [vmem:[%s19859_s20 + $0x78] sm:$0xff]  ;;  %v16363_v3 = vcombine.low %v515_v54, %v519_v55  ;;  %v16420_v54 = vcombine.high %v571_v48, %v575_v49 }
 0x449   : > { %11982 = vmatprep.subr.bf16.mxu0 %v18096_v4  ;;  %12584 = vmatprep.subr.bf16.mxu1 %v18098_v5  ;;  %v16365_v4 = vcombine.low %v516_v56, %v520_v57  ;;  %v16372_v5 = vcombine.high %v523_v62, %v527_v63  ;;  %v16374_v6 = vcombine.high %v524_v1, %v528_v2  ;;  %v579_v56 = vld [vmem:[%s19859_s20 + $0x210] sm:$0xff] }
 0x44a   : > { %v583_v57 = vld [vmem:[%s19859_s20 + $0x230] sm:$0xff] }
 0x44c   : > { %11983 = vmatpush1.bf16.msra.mxu0 %v18095_v10  ;;  %12585 = vmatpush1.bf16.msra.mxu1 %v18097_v11  ;;  %v536_v10 = vld [vmem:[%s19859_s20 + $0xb8] sm:$0xff]  ;;  %v16371_v11 = vcombine.low %v523_v62, %v527_v63  ;;  %v16428_v62 = vcombine.high %v579_v56, %v583_v57 }
 0x44d   : > { %11984 = vmatprep.subr.bf16.mxu0 %v18104_v12  ;;  %12586 = vmatprep.subr.bf16.mxu1 %v18106_v13  ;;  %v16373_v12 = vcombine.low %v524_v1, %v528_v2  ;;  %v16380_v13 = vcombine.high %v531_v7, %v535_v8  ;;  %v16382_v14 = vcombine.high %v532_v9, %v536_v10  ;;  %v591_v1 = vld [vmem:[%s19859_s20 + $0x270] sm:$0xff]  ;;  %v588_v2 = vld [vmem:[%s19859_s20 + $0x258] sm:$0xff] }
 0x450   : > { %11985 = vmatpush1.bf16.msra.mxu0 %v18103_v18  ;;  %12587 = vmatpush1.bf16.msra.mxu1 %v18105_v19  ;;  %v540_v18 = vld [vmem:[%s19859_s20 + $0xd8] sm:$0xff] }
 0x451   : > { %11986 = vmatprep.subr.bf16.mxu0 %v18112_v20  ;;  %12588 = vmatprep.subr.bf16.mxu1 %v18114_v21  ;;  %v544_v19 = vld [vmem:[%s19859_s20 + $0xf8] sm:$0xff]  ;;  %v16379_v20 = vcombine.low %v531_v7, %v535_v8  ;;  %v16381_v21 = vcombine.low %v532_v9, %v536_v10  ;;  %v595_v8 = vld [vmem:[%s19859_s20 + $0x290] sm:$0xff] }
 0x452   : > { %v16390_v23 = vcombine.high %v540_v18, %v544_v19  ;;  %v599_v9 = vld [vmem:[%s19859_s20 + $0x2b0] sm:$0xff]  ;;  %v596_v10 = vld [vmem:[%s19859_s20 + $0x298] sm:$0xff] }
 0x454   : > { %11987 = vmatpush1.bf16.msra.mxu0 %v18111_v26  ;;  %12589 = vmatpush1.bf16.msra.mxu1 %v18113_v27  ;;  %v548_v26 = vld [vmem:[%s19859_s20 + $0x118] sm:$0xff] }
 0x455   : > { %11988 = vmatprep.subr.bf16.mxu0 %v18120_v28  ;;  %12590 = vmatprep.subr.bf16.mxu1 %v18122_v29  ;;  %v552_v27 = vld [vmem:[%s19859_s20 + $0x138] sm:$0xff]  ;;  %v16387_v28 = vcombine.low %v539_v15, %v543_v16  ;;  %v16389_v29 = vcombine.low %v540_v18, %v544_v19  ;;  %v603_v16 = vld [vmem:[%s19859_s20 + $0x2d0] sm:$0xff] }
 0x456   : > { %v16398_v31 = vcombine.high %v548_v26, %v552_v27  ;;  %v604_v18 = vld [vmem:[%s19859_s20 + $0x2d8] sm:$0xff] }
 0x457   : > { %v608_v19 = vld [vmem:[%s19859_s20 + $0x2f8] sm:$0xff] }
 0x458   : > { %11989 = vmatpush1.bf16.msra.mxu0 %v18119_v34  ;;  %12591 = vmatpush1.bf16.msra.mxu1 %v18121_v35  ;;  %v556_v34 = vld [vmem:[%s19859_s20 + $0x158] sm:$0xff] }
 0x459   : > { %11990 = vmatprep.subr.bf16.mxu0 %v18128_v36  ;;  %12592 = vmatprep.subr.bf16.mxu1 %v18130_v37  ;;  %v560_v35 = vld [vmem:[%s19859_s20 + $0x178] sm:$0xff]  ;;  %v16395_v36 = vcombine.low %v547_v24, %v551_v25  ;;  %v16397_v37 = vcombine.low %v548_v26, %v552_v27  ;;  %v611_v24 = vld [vmem:[%s19859_s20 + $0x310] sm:$0xff] }
 0x45a   : > { %v16406_v39 = vcombine.high %v556_v34, %v560_v35  ;;  %v615_v25 = vld [vmem:[%s19859_s20 + $0x330] sm:$0xff]  ;;  %v612_v26 = vld [vmem:[%s19859_s20 + $0x318] sm:$0xff] }
 0x45b   : > { %v616_v27 = vld [vmem:[%s19859_s20 + $0x338] sm:$0xff] }
 0x45c   : > { %11991 = vmatpush1.bf16.msra.mxu0 %v18127_v42  ;;  %12593 = vmatpush1.bf16.msra.mxu1 %v18129_v43  ;;  %v564_v42 = vld [vmem:[%s19859_s20 + $0x198] sm:$0xff] }
 0x45d   : > { %11992 = vmatprep.subr.bf16.mxu0 %v18136_v44  ;;  %12594 = vmatprep.subr.bf16.mxu1 %v18138_v45  ;;  %v568_v43 = vld [vmem:[%s19859_s20 + $0x1b8] sm:$0xff]  ;;  %v16403_v44 = vcombine.low %v555_v32, %v559_v33  ;;  %v16405_v45 = vcombine.low %v556_v34, %v560_v35  ;;  %v619_v32 = vld [vmem:[%s19859_s20 + $0x350] sm:$0xff] }
 0x45e   : > { %v16414_v47 = vcombine.high %v564_v42, %v568_v43  ;;  %v623_v33 = vld [vmem:[%s19859_s20 + $0x370] sm:$0xff]  ;;  %v620_v34 = vld [vmem:[%s19859_s20 + $0x358] sm:$0xff] }
 0x45f   : > { %v624_v35 = vld [vmem:[%s19859_s20 + $0x378] sm:$0xff] }
 0x460   : > { %11993 = vmatpush1.bf16.msra.mxu0 %v18135_v50  ;;  %12595 = vmatpush1.bf16.msra.mxu1 %v18137_v51  ;;  %v572_v50 = vld [vmem:[%s19859_s20 + $0x1d8] sm:$0xff] }
 0x461   : > { %11994 = vmatprep.subr.bf16.mxu0 %v18144_v52  ;;  %12596 = vmatprep.subr.bf16.mxu1 %v18146_v53  ;;  %v576_v51 = vld [vmem:[%s19859_s20 + $0x1f8] sm:$0xff]  ;;  %v16411_v52 = vcombine.low %v563_v40, %v567_v41  ;;  %v16413_v53 = vcombine.low %v564_v42, %v568_v43  ;;  %v627_v40 = vld [vmem:[%s19859_s20 + $0x390] sm:$0xff] }
 0x462   : > { %v16422_v55 = vcombine.high %v572_v50, %v576_v51  ;;  %v631_v41 = vld [vmem:[%s19859_s20 + $0x3b0] sm:$0xff]  ;;  %v628_v42 = vld [vmem:[%s19859_s20 + $0x398] sm:$0xff] }
 0x463   : > { %v632_v43 = vld [vmem:[%s19859_s20 + $0x3b8] sm:$0xff] }
 0x464   : > { %11995 = vmatpush1.bf16.msra.mxu0 %v18143_v58  ;;  %12597 = vmatpush1.bf16.msra.mxu1 %v18145_v59  ;;  %v580_v58 = vld [vmem:[%s19859_s20 + $0x218] sm:$0xff] }
 0x465   : > { %12609 = vmatprep.subr.bf16.mxu0 %v16364_v60  ;;  %13211 = vmatprep.subr.bf16.mxu1 %v16366_v61  ;;  %v584_v59 = vld [vmem:[%s19859_s20 + $0x238] sm:$0xff]  ;;  %v16419_v60 = vcombine.low %v571_v48, %v575_v49  ;;  %v16421_v61 = vcombine.low %v572_v50, %v576_v51  ;;  %v635_v48 = vld [vmem:[%s19859_s20 + $0x3d0] sm:$0xff] }
 0x466   : > { %v16430_v63 = vcombine.high %v580_v58, %v584_v59  ;;  %v639_v49 = vld [vmem:[%s19859_s20 + $0x3f0] sm:$0xff]  ;;  %v636_v50 = vld [vmem:[%s19859_s20 + $0x3d8] sm:$0xff] }
 0x467   : > { %11997 = vmatmul.mubr.bf16.vlgmr.msra.gmra.mrb[0].mxu0 %v18868_v0  ;;  %12599 = vmatmul.mubr.bf16.vlgmr.msra.gmra.mrb[0].mxu1 %v18868_v0  ;;  %v587_v0 = vld [vmem:[%s19859_s20 + $0x250] sm:$0xff]  ;;  %v640_v51 = vld [vmem:[%s19859_s20 + $0x3f8] sm:$0xff] }
 0x468   : > { %12610 = vmatpush1.bf16.msra.mxu0 %v16363_v3  ;;  %13212 = vmatpush1.bf16.msra.mxu1 %v16365_v4  ;;  %v592_v3 = vld [vmem:[%s19859_s20 + $0x278] sm:$0xff]  ;;  %v16427_v4 = vcombine.low %v579_v56, %v583_v57  ;;  %v643_v56 = vld [vmem:[%s19859_s20 + $0x410] sm:$0xff] }
 0x469   : > { %12611 = vmatprep.subr.bf16.mxu0 %v16372_v5  ;;  %13213 = vmatprep.subr.bf16.mxu1 %v16374_v6  ;;  %v16429_v5 = vcombine.low %v580_v58, %v584_v59  ;;  %v16436_v6 = vcombine.high %v587_v0, %v591_v1  ;;  %v16438_v7 = vcombine.high %v588_v2, %v592_v3  ;;  %v647_v57 = vld [vmem:[%s19859_s20 + $0x430] sm:$0xff]  ;;  %v644_v58 = vld [vmem:[%s19859_s20 + $0x418] sm:$0xff] }
 0x46a   : > { %12641 = vmatprep.mubr.bf16.mxu0 %v18869_v17  ;;  %13243 = vmatprep.mubr.bf16.mxu1 %v18869_v17  ;;  %v607_v17 = vld [vmem:[%s19859_s20 + $0x2f0] sm:$0xff]  ;;  %v648_v59 = vld [vmem:[%s19859_s20 + $0x438] sm:$0xff] }
 0x46c   : > { %12612 = vmatpush1.bf16.msra.mxu0 %v16371_v11  ;;  %13214 = vmatpush1.bf16.msra.mxu1 %v16373_v12  ;;  %v600_v11 = vld [vmem:[%s19859_s20 + $0x2b8] sm:$0xff]  ;;  %v16435_v12 = vcombine.low %v587_v0, %v591_v1  ;;  %v651_v0 = vld [vmem:[%s19859_s20 + $0x450] sm:$0xff] }
 0x46d   : > { %12613 = vmatprep.subr.bf16.mxu0 %v16380_v13  ;;  %13215 = vmatprep.subr.bf16.mxu1 %v16382_v14  ;;  %v16437_v13 = vcombine.low %v588_v2, %v592_v3  ;;  %v16444_v14 = vcombine.high %v595_v8, %v599_v9  ;;  %v16446_v15 = vcombine.high %v596_v10, %v600_v11  ;;  %v655_v1 = vld [vmem:[%s19859_s20 + $0x470] sm:$0xff]  ;;  %v652_v2 = vld [vmem:[%s19859_s20 + $0x458] sm:$0xff] }
 0x46e   : > { %v656_v3 = vld [vmem:[%s19859_s20 + $0x478] sm:$0xff] }
 0x470   : > { %12614 = vmatpush1.bf16.msra.mxu0 %v16379_v20  ;;  %13216 = vmatpush1.bf16.msra.mxu1 %v16381_v21  ;;  %v16443_v20 = vcombine.low %v595_v8, %v599_v9  ;;  %v16445_v21 = vcombine.low %v596_v10, %v600_v11  ;;  %v659_v8 = vld [vmem:[%s19859_s20 + $0x490] sm:$0xff]  ;;  %v660_v11 = vld [vmem:[%s19859_s20 + $0x498] sm:$0xff] }
 0x471   : > { %12615 = vmatprep.subr.bf16.mxu0 %v16388_v22  ;;  %13217 = vmatprep.subr.bf16.mxu1 %v16390_v23  ;;  %v16452_v22 = vcombine.high %v603_v16, %v607_v17  ;;  %v16454_v23 = vcombine.high %v604_v18, %v608_v19  ;;  %v663_v9 = vld [vmem:[%s19859_s20 + $0x4b0] sm:$0xff] }
 0x472   : > { %v18870_v10 = vld [vmem:[%s19857_s27] ss:$112 sps:$4 sm:$0xff]  }
 0x474   : > { %12616 = vmatpush1.bf16.msra.mxu0 %v16387_v28  ;;  %13218 = vmatpush1.bf16.msra.mxu1 %v16389_v29  ;;  %v16451_v28 = vcombine.low %v603_v16, %v607_v17  ;;  %v16453_v29 = vcombine.low %v604_v18, %v608_v19  ;;  %v667_v17 = vld [vmem:[%s19859_s20 + $0x4d0] sm:$0xff]  ;;  %v18871_v19 = vld [vmem:[%s19857_s27 + $0xc] ss:$112 sps:$4 sm:$0xff]  }
 0x475   : > { %12617 = vmatprep.subr.bf16.mxu0 %v16396_v30  ;;  %13219 = vmatprep.subr.bf16.mxu1 %v16398_v31  ;;  %v16460_v30 = vcombine.high %v611_v24, %v615_v25  ;;  %v16462_v31 = vcombine.high %v612_v26, %v616_v27  ;;  %v671_v18 = vld [vmem:[%s19859_s20 + $0x4f0] sm:$0xff] }
 0x478   : > { %12618 = vmatpush1.bf16.msra.mxu0 %v16395_v36  ;;  %13220 = vmatpush1.bf16.msra.mxu1 %v16397_v37  ;;  %v16459_v36 = vcombine.low %v611_v24, %v615_v25  ;;  %v16461_v37 = vcombine.low %v612_v26, %v616_v27  ;;  %v16516_v24 = vcombine.high %v667_v17, %v671_v18  ;;  %v675_v26 = vld [vmem:[%s19859_s20 + $0x510] sm:$0xff] }
 0x479   : > { %12619 = vmatprep.subr.bf16.mxu0 %v16404_v38  ;;  %13221 = vmatprep.subr.bf16.mxu1 %v16406_v39  ;;  %v16468_v38 = vcombine.high %v619_v32, %v623_v33  ;;  %v16470_v39 = vcombine.high %v620_v34, %v624_v35  ;;  %v679_v27 = vld [vmem:[%s19859_s20 + $0x530] sm:$0xff] }
 0x47c   : > { %12620 = vmatpush1.bf16.msra.mxu0 %v16403_v44  ;;  %13222 = vmatpush1.bf16.msra.mxu1 %v16405_v45  ;;  %v16467_v44 = vcombine.low %v619_v32, %v623_v33  ;;  %v16469_v45 = vcombine.low %v620_v34, %v624_v35  ;;  %v16524_v32 = vcombine.high %v675_v26, %v679_v27  ;;  %v683_v34 = vld [vmem:[%s19859_s20 + $0x550] sm:$0xff] }
 0x47d   : > { %12621 = vmatprep.subr.bf16.mxu0 %v16412_v46  ;;  %13223 = vmatprep.subr.bf16.mxu1 %v16414_v47  ;;  %v16476_v46 = vcombine.high %v627_v40, %v631_v41  ;;  %v16478_v47 = vcombine.high %v628_v42, %v632_v43  ;;  %v687_v35 = vld [vmem:[%s19859_s20 + $0x570] sm:$0xff] }
 0x480   : > { %12622 = vmatpush1.bf16.msra.mxu0 %v16411_v52  ;;  %13224 = vmatpush1.bf16.msra.mxu1 %v16413_v53  ;;  %v16475_v52 = vcombine.low %v627_v40, %v631_v41  ;;  %v16477_v53 = vcombine.low %v628_v42, %v632_v43  ;;  %v16532_v40 = vcombine.high %v683_v34, %v687_v35  ;;  %v691_v42 = vld [vmem:[%s19859_s20 + $0x590] sm:$0xff] }
 0x481   : > { %12623 = vmatprep.subr.bf16.mxu0 %v16420_v54  ;;  %13225 = vmatprep.subr.bf16.mxu1 %v16422_v55  ;;  %v16484_v54 = vcombine.high %v635_v48, %v639_v49  ;;  %v16486_v55 = vcombine.high %v636_v50, %v640_v51  ;;  %v695_v43 = vld [vmem:[%s19859_s20 + $0x5b0] sm:$0xff] }
 0x484   : > { %12624 = vmatpush1.bf16.msra.mxu0 %v16419_v60  ;;  %13226 = vmatpush1.bf16.msra.mxu1 %v16421_v61  ;;  %v16483_v60 = vcombine.low %v635_v48, %v639_v49  ;;  %v16485_v61 = vcombine.low %v636_v50, %v640_v51  ;;  %v16540_v48 = vcombine.high %v691_v42, %v695_v43  ;;  %v699_v50 = vld [vmem:[%s19859_s20 + $0x5d0] sm:$0xff] }
 0x485   : > { %12625 = vmatprep.subr.bf16.mxu0 %v16428_v62  ;;  %13227 = vmatprep.subr.bf16.mxu1 %v16430_v63  ;;  %v16492_v62 = vcombine.high %v643_v56, %v647_v57  ;;  %v16494_v63 = vcombine.high %v644_v58, %v648_v59  ;;  %v703_v51 = vld [vmem:[%s19859_s20 + $0x5f0] sm:$0xff] }
 0x488   : > { %12626 = vmatpush1.bf16.msra.mxu0 %v16427_v4  ;;  %13228 = vmatpush1.bf16.msra.mxu1 %v16429_v5  ;;  %v16491_v4 = vcombine.low %v643_v56, %v647_v57  ;;  %v16493_v5 = vcombine.low %v644_v58, %v648_v59  ;;  %v16548_v56 = vcombine.high %v699_v50, %v703_v51  ;;  %v707_v58 = vld [vmem:[%s19859_s20 + $0x610] sm:$0xff] }
 0x489   : > { %12627 = vmatprep.subr.bf16.mxu0 %v16436_v6  ;;  %13229 = vmatprep.subr.bf16.mxu1 %v16438_v7  ;;  %v16500_v6 = vcombine.high %v651_v0, %v655_v1  ;;  %v16502_v7 = vcombine.high %v652_v2, %v656_v3  ;;  %v711_v59 = vld [vmem:[%s19859_s20 + $0x630] sm:$0xff] }
 0x48c   : > { %12628 = vmatpush1.bf16.msra.mxu0 %v16435_v12  ;;  %13230 = vmatpush1.bf16.msra.mxu1 %v16437_v13  ;;  %v664_v12 = vld [vmem:[%s19859_s20 + $0x4b8] sm:$0xff]  ;;  %v16499_v13 = vcombine.low %v651_v0, %v655_v1  ;;  %v16556_v0 = vcombine.high %v707_v58, %v711_v59 }
 0x48d   : > { %12629 = vmatprep.subr.bf16.mxu0 %v16444_v14  ;;  %13231 = vmatprep.subr.bf16.mxu1 %v16446_v15  ;;  %v16501_v14 = vcombine.low %v652_v2, %v656_v3  ;;  %v16508_v15 = vcombine.high %v659_v8, %v663_v9  ;;  %v16510_v16 = vcombine.high %v660_v11, %v664_v12  ;;  %v715_v2 = vld [vmem:[%s19859_s20 + $0x650] sm:$0xff] }
 0x48e   : > { %v719_v3 = vld [vmem:[%s19859_s20 + $0x670] sm:$0xff] }
 0x490   : > { %12630 = vmatpush1.bf16.msra.mxu0 %v16443_v20  ;;  %13232 = vmatpush1.bf16.msra.mxu1 %v16445_v21  ;;  %v668_v20 = vld [vmem:[%s19859_s20 + $0x4d8] sm:$0xff] }
 0x491   : > { %12631 = vmatprep.subr.bf16.mxu0 %v16452_v22  ;;  %13233 = vmatprep.subr.bf16.mxu1 %v16454_v23  ;;  %v672_v21 = vld [vmem:[%s19859_s20 + $0x4f8] sm:$0xff]  ;;  %v16507_v22 = vcombine.low %v659_v8, %v663_v9  ;;  %v16509_v23 = vcombine.low %v660_v11, %v664_v12  ;;  %v16564_v8 = vcombine.high %v715_v2, %v719_v3  ;;  %v727_v11 = vld [vmem:[%s19859_s20 + $0x6b0] sm:$0xff] }
 0x492   : > { %v16518_v25 = vcombine.high %v668_v20, %v672_v21  ;;  %v724_v12 = vld [vmem:[%s19859_s20 + $0x698] sm:$0xff] }
 0x494   : > { %12632 = vmatpush1.bf16.msra.mxu0 %v16451_v28  ;;  %13234 = vmatpush1.bf16.msra.mxu1 %v16453_v29  ;;  %v676_v28 = vld [vmem:[%s19859_s20 + $0x518] sm:$0xff] }
 0x495   : > { %12633 = vmatprep.subr.bf16.mxu0 %v16460_v30  ;;  %13235 = vmatprep.subr.bf16.mxu1 %v16462_v31  ;;  %v680_v29 = vld [vmem:[%s19859_s20 + $0x538] sm:$0xff]  ;;  %v16515_v30 = vcombine.low %v667_v17, %v671_v18  ;;  %v16517_v31 = vcombine.low %v668_v20, %v672_v21  ;;  %v731_v18 = vld [vmem:[%s19859_s20 + $0x6d0] sm:$0xff] }
 0x496   : > { %v16526_v33 = vcombine.high %v676_v28, %v680_v29  ;;  %v732_v20 = vld [vmem:[%s19859_s20 + $0x6d8] sm:$0xff] }
 0x497   : > { %v736_v21 = vld [vmem:[%s19859_s20 + $0x6f8] sm:$0xff] }
 0x498   : > { %12634 = vmatpush1.bf16.msra.mxu0 %v16459_v36  ;;  %13236 = vmatpush1.bf16.msra.mxu1 %v16461_v37  ;;  %v684_v36 = vld [vmem:[%s19859_s20 + $0x558] sm:$0xff] }
 0x499   : > { %12635 = vmatprep.subr.bf16.mxu0 %v16468_v38  ;;  %13237 = vmatprep.subr.bf16.mxu1 %v16470_v39  ;;  %v688_v37 = vld [vmem:[%s19859_s20 + $0x578] sm:$0xff]  ;;  %v16523_v38 = vcombine.low %v675_v26, %v679_v27  ;;  %v16525_v39 = vcombine.low %v676_v28, %v680_v29  ;;  %v739_v26 = vld [vmem:[%s19859_s20 + $0x710] sm:$0xff] }
 0x49a   : > { %v16534_v41 = vcombine.high %v684_v36, %v688_v37  ;;  %v743_v27 = vld [vmem:[%s19859_s20 + $0x730] sm:$0xff]  ;;  %v740_v28 = vld [vmem:[%s19859_s20 + $0x718] sm:$0xff] }
 0x49b   : > { %v744_v29 = vld [vmem:[%s19859_s20 + $0x738] sm:$0xff] }
 0x49c   : > { %12636 = vmatpush1.bf16.msra.mxu0 %v16467_v44  ;;  %13238 = vmatpush1.bf16.msra.mxu1 %v16469_v45  ;;  %v692_v44 = vld [vmem:[%s19859_s20 + $0x598] sm:$0xff] }
 0x49d   : > { %12637 = vmatprep.subr.bf16.mxu0 %v16476_v46  ;;  %13239 = vmatprep.subr.bf16.mxu1 %v16478_v47  ;;  %v696_v45 = vld [vmem:[%s19859_s20 + $0x5b8] sm:$0xff]  ;;  %v16531_v46 = vcombine.low %v683_v34, %v687_v35  ;;  %v16533_v47 = vcombine.low %v684_v36, %v688_v37  ;;  %v747_v34 = vld [vmem:[%s19859_s20 + $0x750] sm:$0xff] }
 0x49e   : > { %v16542_v49 = vcombine.high %v692_v44, %v696_v45  ;;  %v751_v35 = vld [vmem:[%s19859_s20 + $0x770] sm:$0xff]  ;;  %v748_v36 = vld [vmem:[%s19859_s20 + $0x758] sm:$0xff] }
 0x49f   : > { %v752_v37 = vld [vmem:[%s19859_s20 + $0x778] sm:$0xff] }
 0x4a0   : > { %12638 = vmatpush1.bf16.msra.mxu0 %v16475_v52  ;;  %13240 = vmatpush1.bf16.msra.mxu1 %v16477_v53  ;;  %v700_v52 = vld [vmem:[%s19859_s20 + $0x5d8] sm:$0xff] }
 0x4a1   : > { %12639 = vmatprep.subr.bf16.mxu0 %v16484_v54  ;;  %13241 = vmatprep.subr.bf16.mxu1 %v16486_v55  ;;  %v704_v53 = vld [vmem:[%s19859_s20 + $0x5f8] sm:$0xff]  ;;  %v16539_v54 = vcombine.low %v691_v42, %v695_v43  ;;  %v16541_v55 = vcombine.low %v692_v44, %v696_v45  ;;  %v755_v42 = vld [vmem:[%s19859_s20 + $0x790] sm:$0xff] }
 0x4a2   : > { %v16550_v57 = vcombine.high %v700_v52, %v704_v53  ;;  %v759_v43 = vld [vmem:[%s19859_s20 + $0x7b0] sm:$0xff]  ;;  %v756_v44 = vld [vmem:[%s19859_s20 + $0x798] sm:$0xff] }
 0x4a3   : > { %v760_v45 = vld [vmem:[%s19859_s20 + $0x7b8] sm:$0xff] }
 0x4a4   : > { %12640 = vmatpush1.bf16.msra.mxu0 %v16483_v60  ;;  %13242 = vmatpush1.bf16.msra.mxu1 %v16485_v61  ;;  %v708_v60 = vld [vmem:[%s19859_s20 + $0x618] sm:$0xff] }
 0x4a5   : > { %12652 = vmatprep.subr.bf16.mxu0 %v16492_v62  ;;  %13254 = vmatprep.subr.bf16.mxu1 %v16494_v63  ;;  %v712_v61 = vld [vmem:[%s19859_s20 + $0x638] sm:$0xff]  ;;  %v16547_v62 = vcombine.low %v699_v50, %v703_v51  ;;  %v16549_v63 = vcombine.low %v700_v52, %v704_v53  ;;  %v763_v50 = vld [vmem:[%s19859_s20 + $0x7d0] sm:$0xff] }
 0x4a6   : > { %v16558_v1 = vcombine.high %v708_v60, %v712_v61  ;;  %v767_v51 = vld [vmem:[%s19859_s20 + $0x7f0] sm:$0xff]  ;;  %v764_v52 = vld [vmem:[%s19859_s20 + $0x7d8] sm:$0xff] }
 0x4a7   : > { %12642 = vmatmul.mubr.bf16.vlgmr.msra.gmra.mrb[4].mxu0 %v18870_v10  ;;  %13244 = vmatmul.mubr.bf16.vlgmr.msra.gmra.mrb[4].mxu1 %v18870_v10  ;;  %v723_v10 = vld [vmem:[%s19859_s20 + $0x690] sm:$0xff]  ;;  %v768_v53 = vld [vmem:[%s19859_s20 + $0x7f8] sm:$0xff] }
 0x4a8   : > { %12653 = vmatpush1.bf16.msra.mxu0 %v16491_v4  ;;  %13255 = vmatpush1.bf16.msra.mxu1 %v16493_v5  ;;  %v716_v4 = vld [vmem:[%s19859_s20 + $0x658] sm:$0xff] }
 0x4a9   : > { %12654 = vmatprep.subr.bf16.mxu0 %v16500_v6  ;;  %13256 = vmatprep.subr.bf16.mxu1 %v16502_v7  ;;  %v720_v5 = vld [vmem:[%s19859_s20 + $0x678] sm:$0xff]  ;;  %v16555_v6 = vcombine.low %v707_v58, %v711_v59  ;;  %v16557_v7 = vcombine.low %v708_v60, %v712_v61  ;;  %v771_v58 = vld [vmem:[%s19859_s20 + $0x810] sm:$0xff] }
 0x4aa   : > { %12684 = vmatprep.mubr.bf16.mxu0 %v18871_v19  ;;  %13286 = vmatprep.mubr.bf16.mxu1 %v18871_v19  ;;  %v16566_v9 = vcombine.high %v716_v4, %v720_v5  ;;  %v735_v19 = vld [vmem:[%s19859_s20 + $0x6f0] sm:$0xff]  ;;  %v772_v60 = vld [vmem:[%s19859_s20 + $0x818] sm:$0xff] }
 0x4ab   : > { %v775_v59 = vld [vmem:[%s19859_s20 + $0x830] sm:$0xff]  ;;  %v776_v61 = vld [vmem:[%s19859_s20 + $0x838] sm:$0xff] }
 0x4ac   : > { %12655 = vmatpush1.bf16.msra.mxu0 %v16499_v13  ;;  %13257 = vmatpush1.bf16.msra.mxu1 %v16501_v14  ;;  %v728_v13 = vld [vmem:[%s19859_s20 + $0x6b8] sm:$0xff]  ;;  %v16563_v14 = vcombine.low %v715_v2, %v719_v3  ;;  %v779_v2 = vld [vmem:[%s19859_s20 + $0x850] sm:$0xff] }
 0x4ad   : > { %12656 = vmatprep.subr.bf16.mxu0 %v16508_v15  ;;  %13258 = vmatprep.subr.bf16.mxu1 %v16510_v16  ;;  %v16565_v15 = vcombine.low %v716_v4, %v720_v5  ;;  %v16572_v16 = vcombine.high %v723_v10, %v727_v11  ;;  %v16574_v17 = vcombine.high %v724_v12, %v728_v13  ;;  %v783_v3 = vld [vmem:[%s19859_s20 + $0x870] sm:$0xff]  ;;  %v780_v4 = vld [vmem:[%s19859_s20 + $0x858] sm:$0xff] }
 0x4ae   : > { %v784_v5 = vld [vmem:[%s19859_s20 + $0x878] sm:$0xff] }
 0x4b0   : > { %12657 = vmatpush1.bf16.msra.mxu0 %v16507_v22  ;;  %13259 = vmatpush1.bf16.msra.mxu1 %v16509_v23  ;;  %v16571_v22 = vcombine.low %v723_v10, %v727_v11  ;;  %v16573_v23 = vcombine.low %v724_v12, %v728_v13  ;;  %v787_v10 = vld [vmem:[%s19859_s20 + $0x890] sm:$0xff]  ;;  %v18872_v12 = vld [vmem:[%s19857_s27 + $0x8] ss:$112 sps:$4 sm:$0xff]  }
 0x4b1   : > { %12658 = vmatprep.subr.bf16.mxu0 %v16516_v24  ;;  %13260 = vmatprep.subr.bf16.mxu1 %v16518_v25  ;;  %v16580_v24 = vcombine.high %v731_v18, %v735_v19  ;;  %v16582_v25 = vcombine.high %v732_v20, %v736_v21  ;;  %v791_v11 = vld [vmem:[%s19859_s20 + $0x8b0] sm:$0xff]  ;;  %v788_v13 = vld [vmem:[%s19859_s20 + $0x898] sm:$0xff] }
 0x4b4   : > { %12659 = vmatpush1.bf16.msra.mxu0 %v16515_v30  ;;  %13261 = vmatpush1.bf16.msra.mxu1 %v16517_v31  ;;  %v16579_v30 = vcombine.low %v731_v18, %v735_v19  ;;  %v16581_v31 = vcombine.low %v732_v20, %v736_v21  ;;  %v795_v19 = vld [vmem:[%s19859_s20 + $0x8d0] sm:$0xff] }
 0x4b5   : > { %12660 = vmatprep.subr.bf16.mxu0 %v16524_v32  ;;  %13262 = vmatprep.subr.bf16.mxu1 %v16526_v33  ;;  %v16588_v32 = vcombine.high %v739_v26, %v743_v27  ;;  %v16590_v33 = vcombine.high %v740_v28, %v744_v29  ;;  %v799_v20 = vld [vmem:[%s19859_s20 + $0x8f0] sm:$0xff] }
 0x4b6   : > { %v18873_v21 = vld [vmem:[%s19857_s27 + $0x14] ss:$112 sps:$4 sm:$0xff]  }
 0x4b8   : > { %12661 = vmatpush1.bf16.msra.mxu0 %v16523_v38  ;;  %13263 = vmatpush1.bf16.msra.mxu1 %v16525_v39  ;;  %v16587_v38 = vcombine.low %v739_v26, %v743_v27  ;;  %v16589_v39 = vcombine.low %v740_v28, %v744_v29  ;;  %v16644_v26 = vcombine.high %v795_v19, %v799_v20  ;;  %v803_v28 = vld [vmem:[%s19859_s20 + $0x910] sm:$0xff] }
 0x4b9   : > { %12662 = vmatprep.subr.bf16.mxu0 %v16532_v40  ;;  %13264 = vmatprep.subr.bf16.mxu1 %v16534_v41  ;;  %v16596_v40 = vcombine.high %v747_v34, %v751_v35  ;;  %v16598_v41 = vcombine.high %v748_v36, %v752_v37  ;;  %v807_v29 = vld [vmem:[%s19859_s20 + $0x930] sm:$0xff] }
 0x4bc   : > { %12663 = vmatpush1.bf16.msra.mxu0 %v16531_v46  ;;  %13265 = vmatpush1.bf16.msra.mxu1 %v16533_v47  ;;  %v16595_v46 = vcombine.low %v747_v34, %v751_v35  ;;  %v16597_v47 = vcombine.low %v748_v36, %v752_v37  ;;  %v16652_v34 = vcombine.high %v803_v28, %v807_v29  ;;  %v811_v36 = vld [vmem:[%s19859_s20 + $0x950] sm:$0xff] }
 0x4bd   : > { %12664 = vmatprep.subr.bf16.mxu0 %v16540_v48  ;;  %13266 = vmatprep.subr.bf16.mxu1 %v16542_v49  ;;  %v16604_v48 = vcombine.high %v755_v42, %v759_v43  ;;  %v16606_v49 = vcombine.high %v756_v44, %v760_v45  ;;  %v815_v37 = vld [vmem:[%s19859_s20 + $0x970] sm:$0xff] }
 0x4c0   : > { %12665 = vmatpush1.bf16.msra.mxu0 %v16539_v54  ;;  %13267 = vmatpush1.bf16.msra.mxu1 %v16541_v55  ;;  %v16603_v54 = vcombine.low %v755_v42, %v759_v43  ;;  %v16605_v55 = vcombine.low %v756_v44, %v760_v45  ;;  %v16660_v42 = vcombine.high %v811_v36, %v815_v37  ;;  %v819_v44 = vld [vmem:[%s19859_s20 + $0x990] sm:$0xff] }
 0x4c1   : > { %12666 = vmatprep.subr.bf16.mxu0 %v16548_v56  ;;  %13268 = vmatprep.subr.bf16.mxu1 %v16550_v57  ;;  %v16612_v56 = vcombine.high %v763_v50, %v767_v51  ;;  %v16614_v57 = vcombine.high %v764_v52, %v768_v53  ;;  %v823_v45 = vld [vmem:[%s19859_s20 + $0x9b0] sm:$0xff] }
 0x4c4   : > { %12667 = vmatpush1.bf16.msra.mxu0 %v16547_v62  ;;  %13269 = vmatpush1.bf16.msra.mxu1 %v16549_v63  ;;  %v16611_v62 = vcombine.low %v763_v50, %v767_v51  ;;  %v16613_v63 = vcombine.low %v764_v52, %v768_v53  ;;  %v16668_v50 = vcombine.high %v819_v44, %v823_v45  ;;  %v827_v52 = vld [vmem:[%s19859_s20 + $0x9d0] sm:$0xff] }
 0x4c5   : > { %12668 = vmatprep.subr.bf16.mxu0 %v16556_v0  ;;  %13270 = vmatprep.subr.bf16.mxu1 %v16558_v1  ;;  %v16620_v0 = vcombine.high %v771_v58, %v775_v59  ;;  %v16622_v1 = vcombine.high %v772_v60, %v776_v61  ;;  %v831_v53 = vld [vmem:[%s19859_s20 + $0x9f0] sm:$0xff] }
 0x4c8   : > { %12669 = vmatpush1.bf16.msra.mxu0 %v16555_v6  ;;  %13271 = vmatpush1.bf16.msra.mxu1 %v16557_v7  ;;  %v16619_v6 = vcombine.low %v771_v58, %v775_v59  ;;  %v16621_v7 = vcombine.low %v772_v60, %v776_v61  ;;  %v16676_v58 = vcombine.high %v827_v52, %v831_v53  ;;  %v835_v60 = vld [vmem:[%s19859_s20 + $0xa10] sm:$0xff] }
 0x4c9   : > { %12670 = vmatprep.subr.bf16.mxu0 %v16564_v8  ;;  %13272 = vmatprep.subr.bf16.mxu1 %v16566_v9  ;;  %v16628_v8 = vcombine.high %v779_v2, %v783_v3  ;;  %v16630_v9 = vcombine.high %v780_v4, %v784_v5  ;;  %v839_v61 = vld [vmem:[%s19859_s20 + $0xa30] sm:$0xff] }
 0x4cc   : > { %12671 = vmatpush1.bf16.msra.mxu0 %v16563_v14  ;;  %13273 = vmatpush1.bf16.msra.mxu1 %v16565_v15  ;;  %v792_v14 = vld [vmem:[%s19859_s20 + $0x8b8] sm:$0xff]  ;;  %v16627_v15 = vcombine.low %v779_v2, %v783_v3  ;;  %v16684_v2 = vcombine.high %v835_v60, %v839_v61 }
 0x4cd   : > { %12672 = vmatprep.subr.bf16.mxu0 %v16572_v16  ;;  %13274 = vmatprep.subr.bf16.mxu1 %v16574_v17  ;;  %v16629_v16 = vcombine.low %v780_v4, %v784_v5  ;;  %v16636_v17 = vcombine.high %v787_v10, %v791_v11  ;;  %v16638_v18 = vcombine.high %v788_v13, %v792_v14  ;;  %v843_v4 = vld [vmem:[%s19859_s20 + $0xa50] sm:$0xff] }
 0x4ce   : > { %v847_v5 = vld [vmem:[%s19859_s20 + $0xa70] sm:$0xff] }
 0x4d0   : > { %12673 = vmatpush1.bf16.msra.mxu0 %v16571_v22  ;;  %13275 = vmatpush1.bf16.msra.mxu1 %v16573_v23  ;;  %v796_v22 = vld [vmem:[%s19859_s20 + $0x8d8] sm:$0xff] }
 0x4d1   : > { %12674 = vmatprep.subr.bf16.mxu0 %v16580_v24  ;;  %13276 = vmatprep.subr.bf16.mxu1 %v16582_v25  ;;  %v800_v23 = vld [vmem:[%s19859_s20 + $0x8f8] sm:$0xff]  ;;  %v16635_v24 = vcombine.low %v787_v10, %v791_v11  ;;  %v16637_v25 = vcombine.low %v788_v13, %v792_v14  ;;  %v16692_v10 = vcombine.high %v843_v4, %v847_v5  ;;  %v855_v13 = vld [vmem:[%s19859_s20 + $0xab0] sm:$0xff] }
 0x4d2   : > { %v16646_v27 = vcombine.high %v796_v22, %v800_v23  ;;  %v852_v14 = vld [vmem:[%s19859_s20 + $0xa98] sm:$0xff] }
 0x4d4   : > { %12675 = vmatpush1.bf16.msra.mxu0 %v16579_v30  ;;  %13277 = vmatpush1.bf16.msra.mxu1 %v16581_v31  ;;  %v804_v30 = vld [vmem:[%s19859_s20 + $0x918] sm:$0xff] }
 0x4d5   : > { %12676 = vmatprep.subr.bf16.mxu0 %v16588_v32  ;;  %13278 = vmatprep.subr.bf16.mxu1 %v16590_v33  ;;  %v808_v31 = vld [vmem:[%s19859_s20 + $0x938] sm:$0xff]  ;;  %v16643_v32 = vcombine.low %v795_v19, %v799_v20  ;;  %v16645_v33 = vcombine.low %v796_v22, %v800_v23  ;;  %v859_v20 = vld [vmem:[%s19859_s20 + $0xad0] sm:$0xff] }
 0x4d6   : > { %v16654_v35 = vcombine.high %v804_v30, %v808_v31  ;;  %v860_v22 = vld [vmem:[%s19859_s20 + $0xad8] sm:$0xff] }
 0x4d7   : > { %v864_v23 = vld [vmem:[%s19859_s20 + $0xaf8] sm:$0xff] }
 0x4d8   : > { %12677 = vmatpush1.bf16.msra.mxu0 %v16587_v38  ;;  %13279 = vmatpush1.bf16.msra.mxu1 %v16589_v39  ;;  %v812_v38 = vld [vmem:[%s19859_s20 + $0x958] sm:$0xff] }
 0x4d9   : > { %12678 = vmatprep.subr.bf16.mxu0 %v16596_v40  ;;  %13280 = vmatprep.subr.bf16.mxu1 %v16598_v41  ;;  %v816_v39 = vld [vmem:[%s19859_s20 + $0x978] sm:$0xff]  ;;  %v16651_v40 = vcombine.low %v803_v28, %v807_v29  ;;  %v16653_v41 = vcombine.low %v804_v30, %v808_v31  ;;  %v867_v28 = vld [vmem:[%s19859_s20 + $0xb10] sm:$0xff] }
 0x4da   : > { %v16662_v43 = vcombine.high %v812_v38, %v816_v39  ;;  %v871_v29 = vld [vmem:[%s19859_s20 + $0xb30] sm:$0xff]  ;;  %v868_v30 = vld [vmem:[%s19859_s20 + $0xb18] sm:$0xff] }
 0x4db   : > { %v872_v31 = vld [vmem:[%s19859_s20 + $0xb38] sm:$0xff] }
 0x4dc   : > { %12679 = vmatpush1.bf16.msra.mxu0 %v16595_v46  ;;  %13281 = vmatpush1.bf16.msra.mxu1 %v16597_v47  ;;  %v820_v46 = vld [vmem:[%s19859_s20 + $0x998] sm:$0xff] }
 0x4dd   : > { %12680 = vmatprep.subr.bf16.mxu0 %v16604_v48  ;;  %13282 = vmatprep.subr.bf16.mxu1 %v16606_v49  ;;  %v824_v47 = vld [vmem:[%s19859_s20 + $0x9b8] sm:$0xff]  ;;  %v16659_v48 = vcombine.low %v811_v36, %v815_v37  ;;  %v16661_v49 = vcombine.low %v812_v38, %v816_v39  ;;  %v875_v36 = vld [vmem:[%s19859_s20 + $0xb50] sm:$0xff] }
 0x4de   : > { %v16670_v51 = vcombine.high %v820_v46, %v824_v47  ;;  %v879_v37 = vld [vmem:[%s19859_s20 + $0xb70] sm:$0xff]  ;;  %v876_v38 = vld [vmem:[%s19859_s20 + $0xb58] sm:$0xff] }
 0x4df   : > { %v880_v39 = vld [vmem:[%s19859_s20 + $0xb78] sm:$0xff] }
 0x4e0   : > { %12681 = vmatpush1.bf16.msra.mxu0 %v16603_v54  ;;  %13283 = vmatpush1.bf16.msra.mxu1 %v16605_v55  ;;  %v828_v54 = vld [vmem:[%s19859_s20 + $0x9d8] sm:$0xff] }
 0x4e1   : > { %12682 = vmatprep.subr.bf16.mxu0 %v16612_v56  ;;  %13284 = vmatprep.subr.bf16.mxu1 %v16614_v57  ;;  %v832_v55 = vld [vmem:[%s19859_s20 + $0x9f8] sm:$0xff]  ;;  %v16667_v56 = vcombine.low %v819_v44, %v823_v45  ;;  %v16669_v57 = vcombine.low %v820_v46, %v824_v47  ;;  %v883_v44 = vld [vmem:[%s19859_s20 + $0xb90] sm:$0xff] }
 0x4e2   : > { %v16678_v59 = vcombine.high %v828_v54, %v832_v55  ;;  %v887_v45 = vld [vmem:[%s19859_s20 + $0xbb0] sm:$0xff]  ;;  %v884_v46 = vld [vmem:[%s19859_s20 + $0xb98] sm:$0xff] }
 0x4e3   : > { %v888_v47 = vld [vmem:[%s19859_s20 + $0xbb8] sm:$0xff] }
 0x4e4   : > { %12683 = vmatpush1.bf16.msra.mxu0 %v16611_v62  ;;  %13285 = vmatpush1.bf16.msra.mxu1 %v16613_v63  ;;  %v836_v62 = vld [vmem:[%s19859_s20 + $0xa18] sm:$0xff] }
 0x4e5   : > { %12695 = vmatprep.subr.bf16.mxu0 %v16620_v0  ;;  %13297 = vmatprep.subr.bf16.mxu1 %v16622_v1  ;;  %v840_v63 = vld [vmem:[%s19859_s20 + $0xa38] sm:$0xff]  ;;  %v16675_v0 = vcombine.low %v827_v52, %v831_v53  ;;  %v16677_v1 = vcombine.low %v828_v54, %v832_v55  ;;  %v891_v52 = vld [vmem:[%s19859_s20 + $0xbd0] sm:$0xff] }
 0x4e6   : > { %v16686_v3 = vcombine.high %v836_v62, %v840_v63  ;;  %v895_v53 = vld [vmem:[%s19859_s20 + $0xbf0] sm:$0xff]  ;;  %v892_v54 = vld [vmem:[%s19859_s20 + $0xbd8] sm:$0xff] }
 0x4e7   : > { %12685 = vmatmul.mubr.bf16.vlgmr.msra.gmra.mrb[4].mxu0 %v18872_v12  ;;  %13287 = vmatmul.mubr.bf16.vlgmr.msra.gmra.mrb[4].mxu1 %v18872_v12  ;;  %v851_v12 = vld [vmem:[%s19859_s20 + $0xa90] sm:$0xff]  ;;  %v896_v55 = vld [vmem:[%s19859_s20 + $0xbf8] sm:$0xff] }
 0x4e8   : > { %12696 = vmatpush1.bf16.msra.mxu0 %v16619_v6  ;;  %13298 = vmatpush1.bf16.msra.mxu1 %v16621_v7  ;;  %v844_v6 = vld [vmem:[%s19859_s20 + $0xa58] sm:$0xff] }
 0x4e9   : > { %12697 = vmatprep.subr.bf16.mxu0 %v16628_v8  ;;  %13299 = vmatprep.subr.bf16.mxu1 %v16630_v9  ;;  %v848_v7 = vld [vmem:[%s19859_s20 + $0xa78] sm:$0xff]  ;;  %v16683_v8 = vcombine.low %v835_v60, %v839_v61  ;;  %v16685_v9 = vcombine.low %v836_v62, %v840_v63  ;;  %v899_v60 = vld [vmem:[%s19859_s20 + $0xc10] sm:$0xff] }
 0x4ea   : > { %12727 = vmatprep.mubr.bf16.mxu0 %v18873_v21  ;;  %13329 = vmatprep.mubr.bf16.mxu1 %v18873_v21  ;;  %v16694_v11 = vcombine.high %v844_v6, %v848_v7  ;;  %v863_v21 = vld [vmem:[%s19859_s20 + $0xaf0] sm:$0xff]  ;;  %v900_v62 = vld [vmem:[%s19859_s20 + $0xc18] sm:$0xff] }
 0x4eb   : > { %v903_v61 = vld [vmem:[%s19859_s20 + $0xc30] sm:$0xff]  ;;  %v904_v63 = vld [vmem:[%s19859_s20 + $0xc38] sm:$0xff] }
 0x4ec   : > { %12698 = vmatpush1.bf16.msra.mxu0 %v16627_v15  ;;  %13300 = vmatpush1.bf16.msra.mxu1 %v16629_v16  ;;  %v856_v15 = vld [vmem:[%s19859_s20 + $0xab8] sm:$0xff]  ;;  %v16691_v16 = vcombine.low %v843_v4, %v847_v5  ;;  %v907_v4 = vld [vmem:[%s19859_s20 + $0xc50] sm:$0xff] }
 0x4ed   : > { %12699 = vmatprep.subr.bf16.mxu0 %v16636_v17  ;;  %13301 = vmatprep.subr.bf16.mxu1 %v16638_v18  ;;  %v16693_v17 = vcombine.low %v844_v6, %v848_v7  ;;  %v16700_v18 = vcombine.high %v851_v12, %v855_v13  ;;  %v16702_v19 = vcombine.high %v852_v14, %v856_v15  ;;  %v911_v5 = vld [vmem:[%s19859_s20 + $0xc70] sm:$0xff]  ;;  %v908_v6 = vld [vmem:[%s19859_s20 + $0xc58] sm:$0xff] }
 0x4ee   : > { %v912_v7 = vld [vmem:[%s19859_s20 + $0xc78] sm:$0xff] }
 0x4f0   : > { %12700 = vmatpush1.bf16.msra.mxu0 %v16635_v24  ;;  %13302 = vmatpush1.bf16.msra.mxu1 %v16637_v25  ;;  %v16699_v24 = vcombine.low %v851_v12, %v855_v13  ;;  %v16701_v25 = vcombine.low %v852_v14, %v856_v15  ;;  %v915_v12 = vld [vmem:[%s19859_s20 + $0xc90] sm:$0xff]  ;;  %v916_v15 = vld [vmem:[%s19859_s20 + $0xc98] sm:$0xff] }
 0x4f1   : > { %12701 = vmatprep.subr.bf16.mxu0 %v16644_v26  ;;  %13303 = vmatprep.subr.bf16.mxu1 %v16646_v27  ;;  %v16708_v26 = vcombine.high %v859_v20, %v863_v21  ;;  %v16710_v27 = vcombine.high %v860_v22, %v864_v23  ;;  %v919_v13 = vld [vmem:[%s19859_s20 + $0xcb0] sm:$0xff] }
 0x4f2   : > { %v18874_v14 = vld [vmem:[%s19857_s27 + $0x10] ss:$112 sps:$4 sm:$0xff]  }
 0x4f4   : > { %12702 = vmatpush1.bf16.msra.mxu0 %v16643_v32  ;;  %13304 = vmatpush1.bf16.msra.mxu1 %v16645_v33  ;;  %v16707_v32 = vcombine.low %v859_v20, %v863_v21  ;;  %v16709_v33 = vcombine.low %v860_v22, %v864_v23  ;;  %v923_v21 = vld [vmem:[%s19859_s20 + $0xcd0] sm:$0xff]  ;;  %v18875_v23 = vld [vmem:[%s19857_s27 + $0x1c] ss:$112 sps:$4 sm:$0xff]  }
 0x4f5   : > { %12703 = vmatprep.subr.bf16.mxu0 %v16652_v34  ;;  %13305 = vmatprep.subr.bf16.mxu1 %v16654_v35  ;;  %v16716_v34 = vcombine.high %v867_v28, %v871_v29  ;;  %v16718_v35 = vcombine.high %v868_v30, %v872_v31  ;;  %v927_v22 = vld [vmem:[%s19859_s20 + $0xcf0] sm:$0xff] }
 0x4f8   : > { %12704 = vmatpush1.bf16.msra.mxu0 %v16651_v40  ;;  %13306 = vmatpush1.bf16.msra.mxu1 %v16653_v41  ;;  %v16715_v40 = vcombine.low %v867_v28, %v871_v29  ;;  %v16717_v41 = vcombine.low %v868_v30, %v872_v31  ;;  %v16772_v28 = vcombine.high %v923_v21, %v927_v22  ;;  %v931_v30 = vld [vmem:[%s19859_s20 + $0xd10] sm:$0xff] }
 0x4f9   : > { %12705 = vmatprep.subr.bf16.mxu0 %v16660_v42  ;;  %13307 = vmatprep.subr.bf16.mxu1 %v16662_v43  ;;  %v16724_v42 = vcombine.high %v875_v36, %v879_v37  ;;  %v16726_v43 = vcombine.high %v876_v38, %v880_v39  ;;  %v935_v31 = vld [vmem:[%s19859_s20 + $0xd30] sm:$0xff] }
 0x4fc   : > { %12706 = vmatpush1.bf16.msra.mxu0 %v16659_v48  ;;  %13308 = vmatpush1.bf16.msra.mxu1 %v16661_v49  ;;  %v16723_v48 = vcombine.low %v875_v36, %v879_v37  ;;  %v16725_v49 = vcombine.low %v876_v38, %v880_v39  ;;  %v16780_v36 = vcombine.high %v931_v30, %v935_v31  ;;  %v939_v38 = vld [vmem:[%s19859_s20 + $0xd50] sm:$0xff] }
 0x4fd   : > { %12707 = vmatprep.subr.bf16.mxu0 %v16668_v50  ;;  %13309 = vmatprep.subr.bf16.mxu1 %v16670_v51  ;;  %v16732_v50 = vcombine.high %v883_v44, %v887_v45  ;;  %v16734_v51 = vcombine.high %v884_v46, %v888_v47  ;;  %v943_v39 = vld [vmem:[%s19859_s20 + $0xd70] sm:$0xff] }
 0x500   : > { %12708 = vmatpush1.bf16.msra.mxu0 %v16667_v56  ;;  %13310 = vmatpush1.bf16.msra.mxu1 %v16669_v57  ;;  %v16731_v56 = vcombine.low %v883_v44, %v887_v45  ;;  %v16733_v57 = vcombine.low %v884_v46, %v888_v47  ;;  %v16788_v44 = vcombine.high %v939_v38, %v943_v39  ;;  %v947_v46 = vld [vmem:[%s19859_s20 + $0xd90] sm:$0xff] }
 0x501   : > { %12709 = vmatprep.subr.bf16.mxu0 %v16676_v58  ;;  %13311 = vmatprep.subr.bf16.mxu1 %v16678_v59  ;;  %v16740_v58 = vcombine.high %v891_v52, %v895_v53  ;;  %v16742_v59 = vcombine.high %v892_v54, %v896_v55  ;;  %v951_v47 = vld [vmem:[%s19859_s20 + $0xdb0] sm:$0xff] }
 0x504   : > { %12710 = vmatpush1.bf16.msra.mxu0 %v16675_v0  ;;  %13312 = vmatpush1.bf16.msra.mxu1 %v16677_v1  ;;  %v16739_v0 = vcombine.low %v891_v52, %v895_v53  ;;  %v16741_v1 = vcombine.low %v892_v54, %v896_v55  ;;  %v16787_v52 = vcombine.low %v939_v38, %v943_v39  ;;  %v470_v53 = vld [vmem:[#allocation2 + $0x8] sm:$0xff]  ;;  %v472_v54 = vld [vmem:[#allocation2 + $0x18] sm:$0xff]  ;;  %v979_v38 = vld [vmem:[%s19859_s20 + $0xe90] sm:$0xff] }
 0x505   : > { %12711 = vmatprep.subr.bf16.mxu0 %v16684_v2  ;;  %13313 = vmatprep.subr.bf16.mxu1 %v16686_v3  ;;  %v16748_v2 = vcombine.high %v899_v60, %v903_v61  ;;  %v16750_v3 = vcombine.high %v900_v62, %v904_v63  ;;  %v983_v39 = vld [vmem:[%s19859_s20 + $0xeb0] sm:$0xff] }
 0x508   : > { %12712 = vmatpush1.bf16.msra.mxu0 %v16683_v8  ;;  %13314 = vmatpush1.bf16.msra.mxu1 %v16685_v9  ;;  %v16747_v8 = vcombine.low %v899_v60, %v903_v61  ;;  %v16749_v9 = vcombine.low %v900_v62, %v904_v63  ;;  %v955_v61 = vld [vmem:[%s19859_s20 + $0xdd0] sm:$0xff] }
 0x509   : > { %12713 = vmatprep.subr.bf16.mxu0 %v16692_v10  ;;  %13315 = vmatprep.subr.bf16.mxu1 %v16694_v11  ;;  %v16756_v10 = vcombine.high %v907_v4, %v911_v5  ;;  %v16758_v11 = vcombine.high %v908_v6, %v912_v7  ;;  %v959_v62 = vld [vmem:[%s19859_s20 + $0xdf0] sm:$0xff] }
 0x50c   : > { %12714 = vmatpush1.bf16.msra.mxu0 %v16691_v16  ;;  %13316 = vmatpush1.bf16.msra.mxu1 %v16693_v17  ;;  %v920_v16 = vld [vmem:[%s19859_s20 + $0xcb8] sm:$0xff]  ;;  %v16755_v17 = vcombine.low %v907_v4, %v911_v5 }
 0x50d   : > { %12715 = vmatprep.subr.bf16.mxu0 %v16700_v18  ;;  %13317 = vmatprep.subr.bf16.mxu1 %v16702_v19  ;;  %v16757_v18 = vcombine.low %v908_v6, %v912_v7  ;;  %v16764_v19 = vcombine.high %v915_v12, %v919_v13  ;;  %v16766_v20 = vcombine.high %v916_v15, %v920_v16  ;;  %v960_v4 = vld [vmem:[%s19859_s20 + $0xdf8] sm:$0xff] }
 0x510   : > { %12716 = vmatpush1.bf16.msra.mxu0 %v16699_v24  ;;  %13318 = vmatpush1.bf16.msra.mxu1 %v16701_v25  ;;  %v924_v24 = vld [vmem:[%s19859_s20 + $0xcd8] sm:$0xff] }
 0x511   : > { %12717 = vmatprep.subr.bf16.mxu0 %v16708_v26  ;;  %13319 = vmatprep.subr.bf16.mxu1 %v16710_v27  ;;  %v928_v25 = vld [vmem:[%s19859_s20 + $0xcf8] sm:$0xff]  ;;  %v16763_v26 = vcombine.low %v915_v12, %v919_v13  ;;  %v16765_v27 = vcombine.low %v916_v15, %v920_v16  ;;  %v16804_v16 = vcombine.high %v955_v61, %v959_v62 }
 0x512   : > { %v16774_v29 = vcombine.high %v924_v24, %v928_v25 }
 0x514   : > { %12718 = vmatpush1.bf16.msra.mxu0 %v16707_v32  ;;  %13320 = vmatpush1.bf16.msra.mxu1 %v16709_v33  ;;  %v932_v32 = vld [vmem:[%s19859_s20 + $0xd18] sm:$0xff] }
 0x515   : > { %12719 = vmatprep.subr.bf16.mxu0 %v16716_v34  ;;  %13321 = vmatprep.subr.bf16.mxu1 %v16718_v35  ;;  %v936_v33 = vld [vmem:[%s19859_s20 + $0xd38] sm:$0xff]  ;;  %v16771_v34 = vcombine.low %v923_v21, %v927_v22  ;;  %v16773_v35 = vcombine.low %v924_v24, %v928_v25  ;;  %v963_v21 = vld [vmem:[%s19859_s20 + $0xe10] sm:$0xff] }
 0x516   : > { %v16782_v37 = vcombine.high %v932_v32, %v936_v33  ;;  %v967_v22 = vld [vmem:[%s19859_s20 + $0xe30] sm:$0xff]  ;;  %v964_v24 = vld [vmem:[%s19859_s20 + $0xe18] sm:$0xff] }
 0x517   : > { %v968_v25 = vld [vmem:[%s19859_s20 + $0xe38] sm:$0xff] }
 0x518   : > { %12720 = vmatpush1.bf16.msra.mxu0 %v16715_v40  ;;  %13322 = vmatpush1.bf16.msra.mxu1 %v16717_v41  ;;  %v940_v40 = vld [vmem:[%s19859_s20 + $0xd58] sm:$0xff] }
 0x519   : > { %12721 = vmatprep.subr.bf16.mxu0 %v16724_v42  ;;  %13323 = vmatprep.subr.bf16.mxu1 %v16726_v43  ;;  %v944_v41 = vld [vmem:[%s19859_s20 + $0xd78] sm:$0xff]  ;;  %v16779_v42 = vcombine.low %v931_v30, %v935_v31  ;;  %v16781_v43 = vcombine.low %v932_v32, %v936_v33  ;;  %v971_v30 = vld [vmem:[%s19859_s20 + $0xe50] sm:$0xff] }
 0x51a   : > { %v16790_v45 = vcombine.high %v940_v40, %v944_v41  ;;  %v16789_v55 = vcombine.low %v940_v40, %v944_v41  ;;  %v975_v31 = vld [vmem:[%s19859_s20 + $0xe70] sm:$0xff]  ;;  %v972_v32 = vld [vmem:[%s19859_s20 + $0xe58] sm:$0xff] }
 0x51b   : > { %v976_v33 = vld [vmem:[%s19859_s20 + $0xe78] sm:$0xff] }
 0x51c   : > { %12722 = vmatpush1.bf16.msra.mxu0 %v16723_v48  ;;  %13324 = vmatpush1.bf16.msra.mxu1 %v16725_v49  ;;  %v948_v48 = vld [vmem:[%s19859_s20 + $0xd98] sm:$0xff] }
 0x51d   : > { %12723 = vmatprep.subr.bf16.mxu0 %v16732_v50  ;;  %13325 = vmatprep.subr.bf16.mxu1 %v16734_v51  ;;  %v952_v49 = vld [vmem:[%s19859_s20 + $0xdb8] sm:$0xff]  ;;  %v469_v50 = vld [vmem:[#allocation2] sm:$0xff]  ;;  %v471_v51 = vld [vmem:[#allocation2 + $0x10] sm:$0xff] }
 0x51e   : > { %v16798_v60 = vcombine.high %v948_v48, %v952_v49  ;;  %v980_v40 = vld [vmem:[%s19859_s20 + $0xe98] sm:$0xff] }
 0x51f   : > { %v984_v41 = vld [vmem:[%s19859_s20 + $0xeb8] sm:$0xff] }
 0x520   : > { %12724 = vmatpush1.bf16.msra.mxu0 %v16731_v56  ;;  %13326 = vmatpush1.bf16.msra.mxu1 %v16733_v57  ;;  %v477_v56 = vld [vmem:[#allocation2 + $0x40] sm:$0xff]  ;;  %v16796_v57 = vcombine.high %v947_v46, %v951_v47 }
 0x521   : > { %12725 = vmatprep.subr.bf16.mxu0 %v16740_v58  ;;  %13327 = vmatprep.subr.bf16.mxu1 %v16742_v59  ;;  %v479_v59 = vld [vmem:[#allocation2 + $0x50] sm:$0xff] }
 0x524   : > { %12726 = vmatpush1.bf16.msra.mxu0 %v16739_v0  ;;  %13328 = vmatpush1.bf16.msra.mxu1 %v16741_v1 }
 0x525   : > { %12738 = vmatprep.subr.bf16.mxu0 %v16748_v2  ;;  %13340 = vmatprep.subr.bf16.mxu1 %v16750_v3  ;;  %v478_v2 = vld [vmem:[#allocation2 + $0x48] sm:$0xff]  ;;  %v956_v3 = vld [vmem:[%s19859_s20 + $0xdd8] sm:$0xff] }
 0x527   : > { %12728 = vmatmul.mubr.bf16.vlgmr.msra.gmra.mrb[4].mxu0 %v18874_v14  ;;  %13330 = vmatmul.mubr.bf16.vlgmr.msra.gmra.mrb[4].mxu1 %v18874_v14 }
 0x528   : > { %12739 = vmatpush1.bf16.msra.mxu0 %v16747_v8  ;;  %13341 = vmatpush1.bf16.msra.mxu1 %v16749_v9  ;;  %v480_v9 = vld [vmem:[#allocation2 + $0x58] sm:$0xff] }
 0x529   : > { %12740 = vmatprep.subr.bf16.mxu0 %v16756_v10  ;;  %13342 = vmatprep.subr.bf16.mxu1 %v16758_v11  ;;  %v16795_v10 = vcombine.low %v947_v46, %v951_v47  ;;  %v16797_v11 = vcombine.low %v948_v48, %v952_v49  ;;  %v987_v46 = vld [vmem:[%s19859_s20 + $0xed0] sm:$0xff]  ;;  %v988_v48 = vld [vmem:[%s19859_s20 + $0xed8] sm:$0xff] }
 0x52a   : > { %12770 = vmatprep.mubr.bf16.mxu0 %v18875_v23  ;;  %13372 = vmatprep.mubr.bf16.mxu1 %v18875_v23  ;;  %v991_v47 = vld [vmem:[%s19859_s20 + $0xef0] sm:$0xff]  ;;  %v992_v49 = vld [vmem:[%s19859_s20 + $0xef8] sm:$0xff] }
 0x52c   : > { %12741 = vmatpush1.bf16.msra.mxu0 %v16755_v17  ;;  %13343 = vmatpush1.bf16.msra.mxu1 %v16757_v18 }
 0x52d   : > { %12742 = vmatprep.subr.bf16.mxu0 %v16764_v19  ;;  %13344 = vmatprep.subr.bf16.mxu1 %v16766_v20  ;;  %v16806_v20 = vcombine.high %v956_v3, %v960_v4 }
 0x530   : > { %12743 = vmatpush1.bf16.msra.mxu0 %v16763_v26  ;;  %13345 = vmatpush1.bf16.msra.mxu1 %v16765_v27  ;;  %v16803_v26 = vcombine.low %v955_v61, %v959_v62  ;;  %v16805_v27 = vcombine.low %v956_v3, %v960_v4  ;;  %v1003_v62 = vld [vmem:[%s19859_s20 + $0xf50] sm:$0xff] }
 0x531   : > { %12744 = vmatprep.subr.bf16.mxu0 %v16772_v28  ;;  %13346 = vmatprep.subr.bf16.mxu1 %v16774_v29  ;;  %v16812_v28 = vcombine.high %v963_v21, %v967_v22  ;;  %v16814_v29 = vcombine.high %v964_v24, %v968_v25 }
 0x534   : > { %12745 = vmatpush1.bf16.msra.mxu0 %v16771_v34  ;;  %13347 = vmatpush1.bf16.msra.mxu1 %v16773_v35  ;;  %v16811_v34 = vcombine.low %v963_v21, %v967_v22  ;;  %v16813_v35 = vcombine.low %v964_v24, %v968_v25  ;;  %v1027_v22 = vld [vmem:[%s19859_s20 + $0x1010] sm:$0xff]  ;;  %v1028_v24 = vld [vmem:[%s19859_s20 + $0x1018] sm:$0xff] }
 0x535   : > { %12746 = vmatprep.subr.bf16.mxu0 %v16780_v36  ;;  %13348 = vmatprep.subr.bf16.mxu1 %v16782_v37  ;;  %v16820_v36 = vcombine.high %v971_v30, %v975_v31  ;;  %v16822_v37 = vcombine.high %v972_v32, %v976_v33  ;;  %v1032_v25 = vld [vmem:[%s19859_s20 + $0x1038] sm:$0xff] }
 0x538   : > { %12747 = vmatpush1.bf16.msra.mxu0 %v16779_v42  ;;  %13349 = vmatpush1.bf16.msra.mxu1 %v16781_v43  ;;  %v16819_v42 = vcombine.low %v971_v30, %v975_v31  ;;  %v16821_v43 = vcombine.low %v972_v32, %v976_v33  ;;  %v1035_v30 = vld [vmem:[%s19859_s20 + $0x1050] sm:$0xff]  ;;  %v1036_v32 = vld [vmem:[%s19859_s20 + $0x1058] sm:$0xff] }
 0x539   : > { %12748 = vmatprep.subr.bf16.mxu0 %v16788_v44  ;;  %13350 = vmatprep.subr.bf16.mxu1 %v16790_v45  ;;  %v16828_v44 = vcombine.high %v979_v38, %v983_v39  ;;  %v16830_v45 = vcombine.high %v980_v40, %v984_v41  ;;  %v1039_v31 = vld [vmem:[%s19859_s20 + $0x1070] sm:$0xff]  ;;  %v1040_v33 = vld [vmem:[%s19859_s20 + $0x1078] sm:$0xff] }
 0x53a   : > { %v11998_v58 = vpop.f32.mrb[0].mxu0  ;;  %v12600_v0 = vpop.f32.mrb[0].mxu1 }
 0x53b   : > { %v13813_v63 = vadd.f32 %v11998_v58, %v469_v50  ;;  %v12000_v1 = vpop.f32.mrb[1].mxu0  ;;  %v13815_v5 = vadd.f32 %v12600_v0, %v471_v51  ;;  %v12602_v7 = vpop.f32.mrb[1].mxu1  ;;  %v16827_v50 = vcombine.low %v979_v38, %v983_v39  ;;  %v16829_v51 = vcombine.low %v980_v40, %v984_v41  ;;  %v1004_v0 = vld [vmem:[%s19859_s20 + $0xf58] sm:$0xff]  ;;  %v1043_v38 = vld [vmem:[%s19859_s20 + $0x1090] sm:$0xff] }
 0x53c   : > { %v13814_v6 = vadd.f32 %v12000_v1, %v470_v53  ;;  %v12002_v8 = vpop.f32.mrb[2].mxu0  ;;  %12749 = vmatpush1.bf16.msra.mxu0 %v16787_v52  ;;  %v13816_v12 = vadd.f32 %v12602_v7, %v472_v54  ;;  %v12604_v14 = vpop.f32.mrb[2].mxu1  ;;  %13351 = vmatpush1.bf16.msra.mxu1 %v16789_v55  ;;  %v16836_v52 = vcombine.high %v987_v46, %v991_v47  ;;  %v995_v54 = vld [vmem:[%s19859_s20 + $0xf10] sm:$0xff]  ;;  %v1008_v1 = vld [vmem:[%s19859_s20 + $0xf78] sm:$0xff] }
 0x53d   : > { %13829 = vst [vmem:[#allocation2] sm:$0xff] %v13813_v63  ;;  %v13821_v13 = vadd.f32 %v12002_v8, %v477_v56  ;;  %v12004_v15 = vpop.f32.mrb[3].mxu0  ;;  %12750 = vmatprep.subr.bf16.mxu0 %v16796_v57  ;;  %13831 = vst [vmem:[#allocation2 + $0x10] sm:$0xff] %v13815_v5  ;;  %v13823_v17 = vadd.f32 %v12604_v14, %v479_v59  ;;  %v12606_v19 = vpop.f32.mrb[3].mxu1  ;;  %13352 = vmatprep.subr.bf16.mxu1 %v16798_v60  ;;  %v999_v55 = vld [vmem:[%s19859_s20 + $0xf30] sm:$0xff]  ;;  %v996_v56 = vld [vmem:[%s19859_s20 + $0xf18] sm:$0xff] }
 0x53e   : > { %13830 = vst [vmem:[#allocation2 + $0x8] sm:$0xff] %v13814_v6  ;;  %v13822_v18 = vadd.f32 %v12004_v15, %v478_v2  ;;  %13832 = vst [vmem:[#allocation2 + $0x18] sm:$0xff] %v13816_v12  ;;  %v13824_v23 = vadd.f32 %v12606_v19, %v480_v9  ;;  %v16838_v53 = vcombine.high %v988_v48, %v992_v49  ;;  %v1000_v57 = vld [vmem:[%s19859_s20 + $0xf38] sm:$0xff]  ;;  %v1007_v63 = vld [vmem:[%s19859_s20 + $0xf70] sm:$0xff] }
 0x53f   : > { %13837 = vst [vmem:[#allocation2 + $0x40] sm:$0xff] %v13821_v13  ;;  %13839 = vst [vmem:[#allocation2 + $0x50] sm:$0xff] %v13823_v17  ;;  %v16835_v58 = vcombine.low %v987_v46, %v991_v47  ;;  %v16837_v59 = vcombine.low %v988_v48, %v992_v49  ;;  %v16844_v60 = vcombine.high %v995_v54, %v999_v55  ;;  %v1011_v6 = vld [vmem:[%s19859_s20 + $0xf90] sm:$0xff]  ;;  %v1012_v8 = vld [vmem:[%s19859_s20 + $0xf98] sm:$0xff] }
 0x540   : > { %13838 = vst [vmem:[#allocation2 + $0x48] sm:$0xff] %v13822_v18  ;;  %12751 = vmatpush1.bf16.msra.mxu0 %v16795_v10  ;;  %13840 = vst [vmem:[#allocation2 + $0x58] sm:$0xff] %v13824_v23  ;;  %13353 = vmatpush1.bf16.msra.mxu1 %v16797_v11  ;;  %v16846_v61 = vcombine.high %v996_v56, %v1000_v57  ;;  %v16843_v2 = vcombine.low %v995_v54, %v999_v55  ;;  %v1015_v7 = vld [vmem:[%s19859_s20 + $0xfb0] sm:$0xff]  ;;  %v1016_v9 = vld [vmem:[%s19859_s20 + $0xfb8] sm:$0xff] }
 0x541   : > { %12752 = vmatprep.subr.bf16.mxu0 %v16804_v16  ;;  %13354 = vmatprep.subr.bf16.mxu1 %v16806_v20  ;;  %v16845_v3 = vcombine.low %v996_v56, %v1000_v57  ;;  %v16852_v4 = vcombine.high %v1003_v62, %v1007_v63  ;;  %v16854_v5 = vcombine.high %v1004_v0, %v1008_v1  ;;  %v1019_v14 = vld [vmem:[%s19859_s20 + $0xfd0] sm:$0xff]  ;;  %v1020_v16 = vld [vmem:[%s19859_s20 + $0xfd8] sm:$0xff] }
 0x542   : > { %v16851_v10 = vcombine.low %v1003_v62, %v1007_v63  ;;  %v16853_v11 = vcombine.low %v1004_v0, %v1008_v1  ;;  %v16860_v12 = vcombine.high %v1011_v6, %v1015_v7  ;;  %v16862_v13 = vcombine.high %v1012_v8, %v1016_v9  ;;  %v1023_v15 = vld [vmem:[%s19859_s20 + $0xff0] sm:$0xff]  ;;  %v1024_v17 = vld [vmem:[%s19859_s20 + $0xff8] sm:$0xff] }
 0x543   : > { %v16859_v18 = vcombine.low %v1011_v6, %v1015_v7  ;;  %v16861_v19 = vcombine.low %v1012_v8, %v1016_v9  ;;  %v16868_v20 = vcombine.high %v1019_v14, %v1023_v15  ;;  %v16870_v21 = vcombine.high %v1020_v16, %v1024_v17  ;;  %v1031_v23 = vld [vmem:[%s19859_s20 + $0x1030] sm:$0xff]  ;;  %v18876_v40 = vld [vmem:[%s19857_s27 + $0x18] ss:$112 sps:$4 sm:$0xff]  }
 0x544   : > { %12753 = vmatpush1.bf16.msra.mxu0 %v16803_v26  ;;  %13355 = vmatpush1.bf16.msra.mxu1 %v16805_v27  ;;  %v16867_v26 = vcombine.low %v1019_v14, %v1023_v15  ;;  %v16869_v27 = vcombine.low %v1020_v16, %v1024_v17  ;;  %v1047_v39 = vld [vmem:[%s19859_s20 + $0x10b0] sm:$0xff]  ;;  %v1044_v41 = vld [vmem:[%s19859_s20 + $0x1098] sm:$0xff] }
 0x545   : > { %12754 = vmatprep.subr.bf16.mxu0 %v16812_v28  ;;  %13356 = vmatprep.subr.bf16.mxu1 %v16814_v29  ;;  %v16876_v28 = vcombine.high %v1027_v22, %v1031_v23  ;;  %v16878_v29 = vcombine.high %v1028_v24, %v1032_v25  ;;  %v1051_v47 = vld [vmem:[%s19859_s20 + $0x10d0] sm:$0xff] }
 0x546   : > { %v1055_v48 = vld [vmem:[%s19859_s20 + $0x10f0] sm:$0xff] }
 0x547   : > { %v18877_v49 = vld [vmem:[%s19857_s27 + $0x24] ss:$112 sps:$4 sm:$0xff]   ;;  %v16900_v54 = vcombine.high %v1051_v47, %v1055_v48 }
 0x548   : > { %12755 = vmatpush1.bf16.msra.mxu0 %v16811_v34  ;;  %13357 = vmatpush1.bf16.msra.mxu1 %v16813_v35  ;;  %v16875_v34 = vcombine.low %v1027_v22, %v1031_v23  ;;  %v16877_v35 = vcombine.low %v1028_v24, %v1032_v25  ;;  %v1059_v56 = vld [vmem:[%s19859_s20 + $0x1110] sm:$0xff] }
 0x549   : > { %12756 = vmatprep.subr.bf16.mxu0 %v16820_v36  ;;  %13358 = vmatprep.subr.bf16.mxu1 %v16822_v37  ;;  %v16884_v36 = vcombine.high %v1035_v30, %v1039_v31  ;;  %v16886_v37 = vcombine.high %v1036_v32, %v1040_v33  ;;  %v1063_v57 = vld [vmem:[%s19859_s20 + $0x1130] sm:$0xff] }
 0x54a   : > { %v16908_v62 = vcombine.high %v1059_v56, %v1063_v57  ;;  %v1067_v0 = vld [vmem:[%s19859_s20 + $0x1150] sm:$0xff] }
 0x54b   : > { %v1071_v1 = vld [vmem:[%s19859_s20 + $0x1170] sm:$0xff] }
 0x54c   : > { %12757 = vmatpush1.bf16.msra.mxu0 %v16819_v42  ;;  %13359 = vmatpush1.bf16.msra.mxu1 %v16821_v43  ;;  %v1048_v42 = vld [vmem:[%s19859_s20 + $0x10b8] sm:$0xff]  ;;  %v16883_v43 = vcombine.low %v1035_v30, %v1039_v31  ;;  %v16916_v6 = vcombine.high %v1067_v0, %v1071_v1  ;;  %v1075_v8 = vld [vmem:[%s19859_s20 + $0x1190] sm:$0xff] }
 0x54d   : > { %12758 = vmatprep.subr.bf16.mxu0 %v16828_v44  ;;  %13360 = vmatprep.subr.bf16.mxu1 %v16830_v45  ;;  %v16885_v44 = vcombine.low %v1036_v32, %v1040_v33  ;;  %v16892_v45 = vcombine.high %v1043_v38, %v1047_v39  ;;  %v16894_v46 = vcombine.high %v1044_v41, %v1048_v42  ;;  %v1079_v9 = vld [vmem:[%s19859_s20 + $0x11b0] sm:$0xff] }
 0x54e   : > { %v16924_v14 = vcombine.high %v1075_v8, %v1079_v9  ;;  %v1083_v16 = vld [vmem:[%s19859_s20 + $0x11d0] sm:$0xff] }
 0x54f   : > { %v1087_v17 = vld [vmem:[%s19859_s20 + $0x11f0] sm:$0xff] }
 0x550   : > { %12759 = vmatpush1.bf16.msra.mxu0 %v16827_v50  ;;  %13361 = vmatpush1.bf16.msra.mxu1 %v16829_v51  ;;  %v1052_v50 = vld [vmem:[%s19859_s20 + $0x10d8] sm:$0xff]  ;;  %v16932_v22 = vcombine.high %v1083_v16, %v1087_v17  ;;  %v1091_v24 = vld [vmem:[%s19859_s20 + $0x1210] sm:$0xff] }
 0x551   : > { %12760 = vmatprep.subr.bf16.mxu0 %v16836_v52  ;;  %13362 = vmatprep.subr.bf16.mxu1 %v16838_v53  ;;  %v1056_v51 = vld [vmem:[%s19859_s20 + $0x10f8] sm:$0xff]  ;;  %v16891_v52 = vcombine.low %v1043_v38, %v1047_v39  ;;  %v16893_v53 = vcombine.low %v1044_v41, %v1048_v42  ;;  %v1095_v25 = vld [vmem:[%s19859_s20 + $0x1230] sm:$0xff] }
 0x552   : > { %v16902_v55 = vcombine.high %v1052_v50, %v1056_v51  ;;  %v16940_v30 = vcombine.high %v1091_v24, %v1095_v25  ;;  %v1099_v32 = vld [vmem:[%s19859_s20 + $0x1250] sm:$0xff]  ;;  %v1108_v42 = vld [vmem:[%s19859_s20 + $0x1298] sm:$0xff] }
 0x553   : > { %v1103_v33 = vld [vmem:[%s19859_s20 + $0x1270] sm:$0xff] }
 0x554   : > { %12761 = vmatpush1.bf16.msra.mxu0 %v16835_v58  ;;  %13363 = vmatpush1.bf16.msra.mxu1 %v16837_v59  ;;  %v1060_v58 = vld [vmem:[%s19859_s20 + $0x1118] sm:$0xff]  ;;  %v16948_v38 = vcombine.high %v1099_v32, %v1103_v33  ;;  %v1111_v41 = vld [vmem:[%s19859_s20 + $0x12b0] sm:$0xff] }
 0x555   : > { %12762 = vmatprep.subr.bf16.mxu0 %v16844_v60  ;;  %13364 = vmatprep.subr.bf16.mxu1 %v16846_v61  ;;  %v1064_v59 = vld [vmem:[%s19859_s20 + $0x1138] sm:$0xff]  ;;  %v16899_v60 = vcombine.low %v1051_v47, %v1055_v48  ;;  %v16901_v61 = vcombine.low %v1052_v50, %v1056_v51  ;;  %v1115_v48 = vld [vmem:[%s19859_s20 + $0x12d0] sm:$0xff] }
 0x556   : > { %v16910_v63 = vcombine.high %v1060_v58, %v1064_v59  ;;  %v1116_v50 = vld [vmem:[%s19859_s20 + $0x12d8] sm:$0xff] }
 0x557   : > { %v1120_v51 = vld [vmem:[%s19859_s20 + $0x12f8] sm:$0xff] }
 0x558   : > { %12763 = vmatpush1.bf16.msra.mxu0 %v16843_v2  ;;  %13365 = vmatpush1.bf16.msra.mxu1 %v16845_v3  ;;  %v1068_v2 = vld [vmem:[%s19859_s20 + $0x1158] sm:$0xff] }
 0x559   : > { %12764 = vmatprep.subr.bf16.mxu0 %v16852_v4  ;;  %13366 = vmatprep.subr.bf16.mxu1 %v16854_v5  ;;  %v1072_v3 = vld [vmem:[%s19859_s20 + $0x1178] sm:$0xff]  ;;  %v16907_v4 = vcombine.low %v1059_v56, %v1063_v57  ;;  %v16909_v5 = vcombine.low %v1060_v58, %v1064_v59  ;;  %v1123_v56 = vld [vmem:[%s19859_s20 + $0x1310] sm:$0xff] }
 0x55a   : > { %v16918_v7 = vcombine.high %v1068_v2, %v1072_v3  ;;  %v1127_v57 = vld [vmem:[%s19859_s20 + $0x1330] sm:$0xff]  ;;  %v1124_v58 = vld [vmem:[%s19859_s20 + $0x1318] sm:$0xff] }
 0x55b   : > { %v1128_v59 = vld [vmem:[%s19859_s20 + $0x1338] sm:$0xff] }
 0x55c   : > { %12765 = vmatpush1.bf16.msra.mxu0 %v16851_v10  ;;  %13367 = vmatpush1.bf16.msra.mxu1 %v16853_v11  ;;  %v1076_v10 = vld [vmem:[%s19859_s20 + $0x1198] sm:$0xff] }
 0x55d   : > { %12766 = vmatprep.subr.bf16.mxu0 %v16860_v12  ;;  %13368 = vmatprep.subr.bf16.mxu1 %v16862_v13  ;;  %v1080_v11 = vld [vmem:[%s19859_s20 + $0x11b8] sm:$0xff]  ;;  %v16915_v12 = vcombine.low %v1067_v0, %v1071_v1  ;;  %v16917_v13 = vcombine.low %v1068_v2, %v1072_v3  ;;  %v1131_v0 = vld [vmem:[%s19859_s20 + $0x1350] sm:$0xff] }
 0x55e   : > { %v16926_v15 = vcombine.high %v1076_v10, %v1080_v11  ;;  %v1135_v1 = vld [vmem:[%s19859_s20 + $0x1370] sm:$0xff]  ;;  %v1132_v2 = vld [vmem:[%s19859_s20 + $0x1358] sm:$0xff] }
 0x55f   : > { %v1136_v3 = vld [vmem:[%s19859_s20 + $0x1378] sm:$0xff] }
 0x560   : > { %12767 = vmatpush1.bf16.msra.mxu0 %v16859_v18  ;;  %13369 = vmatpush1.bf16.msra.mxu1 %v16861_v19  ;;  %v1084_v18 = vld [vmem:[%s19859_s20 + $0x11d8] sm:$0xff] }
 0x561   : > { %12768 = vmatprep.subr.bf16.mxu0 %v16868_v20  ;;  %13370 = vmatprep.subr.bf16.mxu1 %v16870_v21  ;;  %v1088_v19 = vld [vmem:[%s19859_s20 + $0x11f8] sm:$0xff]  ;;  %v16923_v20 = vcombine.low %v1075_v8, %v1079_v9  ;;  %v16925_v21 = vcombine.low %v1076_v10, %v1080_v11  ;;  %v1139_v8 = vld [vmem:[%s19859_s20 + $0x1390] sm:$0xff] }
 0x562   : > { %v16934_v23 = vcombine.high %v1084_v18, %v1088_v19  ;;  %v1143_v9 = vld [vmem:[%s19859_s20 + $0x13b0] sm:$0xff]  ;;  %v1140_v10 = vld [vmem:[%s19859_s20 + $0x1398] sm:$0xff] }
 0x563   : > { %v1144_v11 = vld [vmem:[%s19859_s20 + $0x13b8] sm:$0xff] }
 0x564   : > { %12769 = vmatpush1.bf16.msra.mxu0 %v16867_v26  ;;  %13371 = vmatpush1.bf16.msra.mxu1 %v16869_v27  ;;  %v1092_v26 = vld [vmem:[%s19859_s20 + $0x1218] sm:$0xff] }
 0x565   : > { %12781 = vmatprep.subr.bf16.mxu0 %v16876_v28  ;;  %13383 = vmatprep.subr.bf16.mxu1 %v16878_v29  ;;  %v1096_v27 = vld [vmem:[%s19859_s20 + $0x1238] sm:$0xff]  ;;  %v16931_v28 = vcombine.low %v1083_v16, %v1087_v17  ;;  %v16933_v29 = vcombine.low %v1084_v18, %v1088_v19  ;;  %v1147_v16 = vld [vmem:[%s19859_s20 + $0x13d0] sm:$0xff] }
 0x566   : > { %v16942_v31 = vcombine.high %v1092_v26, %v1096_v27  ;;  %v1151_v17 = vld [vmem:[%s19859_s20 + $0x13f0] sm:$0xff]  ;;  %v1148_v18 = vld [vmem:[%s19859_s20 + $0x13d8] sm:$0xff] }
 0x567   : > { %12771 = vmatmul.mubr.bf16.vlgmr.msra.gmra.mrb[4].mxu0 %v18876_v40  ;;  %13373 = vmatmul.mubr.bf16.vlgmr.msra.gmra.mrb[4].mxu1 %v18876_v40  ;;  %v1107_v40 = vld [vmem:[%s19859_s20 + $0x1290] sm:$0xff]  ;;  %v1152_v19 = vld [vmem:[%s19859_s20 + $0x13f8] sm:$0xff] }
 0x568   : > { %12782 = vmatpush1.bf16.msra.mxu0 %v16875_v34  ;;  %13384 = vmatpush1.bf16.msra.mxu1 %v16877_v35  ;;  %v1100_v34 = vld [vmem:[%s19859_s20 + $0x1258] sm:$0xff] }
 0x569   : > { %12783 = vmatprep.subr.bf16.mxu0 %v16884_v36  ;;  %13385 = vmatprep.subr.bf16.mxu1 %v16886_v37  ;;  %v1104_v35 = vld [vmem:[%s19859_s20 + $0x1278] sm:$0xff]  ;;  %v16939_v36 = vcombine.low %v1091_v24, %v1095_v25  ;;  %v16941_v37 = vcombine.low %v1092_v26, %v1096_v27  ;;  %v1155_v24 = vld [vmem:[%s19859_s20 + $0x1410] sm:$0xff] }
 0x56a   : > { %12813 = vmatprep.mubr.bf16.mxu0 %v18877_v49  ;;  %13415 = vmatprep.mubr.bf16.mxu1 %v18877_v49  ;;  %v16950_v39 = vcombine.high %v1100_v34, %v1104_v35  ;;  %v1119_v49 = vld [vmem:[%s19859_s20 + $0x12f0] sm:$0xff]  ;;  %v1156_v26 = vld [vmem:[%s19859_s20 + $0x1418] sm:$0xff] }
 0x56b   : > { %v1159_v25 = vld [vmem:[%s19859_s20 + $0x1430] sm:$0xff]  ;;  %v1160_v27 = vld [vmem:[%s19859_s20 + $0x1438] sm:$0xff] }
 0x56c   : > { %12784 = vmatpush1.bf16.msra.mxu0 %v16883_v43  ;;  %13386 = vmatpush1.bf16.msra.mxu1 %v16885_v44  ;;  %v1112_v43 = vld [vmem:[%s19859_s20 + $0x12b8] sm:$0xff]  ;;  %v16947_v44 = vcombine.low %v1099_v32, %v1103_v33  ;;  %v1163_v32 = vld [vmem:[%s19859_s20 + $0x1450] sm:$0xff] }
 0x56d   : > { %12785 = vmatprep.subr.bf16.mxu0 %v16892_v45  ;;  %13387 = vmatprep.subr.bf16.mxu1 %v16894_v46  ;;  %v16949_v45 = vcombine.low %v1100_v34, %v1104_v35  ;;  %v16956_v46 = vcombine.high %v1107_v40, %v1111_v41  ;;  %v16958_v47 = vcombine.high %v1108_v42, %v1112_v43  ;;  %v1167_v33 = vld [vmem:[%s19859_s20 + $0x1470] sm:$0xff]  ;;  %v1164_v34 = vld [vmem:[%s19859_s20 + $0x1458] sm:$0xff] }
 0x56e   : > { %v1168_v35 = vld [vmem:[%s19859_s20 + $0x1478] sm:$0xff] }
 0x570   : > { %12786 = vmatpush1.bf16.msra.mxu0 %v16891_v52  ;;  %13388 = vmatpush1.bf16.msra.mxu1 %v16893_v53  ;;  %v16955_v52 = vcombine.low %v1107_v40, %v1111_v41  ;;  %v16957_v53 = vcombine.low %v1108_v42, %v1112_v43  ;;  %v1171_v40 = vld [vmem:[%s19859_s20 + $0x1490] sm:$0xff]  ;;  %v1172_v43 = vld [vmem:[%s19859_s20 + $0x1498] sm:$0xff] }
 0x571   : > { %12787 = vmatprep.subr.bf16.mxu0 %v16900_v54  ;;  %13389 = vmatprep.subr.bf16.mxu1 %v16902_v55  ;;  %v16964_v54 = vcombine.high %v1115_v48, %v1119_v49  ;;  %v16966_v55 = vcombine.high %v1116_v50, %v1120_v51  ;;  %v1175_v41 = vld [vmem:[%s19859_s20 + $0x14b0] sm:$0xff] }
 0x572   : > { %v18878_v42 = vld [vmem:[%s19857_s27 + $0x20] ss:$112 sps:$4 sm:$0xff]  }
 0x574   : > { %12788 = vmatpush1.bf16.msra.mxu0 %v16899_v60  ;;  %13390 = vmatpush1.bf16.msra.mxu1 %v16901_v61  ;;  %v16963_v60 = vcombine.low %v1115_v48, %v1119_v49  ;;  %v16965_v61 = vcombine.low %v1116_v50, %v1120_v51  ;;  %v1179_v49 = vld [vmem:[%s19859_s20 + $0x14d0] sm:$0xff]  ;;  %v18879_v51 = vld [vmem:[%s19857_s27 + $0x2c] ss:$112 sps:$4 sm:$0xff]  }
 0x575   : > { %12789 = vmatprep.subr.bf16.mxu0 %v16908_v62  ;;  %13391 = vmatprep.subr.bf16.mxu1 %v16910_v63  ;;  %v16972_v62 = vcombine.high %v1123_v56, %v1127_v57  ;;  %v16974_v63 = vcombine.high %v1124_v58, %v1128_v59  ;;  %v1183_v50 = vld [vmem:[%s19859_s20 + $0x14f0] sm:$0xff] }
 0x578   : > { %12790 = vmatpush1.bf16.msra.mxu0 %v16907_v4  ;;  %13392 = vmatpush1.bf16.msra.mxu1 %v16909_v5  ;;  %v16971_v4 = vcombine.low %v1123_v56, %v1127_v57  ;;  %v16973_v5 = vcombine.low %v1124_v58, %v1128_v59  ;;  %v17028_v56 = vcombine.high %v1179_v49, %v1183_v50  ;;  %v1187_v58 = vld [vmem:[%s19859_s20 + $0x1510] sm:$0xff] }
 0x579   : > { %12791 = vmatprep.subr.bf16.mxu0 %v16916_v6  ;;  %13393 = vmatprep.subr.bf16.mxu1 %v16918_v7  ;;  %v16980_v6 = vcombine.high %v1131_v0, %v1135_v1  ;;  %v16982_v7 = vcombine.high %v1132_v2, %v1136_v3  ;;  %v1191_v59 = vld [vmem:[%s19859_s20 + $0x1530] sm:$0xff] }
 0x57c   : > { %12792 = vmatpush1.bf16.msra.mxu0 %v16915_v12  ;;  %13394 = vmatpush1.bf16.msra.mxu1 %v16917_v13  ;;  %v16979_v12 = vcombine.low %v1131_v0, %v1135_v1  ;;  %v16981_v13 = vcombine.low %v1132_v2, %v1136_v3  ;;  %v17036_v0 = vcombine.high %v1187_v58, %v1191_v59  ;;  %v1195_v2 = vld [vmem:[%s19859_s20 + $0x1550] sm:$0xff] }
 0x57d   : > { %12793 = vmatprep.subr.bf16.mxu0 %v16924_v14  ;;  %13395 = vmatprep.subr.bf16.mxu1 %v16926_v15  ;;  %v16988_v14 = vcombine.high %v1139_v8, %v1143_v9  ;;  %v16990_v15 = vcombine.high %v1140_v10, %v1144_v11  ;;  %v1199_v3 = vld [vmem:[%s19859_s20 + $0x1570] sm:$0xff] }
 0x580   : > { %12794 = vmatpush1.bf16.msra.mxu0 %v16923_v20  ;;  %13396 = vmatpush1.bf16.msra.mxu1 %v16925_v21  ;;  %v16987_v20 = vcombine.low %v1139_v8, %v1143_v9  ;;  %v16989_v21 = vcombine.low %v1140_v10, %v1144_v11  ;;  %v17044_v8 = vcombine.high %v1195_v2, %v1199_v3  ;;  %v1203_v10 = vld [vmem:[%s19859_s20 + $0x1590] sm:$0xff] }
 0x581   : > { %12795 = vmatprep.subr.bf16.mxu0 %v16932_v22  ;;  %13397 = vmatprep.subr.bf16.mxu1 %v16934_v23  ;;  %v16996_v22 = vcombine.high %v1147_v16, %v1151_v17  ;;  %v16998_v23 = vcombine.high %v1148_v18, %v1152_v19  ;;  %v1207_v11 = vld [vmem:[%s19859_s20 + $0x15b0] sm:$0xff] }
 0x584   : > { %12796 = vmatpush1.bf16.msra.mxu0 %v16931_v28  ;;  %13398 = vmatpush1.bf16.msra.mxu1 %v16933_v29  ;;  %v16995_v28 = vcombine.low %v1147_v16, %v1151_v17  ;;  %v16997_v29 = vcombine.low %v1148_v18, %v1152_v19  ;;  %v17052_v16 = vcombine.high %v1203_v10, %v1207_v11  ;;  %v1211_v18 = vld [vmem:[%s19859_s20 + $0x15d0] sm:$0xff] }
 0x585   : > { %12797 = vmatprep.subr.bf16.mxu0 %v16940_v30  ;;  %13399 = vmatprep.subr.bf16.mxu1 %v16942_v31  ;;  %v17004_v30 = vcombine.high %v1155_v24, %v1159_v25  ;;  %v17006_v31 = vcombine.high %v1156_v26, %v1160_v27  ;;  %v1215_v19 = vld [vmem:[%s19859_s20 + $0x15f0] sm:$0xff] }
 0x588   : > { %12798 = vmatpush1.bf16.msra.mxu0 %v16939_v36  ;;  %13400 = vmatpush1.bf16.msra.mxu1 %v16941_v37  ;;  %v17003_v36 = vcombine.low %v1155_v24, %v1159_v25  ;;  %v17005_v37 = vcombine.low %v1156_v26, %v1160_v27  ;;  %v17060_v24 = vcombine.high %v1211_v18, %v1215_v19  ;;  %v1219_v26 = vld [vmem:[%s19859_s20 + $0x1610] sm:$0xff] }
 0x589   : > { %12799 = vmatprep.subr.bf16.mxu0 %v16948_v38  ;;  %13401 = vmatprep.subr.bf16.mxu1 %v16950_v39  ;;  %v17012_v38 = vcombine.high %v1163_v32, %v1167_v33  ;;  %v17014_v39 = vcombine.high %v1164_v34, %v1168_v35  ;;  %v1223_v27 = vld [vmem:[%s19859_s20 + $0x1630] sm:$0xff] }
 0x58c   : > { %12800 = vmatpush1.bf16.msra.mxu0 %v16947_v44  ;;  %13402 = vmatpush1.bf16.msra.mxu1 %v16949_v45  ;;  %v1176_v44 = vld [vmem:[%s19859_s20 + $0x14b8] sm:$0xff]  ;;  %v17011_v45 = vcombine.low %v1163_v32, %v1167_v33  ;;  %v17068_v32 = vcombine.high %v1219_v26, %v1223_v27 }
 0x58d   : > { %12801 = vmatprep.subr.bf16.mxu0 %v16956_v46  ;;  %13403 = vmatprep.subr.bf16.mxu1 %v16958_v47  ;;  %v17013_v46 = vcombine.low %v1164_v34, %v1168_v35  ;;  %v17020_v47 = vcombine.high %v1171_v40, %v1175_v41  ;;  %v17022_v48 = vcombine.high %v1172_v43, %v1176_v44  ;;  %v1227_v34 = vld [vmem:[%s19859_s20 + $0x1650] sm:$0xff] }
 0x58e   : > { %v1231_v35 = vld [vmem:[%s19859_s20 + $0x1670] sm:$0xff] }
 0x590   : > { %12802 = vmatpush1.bf16.msra.mxu0 %v16955_v52  ;;  %13404 = vmatpush1.bf16.msra.mxu1 %v16957_v53  ;;  %v1180_v52 = vld [vmem:[%s19859_s20 + $0x14d8] sm:$0xff] }
 0x591   : > { %12803 = vmatprep.subr.bf16.mxu0 %v16964_v54  ;;  %13405 = vmatprep.subr.bf16.mxu1 %v16966_v55  ;;  %v1184_v53 = vld [vmem:[%s19859_s20 + $0x14f8] sm:$0xff]  ;;  %v17019_v54 = vcombine.low %v1171_v40, %v1175_v41  ;;  %v17021_v55 = vcombine.low %v1172_v43, %v1176_v44  ;;  %v17076_v40 = vcombine.high %v1227_v34, %v1231_v35  ;;  %v1239_v43 = vld [vmem:[%s19859_s20 + $0x16b0] sm:$0xff] }
 0x592   : > { %v17030_v57 = vcombine.high %v1180_v52, %v1184_v53  ;;  %v1236_v44 = vld [vmem:[%s19859_s20 + $0x1698] sm:$0xff] }
 0x594   : > { %12804 = vmatpush1.bf16.msra.mxu0 %v16963_v60  ;;  %13406 = vmatpush1.bf16.msra.mxu1 %v16965_v61  ;;  %v1188_v60 = vld [vmem:[%s19859_s20 + $0x1518] sm:$0xff] }
 0x595   : > { %12805 = vmatprep.subr.bf16.mxu0 %v16972_v62  ;;  %13407 = vmatprep.subr.bf16.mxu1 %v16974_v63  ;;  %v1192_v61 = vld [vmem:[%s19859_s20 + $0x1538] sm:$0xff]  ;;  %v17027_v62 = vcombine.low %v1179_v49, %v1183_v50  ;;  %v17029_v63 = vcombine.low %v1180_v52, %v1184_v53  ;;  %v1243_v50 = vld [vmem:[%s19859_s20 + $0x16d0] sm:$0xff] }
 0x596   : > { %v17038_v1 = vcombine.high %v1188_v60, %v1192_v61  ;;  %v1244_v52 = vld [vmem:[%s19859_s20 + $0x16d8] sm:$0xff] }
 0x597   : > { %v1248_v53 = vld [vmem:[%s19859_s20 + $0x16f8] sm:$0xff] }
 0x598   : > { %12806 = vmatpush1.bf16.msra.mxu0 %v16971_v4  ;;  %13408 = vmatpush1.bf16.msra.mxu1 %v16973_v5  ;;  %v1196_v4 = vld [vmem:[%s19859_s20 + $0x1558] sm:$0xff] }
 0x599   : > { %12807 = vmatprep.subr.bf16.mxu0 %v16980_v6  ;;  %13409 = vmatprep.subr.bf16.mxu1 %v16982_v7  ;;  %v1200_v5 = vld [vmem:[%s19859_s20 + $0x1578] sm:$0xff]  ;;  %v17035_v6 = vcombine.low %v1187_v58, %v1191_v59  ;;  %v17037_v7 = vcombine.low %v1188_v60, %v1192_v61  ;;  %v1251_v58 = vld [vmem:[%s19859_s20 + $0x1710] sm:$0xff] }
 0x59a   : > { %v17046_v9 = vcombine.high %v1196_v4, %v1200_v5  ;;  %v1255_v59 = vld [vmem:[%s19859_s20 + $0x1730] sm:$0xff]  ;;  %v1252_v60 = vld [vmem:[%s19859_s20 + $0x1718] sm:$0xff] }
 0x59b   : > { %v1256_v61 = vld [vmem:[%s19859_s20 + $0x1738] sm:$0xff] }
 0x59c   : > { %12808 = vmatpush1.bf16.msra.mxu0 %v16979_v12  ;;  %13410 = vmatpush1.bf16.msra.mxu1 %v16981_v13  ;;  %v1204_v12 = vld [vmem:[%s19859_s20 + $0x1598] sm:$0xff] }
 0x59d   : > { %12809 = vmatprep.subr.bf16.mxu0 %v16988_v14  ;;  %13411 = vmatprep.subr.bf16.mxu1 %v16990_v15  ;;  %v1208_v13 = vld [vmem:[%s19859_s20 + $0x15b8] sm:$0xff]  ;;  %v17043_v14 = vcombine.low %v1195_v2, %v1199_v3  ;;  %v17045_v15 = vcombine.low %v1196_v4, %v1200_v5  ;;  %v1259_v2 = vld [vmem:[%s19859_s20 + $0x1750] sm:$0xff] }
 0x59e   : > { %v17054_v17 = vcombine.high %v1204_v12, %v1208_v13  ;;  %v1263_v3 = vld [vmem:[%s19859_s20 + $0x1770] sm:$0xff]  ;;  %v1260_v4 = vld [vmem:[%s19859_s20 + $0x1758] sm:$0xff] }
 0x59f   : > { %v1264_v5 = vld [vmem:[%s19859_s20 + $0x1778] sm:$0xff] }
 0x5a0   : > { %12810 = vmatpush1.bf16.msra.mxu0 %v16987_v20  ;;  %13412 = vmatpush1.bf16.msra.mxu1 %v16989_v21  ;;  %v1212_v20 = vld [vmem:[%s19859_s20 + $0x15d8] sm:$0xff] }
 0x5a1   : > { %12811 = vmatprep.subr.bf16.mxu0 %v16996_v22  ;;  %13413 = vmatprep.subr.bf16.mxu1 %v16998_v23  ;;  %v1216_v21 = vld [vmem:[%s19859_s20 + $0x15f8] sm:$0xff]  ;;  %v17051_v22 = vcombine.low %v1203_v10, %v1207_v11  ;;  %v17053_v23 = vcombine.low %v1204_v12, %v1208_v13  ;;  %v1267_v10 = vld [vmem:[%s19859_s20 + $0x1790] sm:$0xff] }
 0x5a2   : > { %v17062_v25 = vcombine.high %v1212_v20, %v1216_v21  ;;  %v1271_v11 = vld [vmem:[%s19859_s20 + $0x17b0] sm:$0xff]  ;;  %v1268_v12 = vld [vmem:[%s19859_s20 + $0x1798] sm:$0xff] }
 0x5a3   : > { %v1272_v13 = vld [vmem:[%s19859_s20 + $0x17b8] sm:$0xff] }
 0x5a4   : > { %12812 = vmatpush1.bf16.msra.mxu0 %v16995_v28  ;;  %13414 = vmatpush1.bf16.msra.mxu1 %v16997_v29  ;;  %v1220_v28 = vld [vmem:[%s19859_s20 + $0x1618] sm:$0xff] }
 0x5a5   : > { %12824 = vmatprep.subr.bf16.mxu0 %v17004_v30  ;;  %13426 = vmatprep.subr.bf16.mxu1 %v17006_v31  ;;  %v1224_v29 = vld [vmem:[%s19859_s20 + $0x1638] sm:$0xff]  ;;  %v17059_v30 = vcombine.low %v1211_v18, %v1215_v19  ;;  %v17061_v31 = vcombine.low %v1212_v20, %v1216_v21  ;;  %v1275_v18 = vld [vmem:[%s19859_s20 + $0x17d0] sm:$0xff] }
 0x5a6   : > { %v17070_v33 = vcombine.high %v1220_v28, %v1224_v29  ;;  %v1279_v19 = vld [vmem:[%s19859_s20 + $0x17f0] sm:$0xff]  ;;  %v1276_v20 = vld [vmem:[%s19859_s20 + $0x17d8] sm:$0xff] }
 0x5a7   : > { %12814 = vmatmul.mubr.bf16.vlgmr.msra.gmra.mrb[4].mxu0 %v18878_v42  ;;  %13416 = vmatmul.mubr.bf16.vlgmr.msra.gmra.mrb[4].mxu1 %v18878_v42  ;;  %v1235_v42 = vld [vmem:[%s19859_s20 + $0x1690] sm:$0xff]  ;;  %v1280_v21 = vld [vmem:[%s19859_s20 + $0x17f8] sm:$0xff] }
 0x5a8   : > { %12825 = vmatpush1.bf16.msra.mxu0 %v17003_v36  ;;  %13427 = vmatpush1.bf16.msra.mxu1 %v17005_v37  ;;  %v1228_v36 = vld [vmem:[%s19859_s20 + $0x1658] sm:$0xff] }
 0x5a9   : > { %12826 = vmatprep.subr.bf16.mxu0 %v17012_v38  ;;  %13428 = vmatprep.subr.bf16.mxu1 %v17014_v39  ;;  %v1232_v37 = vld [vmem:[%s19859_s20 + $0x1678] sm:$0xff]  ;;  %v17067_v38 = vcombine.low %v1219_v26, %v1223_v27  ;;  %v17069_v39 = vcombine.low %v1220_v28, %v1224_v29  ;;  %v1283_v26 = vld [vmem:[%s19859_s20 + $0x1810] sm:$0xff] }
 0x5aa   : > { %12856 = vmatprep.mubr.bf16.mxu0 %v18879_v51  ;;  %13458 = vmatprep.mubr.bf16.mxu1 %v18879_v51  ;;  %v17078_v41 = vcombine.high %v1228_v36, %v1232_v37  ;;  %v1247_v51 = vld [vmem:[%s19859_s20 + $0x16f0] sm:$0xff]  ;;  %v1284_v28 = vld [vmem:[%s19859_s20 + $0x1818] sm:$0xff] }
 0x5ab   : > { %v1287_v27 = vld [vmem:[%s19859_s20 + $0x1830] sm:$0xff]  ;;  %v1288_v29 = vld [vmem:[%s19859_s20 + $0x1838] sm:$0xff] }
 0x5ac   : > { %12827 = vmatpush1.bf16.msra.mxu0 %v17011_v45  ;;  %13429 = vmatpush1.bf16.msra.mxu1 %v17013_v46  ;;  %v1240_v45 = vld [vmem:[%s19859_s20 + $0x16b8] sm:$0xff]  ;;  %v17075_v46 = vcombine.low %v1227_v34, %v1231_v35  ;;  %v1291_v34 = vld [vmem:[%s19859_s20 + $0x1850] sm:$0xff] }
 0x5ad   : > { %12828 = vmatprep.subr.bf16.mxu0 %v17020_v47  ;;  %13430 = vmatprep.subr.bf16.mxu1 %v17022_v48  ;;  %v17077_v47 = vcombine.low %v1228_v36, %v1232_v37  ;;  %v17084_v48 = vcombine.high %v1235_v42, %v1239_v43  ;;  %v17086_v49 = vcombine.high %v1236_v44, %v1240_v45  ;;  %v1295_v35 = vld [vmem:[%s19859_s20 + $0x1870] sm:$0xff]  ;;  %v1292_v36 = vld [vmem:[%s19859_s20 + $0x1858] sm:$0xff] }
 0x5ae   : > { %v1296_v37 = vld [vmem:[%s19859_s20 + $0x1878] sm:$0xff] }
 0x5b0   : > { %12829 = vmatpush1.bf16.msra.mxu0 %v17019_v54  ;;  %13431 = vmatpush1.bf16.msra.mxu1 %v17021_v55  ;;  %v17083_v54 = vcombine.low %v1235_v42, %v1239_v43  ;;  %v17085_v55 = vcombine.low %v1236_v44, %v1240_v45  ;;  %v1299_v42 = vld [vmem:[%s19859_s20 + $0x1890] sm:$0xff]  ;;  %v18880_v44 = vld [vmem:[%s19857_s27 + $0x28] ss:$112 sps:$4 sm:$0xff]  }
 0x5b1   : > { %12830 = vmatprep.subr.bf16.mxu0 %v17028_v56  ;;  %13432 = vmatprep.subr.bf16.mxu1 %v17030_v57  ;;  %v17092_v56 = vcombine.high %v1243_v50, %v1247_v51  ;;  %v17094_v57 = vcombine.high %v1244_v52, %v1248_v53  ;;  %v1303_v43 = vld [vmem:[%s19859_s20 + $0x18b0] sm:$0xff]  ;;  %v1300_v45 = vld [vmem:[%s19859_s20 + $0x1898] sm:$0xff] }
 0x5b4   : > { %12831 = vmatpush1.bf16.msra.mxu0 %v17027_v62  ;;  %13433 = vmatpush1.bf16.msra.mxu1 %v17029_v63  ;;  %v17091_v62 = vcombine.low %v1243_v50, %v1247_v51  ;;  %v17093_v63 = vcombine.low %v1244_v52, %v1248_v53  ;;  %v1307_v51 = vld [vmem:[%s19859_s20 + $0x18d0] sm:$0xff] }
 0x5b5   : > { %12832 = vmatprep.subr.bf16.mxu0 %v17036_v0  ;;  %13434 = vmatprep.subr.bf16.mxu1 %v17038_v1  ;;  %v17100_v0 = vcombine.high %v1251_v58, %v1255_v59  ;;  %v17102_v1 = vcombine.high %v1252_v60, %v1256_v61  ;;  %v1311_v52 = vld [vmem:[%s19859_s20 + $0x18f0] sm:$0xff] }
 0x5b6   : > { %v18881_v53 = vld [vmem:[%s19857_s27 + $0x34] ss:$112 sps:$4 sm:$0xff]  }
 0x5b8   : > { %12833 = vmatpush1.bf16.msra.mxu0 %v17035_v6  ;;  %13435 = vmatpush1.bf16.msra.mxu1 %v17037_v7  ;;  %v17099_v6 = vcombine.low %v1251_v58, %v1255_v59  ;;  %v17101_v7 = vcombine.low %v1252_v60, %v1256_v61  ;;  %v17156_v58 = vcombine.high %v1307_v51, %v1311_v52  ;;  %v1315_v60 = vld [vmem:[%s19859_s20 + $0x1910] sm:$0xff] }
 0x5b9   : > { %12834 = vmatprep.subr.bf16.mxu0 %v17044_v8  ;;  %13436 = vmatprep.subr.bf16.mxu1 %v17046_v9  ;;  %v17108_v8 = vcombine.high %v1259_v2, %v1263_v3  ;;  %v17110_v9 = vcombine.high %v1260_v4, %v1264_v5  ;;  %v1319_v61 = vld [vmem:[%s19859_s20 + $0x1930] sm:$0xff] }
 0x5bc   : > { %12835 = vmatpush1.bf16.msra.mxu0 %v17043_v14  ;;  %13437 = vmatpush1.bf16.msra.mxu1 %v17045_v15  ;;  %v17107_v14 = vcombine.low %v1259_v2, %v1263_v3  ;;  %v17109_v15 = vcombine.low %v1260_v4, %v1264_v5  ;;  %v17164_v2 = vcombine.high %v1315_v60, %v1319_v61  ;;  %v1323_v4 = vld [vmem:[%s19859_s20 + $0x1950] sm:$0xff] }
 0x5bd   : > { %12836 = vmatprep.subr.bf16.mxu0 %v17052_v16  ;;  %13438 = vmatprep.subr.bf16.mxu1 %v17054_v17  ;;  %v17116_v16 = vcombine.high %v1267_v10, %v1271_v11  ;;  %v17118_v17 = vcombine.high %v1268_v12, %v1272_v13  ;;  %v1327_v5 = vld [vmem:[%s19859_s20 + $0x1970] sm:$0xff] }
 0x5c0   : > { %12837 = vmatpush1.bf16.msra.mxu0 %v17051_v22  ;;  %13439 = vmatpush1.bf16.msra.mxu1 %v17053_v23  ;;  %v17115_v22 = vcombine.low %v1267_v10, %v1271_v11  ;;  %v17117_v23 = vcombine.low %v1268_v12, %v1272_v13  ;;  %v17172_v10 = vcombine.high %v1323_v4, %v1327_v5  ;;  %v1331_v12 = vld [vmem:[%s19859_s20 + $0x1990] sm:$0xff] }
 0x5c1   : > { %12838 = vmatprep.subr.bf16.mxu0 %v17060_v24  ;;  %13440 = vmatprep.subr.bf16.mxu1 %v17062_v25  ;;  %v17124_v24 = vcombine.high %v1275_v18, %v1279_v19  ;;  %v17126_v25 = vcombine.high %v1276_v20, %v1280_v21  ;;  %v1335_v13 = vld [vmem:[%s19859_s20 + $0x19b0] sm:$0xff] }
 0x5c4   : > { %12839 = vmatpush1.bf16.msra.mxu0 %v17059_v30  ;;  %13441 = vmatpush1.bf16.msra.mxu1 %v17061_v31  ;;  %v17123_v30 = vcombine.low %v1275_v18, %v1279_v19  ;;  %v17125_v31 = vcombine.low %v1276_v20, %v1280_v21  ;;  %v17180_v18 = vcombine.high %v1331_v12, %v1335_v13  ;;  %v1339_v20 = vld [vmem:[%s19859_s20 + $0x19d0] sm:$0xff] }
 0x5c5   : > { %12840 = vmatprep.subr.bf16.mxu0 %v17068_v32  ;;  %13442 = vmatprep.subr.bf16.mxu1 %v17070_v33  ;;  %v17132_v32 = vcombine.high %v1283_v26, %v1287_v27  ;;  %v17134_v33 = vcombine.high %v1284_v28, %v1288_v29  ;;  %v1343_v21 = vld [vmem:[%s19859_s20 + $0x19f0] sm:$0xff] }
 0x5c8   : > { %12841 = vmatpush1.bf16.msra.mxu0 %v17067_v38  ;;  %13443 = vmatpush1.bf16.msra.mxu1 %v17069_v39  ;;  %v17131_v38 = vcombine.low %v1283_v26, %v1287_v27  ;;  %v17133_v39 = vcombine.low %v1284_v28, %v1288_v29  ;;  %v17188_v26 = vcombine.high %v1339_v20, %v1343_v21  ;;  %v1347_v28 = vld [vmem:[%s19859_s20 + $0x1a10] sm:$0xff] }
 0x5c9   : > { %12842 = vmatprep.subr.bf16.mxu0 %v17076_v40  ;;  %13444 = vmatprep.subr.bf16.mxu1 %v17078_v41  ;;  %v17140_v40 = vcombine.high %v1291_v34, %v1295_v35  ;;  %v17142_v41 = vcombine.high %v1292_v36, %v1296_v37  ;;  %v1351_v29 = vld [vmem:[%s19859_s20 + $0x1a30] sm:$0xff] }
 0x5cc   : > { %12843 = vmatpush1.bf16.msra.mxu0 %v17075_v46  ;;  %13445 = vmatpush1.bf16.msra.mxu1 %v17077_v47  ;;  %v1304_v46 = vld [vmem:[%s19859_s20 + $0x18b8] sm:$0xff]  ;;  %v17139_v47 = vcombine.low %v1291_v34, %v1295_v35  ;;  %v17196_v34 = vcombine.high %v1347_v28, %v1351_v29 }
 0x5cd   : > { %12844 = vmatprep.subr.bf16.mxu0 %v17084_v48  ;;  %13446 = vmatprep.subr.bf16.mxu1 %v17086_v49  ;;  %v17141_v48 = vcombine.low %v1292_v36, %v1296_v37  ;;  %v17148_v49 = vcombine.high %v1299_v42, %v1303_v43  ;;  %v17150_v50 = vcombine.high %v1300_v45, %v1304_v46  ;;  %v1355_v36 = vld [vmem:[%s19859_s20 + $0x1a50] sm:$0xff] }
 0x5ce   : > { %v1359_v37 = vld [vmem:[%s19859_s20 + $0x1a70] sm:$0xff] }
 0x5d0   : > { %12845 = vmatpush1.bf16.msra.mxu0 %v17083_v54  ;;  %13447 = vmatpush1.bf16.msra.mxu1 %v17085_v55  ;;  %v1308_v54 = vld [vmem:[%s19859_s20 + $0x18d8] sm:$0xff] }
 0x5d1   : > { %12846 = vmatprep.subr.bf16.mxu0 %v17092_v56  ;;  %13448 = vmatprep.subr.bf16.mxu1 %v17094_v57  ;;  %v1312_v55 = vld [vmem:[%s19859_s20 + $0x18f8] sm:$0xff]  ;;  %v17147_v56 = vcombine.low %v1299_v42, %v1303_v43  ;;  %v17149_v57 = vcombine.low %v1300_v45, %v1304_v46  ;;  %v17204_v42 = vcombine.high %v1355_v36, %v1359_v37  ;;  %v1367_v45 = vld [vmem:[%s19859_s20 + $0x1ab0] sm:$0xff] }
 0x5d2   : > { %v17158_v59 = vcombine.high %v1308_v54, %v1312_v55  ;;  %v1364_v46 = vld [vmem:[%s19859_s20 + $0x1a98] sm:$0xff] }
 0x5d4   : > { %12847 = vmatpush1.bf16.msra.mxu0 %v17091_v62  ;;  %13449 = vmatpush1.bf16.msra.mxu1 %v17093_v63  ;;  %v1316_v62 = vld [vmem:[%s19859_s20 + $0x1918] sm:$0xff] }
 0x5d5   : > { %12848 = vmatprep.subr.bf16.mxu0 %v17100_v0  ;;  %13450 = vmatprep.subr.bf16.mxu1 %v17102_v1  ;;  %v1320_v63 = vld [vmem:[%s19859_s20 + $0x1938] sm:$0xff]  ;;  %v17155_v0 = vcombine.low %v1307_v51, %v1311_v52  ;;  %v17157_v1 = vcombine.low %v1308_v54, %v1312_v55  ;;  %v1371_v52 = vld [vmem:[%s19859_s20 + $0x1ad0] sm:$0xff] }
 0x5d6   : > { %v17166_v3 = vcombine.high %v1316_v62, %v1320_v63  ;;  %v1372_v54 = vld [vmem:[%s19859_s20 + $0x1ad8] sm:$0xff] }
 0x5d7   : > { %v1376_v55 = vld [vmem:[%s19859_s20 + $0x1af8] sm:$0xff] }
 0x5d8   : > { %12849 = vmatpush1.bf16.msra.mxu0 %v17099_v6  ;;  %13451 = vmatpush1.bf16.msra.mxu1 %v17101_v7  ;;  %v1324_v6 = vld [vmem:[%s19859_s20 + $0x1958] sm:$0xff] }
 0x5d9   : > { %12850 = vmatprep.subr.bf16.mxu0 %v17108_v8  ;;  %13452 = vmatprep.subr.bf16.mxu1 %v17110_v9  ;;  %v1328_v7 = vld [vmem:[%s19859_s20 + $0x1978] sm:$0xff]  ;;  %v17163_v8 = vcombine.low %v1315_v60, %v1319_v61  ;;  %v17165_v9 = vcombine.low %v1316_v62, %v1320_v63  ;;  %v1379_v60 = vld [vmem:[%s19859_s20 + $0x1b10] sm:$0xff] }
 0x5da   : > { %v17174_v11 = vcombine.high %v1324_v6, %v1328_v7  ;;  %v1383_v61 = vld [vmem:[%s19859_s20 + $0x1b30] sm:$0xff]  ;;  %v1380_v62 = vld [vmem:[%s19859_s20 + $0x1b18] sm:$0xff] }
 0x5db   : > { %v1384_v63 = vld [vmem:[%s19859_s20 + $0x1b38] sm:$0xff] }
 0x5dc   : > { %12851 = vmatpush1.bf16.msra.mxu0 %v17107_v14  ;;  %13453 = vmatpush1.bf16.msra.mxu1 %v17109_v15  ;;  %v1332_v14 = vld [vmem:[%s19859_s20 + $0x1998] sm:$0xff] }
 0x5dd   : > { %12852 = vmatprep.subr.bf16.mxu0 %v17116_v16  ;;  %13454 = vmatprep.subr.bf16.mxu1 %v17118_v17  ;;  %v1336_v15 = vld [vmem:[%s19859_s20 + $0x19b8] sm:$0xff]  ;;  %v17171_v16 = vcombine.low %v1323_v4, %v1327_v5  ;;  %v17173_v17 = vcombine.low %v1324_v6, %v1328_v7  ;;  %v1387_v4 = vld [vmem:[%s19859_s20 + $0x1b50] sm:$0xff] }
 0x5de   : > { %v17182_v19 = vcombine.high %v1332_v14, %v1336_v15  ;;  %v1391_v5 = vld [vmem:[%s19859_s20 + $0x1b70] sm:$0xff]  ;;  %v1388_v6 = vld [vmem:[%s19859_s20 + $0x1b58] sm:$0xff] }
 0x5df   : > { %v1392_v7 = vld [vmem:[%s19859_s20 + $0x1b78] sm:$0xff] }
 0x5e0   : > { %12853 = vmatpush1.bf16.msra.mxu0 %v17115_v22  ;;  %13455 = vmatpush1.bf16.msra.mxu1 %v17117_v23  ;;  %v1340_v22 = vld [vmem:[%s19859_s20 + $0x19d8] sm:$0xff] }
 0x5e1   : > { %12854 = vmatprep.subr.bf16.mxu0 %v17124_v24  ;;  %13456 = vmatprep.subr.bf16.mxu1 %v17126_v25  ;;  %v1344_v23 = vld [vmem:[%s19859_s20 + $0x19f8] sm:$0xff]  ;;  %v17179_v24 = vcombine.low %v1331_v12, %v1335_v13  ;;  %v17181_v25 = vcombine.low %v1332_v14, %v1336_v15  ;;  %v1395_v12 = vld [vmem:[%s19859_s20 + $0x1b90] sm:$0xff] }
 0x5e2   : > { %v17190_v27 = vcombine.high %v1340_v22, %v1344_v23  ;;  %v1399_v13 = vld [vmem:[%s19859_s20 + $0x1bb0] sm:$0xff]  ;;  %v1396_v14 = vld [vmem:[%s19859_s20 + $0x1b98] sm:$0xff] }
 0x5e3   : > { %v1400_v15 = vld [vmem:[%s19859_s20 + $0x1bb8] sm:$0xff] }
 0x5e4   : > { %12855 = vmatpush1.bf16.msra.mxu0 %v17123_v30  ;;  %13457 = vmatpush1.bf16.msra.mxu1 %v17125_v31  ;;  %v1348_v30 = vld [vmem:[%s19859_s20 + $0x1a18] sm:$0xff] }
 0x5e5   : > { %12867 = vmatprep.subr.bf16.mxu0 %v17132_v32  ;;  %13469 = vmatprep.subr.bf16.mxu1 %v17134_v33  ;;  %v1352_v31 = vld [vmem:[%s19859_s20 + $0x1a38] sm:$0xff]  ;;  %v17187_v32 = vcombine.low %v1339_v20, %v1343_v21  ;;  %v17189_v33 = vcombine.low %v1340_v22, %v1344_v23  ;;  %v1403_v20 = vld [vmem:[%s19859_s20 + $0x1bd0] sm:$0xff] }
 0x5e6   : > { %v17198_v35 = vcombine.high %v1348_v30, %v1352_v31  ;;  %v1407_v21 = vld [vmem:[%s19859_s20 + $0x1bf0] sm:$0xff]  ;;  %v1404_v22 = vld [vmem:[%s19859_s20 + $0x1bd8] sm:$0xff] }
 0x5e7   : > { %12857 = vmatmul.mubr.bf16.vlgmr.msra.gmra.mrb[4].mxu0 %v18880_v44  ;;  %13459 = vmatmul.mubr.bf16.vlgmr.msra.gmra.mrb[4].mxu1 %v18880_v44  ;;  %v1363_v44 = vld [vmem:[%s19859_s20 + $0x1a90] sm:$0xff]  ;;  %v1408_v23 = vld [vmem:[%s19859_s20 + $0x1bf8] sm:$0xff] }
 0x5e8   : > { %12868 = vmatpush1.bf16.msra.mxu0 %v17131_v38  ;;  %13470 = vmatpush1.bf16.msra.mxu1 %v17133_v39  ;;  %v1356_v38 = vld [vmem:[%s19859_s20 + $0x1a58] sm:$0xff] }
 0x5e9   : > { %12869 = vmatprep.subr.bf16.mxu0 %v17140_v40  ;;  %13471 = vmatprep.subr.bf16.mxu1 %v17142_v41  ;;  %v1360_v39 = vld [vmem:[%s19859_s20 + $0x1a78] sm:$0xff]  ;;  %v17195_v40 = vcombine.low %v1347_v28, %v1351_v29  ;;  %v17197_v41 = vcombine.low %v1348_v30, %v1352_v31  ;;  %v1411_v28 = vld [vmem:[%s19859_s20 + $0x1c10] sm:$0xff] }
 0x5ea   : > { %12899 = vmatprep.mubr.bf16.mxu0 %v18881_v53  ;;  %13501 = vmatprep.mubr.bf16.mxu1 %v18881_v53  ;;  %v17206_v43 = vcombine.high %v1356_v38, %v1360_v39  ;;  %v1375_v53 = vld [vmem:[%s19859_s20 + $0x1af0] sm:$0xff]  ;;  %v1412_v30 = vld [vmem:[%s19859_s20 + $0x1c18] sm:$0xff] }
 0x5eb   : > { %v1415_v29 = vld [vmem:[%s19859_s20 + $0x1c30] sm:$0xff]  ;;  %v1416_v31 = vld [vmem:[%s19859_s20 + $0x1c38] sm:$0xff] }
 0x5ec   : > { %12870 = vmatpush1.bf16.msra.mxu0 %v17139_v47  ;;  %13472 = vmatpush1.bf16.msra.mxu1 %v17141_v48  ;;  %v1368_v47 = vld [vmem:[%s19859_s20 + $0x1ab8] sm:$0xff]  ;;  %v17203_v48 = vcombine.low %v1355_v36, %v1359_v37  ;;  %v1419_v36 = vld [vmem:[%s19859_s20 + $0x1c50] sm:$0xff] }
 0x5ed   : > { %12871 = vmatprep.subr.bf16.mxu0 %v17148_v49  ;;  %13473 = vmatprep.subr.bf16.mxu1 %v17150_v50  ;;  %v17205_v49 = vcombine.low %v1356_v38, %v1360_v39  ;;  %v17212_v50 = vcombine.high %v1363_v44, %v1367_v45  ;;  %v17214_v51 = vcombine.high %v1364_v46, %v1368_v47  ;;  %v1423_v37 = vld [vmem:[%s19859_s20 + $0x1c70] sm:$0xff]  ;;  %v1420_v38 = vld [vmem:[%s19859_s20 + $0x1c58] sm:$0xff] }
 0x5ee   : > { %v1424_v39 = vld [vmem:[%s19859_s20 + $0x1c78] sm:$0xff] }
 0x5f0   : > { %12872 = vmatpush1.bf16.msra.mxu0 %v17147_v56  ;;  %13474 = vmatpush1.bf16.msra.mxu1 %v17149_v57  ;;  %v17211_v56 = vcombine.low %v1363_v44, %v1367_v45  ;;  %v17213_v57 = vcombine.low %v1364_v46, %v1368_v47  ;;  %v1427_v44 = vld [vmem:[%s19859_s20 + $0x1c90] sm:$0xff]  ;;  %v1428_v47 = vld [vmem:[%s19859_s20 + $0x1c98] sm:$0xff] }
 0x5f1   : > { %12873 = vmatprep.subr.bf16.mxu0 %v17156_v58  ;;  %13475 = vmatprep.subr.bf16.mxu1 %v17158_v59  ;;  %v17220_v58 = vcombine.high %v1371_v52, %v1375_v53  ;;  %v17222_v59 = vcombine.high %v1372_v54, %v1376_v55  ;;  %v1431_v45 = vld [vmem:[%s19859_s20 + $0x1cb0] sm:$0xff] }
 0x5f2   : > { %v18882_v46 = vld [vmem:[%s19857_s27 + $0x30] ss:$112 sps:$4 sm:$0xff]  }
 0x5f4   : > { %12874 = vmatpush1.bf16.msra.mxu0 %v17155_v0  ;;  %13476 = vmatpush1.bf16.msra.mxu1 %v17157_v1  ;;  %v17219_v0 = vcombine.low %v1371_v52, %v1375_v53  ;;  %v17221_v1 = vcombine.low %v1372_v54, %v1376_v55  ;;  %v1435_v53 = vld [vmem:[%s19859_s20 + $0x1cd0] sm:$0xff]  ;;  %v18883_v55 = vld [vmem:[%s19857_s27 + $0x3c] ss:$112 sps:$4 sm:$0xff]  }
 0x5f5   : > { %12875 = vmatprep.subr.bf16.mxu0 %v17164_v2  ;;  %13477 = vmatprep.subr.bf16.mxu1 %v17166_v3  ;;  %v17228_v2 = vcombine.high %v1379_v60, %v1383_v61  ;;  %v17230_v3 = vcombine.high %v1380_v62, %v1384_v63  ;;  %v1439_v54 = vld [vmem:[%s19859_s20 + $0x1cf0] sm:$0xff] }
 0x5f8   : > { %12876 = vmatpush1.bf16.msra.mxu0 %v17163_v8  ;;  %13478 = vmatpush1.bf16.msra.mxu1 %v17165_v9  ;;  %v17227_v8 = vcombine.low %v1379_v60, %v1383_v61  ;;  %v17229_v9 = vcombine.low %v1380_v62, %v1384_v63  ;;  %v17284_v60 = vcombine.high %v1435_v53, %v1439_v54  ;;  %v1443_v62 = vld [vmem:[%s19859_s20 + $0x1d10] sm:$0xff] }
 0x5f9   : > { %12877 = vmatprep.subr.bf16.mxu0 %v17172_v10  ;;  %13479 = vmatprep.subr.bf16.mxu1 %v17174_v11  ;;  %v17236_v10 = vcombine.high %v1387_v4, %v1391_v5  ;;  %v17238_v11 = vcombine.high %v1388_v6, %v1392_v7  ;;  %v1447_v63 = vld [vmem:[%s19859_s20 + $0x1d30] sm:$0xff] }
 0x5fc   : > { %12878 = vmatpush1.bf16.msra.mxu0 %v17171_v16  ;;  %13480 = vmatpush1.bf16.msra.mxu1 %v17173_v17  ;;  %v17235_v16 = vcombine.low %v1387_v4, %v1391_v5  ;;  %v17237_v17 = vcombine.low %v1388_v6, %v1392_v7  ;;  %v17292_v4 = vcombine.high %v1443_v62, %v1447_v63  ;;  %v1451_v6 = vld [vmem:[%s19859_s20 + $0x1d50] sm:$0xff] }
 0x5fd   : > { %12879 = vmatprep.subr.bf16.mxu0 %v17180_v18  ;;  %13481 = vmatprep.subr.bf16.mxu1 %v17182_v19  ;;  %v17244_v18 = vcombine.high %v1395_v12, %v1399_v13  ;;  %v17246_v19 = vcombine.high %v1396_v14, %v1400_v15  ;;  %v1455_v7 = vld [vmem:[%s19859_s20 + $0x1d70] sm:$0xff] }
 0x600   : > { %12880 = vmatpush1.bf16.msra.mxu0 %v17179_v24  ;;  %13482 = vmatpush1.bf16.msra.mxu1 %v17181_v25  ;;  %v17243_v24 = vcombine.low %v1395_v12, %v1399_v13  ;;  %v17245_v25 = vcombine.low %v1396_v14, %v1400_v15  ;;  %v17300_v12 = vcombine.high %v1451_v6, %v1455_v7  ;;  %v1459_v14 = vld [vmem:[%s19859_s20 + $0x1d90] sm:$0xff] }
 0x601   : > { %12881 = vmatprep.subr.bf16.mxu0 %v17188_v26  ;;  %13483 = vmatprep.subr.bf16.mxu1 %v17190_v27  ;;  %v17252_v26 = vcombine.high %v1403_v20, %v1407_v21  ;;  %v17254_v27 = vcombine.high %v1404_v22, %v1408_v23  ;;  %v1463_v15 = vld [vmem:[%s19859_s20 + $0x1db0] sm:$0xff] }
 0x604   : > { %12882 = vmatpush1.bf16.msra.mxu0 %v17187_v32  ;;  %13484 = vmatpush1.bf16.msra.mxu1 %v17189_v33  ;;  %v17251_v32 = vcombine.low %v1403_v20, %v1407_v21  ;;  %v17253_v33 = vcombine.low %v1404_v22, %v1408_v23  ;;  %v17308_v20 = vcombine.high %v1459_v14, %v1463_v15  ;;  %v1467_v22 = vld [vmem:[%s19859_s20 + $0x1dd0] sm:$0xff] }
 0x605   : > { %12883 = vmatprep.subr.bf16.mxu0 %v17196_v34  ;;  %13485 = vmatprep.subr.bf16.mxu1 %v17198_v35  ;;  %v17260_v34 = vcombine.high %v1411_v28, %v1415_v29  ;;  %v17262_v35 = vcombine.high %v1412_v30, %v1416_v31  ;;  %v1471_v23 = vld [vmem:[%s19859_s20 + $0x1df0] sm:$0xff] }
 0x608   : > { %12884 = vmatpush1.bf16.msra.mxu0 %v17195_v40  ;;  %13486 = vmatpush1.bf16.msra.mxu1 %v17197_v41  ;;  %v17259_v40 = vcombine.low %v1411_v28, %v1415_v29  ;;  %v17261_v41 = vcombine.low %v1412_v30, %v1416_v31  ;;  %v17316_v28 = vcombine.high %v1467_v22, %v1471_v23  ;;  %v1475_v30 = vld [vmem:[%s19859_s20 + $0x1e10] sm:$0xff] }
 0x609   : > { %12885 = vmatprep.subr.bf16.mxu0 %v17204_v42  ;;  %13487 = vmatprep.subr.bf16.mxu1 %v17206_v43  ;;  %v17268_v42 = vcombine.high %v1419_v36, %v1423_v37  ;;  %v17270_v43 = vcombine.high %v1420_v38, %v1424_v39  ;;  %v1479_v31 = vld [vmem:[%s19859_s20 + $0x1e30] sm:$0xff] }
 0x60c   : > { %12886 = vmatpush1.bf16.msra.mxu0 %v17203_v48  ;;  %13488 = vmatpush1.bf16.msra.mxu1 %v17205_v49  ;;  %v1432_v48 = vld [vmem:[%s19859_s20 + $0x1cb8] sm:$0xff]  ;;  %v17267_v49 = vcombine.low %v1419_v36, %v1423_v37  ;;  %v17324_v36 = vcombine.high %v1475_v30, %v1479_v31 }
 0x60d   : > { %12887 = vmatprep.subr.bf16.mxu0 %v17212_v50  ;;  %13489 = vmatprep.subr.bf16.mxu1 %v17214_v51  ;;  %v17269_v50 = vcombine.low %v1420_v38, %v1424_v39  ;;  %v17276_v51 = vcombine.high %v1427_v44, %v1431_v45  ;;  %v17278_v52 = vcombine.high %v1428_v47, %v1432_v48  ;;  %v1483_v38 = vld [vmem:[%s19859_s20 + $0x1e50] sm:$0xff] }
 0x60e   : > { %v1487_v39 = vld [vmem:[%s19859_s20 + $0x1e70] sm:$0xff] }
 0x610   : > { %12888 = vmatpush1.bf16.msra.mxu0 %v17211_v56  ;;  %13490 = vmatpush1.bf16.msra.mxu1 %v17213_v57  ;;  %v1436_v56 = vld [vmem:[%s19859_s20 + $0x1cd8] sm:$0xff] }
 0x611   : > { %12889 = vmatprep.subr.bf16.mxu0 %v17220_v58  ;;  %13491 = vmatprep.subr.bf16.mxu1 %v17222_v59  ;;  %v1440_v57 = vld [vmem:[%s19859_s20 + $0x1cf8] sm:$0xff]  ;;  %v17275_v58 = vcombine.low %v1427_v44, %v1431_v45  ;;  %v17277_v59 = vcombine.low %v1428_v47, %v1432_v48  ;;  %v17332_v44 = vcombine.high %v1483_v38, %v1487_v39  ;;  %v1495_v47 = vld [vmem:[%s19859_s20 + $0x1eb0] sm:$0xff] }
 0x612   : > { %v17286_v61 = vcombine.high %v1436_v56, %v1440_v57  ;;  %v1492_v48 = vld [vmem:[%s19859_s20 + $0x1e98] sm:$0xff] }
 0x614   : > { %12890 = vmatpush1.bf16.msra.mxu0 %v17219_v0  ;;  %13492 = vmatpush1.bf16.msra.mxu1 %v17221_v1  ;;  %v1444_v0 = vld [vmem:[%s19859_s20 + $0x1d18] sm:$0xff] }
 0x615   : > { %12891 = vmatprep.subr.bf16.mxu0 %v17228_v2  ;;  %13493 = vmatprep.subr.bf16.mxu1 %v17230_v3  ;;  %v1448_v1 = vld [vmem:[%s19859_s20 + $0x1d38] sm:$0xff]  ;;  %v17283_v2 = vcombine.low %v1435_v53, %v1439_v54  ;;  %v17285_v3 = vcombine.low %v1436_v56, %v1440_v57  ;;  %v1499_v54 = vld [vmem:[%s19859_s20 + $0x1ed0] sm:$0xff] }
 0x616   : > { %v17294_v5 = vcombine.high %v1444_v0, %v1448_v1  ;;  %v1500_v56 = vld [vmem:[%s19859_s20 + $0x1ed8] sm:$0xff] }
 0x617   : > { %v1504_v57 = vld [vmem:[%s19859_s20 + $0x1ef8] sm:$0xff] }
 0x618   : > { %12892 = vmatpush1.bf16.msra.mxu0 %v17227_v8  ;;  %13494 = vmatpush1.bf16.msra.mxu1 %v17229_v9  ;;  %v1452_v8 = vld [vmem:[%s19859_s20 + $0x1d58] sm:$0xff] }
 0x619   : > { %12893 = vmatprep.subr.bf16.mxu0 %v17236_v10  ;;  %13495 = vmatprep.subr.bf16.mxu1 %v17238_v11  ;;  %v1456_v9 = vld [vmem:[%s19859_s20 + $0x1d78] sm:$0xff]  ;;  %v17291_v10 = vcombine.low %v1443_v62, %v1447_v63  ;;  %v17293_v11 = vcombine.low %v1444_v0, %v1448_v1  ;;  %v1507_v62 = vld [vmem:[%s19859_s20 + $0x1f10] sm:$0xff] }
 0x61a   : > { %v17302_v13 = vcombine.high %v1452_v8, %v1456_v9  ;;  %v1511_v63 = vld [vmem:[%s19859_s20 + $0x1f30] sm:$0xff]  ;;  %v1508_v0 = vld [vmem:[%s19859_s20 + $0x1f18] sm:$0xff] }
 0x61b   : > { %v1512_v1 = vld [vmem:[%s19859_s20 + $0x1f38] sm:$0xff] }
 0x61c   : > { %12894 = vmatpush1.bf16.msra.mxu0 %v17235_v16  ;;  %13496 = vmatpush1.bf16.msra.mxu1 %v17237_v17  ;;  %v1460_v16 = vld [vmem:[%s19859_s20 + $0x1d98] sm:$0xff] }
 0x61d   : > { %12895 = vmatprep.subr.bf16.mxu0 %v17244_v18  ;;  %13497 = vmatprep.subr.bf16.mxu1 %v17246_v19  ;;  %v1464_v17 = vld [vmem:[%s19859_s20 + $0x1db8] sm:$0xff]  ;;  %v17299_v18 = vcombine.low %v1451_v6, %v1455_v7  ;;  %v17301_v19 = vcombine.low %v1452_v8, %v1456_v9  ;;  %v1515_v6 = vld [vmem:[%s19859_s20 + $0x1f50] sm:$0xff] }
 0x61e   : > { %v17310_v21 = vcombine.high %v1460_v16, %v1464_v17  ;;  %v1519_v7 = vld [vmem:[%s19859_s20 + $0x1f70] sm:$0xff]  ;;  %v1516_v8 = vld [vmem:[%s19859_s20 + $0x1f58] sm:$0xff] }
 0x61f   : > { %v1520_v9 = vld [vmem:[%s19859_s20 + $0x1f78] sm:$0xff] }
 0x620   : > { %12896 = vmatpush1.bf16.msra.mxu0 %v17243_v24  ;;  %13498 = vmatpush1.bf16.msra.mxu1 %v17245_v25  ;;  %v1468_v24 = vld [vmem:[%s19859_s20 + $0x1dd8] sm:$0xff] }
 0x621   : > { %12897 = vmatprep.subr.bf16.mxu0 %v17252_v26  ;;  %13499 = vmatprep.subr.bf16.mxu1 %v17254_v27  ;;  %v1472_v25 = vld [vmem:[%s19859_s20 + $0x1df8] sm:$0xff]  ;;  %v17307_v26 = vcombine.low %v1459_v14, %v1463_v15  ;;  %v17309_v27 = vcombine.low %v1460_v16, %v1464_v17  ;;  %v1523_v14 = vld [vmem:[%s19859_s20 + $0x1f90] sm:$0xff] }
 0x622   : > { %v17318_v29 = vcombine.high %v1468_v24, %v1472_v25  ;;  %v1527_v15 = vld [vmem:[%s19859_s20 + $0x1fb0] sm:$0xff]  ;;  %v1524_v16 = vld [vmem:[%s19859_s20 + $0x1f98] sm:$0xff] }
 0x623   : > { %v1528_v17 = vld [vmem:[%s19859_s20 + $0x1fb8] sm:$0xff] }
 0x624   : > { %12898 = vmatpush1.bf16.msra.mxu0 %v17251_v32  ;;  %13500 = vmatpush1.bf16.msra.mxu1 %v17253_v33  ;;  %v1476_v32 = vld [vmem:[%s19859_s20 + $0x1e18] sm:$0xff] }
 0x625   : > { %12910 = vmatprep.subr.bf16.mxu0 %v17260_v34  ;;  %13512 = vmatprep.subr.bf16.mxu1 %v17262_v35  ;;  %v1480_v33 = vld [vmem:[%s19859_s20 + $0x1e38] sm:$0xff]  ;;  %v17315_v34 = vcombine.low %v1467_v22, %v1471_v23  ;;  %v17317_v35 = vcombine.low %v1468_v24, %v1472_v25  ;;  %v1531_v22 = vld [vmem:[%s19859_s20 + $0x1fd0] sm:$0xff] }
 0x626   : > { %v17326_v37 = vcombine.high %v1476_v32, %v1480_v33  ;;  %v1535_v23 = vld [vmem:[%s19859_s20 + $0x1ff0] sm:$0xff]  ;;  %v1532_v24 = vld [vmem:[%s19859_s20 + $0x1fd8] sm:$0xff] }
 0x627   : > { %12900 = vmatmul.mubr.bf16.vlgmr.msra.gmra.mrb[4].mxu0 %v18882_v46  ;;  %13502 = vmatmul.mubr.bf16.vlgmr.msra.gmra.mrb[4].mxu1 %v18882_v46  ;;  %v1491_v46 = vld [vmem:[%s19859_s20 + $0x1e90] sm:$0xff]  ;;  %v1536_v25 = vld [vmem:[%s19859_s20 + $0x1ff8] sm:$0xff] }
 0x628   : > { %12911 = vmatpush1.bf16.msra.mxu0 %v17259_v40  ;;  %13513 = vmatpush1.bf16.msra.mxu1 %v17261_v41  ;;  %v1484_v40 = vld [vmem:[%s19859_s20 + $0x1e58] sm:$0xff] }
 0x629   : > { %12912 = vmatprep.subr.bf16.mxu0 %v17268_v42  ;;  %13514 = vmatprep.subr.bf16.mxu1 %v17270_v43  ;;  %v1488_v41 = vld [vmem:[%s19859_s20 + $0x1e78] sm:$0xff]  ;;  %v17323_v42 = vcombine.low %v1475_v30, %v1479_v31  ;;  %v17325_v43 = vcombine.low %v1476_v32, %v1480_v33  ;;  %v1539_v30 = vld [vmem:[%s19859_s20 + $0x2010] sm:$0xff] }
 0x62a   : > { %12942 = vmatprep.mubr.bf16.mxu0 %v18883_v55  ;;  %13544 = vmatprep.mubr.bf16.mxu1 %v18883_v55  ;;  %v17334_v45 = vcombine.high %v1484_v40, %v1488_v41  ;;  %v1503_v55 = vld [vmem:[%s19859_s20 + $0x1ef0] sm:$0xff]  ;;  %v1540_v32 = vld [vmem:[%s19859_s20 + $0x2018] sm:$0xff] }
 0x62b   : > { %v1543_v31 = vld [vmem:[%s19859_s20 + $0x2030] sm:$0xff]  ;;  %v1544_v33 = vld [vmem:[%s19859_s20 + $0x2038] sm:$0xff] }
 0x62c   : > { %12913 = vmatpush1.bf16.msra.mxu0 %v17267_v49  ;;  %13515 = vmatpush1.bf16.msra.mxu1 %v17269_v50  ;;  %v1496_v49 = vld [vmem:[%s19859_s20 + $0x1eb8] sm:$0xff]  ;;  %v17331_v50 = vcombine.low %v1483_v38, %v1487_v39  ;;  %v1547_v38 = vld [vmem:[%s19859_s20 + $0x2050] sm:$0xff] }
 0x62d   : > { %12914 = vmatprep.subr.bf16.mxu0 %v17276_v51  ;;  %13516 = vmatprep.subr.bf16.mxu1 %v17278_v52  ;;  %v17333_v51 = vcombine.low %v1484_v40, %v1488_v41  ;;  %v17340_v52 = vcombine.high %v1491_v46, %v1495_v47  ;;  %v17342_v53 = vcombine.high %v1492_v48, %v1496_v49  ;;  %v1551_v39 = vld [vmem:[%s19859_s20 + $0x2070] sm:$0xff]  ;;  %v1548_v40 = vld [vmem:[%s19859_s20 + $0x2058] sm:$0xff] }
 0x62e   : > { %v1552_v41 = vld [vmem:[%s19859_s20 + $0x2078] sm:$0xff] }
 0x630   : > { %12915 = vmatpush1.bf16.msra.mxu0 %v17275_v58  ;;  %13517 = vmatpush1.bf16.msra.mxu1 %v17277_v59  ;;  %v17339_v58 = vcombine.low %v1491_v46, %v1495_v47  ;;  %v17341_v59 = vcombine.low %v1492_v48, %v1496_v49  ;;  %v1555_v46 = vld [vmem:[%s19859_s20 + $0x2090] sm:$0xff]  ;;  %v18884_v48 = vld [vmem:[%s19857_s27 + $0x38] ss:$112 sps:$4 sm:$0xff]  }
 0x631   : > { %12916 = vmatprep.subr.bf16.mxu0 %v17284_v60  ;;  %13518 = vmatprep.subr.bf16.mxu1 %v17286_v61  ;;  %v17348_v60 = vcombine.high %v1499_v54, %v1503_v55  ;;  %v17350_v61 = vcombine.high %v1500_v56, %v1504_v57  ;;  %v1559_v47 = vld [vmem:[%s19859_s20 + $0x20b0] sm:$0xff]  ;;  %v1556_v49 = vld [vmem:[%s19859_s20 + $0x2098] sm:$0xff] }
 0x634   : > { %12917 = vmatpush1.bf16.msra.mxu0 %v17283_v2  ;;  %13519 = vmatpush1.bf16.msra.mxu1 %v17285_v3  ;;  %v17347_v2 = vcombine.low %v1499_v54, %v1503_v55  ;;  %v17349_v3 = vcombine.low %v1500_v56, %v1504_v57  ;;  %v1563_v55 = vld [vmem:[%s19859_s20 + $0x20d0] sm:$0xff] }
 0x635   : > { %12918 = vmatprep.subr.bf16.mxu0 %v17292_v4  ;;  %13520 = vmatprep.subr.bf16.mxu1 %v17294_v5  ;;  %v17356_v4 = vcombine.high %v1507_v62, %v1511_v63  ;;  %v17358_v5 = vcombine.high %v1508_v0, %v1512_v1  ;;  %v1567_v56 = vld [vmem:[%s19859_s20 + $0x20f0] sm:$0xff] }
 0x636   : > { %v18885_v57 = vld [vmem:[%s19857_s27 + $0x44] ss:$112 sps:$4 sm:$0xff]  }
 0x638   : > { %12919 = vmatpush1.bf16.msra.mxu0 %v17291_v10  ;;  %13521 = vmatpush1.bf16.msra.mxu1 %v17293_v11  ;;  %v17355_v10 = vcombine.low %v1507_v62, %v1511_v63  ;;  %v17357_v11 = vcombine.low %v1508_v0, %v1512_v1  ;;  %v17412_v62 = vcombine.high %v1563_v55, %v1567_v56  ;;  %v1571_v0 = vld [vmem:[%s19859_s20 + $0x2110] sm:$0xff] }
 0x639   : > { %12920 = vmatprep.subr.bf16.mxu0 %v17300_v12  ;;  %13522 = vmatprep.subr.bf16.mxu1 %v17302_v13  ;;  %v17364_v12 = vcombine.high %v1515_v6, %v1519_v7  ;;  %v17366_v13 = vcombine.high %v1516_v8, %v1520_v9  ;;  %v1575_v1 = vld [vmem:[%s19859_s20 + $0x2130] sm:$0xff] }
 0x63c   : > { %12921 = vmatpush1.bf16.msra.mxu0 %v17299_v18  ;;  %13523 = vmatpush1.bf16.msra.mxu1 %v17301_v19  ;;  %v17363_v18 = vcombine.low %v1515_v6, %v1519_v7  ;;  %v17365_v19 = vcombine.low %v1516_v8, %v1520_v9  ;;  %v17420_v6 = vcombine.high %v1571_v0, %v1575_v1  ;;  %v1579_v8 = vld [vmem:[%s19859_s20 + $0x2150] sm:$0xff] }
 0x63d   : > { %12922 = vmatprep.subr.bf16.mxu0 %v17308_v20  ;;  %13524 = vmatprep.subr.bf16.mxu1 %v17310_v21  ;;  %v17372_v20 = vcombine.high %v1523_v14, %v1527_v15  ;;  %v17374_v21 = vcombine.high %v1524_v16, %v1528_v17  ;;  %v1583_v9 = vld [vmem:[%s19859_s20 + $0x2170] sm:$0xff] }
 0x640   : > { %12923 = vmatpush1.bf16.msra.mxu0 %v17307_v26  ;;  %13525 = vmatpush1.bf16.msra.mxu1 %v17309_v27  ;;  %v17371_v26 = vcombine.low %v1523_v14, %v1527_v15  ;;  %v17373_v27 = vcombine.low %v1524_v16, %v1528_v17  ;;  %v17428_v14 = vcombine.high %v1579_v8, %v1583_v9  ;;  %v1587_v16 = vld [vmem:[%s19859_s20 + $0x2190] sm:$0xff] }
 0x641   : > { %12924 = vmatprep.subr.bf16.mxu0 %v17316_v28  ;;  %13526 = vmatprep.subr.bf16.mxu1 %v17318_v29  ;;  %v17380_v28 = vcombine.high %v1531_v22, %v1535_v23  ;;  %v17382_v29 = vcombine.high %v1532_v24, %v1536_v25  ;;  %v1591_v17 = vld [vmem:[%s19859_s20 + $0x21b0] sm:$0xff] }
 0x644   : > { %12925 = vmatpush1.bf16.msra.mxu0 %v17315_v34  ;;  %13527 = vmatpush1.bf16.msra.mxu1 %v17317_v35  ;;  %v17379_v34 = vcombine.low %v1531_v22, %v1535_v23  ;;  %v17381_v35 = vcombine.low %v1532_v24, %v1536_v25  ;;  %v17436_v22 = vcombine.high %v1587_v16, %v1591_v17  ;;  %v1595_v24 = vld [vmem:[%s19859_s20 + $0x21d0] sm:$0xff] }
 0x645   : > { %12926 = vmatprep.subr.bf16.mxu0 %v17324_v36  ;;  %13528 = vmatprep.subr.bf16.mxu1 %v17326_v37  ;;  %v17388_v36 = vcombine.high %v1539_v30, %v1543_v31  ;;  %v17390_v37 = vcombine.high %v1540_v32, %v1544_v33  ;;  %v1599_v25 = vld [vmem:[%s19859_s20 + $0x21f0] sm:$0xff] }
 0x648   : > { %12927 = vmatpush1.bf16.msra.mxu0 %v17323_v42  ;;  %13529 = vmatpush1.bf16.msra.mxu1 %v17325_v43  ;;  %v17387_v42 = vcombine.low %v1539_v30, %v1543_v31  ;;  %v17389_v43 = vcombine.low %v1540_v32, %v1544_v33  ;;  %v17444_v30 = vcombine.high %v1595_v24, %v1599_v25  ;;  %v1603_v32 = vld [vmem:[%s19859_s20 + $0x2210] sm:$0xff] }
 0x649   : > { %12928 = vmatprep.subr.bf16.mxu0 %v17332_v44  ;;  %13530 = vmatprep.subr.bf16.mxu1 %v17334_v45  ;;  %v17396_v44 = vcombine.high %v1547_v38, %v1551_v39  ;;  %v17398_v45 = vcombine.high %v1548_v40, %v1552_v41  ;;  %v1607_v33 = vld [vmem:[%s19859_s20 + $0x2230] sm:$0xff] }
 0x64c   : > { %12929 = vmatpush1.bf16.msra.mxu0 %v17331_v50  ;;  %13531 = vmatpush1.bf16.msra.mxu1 %v17333_v51  ;;  %v1560_v50 = vld [vmem:[%s19859_s20 + $0x20b8] sm:$0xff]  ;;  %v17395_v51 = vcombine.low %v1547_v38, %v1551_v39  ;;  %v17452_v38 = vcombine.high %v1603_v32, %v1607_v33 }
 0x64d   : > { %12930 = vmatprep.subr.bf16.mxu0 %v17340_v52  ;;  %13532 = vmatprep.subr.bf16.mxu1 %v17342_v53  ;;  %v17397_v52 = vcombine.low %v1548_v40, %v1552_v41  ;;  %v17404_v53 = vcombine.high %v1555_v46, %v1559_v47  ;;  %v17406_v54 = vcombine.high %v1556_v49, %v1560_v50  ;;  %v1611_v40 = vld [vmem:[%s19859_s20 + $0x2250] sm:$0xff] }
 0x64e   : > { %v1615_v41 = vld [vmem:[%s19859_s20 + $0x2270] sm:$0xff] }
 0x650   : > { %12931 = vmatpush1.bf16.msra.mxu0 %v17339_v58  ;;  %13533 = vmatpush1.bf16.msra.mxu1 %v17341_v59  ;;  %v1564_v58 = vld [vmem:[%s19859_s20 + $0x20d8] sm:$0xff] }
 0x651   : > { %12932 = vmatprep.subr.bf16.mxu0 %v17348_v60  ;;  %13534 = vmatprep.subr.bf16.mxu1 %v17350_v61  ;;  %v1568_v59 = vld [vmem:[%s19859_s20 + $0x20f8] sm:$0xff]  ;;  %v17403_v60 = vcombine.low %v1555_v46, %v1559_v47  ;;  %v17405_v61 = vcombine.low %v1556_v49, %v1560_v50  ;;  %v17460_v46 = vcombine.high %v1611_v40, %v1615_v41  ;;  %v1623_v49 = vld [vmem:[%s19859_s20 + $0x22b0] sm:$0xff] }
 0x652   : > { %v17414_v63 = vcombine.high %v1564_v58, %v1568_v59  ;;  %v1620_v50 = vld [vmem:[%s19859_s20 + $0x2298] sm:$0xff] }
 0x654   : > { %12933 = vmatpush1.bf16.msra.mxu0 %v17347_v2  ;;  %13535 = vmatpush1.bf16.msra.mxu1 %v17349_v3  ;;  %v1572_v2 = vld [vmem:[%s19859_s20 + $0x2118] sm:$0xff] }
 0x655   : > { %12934 = vmatprep.subr.bf16.mxu0 %v17356_v4  ;;  %13536 = vmatprep.subr.bf16.mxu1 %v17358_v5  ;;  %v1576_v3 = vld [vmem:[%s19859_s20 + $0x2138] sm:$0xff]  ;;  %v17411_v4 = vcombine.low %v1563_v55, %v1567_v56  ;;  %v17413_v5 = vcombine.low %v1564_v58, %v1568_v59  ;;  %v1627_v56 = vld [vmem:[%s19859_s20 + $0x22d0] sm:$0xff] }
 0x656   : > { %v17422_v7 = vcombine.high %v1572_v2, %v1576_v3  ;;  %v1628_v58 = vld [vmem:[%s19859_s20 + $0x22d8] sm:$0xff] }
 0x657   : > { %v1632_v59 = vld [vmem:[%s19859_s20 + $0x22f8] sm:$0xff] }
 0x658   : > { %12935 = vmatpush1.bf16.msra.mxu0 %v17355_v10  ;;  %13537 = vmatpush1.bf16.msra.mxu1 %v17357_v11  ;;  %v1580_v10 = vld [vmem:[%s19859_s20 + $0x2158] sm:$0xff] }
 0x659   : > { %12936 = vmatprep.subr.bf16.mxu0 %v17364_v12  ;;  %13538 = vmatprep.subr.bf16.mxu1 %v17366_v13  ;;  %v1584_v11 = vld [vmem:[%s19859_s20 + $0x2178] sm:$0xff]  ;;  %v17419_v12 = vcombine.low %v1571_v0, %v1575_v1  ;;  %v17421_v13 = vcombine.low %v1572_v2, %v1576_v3  ;;  %v1635_v0 = vld [vmem:[%s19859_s20 + $0x2310] sm:$0xff] }
 0x65a   : > { %v17430_v15 = vcombine.high %v1580_v10, %v1584_v11  ;;  %v1639_v1 = vld [vmem:[%s19859_s20 + $0x2330] sm:$0xff]  ;;  %v1636_v2 = vld [vmem:[%s19859_s20 + $0x2318] sm:$0xff] }
 0x65b   : > { %v1640_v3 = vld [vmem:[%s19859_s20 + $0x2338] sm:$0xff] }
 0x65c   : > { %12937 = vmatpush1.bf16.msra.mxu0 %v17363_v18  ;;  %13539 = vmatpush1.bf16.msra.mxu1 %v17365_v19  ;;  %v1588_v18 = vld [vmem:[%s19859_s20 + $0x2198] sm:$0xff] }
 0x65d   : > { %12938 = vmatprep.subr.bf16.mxu0 %v17372_v20  ;;  %13540 = vmatprep.subr.bf16.mxu1 %v17374_v21  ;;  %v1592_v19 = vld [vmem:[%s19859_s20 + $0x21b8] sm:$0xff]  ;;  %v17427_v20 = vcombine.low %v1579_v8, %v1583_v9  ;;  %v17429_v21 = vcombine.low %v1580_v10, %v1584_v11  ;;  %v1643_v8 = vld [vmem:[%s19859_s20 + $0x2350] sm:$0xff] }
 0x65e   : > { %v17438_v23 = vcombine.high %v1588_v18, %v1592_v19  ;;  %v1647_v9 = vld [vmem:[%s19859_s20 + $0x2370] sm:$0xff]  ;;  %v1644_v10 = vld [vmem:[%s19859_s20 + $0x2358] sm:$0xff] }
 0x65f   : > { %v1648_v11 = vld [vmem:[%s19859_s20 + $0x2378] sm:$0xff] }
 0x660   : > { %12939 = vmatpush1.bf16.msra.mxu0 %v17371_v26  ;;  %13541 = vmatpush1.bf16.msra.mxu1 %v17373_v27  ;;  %v1596_v26 = vld [vmem:[%s19859_s20 + $0x21d8] sm:$0xff] }
 0x661   : > { %12940 = vmatprep.subr.bf16.mxu0 %v17380_v28  ;;  %13542 = vmatprep.subr.bf16.mxu1 %v17382_v29  ;;  %v1600_v27 = vld [vmem:[%s19859_s20 + $0x21f8] sm:$0xff]  ;;  %v17435_v28 = vcombine.low %v1587_v16, %v1591_v17  ;;  %v17437_v29 = vcombine.low %v1588_v18, %v1592_v19  ;;  %v1651_v16 = vld [vmem:[%s19859_s20 + $0x2390] sm:$0xff] }
 0x662   : > { %v17446_v31 = vcombine.high %v1596_v26, %v1600_v27  ;;  %v1655_v17 = vld [vmem:[%s19859_s20 + $0x23b0] sm:$0xff]  ;;  %v1652_v18 = vld [vmem:[%s19859_s20 + $0x2398] sm:$0xff] }
 0x663   : > { %v1656_v19 = vld [vmem:[%s19859_s20 + $0x23b8] sm:$0xff] }
 0x664   : > { %12941 = vmatpush1.bf16.msra.mxu0 %v17379_v34  ;;  %13543 = vmatpush1.bf16.msra.mxu1 %v17381_v35  ;;  %v1604_v34 = vld [vmem:[%s19859_s20 + $0x2218] sm:$0xff] }
 0x665   : > { %12953 = vmatprep.subr.bf16.mxu0 %v17388_v36  ;;  %13555 = vmatprep.subr.bf16.mxu1 %v17390_v37  ;;  %v1608_v35 = vld [vmem:[%s19859_s20 + $0x2238] sm:$0xff]  ;;  %v17443_v36 = vcombine.low %v1595_v24, %v1599_v25  ;;  %v17445_v37 = vcombine.low %v1596_v26, %v1600_v27  ;;  %v1659_v24 = vld [vmem:[%s19859_s20 + $0x23d0] sm:$0xff] }
 0x666   : > { %v17454_v39 = vcombine.high %v1604_v34, %v1608_v35  ;;  %v1663_v25 = vld [vmem:[%s19859_s20 + $0x23f0] sm:$0xff]  ;;  %v1660_v26 = vld [vmem:[%s19859_s20 + $0x23d8] sm:$0xff] }
 0x667   : > { %12943 = vmatmul.mubr.bf16.vlgmr.msra.gmra.mrb[4].mxu0 %v18884_v48  ;;  %13545 = vmatmul.mubr.bf16.vlgmr.msra.gmra.mrb[4].mxu1 %v18884_v48  ;;  %v1619_v48 = vld [vmem:[%s19859_s20 + $0x2290] sm:$0xff]  ;;  %v1664_v27 = vld [vmem:[%s19859_s20 + $0x23f8] sm:$0xff] }
 0x668   : > { %12954 = vmatpush1.bf16.msra.mxu0 %v17387_v42  ;;  %13556 = vmatpush1.bf16.msra.mxu1 %v17389_v43  ;;  %v1612_v42 = vld [vmem:[%s19859_s20 + $0x2258] sm:$0xff] }
 0x669   : > { %12955 = vmatprep.subr.bf16.mxu0 %v17396_v44  ;;  %13557 = vmatprep.subr.bf16.mxu1 %v17398_v45  ;;  %v1616_v43 = vld [vmem:[%s19859_s20 + $0x2278] sm:$0xff]  ;;  %v17451_v44 = vcombine.low %v1603_v32, %v1607_v33  ;;  %v17453_v45 = vcombine.low %v1604_v34, %v1608_v35  ;;  %v1667_v32 = vld [vmem:[%s19859_s20 + $0x2410] sm:$0xff] }
 0x66a   : > { %12985 = vmatprep.mubr.bf16.mxu0 %v18885_v57  ;;  %13587 = vmatprep.mubr.bf16.mxu1 %v18885_v57  ;;  %v17462_v47 = vcombine.high %v1612_v42, %v1616_v43  ;;  %v1631_v57 = vld [vmem:[%s19859_s20 + $0x22f0] sm:$0xff]  ;;  %v1668_v34 = vld [vmem:[%s19859_s20 + $0x2418] sm:$0xff] }
 0x66b   : > { %v1671_v33 = vld [vmem:[%s19859_s20 + $0x2430] sm:$0xff]  ;;  %v1672_v35 = vld [vmem:[%s19859_s20 + $0x2438] sm:$0xff] }
 0x66c   : > { %12956 = vmatpush1.bf16.msra.mxu0 %v17395_v51  ;;  %13558 = vmatpush1.bf16.msra.mxu1 %v17397_v52  ;;  %v1624_v51 = vld [vmem:[%s19859_s20 + $0x22b8] sm:$0xff]  ;;  %v17459_v52 = vcombine.low %v1611_v40, %v1615_v41  ;;  %v1675_v40 = vld [vmem:[%s19859_s20 + $0x2450] sm:$0xff] }
 0x66d   : > { %12957 = vmatprep.subr.bf16.mxu0 %v17404_v53  ;;  %13559 = vmatprep.subr.bf16.mxu1 %v17406_v54  ;;  %v17461_v53 = vcombine.low %v1612_v42, %v1616_v43  ;;  %v17468_v54 = vcombine.high %v1619_v48, %v1623_v49  ;;  %v17470_v55 = vcombine.high %v1620_v50, %v1624_v51  ;;  %v1679_v41 = vld [vmem:[%s19859_s20 + $0x2470] sm:$0xff]  ;;  %v1676_v42 = vld [vmem:[%s19859_s20 + $0x2458] sm:$0xff] }
 0x66e   : > { %v1680_v43 = vld [vmem:[%s19859_s20 + $0x2478] sm:$0xff] }
 0x670   : > { %12958 = vmatpush1.bf16.msra.mxu0 %v17403_v60  ;;  %13560 = vmatpush1.bf16.msra.mxu1 %v17405_v61  ;;  %v17467_v60 = vcombine.low %v1619_v48, %v1623_v49  ;;  %v17469_v61 = vcombine.low %v1620_v50, %v1624_v51  ;;  %v1683_v48 = vld [vmem:[%s19859_s20 + $0x2490] sm:$0xff]  ;;  %v1684_v51 = vld [vmem:[%s19859_s20 + $0x2498] sm:$0xff] }
 0x671   : > { %12959 = vmatprep.subr.bf16.mxu0 %v17412_v62  ;;  %13561 = vmatprep.subr.bf16.mxu1 %v17414_v63  ;;  %v17476_v62 = vcombine.high %v1627_v56, %v1631_v57  ;;  %v17478_v63 = vcombine.high %v1628_v58, %v1632_v59  ;;  %v1687_v49 = vld [vmem:[%s19859_s20 + $0x24b0] sm:$0xff] }
 0x672   : > { %v18886_v50 = vld [vmem:[%s19857_s27 + $0x40] ss:$112 sps:$4 sm:$0xff]  }
 0x674   : > { %12960 = vmatpush1.bf16.msra.mxu0 %v17411_v4  ;;  %13562 = vmatpush1.bf16.msra.mxu1 %v17413_v5  ;;  %v17475_v4 = vcombine.low %v1627_v56, %v1631_v57  ;;  %v17477_v5 = vcombine.low %v1628_v58, %v1632_v59  ;;  %v1691_v57 = vld [vmem:[%s19859_s20 + $0x24d0] sm:$0xff]  ;;  %v18887_v59 = vld [vmem:[%s19857_s27 + $0x4c] ss:$112 sps:$4 sm:$0xff]  }
 0x675   : > { %12961 = vmatprep.subr.bf16.mxu0 %v17420_v6  ;;  %13563 = vmatprep.subr.bf16.mxu1 %v17422_v7  ;;  %v17484_v6 = vcombine.high %v1635_v0, %v1639_v1  ;;  %v17486_v7 = vcombine.high %v1636_v2, %v1640_v3  ;;  %v1695_v58 = vld [vmem:[%s19859_s20 + $0x24f0] sm:$0xff] }
 0x678   : > { %12962 = vmatpush1.bf16.msra.mxu0 %v17419_v12  ;;  %13564 = vmatpush1.bf16.msra.mxu1 %v17421_v13  ;;  %v17483_v12 = vcombine.low %v1635_v0, %v1639_v1  ;;  %v17485_v13 = vcombine.low %v1636_v2, %v1640_v3  ;;  %v17540_v0 = vcombine.high %v1691_v57, %v1695_v58  ;;  %v1699_v2 = vld [vmem:[%s19859_s20 + $0x2510] sm:$0xff] }
 0x679   : > { %12963 = vmatprep.subr.bf16.mxu0 %v17428_v14  ;;  %13565 = vmatprep.subr.bf16.mxu1 %v17430_v15  ;;  %v17492_v14 = vcombine.high %v1643_v8, %v1647_v9  ;;  %v17494_v15 = vcombine.high %v1644_v10, %v1648_v11  ;;  %v1703_v3 = vld [vmem:[%s19859_s20 + $0x2530] sm:$0xff] }
 0x67c   : > { %12964 = vmatpush1.bf16.msra.mxu0 %v17427_v20  ;;  %13566 = vmatpush1.bf16.msra.mxu1 %v17429_v21  ;;  %v17491_v20 = vcombine.low %v1643_v8, %v1647_v9  ;;  %v17493_v21 = vcombine.low %v1644_v10, %v1648_v11  ;;  %v17548_v8 = vcombine.high %v1699_v2, %v1703_v3  ;;  %v1707_v10 = vld [vmem:[%s19859_s20 + $0x2550] sm:$0xff] }
 0x67d   : > { %12965 = vmatprep.subr.bf16.mxu0 %v17436_v22  ;;  %13567 = vmatprep.subr.bf16.mxu1 %v17438_v23  ;;  %v17500_v22 = vcombine.high %v1651_v16, %v1655_v17  ;;  %v17502_v23 = vcombine.high %v1652_v18, %v1656_v19  ;;  %v1711_v11 = vld [vmem:[%s19859_s20 + $0x2570] sm:$0xff] }
 0x680   : > { %12966 = vmatpush1.bf16.msra.mxu0 %v17435_v28  ;;  %13568 = vmatpush1.bf16.msra.mxu1 %v17437_v29  ;;  %v17499_v28 = vcombine.low %v1651_v16, %v1655_v17  ;;  %v17501_v29 = vcombine.low %v1652_v18, %v1656_v19  ;;  %v17556_v16 = vcombine.high %v1707_v10, %v1711_v11  ;;  %v1715_v18 = vld [vmem:[%s19859_s20 + $0x2590] sm:$0xff] }
 0x681   : > { %12967 = vmatprep.subr.bf16.mxu0 %v17444_v30  ;;  %13569 = vmatprep.subr.bf16.mxu1 %v17446_v31  ;;  %v17508_v30 = vcombine.high %v1659_v24, %v1663_v25  ;;  %v17510_v31 = vcombine.high %v1660_v26, %v1664_v27  ;;  %v1719_v19 = vld [vmem:[%s19859_s20 + $0x25b0] sm:$0xff] }
 0x684   : > { %12968 = vmatpush1.bf16.msra.mxu0 %v17443_v36  ;;  %13570 = vmatpush1.bf16.msra.mxu1 %v17445_v37  ;;  %v17507_v36 = vcombine.low %v1659_v24, %v1663_v25  ;;  %v17509_v37 = vcombine.low %v1660_v26, %v1664_v27  ;;  %v17564_v24 = vcombine.high %v1715_v18, %v1719_v19  ;;  %v1723_v26 = vld [vmem:[%s19859_s20 + $0x25d0] sm:$0xff] }
 0x685   : > { %12969 = vmatprep.subr.bf16.mxu0 %v17452_v38  ;;  %13571 = vmatprep.subr.bf16.mxu1 %v17454_v39  ;;  %v17516_v38 = vcombine.high %v1667_v32, %v1671_v33  ;;  %v17518_v39 = vcombine.high %v1668_v34, %v1672_v35  ;;  %v1727_v27 = vld [vmem:[%s19859_s20 + $0x25f0] sm:$0xff] }
 0x688   : > { %12970 = vmatpush1.bf16.msra.mxu0 %v17451_v44  ;;  %13572 = vmatpush1.bf16.msra.mxu1 %v17453_v45  ;;  %v17515_v44 = vcombine.low %v1667_v32, %v1671_v33  ;;  %v17517_v45 = vcombine.low %v1668_v34, %v1672_v35  ;;  %v17572_v32 = vcombine.high %v1723_v26, %v1727_v27  ;;  %v1731_v34 = vld [vmem:[%s19859_s20 + $0x2610] sm:$0xff] }
 0x689   : > { %12971 = vmatprep.subr.bf16.mxu0 %v17460_v46  ;;  %13573 = vmatprep.subr.bf16.mxu1 %v17462_v47  ;;  %v17524_v46 = vcombine.high %v1675_v40, %v1679_v41  ;;  %v17526_v47 = vcombine.high %v1676_v42, %v1680_v43  ;;  %v1735_v35 = vld [vmem:[%s19859_s20 + $0x2630] sm:$0xff] }
 0x68c   : > { %12972 = vmatpush1.bf16.msra.mxu0 %v17459_v52  ;;  %13574 = vmatpush1.bf16.msra.mxu1 %v17461_v53  ;;  %v1688_v52 = vld [vmem:[%s19859_s20 + $0x24b8] sm:$0xff]  ;;  %v17523_v53 = vcombine.low %v1675_v40, %v1679_v41  ;;  %v17580_v40 = vcombine.high %v1731_v34, %v1735_v35 }
 0x68d   : > { %12973 = vmatprep.subr.bf16.mxu0 %v17468_v54  ;;  %13575 = vmatprep.subr.bf16.mxu1 %v17470_v55  ;;  %v17525_v54 = vcombine.low %v1676_v42, %v1680_v43  ;;  %v17532_v55 = vcombine.high %v1683_v48, %v1687_v49  ;;  %v17534_v56 = vcombine.high %v1684_v51, %v1688_v52  ;;  %v1739_v42 = vld [vmem:[%s19859_s20 + $0x2650] sm:$0xff] }
 0x68e   : > { %v1743_v43 = vld [vmem:[%s19859_s20 + $0x2670] sm:$0xff] }
 0x690   : > { %12974 = vmatpush1.bf16.msra.mxu0 %v17467_v60  ;;  %13576 = vmatpush1.bf16.msra.mxu1 %v17469_v61  ;;  %v1692_v60 = vld [vmem:[%s19859_s20 + $0x24d8] sm:$0xff] }
 0x691   : > { %12975 = vmatprep.subr.bf16.mxu0 %v17476_v62  ;;  %13577 = vmatprep.subr.bf16.mxu1 %v17478_v63  ;;  %v1696_v61 = vld [vmem:[%s19859_s20 + $0x24f8] sm:$0xff]  ;;  %v17531_v62 = vcombine.low %v1683_v48, %v1687_v49  ;;  %v17533_v63 = vcombine.low %v1684_v51, %v1688_v52  ;;  %v17588_v48 = vcombine.high %v1739_v42, %v1743_v43  ;;  %v1751_v51 = vld [vmem:[%s19859_s20 + $0x26b0] sm:$0xff] }
 0x692   : > { %v17542_v1 = vcombine.high %v1692_v60, %v1696_v61  ;;  %v1748_v52 = vld [vmem:[%s19859_s20 + $0x2698] sm:$0xff] }
 0x694   : > { %12976 = vmatpush1.bf16.msra.mxu0 %v17475_v4  ;;  %13578 = vmatpush1.bf16.msra.mxu1 %v17477_v5  ;;  %v1700_v4 = vld [vmem:[%s19859_s20 + $0x2518] sm:$0xff] }
 0x695   : > { %12977 = vmatprep.subr.bf16.mxu0 %v17484_v6  ;;  %13579 = vmatprep.subr.bf16.mxu1 %v17486_v7  ;;  %v1704_v5 = vld [vmem:[%s19859_s20 + $0x2538] sm:$0xff]  ;;  %v17539_v6 = vcombine.low %v1691_v57, %v1695_v58  ;;  %v17541_v7 = vcombine.low %v1692_v60, %v1696_v61  ;;  %v1755_v58 = vld [vmem:[%s19859_s20 + $0x26d0] sm:$0xff] }
 0x696   : > { %v17550_v9 = vcombine.high %v1700_v4, %v1704_v5  ;;  %v1756_v60 = vld [vmem:[%s19859_s20 + $0x26d8] sm:$0xff] }
 0x697   : > { %v1760_v61 = vld [vmem:[%s19859_s20 + $0x26f8] sm:$0xff] }
 0x698   : > { %12978 = vmatpush1.bf16.msra.mxu0 %v17483_v12  ;;  %13580 = vmatpush1.bf16.msra.mxu1 %v17485_v13  ;;  %v1708_v12 = vld [vmem:[%s19859_s20 + $0x2558] sm:$0xff] }
 0x699   : > { %12979 = vmatprep.subr.bf16.mxu0 %v17492_v14  ;;  %13581 = vmatprep.subr.bf16.mxu1 %v17494_v15  ;;  %v1712_v13 = vld [vmem:[%s19859_s20 + $0x2578] sm:$0xff]  ;;  %v17547_v14 = vcombine.low %v1699_v2, %v1703_v3  ;;  %v17549_v15 = vcombine.low %v1700_v4, %v1704_v5  ;;  %v1763_v2 = vld [vmem:[%s19859_s20 + $0x2710] sm:$0xff] }
 0x69a   : > { %v17558_v17 = vcombine.high %v1708_v12, %v1712_v13  ;;  %v1767_v3 = vld [vmem:[%s19859_s20 + $0x2730] sm:$0xff]  ;;  %v1764_v4 = vld [vmem:[%s19859_s20 + $0x2718] sm:$0xff] }
 0x69b   : > { %v1768_v5 = vld [vmem:[%s19859_s20 + $0x2738] sm:$0xff] }
 0x69c   : > { %12980 = vmatpush1.bf16.msra.mxu0 %v17491_v20  ;;  %13582 = vmatpush1.bf16.msra.mxu1 %v17493_v21  ;;  %v1716_v20 = vld [vmem:[%s19859_s20 + $0x2598] sm:$0xff] }
 0x69d   : > { %12981 = vmatprep.subr.bf16.mxu0 %v17500_v22  ;;  %13583 = vmatprep.subr.bf16.mxu1 %v17502_v23  ;;  %v1720_v21 = vld [vmem:[%s19859_s20 + $0x25b8] sm:$0xff]  ;;  %v17555_v22 = vcombine.low %v1707_v10, %v1711_v11  ;;  %v17557_v23 = vcombine.low %v1708_v12, %v1712_v13  ;;  %v1771_v10 = vld [vmem:[%s19859_s20 + $0x2750] sm:$0xff] }
 0x69e   : > { %v17566_v25 = vcombine.high %v1716_v20, %v1720_v21  ;;  %v1775_v11 = vld [vmem:[%s19859_s20 + $0x2770] sm:$0xff]  ;;  %v1772_v12 = vld [vmem:[%s19859_s20 + $0x2758] sm:$0xff] }
 0x69f   : > { %v1776_v13 = vld [vmem:[%s19859_s20 + $0x2778] sm:$0xff] }
 0x6a0   : > { %12982 = vmatpush1.bf16.msra.mxu0 %v17499_v28  ;;  %13584 = vmatpush1.bf16.msra.mxu1 %v17501_v29  ;;  %v1724_v28 = vld [vmem:[%s19859_s20 + $0x25d8] sm:$0xff] }
 0x6a1   : > { %12983 = vmatprep.subr.bf16.mxu0 %v17508_v30  ;;  %13585 = vmatprep.subr.bf16.mxu1 %v17510_v31  ;;  %v1728_v29 = vld [vmem:[%s19859_s20 + $0x25f8] sm:$0xff]  ;;  %v17563_v30 = vcombine.low %v1715_v18, %v1719_v19  ;;  %v17565_v31 = vcombine.low %v1716_v20, %v1720_v21  ;;  %v1779_v18 = vld [vmem:[%s19859_s20 + $0x2790] sm:$0xff] }
 0x6a2   : > { %v17574_v33 = vcombine.high %v1724_v28, %v1728_v29  ;;  %v1783_v19 = vld [vmem:[%s19859_s20 + $0x27b0] sm:$0xff]  ;;  %v1780_v20 = vld [vmem:[%s19859_s20 + $0x2798] sm:$0xff] }
 0x6a3   : > { %v1784_v21 = vld [vmem:[%s19859_s20 + $0x27b8] sm:$0xff] }
 0x6a4   : > { %12984 = vmatpush1.bf16.msra.mxu0 %v17507_v36  ;;  %13586 = vmatpush1.bf16.msra.mxu1 %v17509_v37  ;;  %v1732_v36 = vld [vmem:[%s19859_s20 + $0x2618] sm:$0xff] }
 0x6a5   : > { %12996 = vmatprep.subr.bf16.mxu0 %v17516_v38  ;;  %13598 = vmatprep.subr.bf16.mxu1 %v17518_v39  ;;  %v1736_v37 = vld [vmem:[%s19859_s20 + $0x2638] sm:$0xff]  ;;  %v17571_v38 = vcombine.low %v1723_v26, %v1727_v27  ;;  %v17573_v39 = vcombine.low %v1724_v28, %v1728_v29  ;;  %v1787_v26 = vld [vmem:[%s19859_s20 + $0x27d0] sm:$0xff] }
 0x6a6   : > { %v17582_v41 = vcombine.high %v1732_v36, %v1736_v37  ;;  %v1791_v27 = vld [vmem:[%s19859_s20 + $0x27f0] sm:$0xff]  ;;  %v1788_v28 = vld [vmem:[%s19859_s20 + $0x27d8] sm:$0xff] }
 0x6a7   : > { %12986 = vmatmul.mubr.bf16.vlgmr.msra.gmra.mrb[4].mxu0 %v18886_v50  ;;  %13588 = vmatmul.mubr.bf16.vlgmr.msra.gmra.mrb[4].mxu1 %v18886_v50  ;;  %v1747_v50 = vld [vmem:[%s19859_s20 + $0x2690] sm:$0xff]  ;;  %v1792_v29 = vld [vmem:[%s19859_s20 + $0x27f8] sm:$0xff] }
 0x6a8   : > { %12997 = vmatpush1.bf16.msra.mxu0 %v17515_v44  ;;  %13599 = vmatpush1.bf16.msra.mxu1 %v17517_v45  ;;  %v1740_v44 = vld [vmem:[%s19859_s20 + $0x2658] sm:$0xff] }
 0x6a9   : > { %12998 = vmatprep.subr.bf16.mxu0 %v17524_v46  ;;  %13600 = vmatprep.subr.bf16.mxu1 %v17526_v47  ;;  %v1744_v45 = vld [vmem:[%s19859_s20 + $0x2678] sm:$0xff]  ;;  %v17579_v46 = vcombine.low %v1731_v34, %v1735_v35  ;;  %v17581_v47 = vcombine.low %v1732_v36, %v1736_v37  ;;  %v1795_v34 = vld [vmem:[%s19859_s20 + $0x2810] sm:$0xff] }
 0x6aa   : > { %13028 = vmatprep.mubr.bf16.mxu0 %v18887_v59  ;;  %13630 = vmatprep.mubr.bf16.mxu1 %v18887_v59  ;;  %v17590_v49 = vcombine.high %v1740_v44, %v1744_v45  ;;  %v1759_v59 = vld [vmem:[%s19859_s20 + $0x26f0] sm:$0xff]  ;;  %v1796_v36 = vld [vmem:[%s19859_s20 + $0x2818] sm:$0xff] }
 0x6ab   : > { %v1799_v35 = vld [vmem:[%s19859_s20 + $0x2830] sm:$0xff]  ;;  %v1800_v37 = vld [vmem:[%s19859_s20 + $0x2838] sm:$0xff] }
 0x6ac   : > { %12999 = vmatpush1.bf16.msra.mxu0 %v17523_v53  ;;  %13601 = vmatpush1.bf16.msra.mxu1 %v17525_v54  ;;  %v1752_v53 = vld [vmem:[%s19859_s20 + $0x26b8] sm:$0xff]  ;;  %v17587_v54 = vcombine.low %v1739_v42, %v1743_v43  ;;  %v1803_v42 = vld [vmem:[%s19859_s20 + $0x2850] sm:$0xff] }
 0x6ad   : > { %13000 = vmatprep.subr.bf16.mxu0 %v17532_v55  ;;  %13602 = vmatprep.subr.bf16.mxu1 %v17534_v56  ;;  %v17589_v55 = vcombine.low %v1740_v44, %v1744_v45  ;;  %v17596_v56 = vcombine.high %v1747_v50, %v1751_v51  ;;  %v17598_v57 = vcombine.high %v1748_v52, %v1752_v53  ;;  %v1807_v43 = vld [vmem:[%s19859_s20 + $0x2870] sm:$0xff]  ;;  %v1804_v44 = vld [vmem:[%s19859_s20 + $0x2858] sm:$0xff] }
 0x6ae   : > { %v1808_v45 = vld [vmem:[%s19859_s20 + $0x2878] sm:$0xff] }
 0x6b0   : > { %13001 = vmatpush1.bf16.msra.mxu0 %v17531_v62  ;;  %13603 = vmatpush1.bf16.msra.mxu1 %v17533_v63  ;;  %v17595_v62 = vcombine.low %v1747_v50, %v1751_v51  ;;  %v17597_v63 = vcombine.low %v1748_v52, %v1752_v53  ;;  %v1811_v50 = vld [vmem:[%s19859_s20 + $0x2890] sm:$0xff]  ;;  %v18888_v52 = vld [vmem:[%s19857_s27 + $0x48] ss:$112 sps:$4 sm:$0xff]  }
 0x6b1   : > { %13002 = vmatprep.subr.bf16.mxu0 %v17540_v0  ;;  %13604 = vmatprep.subr.bf16.mxu1 %v17542_v1  ;;  %v17604_v0 = vcombine.high %v1755_v58, %v1759_v59  ;;  %v17606_v1 = vcombine.high %v1756_v60, %v1760_v61  ;;  %v1815_v51 = vld [vmem:[%s19859_s20 + $0x28b0] sm:$0xff]  ;;  %v1812_v53 = vld [vmem:[%s19859_s20 + $0x2898] sm:$0xff] }
 0x6b4   : > { %13003 = vmatpush1.bf16.msra.mxu0 %v17539_v6  ;;  %13605 = vmatpush1.bf16.msra.mxu1 %v17541_v7  ;;  %v17603_v6 = vcombine.low %v1755_v58, %v1759_v59  ;;  %v17605_v7 = vcombine.low %v1756_v60, %v1760_v61  ;;  %v1819_v59 = vld [vmem:[%s19859_s20 + $0x28d0] sm:$0xff] }
 0x6b5   : > { %13004 = vmatprep.subr.bf16.mxu0 %v17548_v8  ;;  %13606 = vmatprep.subr.bf16.mxu1 %v17550_v9  ;;  %v17612_v8 = vcombine.high %v1763_v2, %v1767_v3  ;;  %v17614_v9 = vcombine.high %v1764_v4, %v1768_v5  ;;  %v1823_v60 = vld [vmem:[%s19859_s20 + $0x28f0] sm:$0xff] }
 0x6b6   : > { %v18889_v61 = vld [vmem:[%s19857_s27 + $0x54] ss:$112 sps:$4 sm:$0xff]  }
 0x6b8   : > { %13005 = vmatpush1.bf16.msra.mxu0 %v17547_v14  ;;  %13607 = vmatpush1.bf16.msra.mxu1 %v17549_v15  ;;  %v17611_v14 = vcombine.low %v1763_v2, %v1767_v3  ;;  %v17613_v15 = vcombine.low %v1764_v4, %v1768_v5  ;;  %v17668_v2 = vcombine.high %v1819_v59, %v1823_v60  ;;  %v1827_v4 = vld [vmem:[%s19859_s20 + $0x2910] sm:$0xff] }
 0x6b9   : > { %13006 = vmatprep.subr.bf16.mxu0 %v17556_v16  ;;  %13608 = vmatprep.subr.bf16.mxu1 %v17558_v17  ;;  %v17620_v16 = vcombine.high %v1771_v10, %v1775_v11  ;;  %v17622_v17 = vcombine.high %v1772_v12, %v1776_v13  ;;  %v1831_v5 = vld [vmem:[%s19859_s20 + $0x2930] sm:$0xff] }
 0x6bc   : > { %13007 = vmatpush1.bf16.msra.mxu0 %v17555_v22  ;;  %13609 = vmatpush1.bf16.msra.mxu1 %v17557_v23  ;;  %v17619_v22 = vcombine.low %v1771_v10, %v1775_v11  ;;  %v17621_v23 = vcombine.low %v1772_v12, %v1776_v13  ;;  %v17676_v10 = vcombine.high %v1827_v4, %v1831_v5  ;;  %v1835_v12 = vld [vmem:[%s19859_s20 + $0x2950] sm:$0xff] }
 0x6bd   : > { %13008 = vmatprep.subr.bf16.mxu0 %v17564_v24  ;;  %13610 = vmatprep.subr.bf16.mxu1 %v17566_v25  ;;  %v17628_v24 = vcombine.high %v1779_v18, %v1783_v19  ;;  %v17630_v25 = vcombine.high %v1780_v20, %v1784_v21  ;;  %v1839_v13 = vld [vmem:[%s19859_s20 + $0x2970] sm:$0xff] }
 0x6c0   : > { %13009 = vmatpush1.bf16.msra.mxu0 %v17563_v30  ;;  %13611 = vmatpush1.bf16.msra.mxu1 %v17565_v31  ;;  %v17627_v30 = vcombine.low %v1779_v18, %v1783_v19  ;;  %v17629_v31 = vcombine.low %v1780_v20, %v1784_v21  ;;  %v17684_v18 = vcombine.high %v1835_v12, %v1839_v13  ;;  %v1843_v20 = vld [vmem:[%s19859_s20 + $0x2990] sm:$0xff] }
 0x6c1   : > { %13010 = vmatprep.subr.bf16.mxu0 %v17572_v32  ;;  %13612 = vmatprep.subr.bf16.mxu1 %v17574_v33  ;;  %v17636_v32 = vcombine.high %v1787_v26, %v1791_v27  ;;  %v17638_v33 = vcombine.high %v1788_v28, %v1792_v29  ;;  %v1847_v21 = vld [vmem:[%s19859_s20 + $0x29b0] sm:$0xff] }
 0x6c4   : > { %13011 = vmatpush1.bf16.msra.mxu0 %v17571_v38  ;;  %13613 = vmatpush1.bf16.msra.mxu1 %v17573_v39  ;;  %v17635_v38 = vcombine.low %v1787_v26, %v1791_v27  ;;  %v17637_v39 = vcombine.low %v1788_v28, %v1792_v29  ;;  %v17692_v26 = vcombine.high %v1843_v20, %v1847_v21  ;;  %v1851_v28 = vld [vmem:[%s19859_s20 + $0x29d0] sm:$0xff] }
 0x6c5   : > { %13012 = vmatprep.subr.bf16.mxu0 %v17580_v40  ;;  %13614 = vmatprep.subr.bf16.mxu1 %v17582_v41  ;;  %v17644_v40 = vcombine.high %v1795_v34, %v1799_v35  ;;  %v17646_v41 = vcombine.high %v1796_v36, %v1800_v37  ;;  %v1855_v29 = vld [vmem:[%s19859_s20 + $0x29f0] sm:$0xff] }
 0x6c8   : > { %13013 = vmatpush1.bf16.msra.mxu0 %v17579_v46  ;;  %13615 = vmatpush1.bf16.msra.mxu1 %v17581_v47  ;;  %v17643_v46 = vcombine.low %v1795_v34, %v1799_v35  ;;  %v17645_v47 = vcombine.low %v1796_v36, %v1800_v37  ;;  %v17700_v34 = vcombine.high %v1851_v28, %v1855_v29  ;;  %v1859_v36 = vld [vmem:[%s19859_s20 + $0x2a10] sm:$0xff] }
 0x6c9   : > { %13014 = vmatprep.subr.bf16.mxu0 %v17588_v48  ;;  %13616 = vmatprep.subr.bf16.mxu1 %v17590_v49  ;;  %v17652_v48 = vcombine.high %v1803_v42, %v1807_v43  ;;  %v17654_v49 = vcombine.high %v1804_v44, %v1808_v45  ;;  %v1863_v37 = vld [vmem:[%s19859_s20 + $0x2a30] sm:$0xff] }
 0x6cc   : > { %13015 = vmatpush1.bf16.msra.mxu0 %v17587_v54  ;;  %13617 = vmatpush1.bf16.msra.mxu1 %v17589_v55  ;;  %v1816_v54 = vld [vmem:[%s19859_s20 + $0x28b8] sm:$0xff]  ;;  %v17651_v55 = vcombine.low %v1803_v42, %v1807_v43  ;;  %v17708_v42 = vcombine.high %v1859_v36, %v1863_v37 }
 0x6cd   : > { %13016 = vmatprep.subr.bf16.mxu0 %v17596_v56  ;;  %13618 = vmatprep.subr.bf16.mxu1 %v17598_v57  ;;  %v17653_v56 = vcombine.low %v1804_v44, %v1808_v45  ;;  %v17660_v57 = vcombine.high %v1811_v50, %v1815_v51  ;;  %v17662_v58 = vcombine.high %v1812_v53, %v1816_v54  ;;  %v1867_v44 = vld [vmem:[%s19859_s20 + $0x2a50] sm:$0xff] }
 0x6ce   : > { %v1871_v45 = vld [vmem:[%s19859_s20 + $0x2a70] sm:$0xff] }
 0x6d0   : > { %13017 = vmatpush1.bf16.msra.mxu0 %v17595_v62  ;;  %13619 = vmatpush1.bf16.msra.mxu1 %v17597_v63  ;;  %v1820_v62 = vld [vmem:[%s19859_s20 + $0x28d8] sm:$0xff] }
 0x6d1   : > { %13018 = vmatprep.subr.bf16.mxu0 %v17604_v0  ;;  %13620 = vmatprep.subr.bf16.mxu1 %v17606_v1  ;;  %v1824_v63 = vld [vmem:[%s19859_s20 + $0x28f8] sm:$0xff]  ;;  %v17659_v0 = vcombine.low %v1811_v50, %v1815_v51  ;;  %v17661_v1 = vcombine.low %v1812_v53, %v1816_v54  ;;  %v17716_v50 = vcombine.high %v1867_v44, %v1871_v45  ;;  %v1879_v53 = vld [vmem:[%s19859_s20 + $0x2ab0] sm:$0xff] }
 0x6d2   : > { %v17670_v3 = vcombine.high %v1820_v62, %v1824_v63  ;;  %v1876_v54 = vld [vmem:[%s19859_s20 + $0x2a98] sm:$0xff] }
 0x6d4   : > { %13019 = vmatpush1.bf16.msra.mxu0 %v17603_v6  ;;  %13621 = vmatpush1.bf16.msra.mxu1 %v17605_v7  ;;  %v1828_v6 = vld [vmem:[%s19859_s20 + $0x2918] sm:$0xff] }
 0x6d5   : > { %13020 = vmatprep.subr.bf16.mxu0 %v17612_v8  ;;  %13622 = vmatprep.subr.bf16.mxu1 %v17614_v9  ;;  %v1832_v7 = vld [vmem:[%s19859_s20 + $0x2938] sm:$0xff]  ;;  %v17667_v8 = vcombine.low %v1819_v59, %v1823_v60  ;;  %v17669_v9 = vcombine.low %v1820_v62, %v1824_v63  ;;  %v1883_v60 = vld [vmem:[%s19859_s20 + $0x2ad0] sm:$0xff] }
 0x6d6   : > { %v17678_v11 = vcombine.high %v1828_v6, %v1832_v7  ;;  %v1884_v62 = vld [vmem:[%s19859_s20 + $0x2ad8] sm:$0xff] }
 0x6d7   : > { %v1888_v63 = vld [vmem:[%s19859_s20 + $0x2af8] sm:$0xff] }
 0x6d8   : > { %13021 = vmatpush1.bf16.msra.mxu0 %v17611_v14  ;;  %13623 = vmatpush1.bf16.msra.mxu1 %v17613_v15  ;;  %v1836_v14 = vld [vmem:[%s19859_s20 + $0x2958] sm:$0xff] }
 0x6d9   : > { %13022 = vmatprep.subr.bf16.mxu0 %v17620_v16  ;;  %13624 = vmatprep.subr.bf16.mxu1 %v17622_v17  ;;  %v1840_v15 = vld [vmem:[%s19859_s20 + $0x2978] sm:$0xff]  ;;  %v17675_v16 = vcombine.low %v1827_v4, %v1831_v5  ;;  %v17677_v17 = vcombine.low %v1828_v6, %v1832_v7  ;;  %v1891_v4 = vld [vmem:[%s19859_s20 + $0x2b10] sm:$0xff] }
 0x6da   : > { %v17686_v19 = vcombine.high %v1836_v14, %v1840_v15  ;;  %v1895_v5 = vld [vmem:[%s19859_s20 + $0x2b30] sm:$0xff]  ;;  %v1892_v6 = vld [vmem:[%s19859_s20 + $0x2b18] sm:$0xff] }
 0x6db   : > { %v1896_v7 = vld [vmem:[%s19859_s20 + $0x2b38] sm:$0xff] }
 0x6dc   : > { %13023 = vmatpush1.bf16.msra.mxu0 %v17619_v22  ;;  %13625 = vmatpush1.bf16.msra.mxu1 %v17621_v23  ;;  %v1844_v22 = vld [vmem:[%s19859_s20 + $0x2998] sm:$0xff] }
 0x6dd   : > { %13024 = vmatprep.subr.bf16.mxu0 %v17628_v24  ;;  %13626 = vmatprep.subr.bf16.mxu1 %v17630_v25  ;;  %v1848_v23 = vld [vmem:[%s19859_s20 + $0x29b8] sm:$0xff]  ;;  %v17683_v24 = vcombine.low %v1835_v12, %v1839_v13  ;;  %v17685_v25 = vcombine.low %v1836_v14, %v1840_v15  ;;  %v1899_v12 = vld [vmem:[%s19859_s20 + $0x2b50] sm:$0xff] }
 0x6de   : > { %v17694_v27 = vcombine.high %v1844_v22, %v1848_v23  ;;  %v1903_v13 = vld [vmem:[%s19859_s20 + $0x2b70] sm:$0xff]  ;;  %v1900_v14 = vld [vmem:[%s19859_s20 + $0x2b58] sm:$0xff] }
 0x6df   : > { %v1904_v15 = vld [vmem:[%s19859_s20 + $0x2b78] sm:$0xff] }
 0x6e0   : > { %13025 = vmatpush1.bf16.msra.mxu0 %v17627_v30  ;;  %13627 = vmatpush1.bf16.msra.mxu1 %v17629_v31  ;;  %v1852_v30 = vld [vmem:[%s19859_s20 + $0x29d8] sm:$0xff] }
 0x6e1   : > { %13026 = vmatprep.subr.bf16.mxu0 %v17636_v32  ;;  %13628 = vmatprep.subr.bf16.mxu1 %v17638_v33  ;;  %v1856_v31 = vld [vmem:[%s19859_s20 + $0x29f8] sm:$0xff]  ;;  %v17691_v32 = vcombine.low %v1843_v20, %v1847_v21  ;;  %v17693_v33 = vcombine.low %v1844_v22, %v1848_v23  ;;  %v1907_v20 = vld [vmem:[%s19859_s20 + $0x2b90] sm:$0xff] }
 0x6e2   : > { %v17702_v35 = vcombine.high %v1852_v30, %v1856_v31  ;;  %v1911_v21 = vld [vmem:[%s19859_s20 + $0x2bb0] sm:$0xff]  ;;  %v1908_v22 = vld [vmem:[%s19859_s20 + $0x2b98] sm:$0xff] }
 0x6e3   : > { %v1912_v23 = vld [vmem:[%s19859_s20 + $0x2bb8] sm:$0xff] }
 0x6e4   : > { %13027 = vmatpush1.bf16.msra.mxu0 %v17635_v38  ;;  %13629 = vmatpush1.bf16.msra.mxu1 %v17637_v39  ;;  %v1860_v38 = vld [vmem:[%s19859_s20 + $0x2a18] sm:$0xff] }
 0x6e5   : > { %13039 = vmatprep.subr.bf16.mxu0 %v17644_v40  ;;  %13641 = vmatprep.subr.bf16.mxu1 %v17646_v41  ;;  %v1864_v39 = vld [vmem:[%s19859_s20 + $0x2a38] sm:$0xff]  ;;  %v17699_v40 = vcombine.low %v1851_v28, %v1855_v29  ;;  %v17701_v41 = vcombine.low %v1852_v30, %v1856_v31  ;;  %v1915_v28 = vld [vmem:[%s19859_s20 + $0x2bd0] sm:$0xff] }
 0x6e6   : > { %v17710_v43 = vcombine.high %v1860_v38, %v1864_v39  ;;  %v1919_v29 = vld [vmem:[%s19859_s20 + $0x2bf0] sm:$0xff]  ;;  %v1916_v30 = vld [vmem:[%s19859_s20 + $0x2bd8] sm:$0xff] }
 0x6e7   : > { %13029 = vmatmul.mubr.bf16.vlgmr.msra.gmra.mrb[4].mxu0 %v18888_v52  ;;  %13631 = vmatmul.mubr.bf16.vlgmr.msra.gmra.mrb[4].mxu1 %v18888_v52  ;;  %v1875_v52 = vld [vmem:[%s19859_s20 + $0x2a90] sm:$0xff]  ;;  %v1920_v31 = vld [vmem:[%s19859_s20 + $0x2bf8] sm:$0xff] }
 0x6e8   : > { %13040 = vmatpush1.bf16.msra.mxu0 %v17643_v46  ;;  %13642 = vmatpush1.bf16.msra.mxu1 %v17645_v47  ;;  %v1868_v46 = vld [vmem:[%s19859_s20 + $0x2a58] sm:$0xff] }
 0x6e9   : > { %13041 = vmatprep.subr.bf16.mxu0 %v17652_v48  ;;  %13643 = vmatprep.subr.bf16.mxu1 %v17654_v49  ;;  %v1872_v47 = vld [vmem:[%s19859_s20 + $0x2a78] sm:$0xff]  ;;  %v17707_v48 = vcombine.low %v1859_v36, %v1863_v37  ;;  %v17709_v49 = vcombine.low %v1860_v38, %v1864_v39  ;;  %v1923_v36 = vld [vmem:[%s19859_s20 + $0x2c10] sm:$0xff] }
 0x6ea   : > { %13071 = vmatprep.mubr.bf16.mxu0 %v18889_v61  ;;  %13673 = vmatprep.mubr.bf16.mxu1 %v18889_v61  ;;  %v17718_v51 = vcombine.high %v1868_v46, %v1872_v47  ;;  %v1887_v61 = vld [vmem:[%s19859_s20 + $0x2af0] sm:$0xff]  ;;  %v1924_v38 = vld [vmem:[%s19859_s20 + $0x2c18] sm:$0xff] }
 0x6eb   : > { %v1927_v37 = vld [vmem:[%s19859_s20 + $0x2c30] sm:$0xff]  ;;  %v1928_v39 = vld [vmem:[%s19859_s20 + $0x2c38] sm:$0xff] }
 0x6ec   : > { %13042 = vmatpush1.bf16.msra.mxu0 %v17651_v55  ;;  %13644 = vmatpush1.bf16.msra.mxu1 %v17653_v56  ;;  %v1880_v55 = vld [vmem:[%s19859_s20 + $0x2ab8] sm:$0xff]  ;;  %v17715_v56 = vcombine.low %v1867_v44, %v1871_v45  ;;  %v1931_v44 = vld [vmem:[%s19859_s20 + $0x2c50] sm:$0xff] }
 0x6ed   : > { %13043 = vmatprep.subr.bf16.mxu0 %v17660_v57  ;;  %13645 = vmatprep.subr.bf16.mxu1 %v17662_v58  ;;  %v17717_v57 = vcombine.low %v1868_v46, %v1872_v47  ;;  %v17724_v58 = vcombine.high %v1875_v52, %v1879_v53  ;;  %v17726_v59 = vcombine.high %v1876_v54, %v1880_v55  ;;  %v1935_v45 = vld [vmem:[%s19859_s20 + $0x2c70] sm:$0xff]  ;;  %v1932_v46 = vld [vmem:[%s19859_s20 + $0x2c58] sm:$0xff] }
 0x6ee   : > { %v1936_v47 = vld [vmem:[%s19859_s20 + $0x2c78] sm:$0xff] }
 0x6f0   : > { %13044 = vmatpush1.bf16.msra.mxu0 %v17659_v0  ;;  %13646 = vmatpush1.bf16.msra.mxu1 %v17661_v1  ;;  %v17723_v0 = vcombine.low %v1875_v52, %v1879_v53  ;;  %v17725_v1 = vcombine.low %v1876_v54, %v1880_v55  ;;  %v1939_v52 = vld [vmem:[%s19859_s20 + $0x2c90] sm:$0xff]  ;;  %v1940_v55 = vld [vmem:[%s19859_s20 + $0x2c98] sm:$0xff] }
 0x6f1   : > { %13045 = vmatprep.subr.bf16.mxu0 %v17668_v2  ;;  %13647 = vmatprep.subr.bf16.mxu1 %v17670_v3  ;;  %v17732_v2 = vcombine.high %v1883_v60, %v1887_v61  ;;  %v17734_v3 = vcombine.high %v1884_v62, %v1888_v63  ;;  %v1943_v53 = vld [vmem:[%s19859_s20 + $0x2cb0] sm:$0xff] }
 0x6f2   : > { %v18890_v54 = vld [vmem:[%s19857_s27 + $0x50] ss:$112 sps:$4 sm:$0xff]  }
 0x6f4   : > { %13046 = vmatpush1.bf16.msra.mxu0 %v17667_v8  ;;  %13648 = vmatpush1.bf16.msra.mxu1 %v17669_v9  ;;  %v17731_v8 = vcombine.low %v1883_v60, %v1887_v61  ;;  %v17733_v9 = vcombine.low %v1884_v62, %v1888_v63  ;;  %v1947_v61 = vld [vmem:[%s19859_s20 + $0x2cd0] sm:$0xff]  ;;  %v18891_v63 = vld [vmem:[%s19857_s27 + $0x5c] ss:$112 sps:$4 sm:$0xff]  }
 0x6f5   : > { %13047 = vmatprep.subr.bf16.mxu0 %v17676_v10  ;;  %13649 = vmatprep.subr.bf16.mxu1 %v17678_v11  ;;  %v17740_v10 = vcombine.high %v1891_v4, %v1895_v5  ;;  %v17742_v11 = vcombine.high %v1892_v6, %v1896_v7  ;;  %v1951_v62 = vld [vmem:[%s19859_s20 + $0x2cf0] sm:$0xff] }
 0x6f8   : > { %13048 = vmatpush1.bf16.msra.mxu0 %v17675_v16  ;;  %13650 = vmatpush1.bf16.msra.mxu1 %v17677_v17  ;;  %v17739_v16 = vcombine.low %v1891_v4, %v1895_v5  ;;  %v17741_v17 = vcombine.low %v1892_v6, %v1896_v7  ;;  %v17796_v4 = vcombine.high %v1947_v61, %v1951_v62  ;;  %v1955_v6 = vld [vmem:[%s19859_s20 + $0x2d10] sm:$0xff] }
 0x6f9   : > { %13049 = vmatprep.subr.bf16.mxu0 %v17684_v18  ;;  %13651 = vmatprep.subr.bf16.mxu1 %v17686_v19  ;;  %v17748_v18 = vcombine.high %v1899_v12, %v1903_v13  ;;  %v17750_v19 = vcombine.high %v1900_v14, %v1904_v15  ;;  %v1959_v7 = vld [vmem:[%s19859_s20 + $0x2d30] sm:$0xff] }
 0x6fc   : > { %13050 = vmatpush1.bf16.msra.mxu0 %v17683_v24  ;;  %13652 = vmatpush1.bf16.msra.mxu1 %v17685_v25  ;;  %v17747_v24 = vcombine.low %v1899_v12, %v1903_v13  ;;  %v17749_v25 = vcombine.low %v1900_v14, %v1904_v15  ;;  %v17804_v12 = vcombine.high %v1955_v6, %v1959_v7  ;;  %v1963_v14 = vld [vmem:[%s19859_s20 + $0x2d50] sm:$0xff] }
 0x6fd   : > { %13051 = vmatprep.subr.bf16.mxu0 %v17692_v26  ;;  %13653 = vmatprep.subr.bf16.mxu1 %v17694_v27  ;;  %v17756_v26 = vcombine.high %v1907_v20, %v1911_v21  ;;  %v17758_v27 = vcombine.high %v1908_v22, %v1912_v23  ;;  %v1967_v15 = vld [vmem:[%s19859_s20 + $0x2d70] sm:$0xff] }
 0x700   : > { %13052 = vmatpush1.bf16.msra.mxu0 %v17691_v32  ;;  %13654 = vmatpush1.bf16.msra.mxu1 %v17693_v33  ;;  %v17755_v32 = vcombine.low %v1907_v20, %v1911_v21  ;;  %v17757_v33 = vcombine.low %v1908_v22, %v1912_v23  ;;  %v17812_v20 = vcombine.high %v1963_v14, %v1967_v15  ;;  %v1971_v22 = vld [vmem:[%s19859_s20 + $0x2d90] sm:$0xff] }
 0x701   : > { %13053 = vmatprep.subr.bf16.mxu0 %v17700_v34  ;;  %13655 = vmatprep.subr.bf16.mxu1 %v17702_v35  ;;  %v17764_v34 = vcombine.high %v1915_v28, %v1919_v29  ;;  %v17766_v35 = vcombine.high %v1916_v30, %v1920_v31  ;;  %v1975_v23 = vld [vmem:[%s19859_s20 + $0x2db0] sm:$0xff] }
 0x704   : > { %13054 = vmatpush1.bf16.msra.mxu0 %v17699_v40  ;;  %13656 = vmatpush1.bf16.msra.mxu1 %v17701_v41  ;;  %v17763_v40 = vcombine.low %v1915_v28, %v1919_v29  ;;  %v17765_v41 = vcombine.low %v1916_v30, %v1920_v31  ;;  %v17820_v28 = vcombine.high %v1971_v22, %v1975_v23  ;;  %v1979_v30 = vld [vmem:[%s19859_s20 + $0x2dd0] sm:$0xff] }
 0x705   : > { %13055 = vmatprep.subr.bf16.mxu0 %v17708_v42  ;;  %13657 = vmatprep.subr.bf16.mxu1 %v17710_v43  ;;  %v17772_v42 = vcombine.high %v1923_v36, %v1927_v37  ;;  %v17774_v43 = vcombine.high %v1924_v38, %v1928_v39  ;;  %v1983_v31 = vld [vmem:[%s19859_s20 + $0x2df0] sm:$0xff] }
 0x708   : > { %13056 = vmatpush1.bf16.msra.mxu0 %v17707_v48  ;;  %13658 = vmatpush1.bf16.msra.mxu1 %v17709_v49  ;;  %v17771_v48 = vcombine.low %v1923_v36, %v1927_v37  ;;  %v17773_v49 = vcombine.low %v1924_v38, %v1928_v39  ;;  %v17828_v36 = vcombine.high %v1979_v30, %v1983_v31  ;;  %v1987_v38 = vld [vmem:[%s19859_s20 + $0x2e10] sm:$0xff] }
 0x709   : > { %13057 = vmatprep.subr.bf16.mxu0 %v17716_v50  ;;  %13659 = vmatprep.subr.bf16.mxu1 %v17718_v51  ;;  %v17780_v50 = vcombine.high %v1931_v44, %v1935_v45  ;;  %v17782_v51 = vcombine.high %v1932_v46, %v1936_v47  ;;  %v1991_v39 = vld [vmem:[%s19859_s20 + $0x2e30] sm:$0xff] }
 0x70c   : > { %13058 = vmatpush1.bf16.msra.mxu0 %v17715_v56  ;;  %13660 = vmatpush1.bf16.msra.mxu1 %v17717_v57  ;;  %v1944_v56 = vld [vmem:[%s19859_s20 + $0x2cb8] sm:$0xff]  ;;  %v17779_v57 = vcombine.low %v1931_v44, %v1935_v45  ;;  %v17836_v44 = vcombine.high %v1987_v38, %v1991_v39 }
 0x70d   : > { %13059 = vmatprep.subr.bf16.mxu0 %v17724_v58  ;;  %13661 = vmatprep.subr.bf16.mxu1 %v17726_v59  ;;  %v17781_v58 = vcombine.low %v1932_v46, %v1936_v47  ;;  %v17788_v59 = vcombine.high %v1939_v52, %v1943_v53  ;;  %v17790_v60 = vcombine.high %v1940_v55, %v1944_v56  ;;  %v1995_v46 = vld [vmem:[%s19859_s20 + $0x2e50] sm:$0xff] }
 0x70e   : > { %v1999_v47 = vld [vmem:[%s19859_s20 + $0x2e70] sm:$0xff] }
 0x710   : > { %13060 = vmatpush1.bf16.msra.mxu0 %v17723_v0  ;;  %13662 = vmatpush1.bf16.msra.mxu1 %v17725_v1  ;;  %v1948_v0 = vld [vmem:[%s19859_s20 + $0x2cd8] sm:$0xff] }
 0x711   : > { %13061 = vmatprep.subr.bf16.mxu0 %v17732_v2  ;;  %13663 = vmatprep.subr.bf16.mxu1 %v17734_v3  ;;  %v1952_v1 = vld [vmem:[%s19859_s20 + $0x2cf8] sm:$0xff]  ;;  %v17787_v2 = vcombine.low %v1939_v52, %v1943_v53  ;;  %v17789_v3 = vcombine.low %v1940_v55, %v1944_v56  ;;  %v17844_v52 = vcombine.high %v1995_v46, %v1999_v47  ;;  %v2007_v55 = vld [vmem:[%s19859_s20 + $0x2eb0] sm:$0xff] }
 0x712   : > { %v17798_v5 = vcombine.high %v1948_v0, %v1952_v1  ;;  %v2004_v56 = vld [vmem:[%s19859_s20 + $0x2e98] sm:$0xff] }
 0x714   : > { %13062 = vmatpush1.bf16.msra.mxu0 %v17731_v8  ;;  %13664 = vmatpush1.bf16.msra.mxu1 %v17733_v9  ;;  %v1956_v8 = vld [vmem:[%s19859_s20 + $0x2d18] sm:$0xff] }
 0x715   : > { %13063 = vmatprep.subr.bf16.mxu0 %v17740_v10  ;;  %13665 = vmatprep.subr.bf16.mxu1 %v17742_v11  ;;  %v1960_v9 = vld [vmem:[%s19859_s20 + $0x2d38] sm:$0xff]  ;;  %v17795_v10 = vcombine.low %v1947_v61, %v1951_v62  ;;  %v17797_v11 = vcombine.low %v1948_v0, %v1952_v1  ;;  %v2011_v62 = vld [vmem:[%s19859_s20 + $0x2ed0] sm:$0xff] }
 0x716   : > { %v17806_v13 = vcombine.high %v1956_v8, %v1960_v9  ;;  %v2012_v0 = vld [vmem:[%s19859_s20 + $0x2ed8] sm:$0xff] }
 0x717   : > { %v2016_v1 = vld [vmem:[%s19859_s20 + $0x2ef8] sm:$0xff] }
 0x718   : > { %13064 = vmatpush1.bf16.msra.mxu0 %v17739_v16  ;;  %13666 = vmatpush1.bf16.msra.mxu1 %v17741_v17  ;;  %v1964_v16 = vld [vmem:[%s19859_s20 + $0x2d58] sm:$0xff] }
 0x719   : > { %13065 = vmatprep.subr.bf16.mxu0 %v17748_v18  ;;  %13667 = vmatprep.subr.bf16.mxu1 %v17750_v19  ;;  %v1968_v17 = vld [vmem:[%s19859_s20 + $0x2d78] sm:$0xff]  ;;  %v17803_v18 = vcombine.low %v1955_v6, %v1959_v7  ;;  %v17805_v19 = vcombine.low %v1956_v8, %v1960_v9  ;;  %v2019_v6 = vld [vmem:[%s19859_s20 + $0x2f10] sm:$0xff] }
 0x71a   : > { %v17814_v21 = vcombine.high %v1964_v16, %v1968_v17  ;;  %v2023_v7 = vld [vmem:[%s19859_s20 + $0x2f30] sm:$0xff]  ;;  %v2020_v8 = vld [vmem:[%s19859_s20 + $0x2f18] sm:$0xff] }
 0x71b   : > { %v2024_v9 = vld [vmem:[%s19859_s20 + $0x2f38] sm:$0xff] }
 0x71c   : > { %13066 = vmatpush1.bf16.msra.mxu0 %v17747_v24  ;;  %13668 = vmatpush1.bf16.msra.mxu1 %v17749_v25  ;;  %v1972_v24 = vld [vmem:[%s19859_s20 + $0x2d98] sm:$0xff] }
 0x71d   : > { %13067 = vmatprep.subr.bf16.mxu0 %v17756_v26  ;;  %13669 = vmatprep.subr.bf16.mxu1 %v17758_v27  ;;  %v1976_v25 = vld [vmem:[%s19859_s20 + $0x2db8] sm:$0xff]  ;;  %v17811_v26 = vcombine.low %v1963_v14, %v1967_v15  ;;  %v17813_v27 = vcombine.low %v1964_v16, %v1968_v17  ;;  %v2027_v14 = vld [vmem:[%s19859_s20 + $0x2f50] sm:$0xff] }
 0x71e   : > { %v17822_v29 = vcombine.high %v1972_v24, %v1976_v25  ;;  %v2031_v15 = vld [vmem:[%s19859_s20 + $0x2f70] sm:$0xff]  ;;  %v2028_v16 = vld [vmem:[%s19859_s20 + $0x2f58] sm:$0xff] }
 0x71f   : > { %v2032_v17 = vld [vmem:[%s19859_s20 + $0x2f78] sm:$0xff] }
 0x720   : > { %13068 = vmatpush1.bf16.msra.mxu0 %v17755_v32  ;;  %13670 = vmatpush1.bf16.msra.mxu1 %v17757_v33  ;;  %v1980_v32 = vld [vmem:[%s19859_s20 + $0x2dd8] sm:$0xff] }
 0x721   : > { %13069 = vmatprep.subr.bf16.mxu0 %v17764_v34  ;;  %13671 = vmatprep.subr.bf16.mxu1 %v17766_v35  ;;  %v1984_v33 = vld [vmem:[%s19859_s20 + $0x2df8] sm:$0xff]  ;;  %v17819_v34 = vcombine.low %v1971_v22, %v1975_v23  ;;  %v17821_v35 = vcombine.low %v1972_v24, %v1976_v25  ;;  %v2035_v22 = vld [vmem:[%s19859_s20 + $0x2f90] sm:$0xff] }
 0x722   : > { %v17830_v37 = vcombine.high %v1980_v32, %v1984_v33  ;;  %v2039_v23 = vld [vmem:[%s19859_s20 + $0x2fb0] sm:$0xff]  ;;  %v2036_v24 = vld [vmem:[%s19859_s20 + $0x2f98] sm:$0xff] }
 0x723   : > { %v2040_v25 = vld [vmem:[%s19859_s20 + $0x2fb8] sm:$0xff] }
 0x724   : > { %13070 = vmatpush1.bf16.msra.mxu0 %v17763_v40  ;;  %13672 = vmatpush1.bf16.msra.mxu1 %v17765_v41  ;;  %v1988_v40 = vld [vmem:[%s19859_s20 + $0x2e18] sm:$0xff] }
 0x725   : > { %13082 = vmatprep.subr.bf16.mxu0 %v17772_v42  ;;  %13684 = vmatprep.subr.bf16.mxu1 %v17774_v43  ;;  %v1992_v41 = vld [vmem:[%s19859_s20 + $0x2e38] sm:$0xff]  ;;  %v17827_v42 = vcombine.low %v1979_v30, %v1983_v31  ;;  %v17829_v43 = vcombine.low %v1980_v32, %v1984_v33  ;;  %v2043_v30 = vld [vmem:[%s19859_s20 + $0x2fd0] sm:$0xff] }
 0x726   : > { %v17838_v45 = vcombine.high %v1988_v40, %v1992_v41  ;;  %v2047_v31 = vld [vmem:[%s19859_s20 + $0x2ff0] sm:$0xff]  ;;  %v2044_v32 = vld [vmem:[%s19859_s20 + $0x2fd8] sm:$0xff] }
 0x727   : > { %13072 = vmatmul.mubr.bf16.vlgmr.msra.gmra.mrb[4].mxu0 %v18890_v54  ;;  %13674 = vmatmul.mubr.bf16.vlgmr.msra.gmra.mrb[4].mxu1 %v18890_v54  ;;  %v2003_v54 = vld [vmem:[%s19859_s20 + $0x2e90] sm:$0xff]  ;;  %v2048_v33 = vld [vmem:[%s19859_s20 + $0x2ff8] sm:$0xff] }
 0x728   : > { %13083 = vmatpush1.bf16.msra.mxu0 %v17771_v48  ;;  %13685 = vmatpush1.bf16.msra.mxu1 %v17773_v49  ;;  %v1996_v48 = vld [vmem:[%s19859_s20 + $0x2e58] sm:$0xff] }
 0x729   : > { %13084 = vmatprep.subr.bf16.mxu0 %v17780_v50  ;;  %13686 = vmatprep.subr.bf16.mxu1 %v17782_v51  ;;  %v2000_v49 = vld [vmem:[%s19859_s20 + $0x2e78] sm:$0xff]  ;;  %v17835_v50 = vcombine.low %v1987_v38, %v1991_v39  ;;  %v17837_v51 = vcombine.low %v1988_v40, %v1992_v41  ;;  %v2051_v38 = vld [vmem:[%s19859_s20 + $0x3010] sm:$0xff] }
 0x72a   : > { %13114 = vmatprep.mubr.bf16.mxu0 %v18891_v63  ;;  %13716 = vmatprep.mubr.bf16.mxu1 %v18891_v63  ;;  %v17846_v53 = vcombine.high %v1996_v48, %v2000_v49  ;;  %v2015_v63 = vld [vmem:[%s19859_s20 + $0x2ef0] sm:$0xff]  ;;  %v2052_v40 = vld [vmem:[%s19859_s20 + $0x3018] sm:$0xff] }
 0x72b   : > { %v2055_v39 = vld [vmem:[%s19859_s20 + $0x3030] sm:$0xff]  ;;  %v2056_v41 = vld [vmem:[%s19859_s20 + $0x3038] sm:$0xff] }
 0x72c   : > { %13085 = vmatpush1.bf16.msra.mxu0 %v17779_v57  ;;  %13687 = vmatpush1.bf16.msra.mxu1 %v17781_v58  ;;  %v2008_v57 = vld [vmem:[%s19859_s20 + $0x2eb8] sm:$0xff]  ;;  %v17843_v58 = vcombine.low %v1995_v46, %v1999_v47  ;;  %v2059_v46 = vld [vmem:[%s19859_s20 + $0x3050] sm:$0xff] }
 0x72d   : > { %13086 = vmatprep.subr.bf16.mxu0 %v17788_v59  ;;  %13688 = vmatprep.subr.bf16.mxu1 %v17790_v60  ;;  %v17845_v59 = vcombine.low %v1996_v48, %v2000_v49  ;;  %v17852_v60 = vcombine.high %v2003_v54, %v2007_v55  ;;  %v17854_v61 = vcombine.high %v2004_v56, %v2008_v57  ;;  %v2063_v47 = vld [vmem:[%s19859_s20 + $0x3070] sm:$0xff]  ;;  %v2060_v48 = vld [vmem:[%s19859_s20 + $0x3058] sm:$0xff] }
 0x72e   : > { %v2064_v49 = vld [vmem:[%s19859_s20 + $0x3078] sm:$0xff] }
 0x730   : > { %13087 = vmatpush1.bf16.msra.mxu0 %v17787_v2  ;;  %13689 = vmatpush1.bf16.msra.mxu1 %v17789_v3  ;;  %v17851_v2 = vcombine.low %v2003_v54, %v2007_v55  ;;  %v17853_v3 = vcombine.low %v2004_v56, %v2008_v57  ;;  %v2067_v54 = vld [vmem:[%s19859_s20 + $0x3090] sm:$0xff]  ;;  %v18892_v56 = vld [vmem:[%s19857_s27 + $0x58] ss:$112 sps:$4 sm:$0xff]  }
 0x731   : > { %13088 = vmatprep.subr.bf16.mxu0 %v17796_v4  ;;  %13690 = vmatprep.subr.bf16.mxu1 %v17798_v5  ;;  %v17860_v4 = vcombine.high %v2011_v62, %v2015_v63  ;;  %v17862_v5 = vcombine.high %v2012_v0, %v2016_v1  ;;  %v2071_v55 = vld [vmem:[%s19859_s20 + $0x30b0] sm:$0xff]  ;;  %v2068_v57 = vld [vmem:[%s19859_s20 + $0x3098] sm:$0xff] }
 0x734   : > { %13089 = vmatpush1.bf16.msra.mxu0 %v17795_v10  ;;  %13691 = vmatpush1.bf16.msra.mxu1 %v17797_v11  ;;  %v17859_v10 = vcombine.low %v2011_v62, %v2015_v63  ;;  %v17861_v11 = vcombine.low %v2012_v0, %v2016_v1  ;;  %v2075_v63 = vld [vmem:[%s19859_s20 + $0x30d0] sm:$0xff] }
 0x735   : > { %13090 = vmatprep.subr.bf16.mxu0 %v17804_v12  ;;  %13692 = vmatprep.subr.bf16.mxu1 %v17806_v13  ;;  %v17868_v12 = vcombine.high %v2019_v6, %v2023_v7  ;;  %v17870_v13 = vcombine.high %v2020_v8, %v2024_v9  ;;  %v2079_v0 = vld [vmem:[%s19859_s20 + $0x30f0] sm:$0xff] }
 0x736   : > { %v18893_v1 = vld [vmem:[%s19857_s27 + $0x64] ss:$112 sps:$4 sm:$0xff]  }
 0x738   : > { %13091 = vmatpush1.bf16.msra.mxu0 %v17803_v18  ;;  %13693 = vmatpush1.bf16.msra.mxu1 %v17805_v19  ;;  %v17867_v18 = vcombine.low %v2019_v6, %v2023_v7  ;;  %v17869_v19 = vcombine.low %v2020_v8, %v2024_v9  ;;  %v17924_v6 = vcombine.high %v2075_v63, %v2079_v0  ;;  %v2083_v8 = vld [vmem:[%s19859_s20 + $0x3110] sm:$0xff] }
 0x739   : > { %13092 = vmatprep.subr.bf16.mxu0 %v17812_v20  ;;  %13694 = vmatprep.subr.bf16.mxu1 %v17814_v21  ;;  %v17876_v20 = vcombine.high %v2027_v14, %v2031_v15  ;;  %v17878_v21 = vcombine.high %v2028_v16, %v2032_v17  ;;  %v2087_v9 = vld [vmem:[%s19859_s20 + $0x3130] sm:$0xff] }
 0x73c   : > { %13093 = vmatpush1.bf16.msra.mxu0 %v17811_v26  ;;  %13695 = vmatpush1.bf16.msra.mxu1 %v17813_v27  ;;  %v17875_v26 = vcombine.low %v2027_v14, %v2031_v15  ;;  %v17877_v27 = vcombine.low %v2028_v16, %v2032_v17  ;;  %v17932_v14 = vcombine.high %v2083_v8, %v2087_v9  ;;  %v2091_v16 = vld [vmem:[%s19859_s20 + $0x3150] sm:$0xff] }
 0x73d   : > { %13094 = vmatprep.subr.bf16.mxu0 %v17820_v28  ;;  %13696 = vmatprep.subr.bf16.mxu1 %v17822_v29  ;;  %v17884_v28 = vcombine.high %v2035_v22, %v2039_v23  ;;  %v17886_v29 = vcombine.high %v2036_v24, %v2040_v25  ;;  %v2095_v17 = vld [vmem:[%s19859_s20 + $0x3170] sm:$0xff] }
 0x740   : > { %13095 = vmatpush1.bf16.msra.mxu0 %v17819_v34  ;;  %13697 = vmatpush1.bf16.msra.mxu1 %v17821_v35  ;;  %v17883_v34 = vcombine.low %v2035_v22, %v2039_v23  ;;  %v17885_v35 = vcombine.low %v2036_v24, %v2040_v25  ;;  %v17940_v22 = vcombine.high %v2091_v16, %v2095_v17  ;;  %v2099_v24 = vld [vmem:[%s19859_s20 + $0x3190] sm:$0xff] }
 0x741   : > { %13096 = vmatprep.subr.bf16.mxu0 %v17828_v36  ;;  %13698 = vmatprep.subr.bf16.mxu1 %v17830_v37  ;;  %v17892_v36 = vcombine.high %v2043_v30, %v2047_v31  ;;  %v17894_v37 = vcombine.high %v2044_v32, %v2048_v33  ;;  %v2103_v25 = vld [vmem:[%s19859_s20 + $0x31b0] sm:$0xff] }
 0x744   : > { %13097 = vmatpush1.bf16.msra.mxu0 %v17827_v42  ;;  %13699 = vmatpush1.bf16.msra.mxu1 %v17829_v43  ;;  %v17891_v42 = vcombine.low %v2043_v30, %v2047_v31  ;;  %v17893_v43 = vcombine.low %v2044_v32, %v2048_v33  ;;  %v17948_v30 = vcombine.high %v2099_v24, %v2103_v25  ;;  %v2107_v32 = vld [vmem:[%s19859_s20 + $0x31d0] sm:$0xff] }
 0x745   : > { %13098 = vmatprep.subr.bf16.mxu0 %v17836_v44  ;;  %13700 = vmatprep.subr.bf16.mxu1 %v17838_v45  ;;  %v17900_v44 = vcombine.high %v2051_v38, %v2055_v39  ;;  %v17902_v45 = vcombine.high %v2052_v40, %v2056_v41  ;;  %v2111_v33 = vld [vmem:[%s19859_s20 + $0x31f0] sm:$0xff] }
 0x748   : > { %13099 = vmatpush1.bf16.msra.mxu0 %v17835_v50  ;;  %13701 = vmatpush1.bf16.msra.mxu1 %v17837_v51  ;;  %v17899_v50 = vcombine.low %v2051_v38, %v2055_v39  ;;  %v17901_v51 = vcombine.low %v2052_v40, %v2056_v41  ;;  %v17956_v38 = vcombine.high %v2107_v32, %v2111_v33  ;;  %v2115_v40 = vld [vmem:[%s19859_s20 + $0x3210] sm:$0xff] }
 0x749   : > { %13100 = vmatprep.subr.bf16.mxu0 %v17844_v52  ;;  %13702 = vmatprep.subr.bf16.mxu1 %v17846_v53  ;;  %v17908_v52 = vcombine.high %v2059_v46, %v2063_v47  ;;  %v17910_v53 = vcombine.high %v2060_v48, %v2064_v49  ;;  %v2119_v41 = vld [vmem:[%s19859_s20 + $0x3230] sm:$0xff] }
 0x74c   : > { %13101 = vmatpush1.bf16.msra.mxu0 %v17843_v58  ;;  %13703 = vmatpush1.bf16.msra.mxu1 %v17845_v59  ;;  %v2072_v58 = vld [vmem:[%s19859_s20 + $0x30b8] sm:$0xff]  ;;  %v17907_v59 = vcombine.low %v2059_v46, %v2063_v47  ;;  %v17964_v46 = vcombine.high %v2115_v40, %v2119_v41 }
 0x74d   : > { %13102 = vmatprep.subr.bf16.mxu0 %v17852_v60  ;;  %13704 = vmatprep.subr.bf16.mxu1 %v17854_v61  ;;  %v17909_v60 = vcombine.low %v2060_v48, %v2064_v49  ;;  %v17916_v61 = vcombine.high %v2067_v54, %v2071_v55  ;;  %v17918_v62 = vcombine.high %v2068_v57, %v2072_v58  ;;  %v2123_v48 = vld [vmem:[%s19859_s20 + $0x3250] sm:$0xff] }
 0x74e   : > { %v2127_v49 = vld [vmem:[%s19859_s20 + $0x3270] sm:$0xff] }
 0x750   : > { %13103 = vmatpush1.bf16.msra.mxu0 %v17851_v2  ;;  %13705 = vmatpush1.bf16.msra.mxu1 %v17853_v3  ;;  %v2076_v2 = vld [vmem:[%s19859_s20 + $0x30d8] sm:$0xff] }
 0x751   : > { %13104 = vmatprep.subr.bf16.mxu0 %v17860_v4  ;;  %13706 = vmatprep.subr.bf16.mxu1 %v17862_v5  ;;  %v2080_v3 = vld [vmem:[%s19859_s20 + $0x30f8] sm:$0xff]  ;;  %v17915_v4 = vcombine.low %v2067_v54, %v2071_v55  ;;  %v17917_v5 = vcombine.low %v2068_v57, %v2072_v58  ;;  %v17972_v54 = vcombine.high %v2123_v48, %v2127_v49  ;;  %v2135_v57 = vld [vmem:[%s19859_s20 + $0x32b0] sm:$0xff] }
 0x752   : > { %v17926_v7 = vcombine.high %v2076_v2, %v2080_v3  ;;  %v2132_v58 = vld [vmem:[%s19859_s20 + $0x3298] sm:$0xff] }
 0x754   : > { %13105 = vmatpush1.bf16.msra.mxu0 %v17859_v10  ;;  %13707 = vmatpush1.bf16.msra.mxu1 %v17861_v11  ;;  %v2084_v10 = vld [vmem:[%s19859_s20 + $0x3118] sm:$0xff] }
 0x755   : > { %13106 = vmatprep.subr.bf16.mxu0 %v17868_v12  ;;  %13708 = vmatprep.subr.bf16.mxu1 %v17870_v13  ;;  %v2088_v11 = vld [vmem:[%s19859_s20 + $0x3138] sm:$0xff]  ;;  %v17923_v12 = vcombine.low %v2075_v63, %v2079_v0  ;;  %v17925_v13 = vcombine.low %v2076_v2, %v2080_v3  ;;  %v2139_v0 = vld [vmem:[%s19859_s20 + $0x32d0] sm:$0xff] }
 0x756   : > { %v17934_v15 = vcombine.high %v2084_v10, %v2088_v11  ;;  %v2140_v2 = vld [vmem:[%s19859_s20 + $0x32d8] sm:$0xff] }
 0x757   : > { %v2144_v3 = vld [vmem:[%s19859_s20 + $0x32f8] sm:$0xff] }
 0x758   : > { %13107 = vmatpush1.bf16.msra.mxu0 %v17867_v18  ;;  %13709 = vmatpush1.bf16.msra.mxu1 %v17869_v19  ;;  %v2092_v18 = vld [vmem:[%s19859_s20 + $0x3158] sm:$0xff] }
 0x759   : > { %13108 = vmatprep.subr.bf16.mxu0 %v17876_v20  ;;  %13710 = vmatprep.subr.bf16.mxu1 %v17878_v21  ;;  %v2096_v19 = vld [vmem:[%s19859_s20 + $0x3178] sm:$0xff]  ;;  %v17931_v20 = vcombine.low %v2083_v8, %v2087_v9  ;;  %v17933_v21 = vcombine.low %v2084_v10, %v2088_v11  ;;  %v2147_v8 = vld [vmem:[%s19859_s20 + $0x3310] sm:$0xff] }
 0x75a   : > { %v17942_v23 = vcombine.high %v2092_v18, %v2096_v19  ;;  %v2151_v9 = vld [vmem:[%s19859_s20 + $0x3330] sm:$0xff]  ;;  %v2148_v10 = vld [vmem:[%s19859_s20 + $0x3318] sm:$0xff] }
 0x75b   : > { %v2152_v11 = vld [vmem:[%s19859_s20 + $0x3338] sm:$0xff] }
 0x75c   : > { %13109 = vmatpush1.bf16.msra.mxu0 %v17875_v26  ;;  %13711 = vmatpush1.bf16.msra.mxu1 %v17877_v27  ;;  %v2100_v26 = vld [vmem:[%s19859_s20 + $0x3198] sm:$0xff] }
 0x75d   : > { %13110 = vmatprep.subr.bf16.mxu0 %v17884_v28  ;;  %13712 = vmatprep.subr.bf16.mxu1 %v17886_v29  ;;  %v2104_v27 = vld [vmem:[%s19859_s20 + $0x31b8] sm:$0xff]  ;;  %v17939_v28 = vcombine.low %v2091_v16, %v2095_v17  ;;  %v17941_v29 = vcombine.low %v2092_v18, %v2096_v19  ;;  %v2155_v16 = vld [vmem:[%s19859_s20 + $0x3350] sm:$0xff] }
 0x75e   : > { %v17950_v31 = vcombine.high %v2100_v26, %v2104_v27  ;;  %v2159_v17 = vld [vmem:[%s19859_s20 + $0x3370] sm:$0xff]  ;;  %v2156_v18 = vld [vmem:[%s19859_s20 + $0x3358] sm:$0xff] }
 0x75f   : > { %v2160_v19 = vld [vmem:[%s19859_s20 + $0x3378] sm:$0xff] }
 0x760   : > { %13111 = vmatpush1.bf16.msra.mxu0 %v17883_v34  ;;  %13713 = vmatpush1.bf16.msra.mxu1 %v17885_v35  ;;  %v2108_v34 = vld [vmem:[%s19859_s20 + $0x31d8] sm:$0xff] }
 0x761   : > { %13112 = vmatprep.subr.bf16.mxu0 %v17892_v36  ;;  %13714 = vmatprep.subr.bf16.mxu1 %v17894_v37  ;;  %v2112_v35 = vld [vmem:[%s19859_s20 + $0x31f8] sm:$0xff]  ;;  %v17947_v36 = vcombine.low %v2099_v24, %v2103_v25  ;;  %v17949_v37 = vcombine.low %v2100_v26, %v2104_v27  ;;  %v2163_v24 = vld [vmem:[%s19859_s20 + $0x3390] sm:$0xff] }
 0x762   : > { %v17958_v39 = vcombine.high %v2108_v34, %v2112_v35  ;;  %v2167_v25 = vld [vmem:[%s19859_s20 + $0x33b0] sm:$0xff]  ;;  %v2164_v26 = vld [vmem:[%s19859_s20 + $0x3398] sm:$0xff] }
 0x763   : > { %v2168_v27 = vld [vmem:[%s19859_s20 + $0x33b8] sm:$0xff] }
 0x764   : > { %13113 = vmatpush1.bf16.msra.mxu0 %v17891_v42  ;;  %13715 = vmatpush1.bf16.msra.mxu1 %v17893_v43  ;;  %v2116_v42 = vld [vmem:[%s19859_s20 + $0x3218] sm:$0xff] }
 0x765   : > { %13125 = vmatprep.subr.bf16.mxu0 %v17900_v44  ;;  %13727 = vmatprep.subr.bf16.mxu1 %v17902_v45  ;;  %v2120_v43 = vld [vmem:[%s19859_s20 + $0x3238] sm:$0xff]  ;;  %v17955_v44 = vcombine.low %v2107_v32, %v2111_v33  ;;  %v17957_v45 = vcombine.low %v2108_v34, %v2112_v35  ;;  %v2171_v32 = vld [vmem:[%s19859_s20 + $0x33d0] sm:$0xff] }
 0x766   : > { %v17966_v47 = vcombine.high %v2116_v42, %v2120_v43  ;;  %v2175_v33 = vld [vmem:[%s19859_s20 + $0x33f0] sm:$0xff]  ;;  %v2172_v34 = vld [vmem:[%s19859_s20 + $0x33d8] sm:$0xff] }
 0x767   : > { %13115 = vmatmul.mubr.bf16.vlgmr.msra.gmra.mrb[4].mxu0 %v18892_v56  ;;  %13717 = vmatmul.mubr.bf16.vlgmr.msra.gmra.mrb[4].mxu1 %v18892_v56  ;;  %v2131_v56 = vld [vmem:[%s19859_s20 + $0x3290] sm:$0xff]  ;;  %v2176_v35 = vld [vmem:[%s19859_s20 + $0x33f8] sm:$0xff] }
 0x768   : > { %13126 = vmatpush1.bf16.msra.mxu0 %v17899_v50  ;;  %13728 = vmatpush1.bf16.msra.mxu1 %v17901_v51  ;;  %v2124_v50 = vld [vmem:[%s19859_s20 + $0x3258] sm:$0xff] }
 0x769   : > { %13127 = vmatprep.subr.bf16.mxu0 %v17908_v52  ;;  %13729 = vmatprep.subr.bf16.mxu1 %v17910_v53  ;;  %v2128_v51 = vld [vmem:[%s19859_s20 + $0x3278] sm:$0xff]  ;;  %v17963_v52 = vcombine.low %v2115_v40, %v2119_v41  ;;  %v17965_v53 = vcombine.low %v2116_v42, %v2120_v43  ;;  %v2179_v40 = vld [vmem:[%s19859_s20 + $0x3410] sm:$0xff] }
 0x76a   : > { %13157 = vmatprep.mubr.bf16.mxu0 %v18893_v1  ;;  %13759 = vmatprep.mubr.bf16.mxu1 %v18893_v1  ;;  %v17974_v55 = vcombine.high %v2124_v50, %v2128_v51  ;;  %v2143_v1 = vld [vmem:[%s19859_s20 + $0x32f0] sm:$0xff]  ;;  %v2180_v42 = vld [vmem:[%s19859_s20 + $0x3418] sm:$0xff] }
 0x76b   : > { %v2183_v41 = vld [vmem:[%s19859_s20 + $0x3430] sm:$0xff]  ;;  %v2184_v43 = vld [vmem:[%s19859_s20 + $0x3438] sm:$0xff] }
 0x76c   : > { %13128 = vmatpush1.bf16.msra.mxu0 %v17907_v59  ;;  %13730 = vmatpush1.bf16.msra.mxu1 %v17909_v60  ;;  %v2136_v59 = vld [vmem:[%s19859_s20 + $0x32b8] sm:$0xff]  ;;  %v17971_v60 = vcombine.low %v2123_v48, %v2127_v49  ;;  %v2187_v48 = vld [vmem:[%s19859_s20 + $0x3450] sm:$0xff] }
 0x76d   : > { %13129 = vmatprep.subr.bf16.mxu0 %v17916_v61  ;;  %13731 = vmatprep.subr.bf16.mxu1 %v17918_v62  ;;  %v17973_v61 = vcombine.low %v2124_v50, %v2128_v51  ;;  %v17980_v62 = vcombine.high %v2131_v56, %v2135_v57  ;;  %v17982_v63 = vcombine.high %v2132_v58, %v2136_v59  ;;  %v2191_v49 = vld [vmem:[%s19859_s20 + $0x3470] sm:$0xff]  ;;  %v2188_v50 = vld [vmem:[%s19859_s20 + $0x3458] sm:$0xff] }
 0x76e   : > { %v2192_v51 = vld [vmem:[%s19859_s20 + $0x3478] sm:$0xff] }
 0x770   : > { %13130 = vmatpush1.bf16.msra.mxu0 %v17915_v4  ;;  %13732 = vmatpush1.bf16.msra.mxu1 %v17917_v5  ;;  %v17979_v4 = vcombine.low %v2131_v56, %v2135_v57  ;;  %v17981_v5 = vcombine.low %v2132_v58, %v2136_v59  ;;  %v2195_v56 = vld [vmem:[%s19859_s20 + $0x3490] sm:$0xff]  ;;  %v2196_v59 = vld [vmem:[%s19859_s20 + $0x3498] sm:$0xff] }
 0x771   : > { %13131 = vmatprep.subr.bf16.mxu0 %v17924_v6  ;;  %13733 = vmatprep.subr.bf16.mxu1 %v17926_v7  ;;  %v17988_v6 = vcombine.high %v2139_v0, %v2143_v1  ;;  %v17990_v7 = vcombine.high %v2140_v2, %v2144_v3  ;;  %v2199_v57 = vld [vmem:[%s19859_s20 + $0x34b0] sm:$0xff] }
 0x772   : > { %v18894_v58 = vld [vmem:[%s19857_s27 + $0x60] ss:$112 sps:$4 sm:$0xff]  }
 0x774   : > { %13132 = vmatpush1.bf16.msra.mxu0 %v17923_v12  ;;  %13734 = vmatpush1.bf16.msra.mxu1 %v17925_v13  ;;  %v17987_v12 = vcombine.low %v2139_v0, %v2143_v1  ;;  %v17989_v13 = vcombine.low %v2140_v2, %v2144_v3  ;;  %v2203_v1 = vld [vmem:[%s19859_s20 + $0x34d0] sm:$0xff]  ;;  %v18895_v3 = vld [vmem:[%s19857_s27 + $0x6c] ss:$112 sps:$4 sm:$0xff]  }
 0x775   : > { %13133 = vmatprep.subr.bf16.mxu0 %v17932_v14  ;;  %13735 = vmatprep.subr.bf16.mxu1 %v17934_v15  ;;  %v17996_v14 = vcombine.high %v2147_v8, %v2151_v9  ;;  %v17998_v15 = vcombine.high %v2148_v10, %v2152_v11  ;;  %v2207_v2 = vld [vmem:[%s19859_s20 + $0x34f0] sm:$0xff] }
 0x778   : > { %13134 = vmatpush1.bf16.msra.mxu0 %v17931_v20  ;;  %13736 = vmatpush1.bf16.msra.mxu1 %v17933_v21  ;;  %v17995_v20 = vcombine.low %v2147_v8, %v2151_v9  ;;  %v17997_v21 = vcombine.low %v2148_v10, %v2152_v11  ;;  %v18052_v8 = vcombine.high %v2203_v1, %v2207_v2  ;;  %v2211_v10 = vld [vmem:[%s19859_s20 + $0x3510] sm:$0xff] }
 0x779   : > { %13135 = vmatprep.subr.bf16.mxu0 %v17940_v22  ;;  %13737 = vmatprep.subr.bf16.mxu1 %v17942_v23  ;;  %v18004_v22 = vcombine.high %v2155_v16, %v2159_v17  ;;  %v18006_v23 = vcombine.high %v2156_v18, %v2160_v19  ;;  %v2215_v11 = vld [vmem:[%s19859_s20 + $0x3530] sm:$0xff] }
 0x77c   : > { %13136 = vmatpush1.bf16.msra.mxu0 %v17939_v28  ;;  %13738 = vmatpush1.bf16.msra.mxu1 %v17941_v29  ;;  %v18003_v28 = vcombine.low %v2155_v16, %v2159_v17  ;;  %v18005_v29 = vcombine.low %v2156_v18, %v2160_v19  ;;  %v18060_v16 = vcombine.high %v2211_v10, %v2215_v11  ;;  %v2219_v18 = vld [vmem:[%s19859_s20 + $0x3550] sm:$0xff] }
 0x77d   : > { %13137 = vmatprep.subr.bf16.mxu0 %v17948_v30  ;;  %13739 = vmatprep.subr.bf16.mxu1 %v17950_v31  ;;  %v18012_v30 = vcombine.high %v2163_v24, %v2167_v25  ;;  %v18014_v31 = vcombine.high %v2164_v26, %v2168_v27  ;;  %v2223_v19 = vld [vmem:[%s19859_s20 + $0x3570] sm:$0xff] }
 0x780   : > { %13138 = vmatpush1.bf16.msra.mxu0 %v17947_v36  ;;  %13740 = vmatpush1.bf16.msra.mxu1 %v17949_v37  ;;  %v18011_v36 = vcombine.low %v2163_v24, %v2167_v25  ;;  %v18013_v37 = vcombine.low %v2164_v26, %v2168_v27  ;;  %v18068_v24 = vcombine.high %v2219_v18, %v2223_v19  ;;  %v2227_v26 = vld [vmem:[%s19859_s20 + $0x3590] sm:$0xff] }
 0x781   : > { %13139 = vmatprep.subr.bf16.mxu0 %v17956_v38  ;;  %13741 = vmatprep.subr.bf16.mxu1 %v17958_v39  ;;  %v18020_v38 = vcombine.high %v2171_v32, %v2175_v33  ;;  %v18022_v39 = vcombine.high %v2172_v34, %v2176_v35  ;;  %v2231_v27 = vld [vmem:[%s19859_s20 + $0x35b0] sm:$0xff] }
 0x784   : > { %13140 = vmatpush1.bf16.msra.mxu0 %v17955_v44  ;;  %13742 = vmatpush1.bf16.msra.mxu1 %v17957_v45  ;;  %v18019_v44 = vcombine.low %v2171_v32, %v2175_v33  ;;  %v18021_v45 = vcombine.low %v2172_v34, %v2176_v35  ;;  %v18076_v32 = vcombine.high %v2227_v26, %v2231_v27  ;;  %v2235_v34 = vld [vmem:[%s19859_s20 + $0x35d0] sm:$0xff] }
 0x785   : > { %13141 = vmatprep.subr.bf16.mxu0 %v17964_v46  ;;  %13743 = vmatprep.subr.bf16.mxu1 %v17966_v47  ;;  %v18028_v46 = vcombine.high %v2179_v40, %v2183_v41  ;;  %v18030_v47 = vcombine.high %v2180_v42, %v2184_v43  ;;  %v2239_v35 = vld [vmem:[%s19859_s20 + $0x35f0] sm:$0xff] }
 0x788   : > { %13142 = vmatpush1.bf16.msra.mxu0 %v17963_v52  ;;  %13744 = vmatpush1.bf16.msra.mxu1 %v17965_v53  ;;  %v18027_v52 = vcombine.low %v2179_v40, %v2183_v41  ;;  %v18029_v53 = vcombine.low %v2180_v42, %v2184_v43  ;;  %v18084_v40 = vcombine.high %v2235_v34, %v2239_v35  ;;  %v2243_v42 = vld [vmem:[%s19859_s20 + $0x3610] sm:$0xff] }
 0x789   : > { %13143 = vmatprep.subr.bf16.mxu0 %v17972_v54  ;;  %13745 = vmatprep.subr.bf16.mxu1 %v17974_v55  ;;  %v18036_v54 = vcombine.high %v2187_v48, %v2191_v49  ;;  %v18038_v55 = vcombine.high %v2188_v50, %v2192_v51  ;;  %v2247_v43 = vld [vmem:[%s19859_s20 + $0x3630] sm:$0xff] }
 0x78c   : > { %13144 = vmatpush1.bf16.msra.mxu0 %v17971_v60  ;;  %13746 = vmatpush1.bf16.msra.mxu1 %v17973_v61  ;;  %v2200_v60 = vld [vmem:[%s19859_s20 + $0x34b8] sm:$0xff]  ;;  %v18035_v61 = vcombine.low %v2187_v48, %v2191_v49  ;;  %v18092_v48 = vcombine.high %v2243_v42, %v2247_v43 }
 0x78d   : > { %13145 = vmatprep.subr.bf16.mxu0 %v17980_v62  ;;  %13747 = vmatprep.subr.bf16.mxu1 %v17982_v63  ;;  %v18037_v62 = vcombine.low %v2188_v50, %v2192_v51  ;;  %v18044_v63 = vcombine.high %v2195_v56, %v2199_v57  ;;  %v18046_v0 = vcombine.high %v2196_v59, %v2200_v60  ;;  %v2251_v50 = vld [vmem:[%s19859_s20 + $0x3650] sm:$0xff] }
 0x78e   : > { %v2255_v51 = vld [vmem:[%s19859_s20 + $0x3670] sm:$0xff] }
 0x790   : > { %13146 = vmatpush1.bf16.msra.mxu0 %v17979_v4  ;;  %13748 = vmatpush1.bf16.msra.mxu1 %v17981_v5  ;;  %v2204_v4 = vld [vmem:[%s19859_s20 + $0x34d8] sm:$0xff] }
 0x791   : > { %13147 = vmatprep.subr.bf16.mxu0 %v17988_v6  ;;  %13749 = vmatprep.subr.bf16.mxu1 %v17990_v7  ;;  %v2208_v5 = vld [vmem:[%s19859_s20 + $0x34f8] sm:$0xff]  ;;  %v18043_v6 = vcombine.low %v2195_v56, %v2199_v57  ;;  %v18045_v7 = vcombine.low %v2196_v59, %v2200_v60  ;;  %v18100_v56 = vcombine.high %v2251_v50, %v2255_v51  ;;  %v2263_v59 = vld [vmem:[%s19859_s20 + $0x36b0] sm:$0xff] }
 0x792   : > { %v18054_v9 = vcombine.high %v2204_v4, %v2208_v5  ;;  %v2260_v60 = vld [vmem:[%s19859_s20 + $0x3698] sm:$0xff] }
 0x794   : > { %13148 = vmatpush1.bf16.msra.mxu0 %v17987_v12  ;;  %13750 = vmatpush1.bf16.msra.mxu1 %v17989_v13  ;;  %v2212_v12 = vld [vmem:[%s19859_s20 + $0x3518] sm:$0xff] }
 0x795   : > { %13149 = vmatprep.subr.bf16.mxu0 %v17996_v14  ;;  %13751 = vmatprep.subr.bf16.mxu1 %v17998_v15  ;;  %v2216_v13 = vld [vmem:[%s19859_s20 + $0x3538] sm:$0xff]  ;;  %v18051_v14 = vcombine.low %v2203_v1, %v2207_v2  ;;  %v18053_v15 = vcombine.low %v2204_v4, %v2208_v5  ;;  %v2267_v2 = vld [vmem:[%s19859_s20 + $0x36d0] sm:$0xff] }
 0x796   : > { %v18062_v17 = vcombine.high %v2212_v12, %v2216_v13  ;;  %v2268_v4 = vld [vmem:[%s19859_s20 + $0x36d8] sm:$0xff] }
 0x797   : > { %v2272_v5 = vld [vmem:[%s19859_s20 + $0x36f8] sm:$0xff] }
 0x798   : > { %13150 = vmatpush1.bf16.msra.mxu0 %v17995_v20  ;;  %13752 = vmatpush1.bf16.msra.mxu1 %v17997_v21  ;;  %v2220_v20 = vld [vmem:[%s19859_s20 + $0x3558] sm:$0xff] }
 0x799   : > { %13151 = vmatprep.subr.bf16.mxu0 %v18004_v22  ;;  %13753 = vmatprep.subr.bf16.mxu1 %v18006_v23  ;;  %v2224_v21 = vld [vmem:[%s19859_s20 + $0x3578] sm:$0xff]  ;;  %v18059_v22 = vcombine.low %v2211_v10, %v2215_v11  ;;  %v18061_v23 = vcombine.low %v2212_v12, %v2216_v13  ;;  %v2275_v10 = vld [vmem:[%s19859_s20 + $0x3710] sm:$0xff] }
 0x79a   : > { %v18070_v25 = vcombine.high %v2220_v20, %v2224_v21  ;;  %v2279_v11 = vld [vmem:[%s19859_s20 + $0x3730] sm:$0xff]  ;;  %v2276_v12 = vld [vmem:[%s19859_s20 + $0x3718] sm:$0xff] }
 0x79b   : > { %v2280_v13 = vld [vmem:[%s19859_s20 + $0x3738] sm:$0xff] }
 0x79c   : > { %13152 = vmatpush1.bf16.msra.mxu0 %v18003_v28  ;;  %13754 = vmatpush1.bf16.msra.mxu1 %v18005_v29  ;;  %v2228_v28 = vld [vmem:[%s19859_s20 + $0x3598] sm:$0xff] }
 0x79d   : > { %13153 = vmatprep.subr.bf16.mxu0 %v18012_v30  ;;  %13755 = vmatprep.subr.bf16.mxu1 %v18014_v31  ;;  %v2232_v29 = vld [vmem:[%s19859_s20 + $0x35b8] sm:$0xff]  ;;  %v18067_v30 = vcombine.low %v2219_v18, %v2223_v19  ;;  %v18069_v31 = vcombine.low %v2220_v20, %v2224_v21  ;;  %v2283_v18 = vld [vmem:[%s19859_s20 + $0x3750] sm:$0xff] }
 0x79e   : > { %v18078_v33 = vcombine.high %v2228_v28, %v2232_v29  ;;  %v2287_v19 = vld [vmem:[%s19859_s20 + $0x3770] sm:$0xff]  ;;  %v2284_v20 = vld [vmem:[%s19859_s20 + $0x3758] sm:$0xff] }
 0x79f   : > { %v2288_v21 = vld [vmem:[%s19859_s20 + $0x3778] sm:$0xff] }
 0x7a0   : > { %13154 = vmatpush1.bf16.msra.mxu0 %v18011_v36  ;;  %13756 = vmatpush1.bf16.msra.mxu1 %v18013_v37  ;;  %v2236_v36 = vld [vmem:[%s19859_s20 + $0x35d8] sm:$0xff] }
 0x7a1   : > { %13155 = vmatprep.subr.bf16.mxu0 %v18020_v38  ;;  %13757 = vmatprep.subr.bf16.mxu1 %v18022_v39  ;;  %v2240_v37 = vld [vmem:[%s19859_s20 + $0x35f8] sm:$0xff]  ;;  %v18075_v38 = vcombine.low %v2227_v26, %v2231_v27  ;;  %v18077_v39 = vcombine.low %v2228_v28, %v2232_v29  ;;  %v2291_v26 = vld [vmem:[%s19859_s20 + $0x3790] sm:$0xff] }
 0x7a2   : > { %v18086_v41 = vcombine.high %v2236_v36, %v2240_v37  ;;  %v2295_v27 = vld [vmem:[%s19859_s20 + $0x37b0] sm:$0xff]  ;;  %v2292_v28 = vld [vmem:[%s19859_s20 + $0x3798] sm:$0xff] }
 0x7a3   : > { %v2296_v29 = vld [vmem:[%s19859_s20 + $0x37b8] sm:$0xff] }
 0x7a4   : > { %13156 = vmatpush1.bf16.msra.mxu0 %v18019_v44  ;;  %13758 = vmatpush1.bf16.msra.mxu1 %v18021_v45  ;;  %v2244_v44 = vld [vmem:[%s19859_s20 + $0x3618] sm:$0xff] }
 0x7a5   : > { %13168 = vmatprep.subr.bf16.mxu0 %v18028_v46  ;;  %13770 = vmatprep.subr.bf16.mxu1 %v18030_v47  ;;  %v2248_v45 = vld [vmem:[%s19859_s20 + $0x3638] sm:$0xff]  ;;  %v18083_v46 = vcombine.low %v2235_v34, %v2239_v35  ;;  %v18085_v47 = vcombine.low %v2236_v36, %v2240_v37  ;;  %v2299_v34 = vld [vmem:[%s19859_s20 + $0x37d0] sm:$0xff] }
 0x7a6   : > { %v18094_v49 = vcombine.high %v2244_v44, %v2248_v45  ;;  %v2303_v35 = vld [vmem:[%s19859_s20 + $0x37f0] sm:$0xff]  ;;  %v2300_v36 = vld [vmem:[%s19859_s20 + $0x37d8] sm:$0xff] }
 0x7a7   : > { %13158 = vmatmul.mubr.bf16.vlgmr.msra.gmra.mrb[4].mxu0 %v18894_v58  ;;  %13760 = vmatmul.mubr.bf16.vlgmr.msra.gmra.mrb[4].mxu1 %v18894_v58  ;;  %v2259_v58 = vld [vmem:[%s19859_s20 + $0x3690] sm:$0xff]  ;;  %v2304_v37 = vld [vmem:[%s19859_s20 + $0x37f8] sm:$0xff] }
 0x7a8   : > { %13169 = vmatpush1.bf16.msra.mxu0 %v18027_v52  ;;  %13771 = vmatpush1.bf16.msra.mxu1 %v18029_v53  ;;  %v2252_v52 = vld [vmem:[%s19859_s20 + $0x3658] sm:$0xff] }
 0x7a9   : > { %13170 = vmatprep.subr.bf16.mxu0 %v18036_v54  ;;  %13772 = vmatprep.subr.bf16.mxu1 %v18038_v55  ;;  %v2256_v53 = vld [vmem:[%s19859_s20 + $0x3678] sm:$0xff]  ;;  %v18091_v54 = vcombine.low %v2243_v42, %v2247_v43  ;;  %v18093_v55 = vcombine.low %v2244_v44, %v2248_v45  ;;  %v18147_v42 = vcombine.low %v2299_v34, %v2303_v35  ;;  %v473_v45 = vld [vmem:[#allocation2 + $0x20] sm:$0xff] }
 0x7aa   : > { %13200 = vmatprep.mubr.bf16.mxu0 %v18895_v3  ;;  %13802 = vmatprep.mubr.bf16.mxu1 %v18895_v3  ;;  %v18102_v57 = vcombine.high %v2252_v52, %v2256_v53  ;;  %v2271_v3 = vld [vmem:[%s19859_s20 + $0x36f0] sm:$0xff]  ;;  %v18149_v43 = vcombine.low %v2300_v36, %v2304_v37  ;;  %v18896_v44 = vld [vmem:[%s19857_s27 + $0x68] ss:$112 sps:$4 sm:$0xff]  }
 0x7ac   : > { %13171 = vmatpush1.bf16.msra.mxu0 %v18035_v61  ;;  %13773 = vmatpush1.bf16.msra.mxu1 %v18037_v62  ;;  %v2264_v61 = vld [vmem:[%s19859_s20 + $0x36b8] sm:$0xff]  ;;  %v18099_v62 = vcombine.low %v2251_v50, %v2255_v51  ;;  %v481_v50 = vld [vmem:[#allocation2 + $0x60] sm:$0xff] }
 0x7ad   : > { %13172 = vmatprep.subr.bf16.mxu0 %v18044_v63  ;;  %13774 = vmatprep.subr.bf16.mxu1 %v18046_v0  ;;  %v18101_v63 = vcombine.low %v2252_v52, %v2256_v53  ;;  %v18108_v0 = vcombine.high %v2259_v58, %v2263_v59  ;;  %v18110_v1 = vcombine.high %v2260_v60, %v2264_v61 }
 0x7b0   : > { %13173 = vmatpush1.bf16.msra.mxu0 %v18043_v6  ;;  %13775 = vmatpush1.bf16.msra.mxu1 %v18045_v7  ;;  %v18107_v6 = vcombine.low %v2259_v58, %v2263_v59  ;;  %v18109_v7 = vcombine.low %v2260_v60, %v2264_v61  ;;  %v484_v60 = vld [vmem:[#allocation2 + $0x78] sm:$0xff] }
 0x7b1   : > { %13174 = vmatprep.subr.bf16.mxu0 %v18052_v8  ;;  %13776 = vmatprep.subr.bf16.mxu1 %v18054_v9  ;;  %v18116_v8 = vcombine.high %v2267_v2, %v2271_v3  ;;  %v18118_v9 = vcombine.high %v2268_v4, %v2272_v5 }
 0x7b4   : > { %13175 = vmatpush1.bf16.msra.mxu0 %v18051_v14  ;;  %13777 = vmatpush1.bf16.msra.mxu1 %v18053_v15  ;;  %v18115_v14 = vcombine.low %v2267_v2, %v2271_v3  ;;  %v18117_v15 = vcombine.low %v2268_v4, %v2272_v5  ;;  %v18897_v5 = vld [vmem:[#allocation8 + $0x4] ss:$16 sps:$4 sm:$0xff] (!%p18151_p13)  }
 0x7b5   : > { %13176 = vmatprep.subr.bf16.mxu0 %v18060_v16  ;;  %13778 = vmatprep.subr.bf16.mxu1 %v18062_v17  ;;  %v18124_v16 = vcombine.high %v2275_v10, %v2279_v11  ;;  %v18126_v17 = vcombine.high %v2276_v12, %v2280_v13 }
 0x7b8   : > { %13177 = vmatpush1.bf16.msra.mxu0 %v18059_v22  ;;  %13779 = vmatpush1.bf16.msra.mxu1 %v18061_v23  ;;  %v18123_v22 = vcombine.low %v2275_v10, %v2279_v11  ;;  %v18125_v23 = vcombine.low %v2276_v12, %v2280_v13  ;;  %v18905_v10 = vld [vmem:[#allocation8 + $0x2c] ss:$16 sps:$4 sm:$0xff] (!%p18151_p13)   ;;  %v18907_v11 = vld [vmem:[#allocation8 + $0x20] ss:$16 sps:$4 sm:$0xff] (!%p18151_p13)   ;;  %v18908_v12 = vld [vmem:[#allocation8 + $0x28] ss:$16 sps:$4 sm:$0xff] (!%p18151_p13)  }
 0x7b9   : > { %13178 = vmatprep.subr.bf16.mxu0 %v18068_v24  ;;  %13780 = vmatprep.subr.bf16.mxu1 %v18070_v25  ;;  %v18132_v24 = vcombine.high %v2283_v18, %v2287_v19  ;;  %v18134_v25 = vcombine.high %v2284_v20, %v2288_v21  ;;  %v18909_v13 = vld [vmem:[#allocation8 + $0x44] ss:$16 sps:$4 sm:$0xff] (!%p18151_p13)  }
 0x7bc   : > { %13179 = vmatpush1.bf16.msra.mxu0 %v18067_v30  ;;  %13781 = vmatpush1.bf16.msra.mxu1 %v18069_v31  ;;  %v18131_v30 = vcombine.low %v2283_v18, %v2287_v19  ;;  %v18133_v31 = vcombine.low %v2284_v20, %v2288_v21  ;;  %v18917_v18 = vld [vmem:[#allocation8 + $0x6c] ss:$16 sps:$4 sm:$0xff] (!%p18151_p13)   ;;  %v18919_v19 = vld [vmem:[#allocation8 + $0x60] ss:$16 sps:$4 sm:$0xff] (!%p18151_p13)   ;;  %v18920_v20 = vld [vmem:[#allocation8 + $0x68] ss:$16 sps:$4 sm:$0xff] (!%p18151_p13)  }
 0x7bd   : > { %13180 = vmatprep.subr.bf16.mxu0 %v18076_v32  ;;  %13782 = vmatprep.subr.bf16.mxu1 %v18078_v33  ;;  %v18140_v32 = vcombine.high %v2291_v26, %v2295_v27  ;;  %v18142_v33 = vcombine.high %v2292_v28, %v2296_v29  ;;  %v18921_v21 = vld [vmem:[#allocation8 + $0x84] ss:$16 sps:$4 sm:$0xff] (!%p18151_p13)  }
 0x7c0   : > { %13181 = vmatpush1.bf16.msra.mxu0 %v18075_v38  ;;  %13783 = vmatpush1.bf16.msra.mxu1 %v18077_v39  ;;  %v18139_v38 = vcombine.low %v2291_v26, %v2295_v27  ;;  %v18141_v39 = vcombine.low %v2292_v28, %v2296_v29  ;;  %v18929_v26 = vld [vmem:[#allocation8 + $0xac] ss:$16 sps:$4 sm:$0xff] (!%p18151_p13)   ;;  %v18931_v27 = vld [vmem:[#allocation8 + $0xa0] ss:$16 sps:$4 sm:$0xff] (!%p18151_p13)   ;;  %v18932_v28 = vld [vmem:[#allocation8 + $0xa8] ss:$16 sps:$4 sm:$0xff] (!%p18151_p13)  }
 0x7c1   : > { %13182 = vmatprep.subr.bf16.mxu0 %v18084_v40  ;;  %13784 = vmatprep.subr.bf16.mxu1 %v18086_v41  ;;  %v18148_v40 = vcombine.high %v2299_v34, %v2303_v35  ;;  %v18150_v41 = vcombine.high %v2300_v36, %v2304_v37  ;;  %v18933_v29 = vld [vmem:[#allocation8 + $0xc4] ss:$16 sps:$4 sm:$0xff] (!%p18151_p13)   ;;  %v18941_v34 = vld [vmem:[#allocation8 + $0xec] ss:$16 sps:$4 sm:$0xff] (!%p18151_p13)   ;;  %v18943_v35 = vld [vmem:[#allocation8 + $0xe0] ss:$16 sps:$4 sm:$0xff] (!%p18151_p13)  }
 0x7c2   : > { %v18944_v36 = vld [vmem:[#allocation8 + $0xe8] ss:$16 sps:$4 sm:$0xff] (!%p18151_p13)   ;;  %v18945_v37 = vld [vmem:[#allocation8 + $0x104] ss:$16 sps:$4 sm:$0xff] (!%p18151_p13)  }
 0x7c4   : > { %13183 = vmatpush1.bf16.msra.mxu0 %v18083_v46  ;;  %13785 = vmatpush1.bf16.msra.mxu1 %v18085_v47  ;;  %v475_v46 = vld [vmem:[#allocation2 + $0x30] sm:$0xff]  ;;  %v474_v47 = vld [vmem:[#allocation2 + $0x28] sm:$0xff] }
 0x7c5   : > { %13184 = vmatprep.subr.bf16.mxu0 %v18092_v48  ;;  %13786 = vmatprep.subr.bf16.mxu1 %v18094_v49  ;;  %v476_v49 = vld [vmem:[#allocation2 + $0x38] sm:$0xff] }
 0x7c8   : > { %13185 = vmatpush1.bf16.msra.mxu0 %v18091_v54  ;;  %13787 = vmatpush1.bf16.msra.mxu1 %v18093_v55  ;;  %v483_v54 = vld [vmem:[#allocation2 + $0x70] sm:$0xff]  ;;  %v482_v55 = vld [vmem:[#allocation2 + $0x68] sm:$0xff] }
 0x7c9   : > { %13186 = vmatprep.subr.bf16.mxu0 %v18100_v56  ;;  %13788 = vmatprep.subr.bf16.mxu1 %v18102_v57 }
 0x7cc   : > { %13187 = vmatpush1.bf16.msra.mxu0 %v18099_v62  ;;  %13789 = vmatpush1.bf16.msra.mxu1 %v18101_v63 }
 0x7cd   : > { %13188 = vmatprep.subr.bf16.mxu0 %v18108_v0  ;;  %13790 = vmatprep.subr.bf16.mxu1 %v18110_v1 }
 0x7d0   : > { %13189 = vmatpush1.bf16.msra.mxu0 %v18107_v6  ;;  %13791 = vmatpush1.bf16.msra.mxu1 %v18109_v7  ;;  %v18899_v6 = vld [vmem:[#allocation8 + $0xc] ss:$16 sps:$4 sm:$0xff] (!%p18151_p13)   ;;  %v18901_v7 = vld [vmem:[#allocation8] ss:$16 sps:$4 sm:$0xff] (!%p18151_p13)  }
 0x7d1   : > { %13190 = vmatprep.subr.bf16.mxu0 %v18116_v8  ;;  %13792 = vmatprep.subr.bf16.mxu1 %v18118_v9  ;;  %v18902_v8 = vld [vmem:[#allocation8 + $0x8] ss:$16 sps:$4 sm:$0xff] (!%p18151_p13)   ;;  %v18903_v9 = vld [vmem:[#allocation8 + $0x24] ss:$16 sps:$4 sm:$0xff] (!%p18151_p13)  }
 0x7d4   : > { %13191 = vmatpush1.bf16.msra.mxu0 %v18115_v14  ;;  %13793 = vmatpush1.bf16.msra.mxu1 %v18117_v15  ;;  %v18911_v14 = vld [vmem:[#allocation8 + $0x4c] ss:$16 sps:$4 sm:$0xff] (!%p18151_p13)   ;;  %v18913_v15 = vld [vmem:[#allocation8 + $0x40] ss:$16 sps:$4 sm:$0xff] (!%p18151_p13)  }
 0x7d5   : > { %13192 = vmatprep.subr.bf16.mxu0 %v18124_v16  ;;  %13794 = vmatprep.subr.bf16.mxu1 %v18126_v17  ;;  %v18914_v16 = vld [vmem:[#allocation8 + $0x48] ss:$16 sps:$4 sm:$0xff] (!%p18151_p13)   ;;  %v18915_v17 = vld [vmem:[#allocation8 + $0x64] ss:$16 sps:$4 sm:$0xff] (!%p18151_p13)  }
 0x7d8   : > { %13193 = vmatpush1.bf16.msra.mxu0 %v18123_v22  ;;  %13795 = vmatpush1.bf16.msra.mxu1 %v18125_v23  ;;  %v18923_v22 = vld [vmem:[#allocation8 + $0x8c] ss:$16 sps:$4 sm:$0xff] (!%p18151_p13)   ;;  %v18925_v23 = vld [vmem:[#allocation8 + $0x80] ss:$16 sps:$4 sm:$0xff] (!%p18151_p13)  }
 0x7d9   : > { %13194 = vmatprep.subr.bf16.mxu0 %v18132_v24  ;;  %13796 = vmatprep.subr.bf16.mxu1 %v18134_v25  ;;  %v18926_v24 = vld [vmem:[#allocation8 + $0x88] ss:$16 sps:$4 sm:$0xff] (!%p18151_p13)   ;;  %v18927_v25 = vld [vmem:[#allocation8 + $0xa4] ss:$16 sps:$4 sm:$0xff] (!%p18151_p13)  }
 0x7dc   : > { %13195 = vmatpush1.bf16.msra.mxu0 %v18131_v30  ;;  %13797 = vmatpush1.bf16.msra.mxu1 %v18133_v31  ;;  %v18935_v30 = vld [vmem:[#allocation8 + $0xcc] ss:$16 sps:$4 sm:$0xff] (!%p18151_p13)   ;;  %v18937_v31 = vld [vmem:[#allocation8 + $0xc0] ss:$16 sps:$4 sm:$0xff] (!%p18151_p13)  }
 0x7dd   : > { %13196 = vmatprep.subr.bf16.mxu0 %v18140_v32  ;;  %13798 = vmatprep.subr.bf16.mxu1 %v18142_v33  ;;  %v18938_v32 = vld [vmem:[#allocation8 + $0xc8] ss:$16 sps:$4 sm:$0xff] (!%p18151_p13)   ;;  %v18939_v33 = vld [vmem:[#allocation8 + $0xe4] ss:$16 sps:$4 sm:$0xff] (!%p18151_p13)  }
 0x7e0   : > { %13197 = vmatpush1.bf16.msra.mxu0 %v18139_v38  ;;  %13799 = vmatpush1.bf16.msra.mxu1 %v18141_v39  ;;  %v18947_v38 = vld [vmem:[#allocation8 + $0x10c] ss:$16 sps:$4 sm:$0xff] (!%p18151_p13)   ;;  %v18949_v39 = vld [vmem:[#allocation8 + $0x100] ss:$16 sps:$4 sm:$0xff] (!%p18151_p13)  }
 0x7e1   : > { %13198 = vmatprep.subr.bf16.mxu0 %v18148_v40  ;;  %13800 = vmatprep.subr.bf16.mxu1 %v18150_v41  ;;  %v18950_v40 = vld [vmem:[#allocation8 + $0x108] ss:$16 sps:$4 sm:$0xff] (!%p18151_p13)   ;;  %v18951_v41 = vld [vmem:[#allocation8 + $0x124] ss:$16 sps:$4 sm:$0xff] (!%p18151_p13)  }
 0x7e4   : > { %13199 = vmatpush1.bf16.msra.mxu0 %v18147_v42  ;;  %13801 = vmatpush1.bf16.msra.mxu1 %v18149_v43  ;;  %v13867_v42 = vlaneseq (!%p18151_p13)  ;;  %v18953_v43 = vld [vmem:[#allocation8 + $0x12c] ss:$16 sps:$4 sm:$0xff] (!%p18151_p13)  }
 0x7e5   : > { %15505 = vmatprep.subr.bf16.mxu0 (!%p18151_p13), %v18897_v5  ;;  %15677 = vmatprep.subr.bf16.mxu1 (!%p18151_p13), %v18899_v6  ;;  %v18975_v5 = vld [vmem:[#allocation8 + $0x1a4] ss:$16 sps:$4 sm:$0xff] (!%p18151_p13)   ;;  %v18977_v6 = vld [vmem:[#allocation8 + $0x1ac] ss:$16 sps:$4 sm:$0xff] (!%p18151_p13)  }
 0x7e7   : > { %13201 = vmatmul.mubr.bf16.vlgmr.msra.gmra.mrb[4].mxu0 %v18896_v44  ;;  %13803 = vmatmul.mubr.bf16.vlgmr.msra.gmra.mrb[4].mxu1 %v18896_v44  ;;  %v18955_v44 = vld [vmem:[#allocation8 + $0x120] ss:$16 sps:$4 sm:$0xff] (!%p18151_p13)  }
 0x7e8   : > { %15506 = vmatpush1.bf16.msra.mxu0 (!%p18151_p13), %v18901_v7  ;;  %15678 = vmatpush1.bf16.msra.mxu1 (!%p18151_p13), %v18902_v8  ;;  %v18979_v7 = vld [vmem:[#allocation8 + $0x1a0] ss:$16 sps:$4 sm:$0xff] (!%p18151_p13)  }
 0x7e9   : > { %15507 = vmatprep.subr.bf16.mxu0 (!%p18151_p13), %v18903_v9  ;;  %15679 = vmatprep.subr.bf16.mxu1 (!%p18151_p13), %v18905_v10  ;;  %v18980_v9 = vld [vmem:[#allocation8 + $0x1a8] ss:$16 sps:$4 sm:$0xff] (!%p18151_p13)  }
 0x7ec   : > { %15508 = vmatpush1.bf16.msra.mxu0 (!%p18151_p13), %v18907_v11  ;;  %15680 = vmatpush1.bf16.msra.mxu1 (!%p18151_p13), %v18908_v12  ;;  %v13849_v11 = vld [vmem:[#allocation2] sm:$0xff] (!%p18151_p13) }
 0x7ed   : > { %15509 = vmatprep.subr.bf16.mxu0 (!%p18151_p13), %v18909_v13  ;;  %15681 = vmatprep.subr.bf16.mxu1 (!%p18151_p13), %v18911_v14  ;;  %v13857_v12 = vld [vmem:[#allocation2 + $0x40] sm:$0xff] (!%p18151_p13)  ;;  %v18981_v13 = vld [vmem:[#allocation8 + $0x1c4] ss:$16 sps:$4 sm:$0xff] (!%p18151_p13)  }
 0x7ee   : > { %v18983_v14 = vld [vmem:[#allocation8 + $0x1cc] ss:$16 sps:$4 sm:$0xff] (!%p18151_p13)  }
 0x7f0   : > { %15510 = vmatpush1.bf16.msra.mxu0 (!%p18151_p13), %v18913_v15  ;;  %15682 = vmatpush1.bf16.msra.mxu1 (!%p18151_p13), %v18914_v16 }
 0x7f1   : > { %15511 = vmatprep.subr.bf16.mxu0 (!%p18151_p13), %v18915_v17  ;;  %15683 = vmatprep.subr.bf16.mxu1 (!%p18151_p13), %v18917_v18  ;;  %v18985_v17 = vld [vmem:[#allocation8 + $0x1c0] ss:$16 sps:$4 sm:$0xff] (!%p18151_p13)   ;;  %v18986_v18 = vld [vmem:[#allocation8 + $0x1c8] ss:$16 sps:$4 sm:$0xff] (!%p18151_p13)  }
 0x7f4   : > { %15512 = vmatpush1.bf16.msra.mxu0 (!%p18151_p13), %v18919_v19  ;;  %15684 = vmatpush1.bf16.msra.mxu1 (!%p18151_p13), %v18920_v20  ;;  %v18987_v19 = vld [vmem:[#allocation8 + $0x1e4] ss:$16 sps:$4 sm:$0xff] (!%p18151_p13)   ;;  %v18989_v20 = vld [vmem:[#allocation8 + $0x1ec] ss:$16 sps:$4 sm:$0xff] (!%p18151_p13)  }
 0x7f5   : > { %15513 = vmatprep.subr.bf16.mxu0 (!%p18151_p13), %v18921_v21  ;;  %15685 = vmatprep.subr.bf16.mxu1 (!%p18151_p13), %v18923_v22 }
 0x7f8   : > { %15514 = vmatpush1.bf16.msra.mxu0 (!%p18151_p13), %v18925_v23  ;;  %15686 = vmatpush1.bf16.msra.mxu1 (!%p18151_p13), %v18926_v24  ;;  %v18991_v23 = vld [vmem:[#allocation8 + $0x1e0] ss:$16 sps:$4 sm:$0xff] (!%p18151_p13)   ;;  %v18992_v24 = vld [vmem:[#allocation8 + $0x1e8] ss:$16 sps:$4 sm:$0xff] (!%p18151_p13)  }
 0x7f9   : > { %15515 = vmatprep.subr.bf16.mxu0 (!%p18151_p13), %v18927_v25  ;;  %15687 = vmatprep.subr.bf16.mxu1 (!%p18151_p13), %v18929_v26  ;;  %v18995_v25 = vld [vmem:[#allocation8 + $0x204] ss:$16 sps:$4 sm:$0xff] (!%p18151_p13)   ;;  %v18998_v26 = vld [vmem:[#allocation8 + $0x20c] ss:$16 sps:$4 sm:$0xff] (!%p18151_p13)  }
 0x7fc   : > { %15516 = vmatpush1.bf16.msra.mxu0 (!%p18151_p13), %v18931_v27  ;;  %15688 = vmatpush1.bf16.msra.mxu1 (!%p18151_p13), %v18932_v28  ;;  %v18993_v28 = vld [vmem:[#allocation8 + $0x200] ss:$16 sps:$4 sm:$0xff] (!%p18151_p13)  }
 0x7fd   : > { %15517 = vmatprep.subr.bf16.mxu0 (!%p18151_p13), %v18933_v29  ;;  %15689 = vmatprep.subr.bf16.mxu1 (!%p18151_p13), %v18935_v30  ;;  %v18996_v29 = vld [vmem:[#allocation8 + $0x208] ss:$16 sps:$4 sm:$0xff] (!%p18151_p13)   ;;  %v19001_v30 = vld [vmem:[#allocation8 + $0x224] ss:$16 sps:$4 sm:$0xff] (!%p18151_p13)  }
 0x800   : > { %15518 = vmatpush1.bf16.msra.mxu0 (!%p18151_p13), %v18937_v31  ;;  %15690 = vmatpush1.bf16.msra.mxu1 (!%p18151_p13), %v18938_v32  ;;  %v19004_v31 = vld [vmem:[#allocation8 + $0x22c] ss:$16 sps:$4 sm:$0xff] (!%p18151_p13)   ;;  %v18999_v32 = vld [vmem:[#allocation8 + $0x220] ss:$16 sps:$4 sm:$0xff] (!%p18151_p13)  }
 0x801   : > { %15519 = vmatprep.subr.bf16.mxu0 (!%p18151_p13), %v18939_v33  ;;  %15691 = vmatprep.subr.bf16.mxu1 (!%p18151_p13), %v18941_v34  ;;  %v19002_v33 = vld [vmem:[#allocation8 + $0x228] ss:$16 sps:$4 sm:$0xff] (!%p18151_p13)   ;;  %v19007_v34 = vld [vmem:[#allocation8 + $0x244] ss:$16 sps:$4 sm:$0xff] (!%p18151_p13)  }
 0x804   : > { %15520 = vmatpush1.bf16.msra.mxu0 (!%p18151_p13), %v18943_v35  ;;  %15692 = vmatpush1.bf16.msra.mxu1 (!%p18151_p13), %v18944_v36  ;;  %v19010_v35 = vld [vmem:[#allocation8 + $0x24c] ss:$16 sps:$4 sm:$0xff] (!%p18151_p13)   ;;  %v19005_v36 = vld [vmem:[#allocation8 + $0x240] ss:$16 sps:$4 sm:$0xff] (!%p18151_p13)  }
 0x805   : > { %15521 = vmatprep.subr.bf16.mxu0 (!%p18151_p13), %v18945_v37  ;;  %15693 = vmatprep.subr.bf16.mxu1 (!%p18151_p13), %v18947_v38  ;;  %v19008_v37 = vld [vmem:[#allocation8 + $0x248] ss:$16 sps:$4 sm:$0xff] (!%p18151_p13)   ;;  %v19013_v38 = vld [vmem:[#allocation8 + $0x264] ss:$16 sps:$4 sm:$0xff] (!%p18151_p13)  }
 0x808   : > { %15522 = vmatpush1.bf16.msra.mxu0 (!%p18151_p13), %v18949_v39  ;;  %15694 = vmatpush1.bf16.msra.mxu1 (!%p18151_p13), %v18950_v40  ;;  %v19016_v39 = vld [vmem:[#allocation8 + $0x26c] ss:$16 sps:$4 sm:$0xff] (!%p18151_p13)   ;;  %v19011_v40 = vld [vmem:[#allocation8 + $0x260] ss:$16 sps:$4 sm:$0xff] (!%p18151_p13)  }
 0x809   : > { %15523 = vmatprep.subr.bf16.mxu0 (!%p18151_p13), %v18951_v41  ;;  %15695 = vmatprep.subr.bf16.mxu1 (!%p18151_p13), %v18953_v43  ;;  %v19014_v41 = vld [vmem:[#allocation8 + $0x268] ss:$16 sps:$4 sm:$0xff] (!%p18151_p13)   ;;  %v19022_v43 = vld [vmem:[#allocation8 + $0x28c] ss:$16 sps:$4 sm:$0xff] (!%p18151_p13)  }
 0x80c   : > { %15524 = vmatpush1.bf16.msra.mxu0 (!%p18151_p13), %v18955_v44  ;;  %v19017_v44 = vld [vmem:[#allocation8 + $0x280] ss:$16 sps:$4 sm:$0xff] (!%p18151_p13)  }
 0x8ba   : > { %v13202_v48 = vpop.f32.mrb[4].mxu0  ;;  %v13804_v52 = vpop.f32.mrb[4].mxu1  ;;  %13848 = sbr.rel (%p18151_p13) target bundleno = 2897 (0xb51), region = 103 }
 0x8bb   : > { %v13817_v51 = vadd.f32 %v13202_v48, %v473_v45  ;;  %v13204_v53 = vpop.f32.mrb[5].mxu0  ;;  %v13819_v56 = vadd.f32 %v13804_v52, %v475_v46  ;;  %v13806_v58 = vpop.f32.mrb[5].mxu1  ;;  %v18956_v45 = vld [vmem:[#allocation8 + $0x128] ss:$16 sps:$4 sm:$0xff] (!%p18151_p13)   ;;  %v18957_v46 = vld [vmem:[#allocation8 + $0x144] ss:$16 sps:$4 sm:$0xff] (!%p18151_p13)  }
 0x8bc   : > { %v13818_v57 = vadd.f32 %v13204_v53, %v474_v47  ;;  %v13206_v59 = vpop.f32.mrb[6].mxu0  ;;  %v13820_v61 = vadd.f32 %v13806_v58, %v476_v49  ;;  %v13808_v63 = vpop.f32.mrb[6].mxu1  ;;  %v21728_v47 = vshrl.u32 (!%p18151_p13), %v13867_v42, 7  ;;  %v18959_v48 = vld [vmem:[#allocation8 + $0x14c] ss:$16 sps:$4 sm:$0xff] (!%p18151_p13)   ;;  %15696 = vmatpush1.bf16.msra.mxu1 (!%p18151_p13), %v18956_v45  ;;  %15525 = vmatprep.subr.bf16.mxu0 (!%p18151_p13), %v18957_v46 }
 0x8bd   : > { %13833 = vst [vmem:[#allocation2 + $0x20] sm:$0xff] %v13817_v51  ;;  %v13825_v62 = vadd.f32 %v13206_v59, %v481_v50  ;;  %v13208_v0 = vpop.f32.mrb[7].mxu0  ;;  %13835 = vst [vmem:[#allocation2 + $0x30] sm:$0xff] %v13819_v56  ;;  %v13827_v1 = vadd.f32 %v13808_v63, %v483_v54  ;;  %v13810_v3 = vpop.f32.mrb[7].mxu1  ;;  %v18961_v49 = vld [vmem:[#allocation8 + $0x140] ss:$16 sps:$4 sm:$0xff] (!%p18151_p13)   ;;  %15697 = vmatprep.subr.bf16.mxu1 (!%p18151_p13), %v18959_v48 }
 0x8be   : > { %13834 = vst [vmem:[#allocation2 + $0x28] sm:$0xff] %v13818_v57  ;;  %v13826_v2 = vadd.f32 %v13208_v0, %v482_v55  ;;  %13836 = vst [vmem:[#allocation2 + $0x38] sm:$0xff] %v13820_v61  ;;  %v13828_v4 = vadd.f32 %v13810_v3, %v484_v60  ;;  %v18962_v50 = vld [vmem:[#allocation8 + $0x148] ss:$16 sps:$4 sm:$0xff] (!%p18151_p13)   ;;  %v18963_v51 = vld [vmem:[#allocation8 + $0x164] ss:$16 sps:$4 sm:$0xff] (!%p18151_p13)   ;;  %15526 = vmatpush1.bf16.msra.mxu0 (!%p18151_p13), %v18961_v49 }
 0x8bf   : > { %13841 = vst [vmem:[#allocation2 + $0x60] sm:$0xff] %v13825_v62  ;;  %13843 = vst [vmem:[#allocation2 + $0x70] sm:$0xff] %v13827_v1  ;;  %v13873_v52 = vsub.s32 (!%p18151_p13), 1, %v21728_v47  ;;  %v18965_v53 = vld [vmem:[#allocation8 + $0x16c] ss:$16 sps:$4 sm:$0xff] (!%p18151_p13)   ;;  %v13850_v55 = vld [vmem:[#allocation2 + $0x8] sm:$0xff] (!%p18151_p13)  ;;  %15527 = vmatprep.subr.bf16.mxu0 (!%p18151_p13), %v18963_v51 }
 0x8c0   : > { %13842 = vst [vmem:[#allocation2 + $0x68] sm:$0xff] %v13826_v2  ;;  %13844 = vst [vmem:[#allocation2 + $0x78] sm:$0xff] %v13828_v4  ;;  %v18967_v54 = vld [vmem:[#allocation8 + $0x160] ss:$16 sps:$4 sm:$0xff] (!%p18151_p13)   ;;  %v21731_v57 = vld [vmem:[#allocation6] sm:$0xff] (!%p18151_p13)  ;;  %15698 = vmatpush1.bf16.msra.mxu1 (!%p18151_p13), %v18962_v50  ;;  %v13869_v1 = vsub.s32 (!%p18151_p13), 0, %v21728_v47 }
 0x8c1   : > { %v13858_v56 = vld [vmem:[#allocation2 + $0x48] sm:$0xff]  ;;  %v18968_v58 = vld [vmem:[#allocation8 + $0x168] ss:$16 sps:$4 sm:$0xff]   ;;  %v13874_v60 = vrot.slane %v21731_v57, %v13873_v52  ;;  %15699 = vmatprep.subr.bf16.mxu1 %v18965_v53  ;;  %v18971_v61 = vld [vmem:[#allocation8 + $0x18c] ss:$16 sps:$4 sm:$0xff]   ;;  %v13881_v46 = vsub.s32 3, %v21728_v47 }
 0x8c2   : > { %v18969_v59 = vld [vmem:[#allocation8 + $0x184] ss:$16 sps:$4 sm:$0xff]   ;;  %v18973_v0 = vld [vmem:[#allocation8 + $0x180] ss:$16 sps:$4 sm:$0xff]   ;;  %15528 = vmatpush1.bf16.msra.mxu0 %v18967_v54  ;;  %v18974_v2 = vld [vmem:[#allocation8 + $0x188] ss:$16 sps:$4 sm:$0xff]   ;;  %v13870_v10 = vrot.slane %v21731_v57, %v13869_v1 }
 0x8c3   : > { %v13908_v62 = vadd.f32 %v13874_v60, %v13850_v55  ;;  %v13916_v63 = vadd.f32 %v13874_v60, %v13858_v56  ;;  %15529 = vmatprep.subr.bf16.mxu0 %v18969_v59  ;;  %v19019_v42 = vld [vmem:[#allocation8 + $0x284] ss:$16 sps:$4 sm:$0xff]   ;;  %v19020_v45 = vld [vmem:[#allocation8 + $0x288] ss:$16 sps:$4 sm:$0xff]   ;;  %v19028_v49 = vld [vmem:[#allocation8 + $0x2ac] ss:$16 sps:$4 sm:$0xff]   ;;  %v13882_v53 = vrot.slane %v21731_v57, %v13881_v46 }
 0x8c4   : > { %15700 = vmatpush1.bf16.msra.mxu1 %v18968_v58  ;;  %v13907_v15 = vadd.f32 %v13870_v10, %v13849_v11  ;;  %v13915_v16 = vadd.f32 %v13870_v10, %v13857_v12  ;;  %v19025_v48 = vld [vmem:[#allocation8 + $0x2a4] ss:$16 sps:$4 sm:$0xff]   ;;  %v19023_v50 = vld [vmem:[#allocation8 + $0x2a0] ss:$16 sps:$4 sm:$0xff]   ;;  %v19026_v51 = vld [vmem:[#allocation8 + $0x2a8] ss:$16 sps:$4 sm:$0xff]  }
 0x8c5   : > { %v13924_v3 = vmax.f32 %v13908_v62, 0.0  ;;  %v13932_v4 = vmax.f32 %v13916_v63, 0.0  ;;  %15701 = vmatprep.subr.bf16.mxu1 %v18971_v61  ;;  %v19031_v54 = vld [vmem:[#allocation8 + $0x2c4] ss:$16 sps:$4 sm:$0xff]   ;;  %v19034_v55 = vld [vmem:[#allocation8 + $0x2cc] ss:$16 sps:$4 sm:$0xff]  }
 0x8c6   : > { %15530 = vmatpush1.bf16.msra.mxu0 %v18973_v0  ;;  %v13923_v21 = vmax.f32 %v13907_v15, 0.0  ;;  %v13931_v22 = vmax.f32 %v13915_v16, 0.0  ;;  %v19029_v56 = vld [vmem:[#allocation8 + $0x2c0] ss:$16 sps:$4 sm:$0xff]   ;;  %v19032_v58 = vld [vmem:[#allocation8 + $0x2c8] ss:$16 sps:$4 sm:$0xff]  }
 0x8c7   : > { %v13940_v8 = vpack.c.bf16 %v13932_v4, %v13924_v3  ;;  %15531 = vmatprep.subr.bf16.mxu0 %v18975_v5  ;;  %v13852_v59 = vld [vmem:[#allocation2 + $0x18] sm:$0xff]  ;;  %v19040_v0 = vld [vmem:[#allocation8 + $0x2ec] ss:$16 sps:$4 sm:$0xff]   ;;  %v19038_v5 = vld [vmem:[#allocation8 + $0x2e8] ss:$16 sps:$4 sm:$0xff]  }
 0x8c8   : > { %15702 = vmatpush1.bf16.msra.mxu1 %v18974_v2  ;;  %v13939_v27 = vpack.c.bf16 %v13931_v22, %v13923_v21  ;;  %v13860_v60 = vld [vmem:[#allocation2 + $0x58] sm:$0xff]  ;;  %v13910_v62 = vadd.f32 %v13882_v53, %v13852_v59  ;;  %v19044_v10 = vld [vmem:[#allocation8 + $0x308] ss:$16 sps:$4 sm:$0xff]   ;;  %v19052_v12 = vld [vmem:[#allocation8 + $0x32c] ss:$16 sps:$4 sm:$0xff]  }
 0x8c9   : > { %15703 = vmatprep.subr.bf16.mxu1 %v18977_v6  ;;  %15537 = vmatprep.mubr.bf16.mxu0 %v13940_v8  ;;  %v19037_v61 = vld [vmem:[#allocation8 + $0x2e4] ss:$16 sps:$4 sm:$0xff]   ;;  %v13918_v63 = vadd.f32 %v13882_v53, %v13860_v60  ;;  %v19035_v4 = vld [vmem:[#allocation8 + $0x2e0] ss:$16 sps:$4 sm:$0xff]   ;;  %v19058_v16 = vld [vmem:[#allocation8 + $0x34c] ss:$16 sps:$4 sm:$0xff]  }
 0x8ca   : > { %15709 = vmatprep.mubr.bf16.mxu1 %v13940_v8  ;;  %15532 = vmatpush1.bf16.msra.mxu0 %v18979_v7  ;;  %v13926_v2 = vmax.f32 %v13910_v62, 0.0  ;;  %v19043_v6 = vld [vmem:[#allocation8 + $0x304] ss:$16 sps:$4 sm:$0xff]   ;;  %v19046_v8 = vld [vmem:[#allocation8 + $0x30c] ss:$16 sps:$4 sm:$0xff]  }
 0x8cb   : > { %15533 = vmatprep.subr.bf16.mxu0 %v18981_v13  ;;  %v13934_v3 = vmax.f32 %v13918_v63, 0.0  ;;  %v19049_v11 = vld [vmem:[#allocation8 + $0x324] ss:$16 sps:$4 sm:$0xff]   ;;  %v19047_v13 = vld [vmem:[#allocation8 + $0x320] ss:$16 sps:$4 sm:$0xff]  }
 0x8cc   : > { %15704 = vmatpush1.bf16.msra.mxu1 %v18980_v9  ;;  %v19041_v9 = vld [vmem:[#allocation8 + $0x300] ss:$16 sps:$4 sm:$0xff]   ;;  %v19055_v15 = vld [vmem:[#allocation8 + $0x344] ss:$16 sps:$4 sm:$0xff]   ;;  %v19062_v22 = vld [vmem:[#allocation8 + $0x368] ss:$16 sps:$4 sm:$0xff]  }
 0x8cd   : > { %15705 = vmatprep.subr.bf16.mxu1 %v18983_v14  ;;  %v13942_v7 = vpack.c.bf16 %v13934_v3, %v13926_v2  ;;  %v19050_v14 = vld [vmem:[#allocation8 + $0x328] ss:$16 sps:$4 sm:$0xff]   ;;  %v19059_v21 = vld [vmem:[#allocation8 + $0x360] ss:$16 sps:$4 sm:$0xff]   ;;  %v19100_v59 = vld [vmem:[#allocation8 + $0x42c] ss:$16 sps:$4 sm:$0xff]  }
 0x8ce   : > { %15534 = vmatpush1.bf16.msra.mxu0 %v18985_v17  ;;  %v19053_v17 = vld [vmem:[#allocation8 + $0x340] ss:$16 sps:$4 sm:$0xff]   ;;  %v19103_v2 = vld [vmem:[#allocation8 + $0x444] ss:$16 sps:$4 sm:$0xff]   ;;  %v19106_v3 = vld [vmem:[#allocation8 + $0x44c] ss:$16 sps:$4 sm:$0xff]  }
 0x8cf   : > { %15535 = vmatprep.subr.bf16.mxu0 %v18987_v19  ;;  %v19061_v19 = vld [vmem:[#allocation8 + $0x364] ss:$16 sps:$4 sm:$0xff]   ;;  %v19089_v53 = vld [vmem:[#allocation8 + $0x400] ss:$16 sps:$4 sm:$0xff]  }
 0x8d0   : > { %15706 = vmatpush1.bf16.msra.mxu1 %v18986_v18  ;;  %v19056_v18 = vld [vmem:[#allocation8 + $0x348] ss:$16 sps:$4 sm:$0xff]   ;;  %v19095_v60 = vld [vmem:[#allocation8 + $0x420] ss:$16 sps:$4 sm:$0xff]  }
 0x8d1   : > { %15707 = vmatprep.subr.bf16.mxu1 %v18989_v20  ;;  %v19064_v20 = vld [vmem:[#allocation8 + $0x36c] ss:$16 sps:$4 sm:$0xff]   ;;  %v13854_v62 = vld [vmem:[#allocation2 + $0x28] sm:$0xff] }
 0x8d2   : > { %15536 = vmatpush1.bf16.msra.mxu0 %v18991_v23  ;;  %v19067_v23 = vld [vmem:[#allocation8 + $0x384] ss:$16 sps:$4 sm:$0xff]  }
 0x8d3   : > { %15548 = vmatprep.subr.bf16.mxu0 %v18995_v25  ;;  %v19065_v25 = vld [vmem:[#allocation8 + $0x380] ss:$16 sps:$4 sm:$0xff]  }
 0x8d4   : > { %15708 = vmatpush1.bf16.msra.mxu1 %v18992_v24  ;;  %v19070_v24 = vld [vmem:[#allocation8 + $0x38c] ss:$16 sps:$4 sm:$0xff]   ;;  %v13862_v63 = vld [vmem:[#allocation2 + $0x68] sm:$0xff] }
 0x8d5   : > { %15720 = vmatprep.subr.bf16.mxu1 %v18998_v26  ;;  %15538 = vmatmul.mubr.bf16.vlgmr.msra.gmra.mrb[0].mxu0 %v13939_v27  ;;  %v13877_v26 = vsub.s32 2, %v21728_v47 }
 0x8d6   : > { %15549 = vmatpush1.bf16.msra.mxu0 %v18993_v28  ;;  %15580 = vmatprep.mubr.bf16.mxu0 %v13942_v7  ;;  %v19073_v28 = vld [vmem:[#allocation8 + $0x3a4] ss:$16 sps:$4 sm:$0xff]  }
 0x8d7   : > { %15710 = vmatmul.mubr.bf16.vlgmr.msra.gmra.mrb[0].mxu1 %v13939_v27  ;;  %15550 = vmatprep.subr.bf16.mxu0 %v19001_v30  ;;  %v19068_v27 = vld [vmem:[#allocation8 + $0x388] ss:$16 sps:$4 sm:$0xff]   ;;  %v19071_v30 = vld [vmem:[#allocation8 + $0x3a0] ss:$16 sps:$4 sm:$0xff]  }
 0x8d8   : > { %15721 = vmatpush1.bf16.msra.mxu1 %v18996_v29  ;;  %15752 = vmatprep.mubr.bf16.mxu1 %v13942_v7  ;;  %v19076_v29 = vld [vmem:[#allocation8 + $0x3ac] ss:$16 sps:$4 sm:$0xff]   ;;  %v19104_v7 = vld [vmem:[#allocation8 + $0x448] ss:$16 sps:$4 sm:$0xff]  }
 0x8d9   : > { %15722 = vmatprep.subr.bf16.mxu1 %v19004_v31  ;;  %v19074_v31 = vld [vmem:[#allocation8 + $0x3a8] ss:$16 sps:$4 sm:$0xff]  }
 0x8da   : > { %15551 = vmatpush1.bf16.msra.mxu0 %v18999_v32  ;;  %v19079_v32 = vld [vmem:[#allocation8 + $0x3c4] ss:$16 sps:$4 sm:$0xff]  }
 0x8db   : > { %15552 = vmatprep.subr.bf16.mxu0 %v19007_v34  ;;  %v13851_v34 = vld [vmem:[#allocation2 + $0x10] sm:$0xff] }
 0x8dc   : > { %15723 = vmatpush1.bf16.msra.mxu1 %v19002_v33  ;;  %v13878_v33 = vrot.slane %v21731_v57, %v13877_v26 }
 0x8dd   : > { %15724 = vmatprep.subr.bf16.mxu1 %v19010_v35  ;;  %v13859_v35 = vld [vmem:[#allocation2 + $0x50] sm:$0xff] }
 0x8de   : > { %15553 = vmatpush1.bf16.msra.mxu0 %v19005_v36  ;;  %v19082_v36 = vld [vmem:[#allocation8 + $0x3cc] ss:$16 sps:$4 sm:$0xff]  }
 0x8df   : > { %15554 = vmatprep.subr.bf16.mxu0 %v19013_v38  ;;  %v13909_v38 = vadd.f32 %v13878_v33, %v13851_v34  ;;  %v19145_v34 = vld [vmem:[#allocation8 + $0x524] ss:$16 sps:$4 sm:$0xff]  }
 0x8e0   : > { %15725 = vmatpush1.bf16.msra.mxu1 %v19008_v37  ;;  %v19077_v37 = vld [vmem:[#allocation8 + $0x3c0] ss:$16 sps:$4 sm:$0xff]  }
 0x8e1   : > { %15726 = vmatprep.subr.bf16.mxu1 %v19016_v39  ;;  %v13917_v39 = vadd.f32 %v13878_v33, %v13859_v35  ;;  %v19140_v33 = vld [vmem:[#allocation8 + $0x508] ss:$16 sps:$4 sm:$0xff]   ;;  %v19148_v35 = vld [vmem:[#allocation8 + $0x52c] ss:$16 sps:$4 sm:$0xff]  }
 0x8e2   : > { %15555 = vmatpush1.bf16.msra.mxu0 %v19011_v40  ;;  %v19080_v40 = vld [vmem:[#allocation8 + $0x3c8] ss:$16 sps:$4 sm:$0xff]  }
 0x8e3   : > { %15556 = vmatprep.subr.bf16.mxu0 %v19019_v42  ;;  %v19088_v42 = vld [vmem:[#allocation8 + $0x3ec] ss:$16 sps:$4 sm:$0xff]  }
 0x8e4   : > { %15727 = vmatpush1.bf16.msra.mxu1 %v19014_v41  ;;  %v19085_v41 = vld [vmem:[#allocation8 + $0x3e4] ss:$16 sps:$4 sm:$0xff]  }
 0x8e5   : > { %15728 = vmatprep.subr.bf16.mxu1 %v19022_v43  ;;  %v19083_v43 = vld [vmem:[#allocation8 + $0x3e0] ss:$16 sps:$4 sm:$0xff]  }
 0x8e6   : > { %15557 = vmatpush1.bf16.msra.mxu0 %v19017_v44  ;;  %v13925_v44 = vmax.f32 %v13909_v38, 0.0  ;;  %v19151_v38 = vld [vmem:[#allocation8 + $0x544] ss:$16 sps:$4 sm:$0xff]  }
 0x8e7   : > { %15558 = vmatprep.subr.bf16.mxu0 %v19025_v48  ;;  %v19086_v48 = vld [vmem:[#allocation8 + $0x3e8] ss:$16 sps:$4 sm:$0xff]  }
 0x8e8   : > { %15729 = vmatpush1.bf16.msra.mxu1 %v19020_v45  ;;  %v13933_v45 = vmax.f32 %v13917_v39, 0.0  ;;  %v19154_v39 = vld [vmem:[#allocation8 + $0x54c] ss:$16 sps:$4 sm:$0xff]  }
 0x8e9   : > { %15730 = vmatprep.subr.bf16.mxu1 %v19028_v49  ;;  %v19091_v49 = vld [vmem:[#allocation8 + $0x404] ss:$16 sps:$4 sm:$0xff]  }
 0x8ea   : > { %15559 = vmatpush1.bf16.msra.mxu0 %v19023_v50  ;;  %v13889_v50 = vsub.s32 5, %v21728_v47 }
 0x8eb   : > { %15560 = vmatprep.subr.bf16.mxu0 %v19031_v54  ;;  %v13941_v54 = vpack.c.bf16 %v13933_v45, %v13925_v44  ;;  %v19155_v44 = vld [vmem:[#allocation8 + $0x560] ss:$16 sps:$4 sm:$0xff]   ;;  %v19158_v45 = vld [vmem:[#allocation8 + $0x568] ss:$16 sps:$4 sm:$0xff]  }
 0x8ec   : > { %15731 = vmatpush1.bf16.msra.mxu1 %v19026_v51  ;;  %v19094_v51 = vld [vmem:[#allocation8 + $0x40c] ss:$16 sps:$4 sm:$0xff]  }
 0x8ed   : > { %15732 = vmatprep.subr.bf16.mxu1 %v19034_v55  ;;  %v19092_v55 = vld [vmem:[#allocation8 + $0x408] ss:$16 sps:$4 sm:$0xff]  }
 0x8ee   : > { %15561 = vmatpush1.bf16.msra.mxu0 %v19029_v56  ;;  %v19097_v56 = vld [vmem:[#allocation8 + $0x424] ss:$16 sps:$4 sm:$0xff]  }
 0x8ef   : > { %15562 = vmatprep.subr.bf16.mxu0 %v19037_v61  ;;  %v19098_v61 = vld [vmem:[#allocation8 + $0x428] ss:$16 sps:$4 sm:$0xff]  }
 0x8f0   : > { %15733 = vmatpush1.bf16.msra.mxu1 %v19032_v58  ;;  %v13890_v58 = vrot.slane %v21731_v57, %v13889_v50  ;;  %v13885_v50 = vsub.s32 4, %v21728_v47 }
 0x8f1   : > { %15734 = vmatprep.subr.bf16.mxu1 %v19040_v0 }
 0x8f2   : > { %15563 = vmatpush1.bf16.msra.mxu0 %v19035_v4  ;;  %v13912_v0 = vadd.f32 %v13890_v58, %v13854_v62  ;;  %v13920_v4 = vadd.f32 %v13890_v58, %v13862_v63  ;;  %v19167_v58 = vld [vmem:[#allocation8 + $0x5a0] ss:$16 sps:$4 sm:$0xff]   ;;  %v13861_v62 = vld [vmem:[#allocation2 + $0x60] sm:$0xff] }
 0x8f3   : > { %15564 = vmatprep.subr.bf16.mxu0 %v19043_v6  ;;  %v19101_v6 = vld [vmem:[#allocation8 + $0x440] ss:$16 sps:$4 sm:$0xff]   ;;  %v21752_v63 = vld [vmem:[#allocation6] sm:$0xff] }
 0x8f4   : > { %15735 = vmatpush1.bf16.msra.mxu1 %v19038_v5  ;;  %v13928_v5 = vmax.f32 %v13912_v0, 0.0  ;;  %v13936_v57 = vmax.f32 %v13920_v4, 0.0  ;;  %v13886_v0 = vrot.slane %v21752_v63, %v13885_v50  ;;  %v19176_v4 = vld [vmem:[#allocation8 + $0x5c8] ss:$16 sps:$4 sm:$0xff]   ;;  %v19221_v50 = vld [vmem:[#allocation8 + $0x6c0] ss:$16 sps:$4 sm:$0xff]  }
 0x8f5   : > { %15736 = vmatprep.subr.bf16.mxu1 %v19046_v8  ;;  %v19109_v8 = vld [vmem:[#allocation8 + $0x464] ss:$16 sps:$4 sm:$0xff]  }
 0x8f6   : > { %15565 = vmatpush1.bf16.msra.mxu0 %v19041_v9  ;;  %v19112_v9 = vld [vmem:[#allocation8 + $0x46c] ss:$16 sps:$4 sm:$0xff]  }
 0x8f7   : > { %15566 = vmatprep.subr.bf16.mxu0 %v19049_v11  ;;  %v19107_v11 = vld [vmem:[#allocation8 + $0x460] ss:$16 sps:$4 sm:$0xff]  }
 0x8f8   : > { %15737 = vmatpush1.bf16.msra.mxu1 %v19044_v10  ;;  %v13944_v10 = vpack.c.bf16 %v13936_v57, %v13928_v5  ;;  %v13856_v5 = vld [vmem:[#allocation2 + $0x38] sm:$0xff] }
 0x8f9   : > { %15738 = vmatprep.subr.bf16.mxu1 %v19052_v12  ;;  %v19110_v12 = vld [vmem:[#allocation8 + $0x468] ss:$16 sps:$4 sm:$0xff]  }
 0x8fa   : > { %15567 = vmatpush1.bf16.msra.mxu0 %v19047_v13  ;;  %v19115_v13 = vld [vmem:[#allocation8 + $0x484] ss:$16 sps:$4 sm:$0xff]  }
 0x8fb   : > { %15568 = vmatprep.subr.bf16.mxu0 %v19055_v15  ;;  %v19113_v15 = vld [vmem:[#allocation8 + $0x480] ss:$16 sps:$4 sm:$0xff]  }
 0x8fc   : > { %15739 = vmatpush1.bf16.msra.mxu1 %v19050_v14  ;;  %v19118_v14 = vld [vmem:[#allocation8 + $0x48c] ss:$16 sps:$4 sm:$0xff]  }
 0x8fd   : > { %15740 = vmatprep.subr.bf16.mxu1 %v19058_v16  ;;  %v19116_v16 = vld [vmem:[#allocation8 + $0x488] ss:$16 sps:$4 sm:$0xff]  }
 0x8fe   : > { %15569 = vmatpush1.bf16.msra.mxu0 %v19053_v17  ;;  %v19121_v17 = vld [vmem:[#allocation8 + $0x4a4] ss:$16 sps:$4 sm:$0xff]  }
 0x8ff   : > { %15570 = vmatprep.subr.bf16.mxu0 %v19061_v19  ;;  %v19119_v19 = vld [vmem:[#allocation8 + $0x4a0] ss:$16 sps:$4 sm:$0xff]  }
 0x900   : > { %15741 = vmatpush1.bf16.msra.mxu1 %v19056_v18  ;;  %v19124_v18 = vld [vmem:[#allocation8 + $0x4ac] ss:$16 sps:$4 sm:$0xff]  }
 0x901   : > { %15742 = vmatprep.subr.bf16.mxu1 %v19064_v20  ;;  %v19122_v20 = vld [vmem:[#allocation8 + $0x4a8] ss:$16 sps:$4 sm:$0xff]  }
 0x902   : > { %15571 = vmatpush1.bf16.msra.mxu0 %v19059_v21  ;;  %v19127_v21 = vld [vmem:[#allocation8 + $0x4c4] ss:$16 sps:$4 sm:$0xff]  }
 0x903   : > { %15572 = vmatprep.subr.bf16.mxu0 %v19067_v23  ;;  %v19125_v23 = vld [vmem:[#allocation8 + $0x4c0] ss:$16 sps:$4 sm:$0xff]  }
 0x904   : > { %15743 = vmatpush1.bf16.msra.mxu1 %v19062_v22  ;;  %v19130_v22 = vld [vmem:[#allocation8 + $0x4cc] ss:$16 sps:$4 sm:$0xff]  }
 0x905   : > { %15744 = vmatprep.subr.bf16.mxu1 %v19070_v24  ;;  %v19128_v24 = vld [vmem:[#allocation8 + $0x4c8] ss:$16 sps:$4 sm:$0xff]  }
 0x906   : > { %15573 = vmatpush1.bf16.msra.mxu0 %v19065_v25  ;;  %v19133_v25 = vld [vmem:[#allocation8 + $0x4e4] ss:$16 sps:$4 sm:$0xff]  }
 0x907   : > { %15574 = vmatprep.subr.bf16.mxu0 %v19073_v28  ;;  %v19131_v28 = vld [vmem:[#allocation8 + $0x4e0] ss:$16 sps:$4 sm:$0xff]  }
 0x908   : > { %15745 = vmatpush1.bf16.msra.mxu1 %v19068_v27  ;;  %v19136_v27 = vld [vmem:[#allocation8 + $0x4ec] ss:$16 sps:$4 sm:$0xff]  }
 0x909   : > { %15746 = vmatprep.subr.bf16.mxu1 %v19076_v29  ;;  %v19134_v29 = vld [vmem:[#allocation8 + $0x4e8] ss:$16 sps:$4 sm:$0xff]  }
 0x90a   : > { %15575 = vmatpush1.bf16.msra.mxu0 %v19071_v30  ;;  %v19139_v30 = vld [vmem:[#allocation8 + $0x504] ss:$16 sps:$4 sm:$0xff]  }
 0x90b   : > { %15576 = vmatprep.subr.bf16.mxu0 %v19079_v32  ;;  %v19137_v32 = vld [vmem:[#allocation8 + $0x500] ss:$16 sps:$4 sm:$0xff]  }
 0x90c   : > { %15747 = vmatpush1.bf16.msra.mxu1 %v19074_v31  ;;  %v19142_v31 = vld [vmem:[#allocation8 + $0x50c] ss:$16 sps:$4 sm:$0xff]  }
 0x90d   : > { %15748 = vmatprep.subr.bf16.mxu1 %v19082_v36  ;;  %v19143_v36 = vld [vmem:[#allocation8 + $0x520] ss:$16 sps:$4 sm:$0xff]  }
 0x90e   : > { %15577 = vmatpush1.bf16.msra.mxu0 %v19077_v37  ;;  %v19146_v37 = vld [vmem:[#allocation8 + $0x528] ss:$16 sps:$4 sm:$0xff]  }
 0x90f   : > { %15578 = vmatprep.subr.bf16.mxu0 %v19085_v41  ;;  %v19152_v41 = vld [vmem:[#allocation8 + $0x548] ss:$16 sps:$4 sm:$0xff]  }
 0x910   : > { %15749 = vmatpush1.bf16.msra.mxu1 %v19080_v40  ;;  %v19149_v40 = vld [vmem:[#allocation8 + $0x540] ss:$16 sps:$4 sm:$0xff]  }
 0x911   : > { %15750 = vmatprep.subr.bf16.mxu1 %v19088_v42  ;;  %v19157_v42 = vld [vmem:[#allocation8 + $0x564] ss:$16 sps:$4 sm:$0xff]  }
 0x912   : > { %15579 = vmatpush1.bf16.msra.mxu0 %v19083_v43  ;;  %v19160_v43 = vld [vmem:[#allocation8 + $0x56c] ss:$16 sps:$4 sm:$0xff]  }
 0x913   : > { %15591 = vmatprep.subr.bf16.mxu0 %v19091_v49  ;;  %v19166_v49 = vld [vmem:[#allocation8 + $0x58c] ss:$16 sps:$4 sm:$0xff]  }
 0x914   : > { %15751 = vmatpush1.bf16.msra.mxu1 %v19086_v48  ;;  %v19163_v48 = vld [vmem:[#allocation8 + $0x584] ss:$16 sps:$4 sm:$0xff]  }
 0x915   : > { %15763 = vmatprep.subr.bf16.mxu1 %v19094_v51  ;;  %15581 = vmatmul.mubr.bf16.vlgmr.msra.gmra.mrb[0].mxu0 %v13941_v54  ;;  %v13897_v51 = vsub.s32 7, %v21728_v47 }
 0x916   : > { %15592 = vmatpush1.bf16.msra.mxu0 %v19089_v53  ;;  %15623 = vmatprep.mubr.bf16.mxu0 %v13944_v10  ;;  %v19161_v53 = vld [vmem:[#allocation8 + $0x580] ss:$16 sps:$4 sm:$0xff]  }
 0x917   : > { %15753 = vmatmul.mubr.bf16.vlgmr.msra.gmra.mrb[0].mxu1 %v13941_v54  ;;  %15593 = vmatprep.subr.bf16.mxu0 %v19097_v56  ;;  %v19164_v54 = vld [vmem:[#allocation8 + $0x588] ss:$16 sps:$4 sm:$0xff]   ;;  %v19172_v56 = vld [vmem:[#allocation8 + $0x5ac] ss:$16 sps:$4 sm:$0xff]  }
 0x918   : > { %15764 = vmatpush1.bf16.msra.mxu1 %v19092_v55  ;;  %15795 = vmatprep.mubr.bf16.mxu1 %v13944_v10  ;;  %v19169_v55 = vld [vmem:[#allocation8 + $0x5a4] ss:$16 sps:$4 sm:$0xff]   ;;  %v19184_v10 = vld [vmem:[#allocation8 + $0x5ec] ss:$16 sps:$4 sm:$0xff]  }
 0x919   : > { %15765 = vmatprep.subr.bf16.mxu1 %v19100_v59  ;;  %v19170_v59 = vld [vmem:[#allocation8 + $0x5a8] ss:$16 sps:$4 sm:$0xff]  }
 0x91a   : > { %15594 = vmatpush1.bf16.msra.mxu0 %v19095_v60  ;;  %v19175_v60 = vld [vmem:[#allocation8 + $0x5c4] ss:$16 sps:$4 sm:$0xff]  }
 0x91b   : > { %15595 = vmatprep.subr.bf16.mxu0 %v19103_v2  ;;  %v19178_v2 = vld [vmem:[#allocation8 + $0x5cc] ss:$16 sps:$4 sm:$0xff]  }
 0x91c   : > { %15766 = vmatpush1.bf16.msra.mxu1 %v19098_v61  ;;  %v13853_v61 = vld [vmem:[#allocation2 + $0x20] sm:$0xff] }
 0x91d   : > { %15767 = vmatprep.subr.bf16.mxu1 %v19106_v3  ;;  %v19173_v3 = vld [vmem:[#allocation8 + $0x5c0] ss:$16 sps:$4 sm:$0xff]   ;;  %v13911_v57 = vadd.f32 %v13886_v0, %v13853_v61  ;;  %v19236_v61 = vld [vmem:[#allocation8 + $0x708] ss:$16 sps:$4 sm:$0xff]  }
 0x91e   : > { %15596 = vmatpush1.bf16.msra.mxu0 %v19101_v6  ;;  %v13898_v6 = vrot.slane %v21752_v63, %v13897_v51  ;;  %v19224_v51 = vld [vmem:[#allocation8 + $0x6c8] ss:$16 sps:$4 sm:$0xff]  }
 0x91f   : > { %15597 = vmatprep.subr.bf16.mxu0 %v19109_v8  ;;  %v13864_v8 = vld [vmem:[#allocation2 + $0x78] sm:$0xff] }
 0x920   : > { %15768 = vmatpush1.bf16.msra.mxu1 %v19104_v7  ;;  %v13919_v7 = vadd.f32 %v13886_v0, %v13861_v62  ;;  %v19241_v62 = vld [vmem:[#allocation8 + $0x724] ss:$16 sps:$4 sm:$0xff]   ;;  %v19244_v0 = vld [vmem:[#allocation8 + $0x72c] ss:$16 sps:$4 sm:$0xff]  }
 0x921   : > { %15769 = vmatprep.subr.bf16.mxu1 %v19112_v9  ;;  %v19181_v9 = vld [vmem:[#allocation8 + $0x5e4] ss:$16 sps:$4 sm:$0xff]  }
 0x922   : > { %15598 = vmatpush1.bf16.msra.mxu0 %v19107_v11  ;;  %v19179_v11 = vld [vmem:[#allocation8 + $0x5e0] ss:$16 sps:$4 sm:$0xff]  }
 0x923   : > { %15599 = vmatprep.subr.bf16.mxu0 %v19115_v13  ;;  %v13914_v13 = vadd.f32 %v13898_v6, %v13856_v5  ;;  %v19250_v5 = vld [vmem:[#allocation8 + $0x74c] ss:$16 sps:$4 sm:$0xff]  }
 0x924   : > { %15770 = vmatpush1.bf16.msra.mxu1 %v19110_v12  ;;  %v19182_v12 = vld [vmem:[#allocation8 + $0x5e8] ss:$16 sps:$4 sm:$0xff]  }
 0x925   : > { %15771 = vmatprep.subr.bf16.mxu1 %v19118_v14  ;;  %v13922_v14 = vadd.f32 %v13898_v6, %v13864_v8  ;;  %v19245_v6 = vld [vmem:[#allocation8 + $0x740] ss:$16 sps:$4 sm:$0xff]   ;;  %v19256_v8 = vld [vmem:[#allocation8 + $0x76c] ss:$16 sps:$4 sm:$0xff]  }
 0x926   : > { %15600 = vmatpush1.bf16.msra.mxu0 %v19113_v15  ;;  %v13927_v15 = vmax.f32 %v13911_v57, 0.0  ;;  %v19248_v57 = vld [vmem:[#allocation8 + $0x748] ss:$16 sps:$4 sm:$0xff]  }
 0x927   : > { %15601 = vmatprep.subr.bf16.mxu0 %v19121_v17  ;;  %v19187_v17 = vld [vmem:[#allocation8 + $0x604] ss:$16 sps:$4 sm:$0xff]  }
 0x928   : > { %15772 = vmatpush1.bf16.msra.mxu1 %v19116_v16  ;;  %v13935_v16 = vmax.f32 %v13919_v7, 0.0  ;;  %v19253_v7 = vld [vmem:[#allocation8 + $0x764] ss:$16 sps:$4 sm:$0xff]  }
 0x929   : > { %15773 = vmatprep.subr.bf16.mxu1 %v19124_v18  ;;  %v19190_v18 = vld [vmem:[#allocation8 + $0x60c] ss:$16 sps:$4 sm:$0xff]  }
 0x92a   : > { %15602 = vmatpush1.bf16.msra.mxu0 %v19119_v19  ;;  %v19185_v19 = vld [vmem:[#allocation8 + $0x600] ss:$16 sps:$4 sm:$0xff]  }
 0x92b   : > { %15603 = vmatprep.subr.bf16.mxu0 %v19127_v21  ;;  %v13938_v21 = vmax.f32 %v13922_v14, 0.0  ;;  %v19257_v14 = vld [vmem:[#allocation8 + $0x780] ss:$16 sps:$4 sm:$0xff]  }
 0x92c   : > { %15774 = vmatpush1.bf16.msra.mxu1 %v19122_v20  ;;  %v13930_v20 = vmax.f32 %v13914_v13, 0.0  ;;  %v13893_v13 = vsub.s32 6, %v21728_v47 }
 0x92d   : > { %15775 = vmatprep.subr.bf16.mxu1 %v19130_v22  ;;  %v19188_v22 = vld [vmem:[#allocation8 + $0x608] ss:$16 sps:$4 sm:$0xff]  }
 0x92e   : > { %15604 = vmatpush1.bf16.msra.mxu0 %v19125_v23  ;;  %v13943_v23 = vpack.c.bf16 %v13935_v16, %v13927_v15  ;;  %v19260_v15 = vld [vmem:[#allocation8 + $0x788] ss:$16 sps:$4 sm:$0xff]   ;;  %v19265_v16 = vld [vmem:[#allocation8 + $0x7a4] ss:$16 sps:$4 sm:$0xff]  }
 0x92f   : > { %15605 = vmatprep.subr.bf16.mxu0 %v19133_v25  ;;  %v19196_v25 = vld [vmem:[#allocation8 + $0x62c] ss:$16 sps:$4 sm:$0xff]  }
 0x930   : > { %15776 = vmatpush1.bf16.msra.mxu1 %v19128_v24  ;;  %v19193_v24 = vld [vmem:[#allocation8 + $0x624] ss:$16 sps:$4 sm:$0xff]  }
 0x931   : > { %15777 = vmatprep.subr.bf16.mxu1 %v19136_v27  ;;  %v19191_v27 = vld [vmem:[#allocation8 + $0x620] ss:$16 sps:$4 sm:$0xff]  }
 0x932   : > { %15606 = vmatpush1.bf16.msra.mxu0 %v19131_v28  ;;  %v13946_v28 = vpack.c.bf16 %v13938_v21, %v13930_v20  ;;  %v19266_v20 = vld [vmem:[#allocation8 + $0x7a8] ss:$16 sps:$4 sm:$0xff]  }
 0x933   : > { %15607 = vmatprep.subr.bf16.mxu0 %v19139_v30  ;;  %v19199_v30 = vld [vmem:[#allocation8 + $0x644] ss:$16 sps:$4 sm:$0xff]   ;;  %v13855_v21 = vld [vmem:[#allocation2 + $0x30] sm:$0xff] }
 0x934   : > { %15778 = vmatpush1.bf16.msra.mxu1 %v19134_v29  ;;  %v19194_v29 = vld [vmem:[#allocation8 + $0x628] ss:$16 sps:$4 sm:$0xff]  }
 0x935   : > { %15779 = vmatprep.subr.bf16.mxu1 %v19142_v31  ;;  %v19202_v31 = vld [vmem:[#allocation8 + $0x64c] ss:$16 sps:$4 sm:$0xff]  }
 0x936   : > { %15608 = vmatpush1.bf16.msra.mxu0 %v19137_v32  ;;  %v19197_v32 = vld [vmem:[#allocation8 + $0x640] ss:$16 sps:$4 sm:$0xff]  }
 0x937   : > { %15609 = vmatprep.subr.bf16.mxu0 %v19145_v34  ;;  %v19205_v34 = vld [vmem:[#allocation8 + $0x664] ss:$16 sps:$4 sm:$0xff]  }
 0x938   : > { %15780 = vmatpush1.bf16.msra.mxu1 %v19140_v33  ;;  %v19200_v33 = vld [vmem:[#allocation8 + $0x648] ss:$16 sps:$4 sm:$0xff]  }
 0x939   : > { %15781 = vmatprep.subr.bf16.mxu1 %v19148_v35  ;;  %v19208_v35 = vld [vmem:[#allocation8 + $0x66c] ss:$16 sps:$4 sm:$0xff]  }
 0x93a   : > { %15610 = vmatpush1.bf16.msra.mxu0 %v19143_v36  ;;  %v19203_v36 = vld [vmem:[#allocation8 + $0x660] ss:$16 sps:$4 sm:$0xff]  }
 0x93b   : > { %15611 = vmatprep.subr.bf16.mxu0 %v19151_v38  ;;  %v19211_v38 = vld [vmem:[#allocation8 + $0x684] ss:$16 sps:$4 sm:$0xff]  }
 0x93c   : > { %15782 = vmatpush1.bf16.msra.mxu1 %v19146_v37  ;;  %v19206_v37 = vld [vmem:[#allocation8 + $0x668] ss:$16 sps:$4 sm:$0xff]  }
 0x93d   : > { %15783 = vmatprep.subr.bf16.mxu1 %v19154_v39  ;;  %v19214_v39 = vld [vmem:[#allocation8 + $0x68c] ss:$16 sps:$4 sm:$0xff]  }
 0x93e   : > { %15612 = vmatpush1.bf16.msra.mxu0 %v19149_v40  ;;  %v19209_v40 = vld [vmem:[#allocation8 + $0x680] ss:$16 sps:$4 sm:$0xff]  }
 0x93f   : > { %15613 = vmatprep.subr.bf16.mxu0 %v19157_v42  ;;  %v19217_v42 = vld [vmem:[#allocation8 + $0x6a4] ss:$16 sps:$4 sm:$0xff]  }
 0x940   : > { %15784 = vmatpush1.bf16.msra.mxu1 %v19152_v41  ;;  %v19212_v41 = vld [vmem:[#allocation8 + $0x688] ss:$16 sps:$4 sm:$0xff]  }
 0x941   : > { %15785 = vmatprep.subr.bf16.mxu1 %v19160_v43  ;;  %v19220_v43 = vld [vmem:[#allocation8 + $0x6ac] ss:$16 sps:$4 sm:$0xff]  }
 0x942   : > { %15614 = vmatpush1.bf16.msra.mxu0 %v19155_v44  ;;  %v19215_v44 = vld [vmem:[#allocation8 + $0x6a0] ss:$16 sps:$4 sm:$0xff]  }
 0x943   : > { %15615 = vmatprep.subr.bf16.mxu0 %v19163_v48  ;;  %v19223_v48 = vld [vmem:[#allocation8 + $0x6c4] ss:$16 sps:$4 sm:$0xff]  }
 0x944   : > { %15786 = vmatpush1.bf16.msra.mxu1 %v19158_v45  ;;  %v19218_v45 = vld [vmem:[#allocation8 + $0x6a8] ss:$16 sps:$4 sm:$0xff]  }
 0x945   : > { %15787 = vmatprep.subr.bf16.mxu1 %v19166_v49  ;;  %v19226_v49 = vld [vmem:[#allocation8 + $0x6cc] ss:$16 sps:$4 sm:$0xff]  }
 0x946   : > { %15616 = vmatpush1.bf16.msra.mxu0 %v19161_v53  ;;  %v19229_v53 = vld [vmem:[#allocation8 + $0x6e4] ss:$16 sps:$4 sm:$0xff]  }
 0x947   : > { %15617 = vmatprep.subr.bf16.mxu0 %v19169_v55  ;;  %v19227_v55 = vld [vmem:[#allocation8 + $0x6e0] ss:$16 sps:$4 sm:$0xff]  }
 0x948   : > { %15788 = vmatpush1.bf16.msra.mxu1 %v19164_v54  ;;  %v19232_v54 = vld [vmem:[#allocation8 + $0x6ec] ss:$16 sps:$4 sm:$0xff]  }
 0x949   : > { %15789 = vmatprep.subr.bf16.mxu1 %v19172_v56  ;;  %v19230_v56 = vld [vmem:[#allocation8 + $0x6e8] ss:$16 sps:$4 sm:$0xff]  }
 0x94a   : > { %15618 = vmatpush1.bf16.msra.mxu0 %v19167_v58  ;;  %v19235_v58 = vld [vmem:[#allocation8 + $0x704] ss:$16 sps:$4 sm:$0xff]  }
 0x94b   : > { %15619 = vmatprep.subr.bf16.mxu0 %v19175_v60  ;;  %v19233_v60 = vld [vmem:[#allocation8 + $0x700] ss:$16 sps:$4 sm:$0xff]  }
 0x94c   : > { %15790 = vmatpush1.bf16.msra.mxu1 %v19170_v59  ;;  %v19238_v59 = vld [vmem:[#allocation8 + $0x70c] ss:$16 sps:$4 sm:$0xff]  }
 0x94d   : > { %15791 = vmatprep.subr.bf16.mxu1 %v19178_v2  ;;  %v19239_v2 = vld [vmem:[#allocation8 + $0x720] ss:$16 sps:$4 sm:$0xff]  }
 0x94e   : > { %15620 = vmatpush1.bf16.msra.mxu0 %v19173_v3  ;;  %v19242_v3 = vld [vmem:[#allocation8 + $0x728] ss:$16 sps:$4 sm:$0xff]  }
 0x94f   : > { %15621 = vmatprep.subr.bf16.mxu0 %v19181_v9  ;;  %v19251_v9 = vld [vmem:[#allocation8 + $0x760] ss:$16 sps:$4 sm:$0xff]  }
 0x950   : > { %15792 = vmatpush1.bf16.msra.mxu1 %v19176_v4  ;;  %v19247_v4 = vld [vmem:[#allocation8 + $0x744] ss:$16 sps:$4 sm:$0xff]  }
 0x951   : > { %15793 = vmatprep.subr.bf16.mxu1 %v19184_v10  ;;  %v19254_v10 = vld [vmem:[#allocation8 + $0x768] ss:$16 sps:$4 sm:$0xff]  }
 0x952   : > { %15622 = vmatpush1.bf16.msra.mxu0 %v19179_v11  ;;  %v19259_v11 = vld [vmem:[#allocation8 + $0x784] ss:$16 sps:$4 sm:$0xff]  }
 0x953   : > { %15634 = vmatprep.subr.bf16.mxu0 %v19187_v17  ;;  %v19268_v17 = vld [vmem:[#allocation8 + $0x7ac] ss:$16 sps:$4 sm:$0xff]  }
 0x954   : > { %15794 = vmatpush1.bf16.msra.mxu1 %v19182_v12  ;;  %v19262_v12 = vld [vmem:[#allocation8 + $0x78c] ss:$16 sps:$4 sm:$0xff]  }
 0x955   : > { %15806 = vmatprep.subr.bf16.mxu1 %v19190_v18  ;;  %15624 = vmatmul.mubr.bf16.vlgmr.msra.gmra.mrb[0].mxu0 %v13943_v23  ;;  %v19263_v18 = vld [vmem:[#allocation8 + $0x7a0] ss:$16 sps:$4 sm:$0xff]  }
 0x956   : > { %15635 = vmatpush1.bf16.msra.mxu0 %v19185_v19  ;;  %15666 = vmatprep.mubr.bf16.mxu0 %v13946_v28  ;;  %v13894_v19 = vrot.slane %v21752_v63, %v13893_v13 }
 0x957   : > { %15796 = vmatmul.mubr.bf16.vlgmr.msra.gmra.mrb[0].mxu1 %v13943_v23  ;;  %15636 = vmatprep.subr.bf16.mxu0 %v19193_v24  ;;  %v19271_v23 = vld [vmem:[#allocation8 + $0x7c4] ss:$16 sps:$4 sm:$0xff]   ;;  %v19274_v24 = vld [vmem:[#allocation8 + $0x7cc] ss:$16 sps:$4 sm:$0xff]  }
 0x958   : > { %15807 = vmatpush1.bf16.msra.mxu1 %v19188_v22  ;;  %15838 = vmatprep.mubr.bf16.mxu1 %v13946_v28  ;;  %v13863_v22 = vld [vmem:[#allocation2 + $0x70] sm:$0xff]  ;;  %v19269_v28 = vld [vmem:[#allocation8 + $0x7c0] ss:$16 sps:$4 sm:$0xff]  }
 0x959   : > { %15808 = vmatprep.subr.bf16.mxu1 %v19196_v25  ;;  %v13913_v25 = vadd.f32 %v13894_v19, %v13855_v21 }
 0x95a   : > { %15637 = vmatpush1.bf16.msra.mxu0 %v19191_v27  ;;  %v13921_v27 = vadd.f32 %v13894_v19, %v13863_v22 }
 0x95b   : > { %15638 = vmatprep.subr.bf16.mxu0 %v19199_v30  ;;  %v19277_v30 = vld [vmem:[#allocation8 + $0x7e4] ss:$16 sps:$4 sm:$0xff]   ;;  %v13929_v63 = vmax.f32 %v13913_v25, 0.0 }
 0x95c   : > { %15809 = vmatpush1.bf16.msra.mxu1 %v19194_v29  ;;  %v19272_v29 = vld [vmem:[#allocation8 + $0x7c8] ss:$16 sps:$4 sm:$0xff]  }
 0x95d   : > { %15810 = vmatprep.subr.bf16.mxu1 %v19202_v31  ;;  %v19280_v31 = vld [vmem:[#allocation8 + $0x7ec] ss:$16 sps:$4 sm:$0xff]  }
 0x95e   : > { %15639 = vmatpush1.bf16.msra.mxu0 %v19197_v32  ;;  %v13937_v32 = vmax.f32 %v13921_v27, 0.0 }
 0x95f   : > { %15640 = vmatprep.subr.bf16.mxu0 %v19205_v34  ;;  %v19278_v34 = vld [vmem:[#allocation8 + $0x7e8] ss:$16 sps:$4 sm:$0xff]  }
 0x960   : > { %15811 = vmatpush1.bf16.msra.mxu1 %v19200_v33  ;;  %v19275_v33 = vld [vmem:[#allocation8 + $0x7e0] ss:$16 sps:$4 sm:$0xff]  }
 0x961   : > { %15812 = vmatprep.subr.bf16.mxu1 %v19208_v35  ;;  %v19281_v35 = vld [vmem:[#allocation11 + $0x40] sm:$0xff]  }
 0x962   : > { %15641 = vmatpush1.bf16.msra.mxu0 %v19203_v36  ;;  %v19282_v36 = vld [vmem:[#allocation11 + $0xc0] sm:$0xff]  }
 0x963   : > { %15642 = vmatprep.subr.bf16.mxu0 %v19211_v38  ;;  %v19283_v38 = vld [vmem:[#allocation11] sm:$0xff]  }
 0x964   : > { %15813 = vmatpush1.bf16.msra.mxu1 %v19206_v37  ;;  %v13945_v37 = vpack.c.bf16 %v13937_v32, %v13929_v63 }
 0x965   : > { %15814 = vmatprep.subr.bf16.mxu1 %v19214_v39  ;;  %v19284_v39 = vld [vmem:[#allocation11 + $0x80] sm:$0xff]  }
 0x966   : > { %15643 = vmatpush1.bf16.msra.mxu0 %v19209_v40  ;;  %v19285_v40 = vld [vmem:[#allocation11 + $0x48] sm:$0xff]  }
 0x967   : > { %15644 = vmatprep.subr.bf16.mxu0 %v19217_v42  ;;  %v19287_v42 = vld [vmem:[#allocation11 + $0x8] sm:$0xff]  }
 0x968   : > { %15815 = vmatpush1.bf16.msra.mxu1 %v19212_v41  ;;  %v19286_v41 = vld [vmem:[#allocation11 + $0xc8] sm:$0xff]  }
 0x969   : > { %15816 = vmatprep.subr.bf16.mxu1 %v19220_v43  ;;  %v19288_v43 = vld [vmem:[#allocation11 + $0x88] sm:$0xff]  }
 0x96a   : > { %15645 = vmatpush1.bf16.msra.mxu0 %v19215_v44  ;;  %v19289_v44 = vld [vmem:[#allocation11 + $0x50] sm:$0xff]  }
 0x96b   : > { %15646 = vmatprep.subr.bf16.mxu0 %v19223_v48  ;;  %v19291_v48 = vld [vmem:[#allocation11 + $0x10] sm:$0xff]  }
 0x96c   : > { %15817 = vmatpush1.bf16.msra.mxu1 %v19218_v45  ;;  %v19290_v45 = vld [vmem:[#allocation11 + $0xd0] sm:$0xff]  }
 0x96d   : > { %15818 = vmatprep.subr.bf16.mxu1 %v19226_v49  ;;  %v19292_v49 = vld [vmem:[#allocation11 + $0x90] sm:$0xff]  }
 0x96e   : > { %15647 = vmatpush1.bf16.msra.mxu0 %v19221_v50  ;;  %v19293_v50 = vld [vmem:[#allocation11 + $0x58] sm:$0xff]  }
 0x96f   : > { %15648 = vmatprep.subr.bf16.mxu0 %v19229_v53  ;;  %v19295_v53 = vld [vmem:[#allocation11 + $0x18] sm:$0xff]  }
 0x970   : > { %15819 = vmatpush1.bf16.msra.mxu1 %v19224_v51  ;;  %v19294_v51 = vld [vmem:[#allocation11 + $0xd8] sm:$0xff]  }
 0x971   : > { %15820 = vmatprep.subr.bf16.mxu1 %v19232_v54  ;;  %v19296_v54 = vld [vmem:[#allocation11 + $0x98] sm:$0xff]  }
 0x972   : > { %15649 = vmatpush1.bf16.msra.mxu0 %v19227_v55  ;;  %v19297_v55 = vld [vmem:[#allocation11 + $0x60] sm:$0xff]  }
 0x973   : > { %15650 = vmatprep.subr.bf16.mxu0 %v19235_v58  ;;  %v19299_v58 = vld [vmem:[#allocation11 + $0x20] sm:$0xff]  }
 0x974   : > { %15821 = vmatpush1.bf16.msra.mxu1 %v19230_v56  ;;  %v19298_v56 = vld [vmem:[#allocation11 + $0xe0] sm:$0xff]  }
 0x975   : > { %15822 = vmatprep.subr.bf16.mxu1 %v19238_v59  ;;  %v19300_v59 = vld [vmem:[#allocation11 + $0xa0] sm:$0xff]  }
 0x976   : > { %15651 = vmatpush1.bf16.msra.mxu0 %v19233_v60  ;;  %v19301_v60 = vld [vmem:[#allocation11 + $0x68] sm:$0xff]  }
 0x977   : > { %15652 = vmatprep.subr.bf16.mxu0 %v19241_v62  ;;  %v19303_v62 = vld [vmem:[#allocation11 + $0x28] sm:$0xff]  }
 0x978   : > { %15823 = vmatpush1.bf16.msra.mxu1 %v19236_v61  ;;  %v19302_v61 = vld [vmem:[#allocation11 + $0xe8] sm:$0xff]  }
 0x979   : > { %15824 = vmatprep.subr.bf16.mxu1 %v19244_v0  ;;  %v19304_v0 = vld [vmem:[#allocation11 + $0xa8] sm:$0xff]  }
 0x97a   : > { %15653 = vmatpush1.bf16.msra.mxu0 %v19239_v2  ;;  %v19305_v2 = vld [vmem:[#allocation11 + $0x70] sm:$0xff]  }
 0x97b   : > { %15654 = vmatprep.subr.bf16.mxu0 %v19247_v4  ;;  %v19307_v4 = vld [vmem:[#allocation11 + $0x30] sm:$0xff]  }
 0x97c   : > { %15825 = vmatpush1.bf16.msra.mxu1 %v19242_v3  ;;  %v19306_v3 = vld [vmem:[#allocation11 + $0xf0] sm:$0xff]  }
 0x97d   : > { %15826 = vmatprep.subr.bf16.mxu1 %v19250_v5  ;;  %v19308_v5 = vld [vmem:[#allocation11 + $0xb0] sm:$0xff]  }
 0x97e   : > { %15655 = vmatpush1.bf16.msra.mxu0 %v19245_v6  ;;  %v19309_v6 = vld [vmem:[#allocation11 + $0x78] sm:$0xff]  }
 0x97f   : > { %15656 = vmatprep.subr.bf16.mxu0 %v19253_v7  ;;  %v19311_v7 = vld [vmem:[#allocation11 + $0x38] sm:$0xff]  }
 0x980   : > { %15827 = vmatpush1.bf16.msra.mxu1 %v19248_v57  ;;  %v19310_v57 = vld [vmem:[#allocation11 + $0xf8] sm:$0xff]  }
 0x981   : > { %15828 = vmatprep.subr.bf16.mxu1 %v19256_v8  ;;  %v19312_v8 = vld [vmem:[#allocation11 + $0xb8] sm:$0xff]  }
 0x982   : > { %15657 = vmatpush1.bf16.msra.mxu0 %v19251_v9  ;;  %v14203_v9 = vld [vmem:[#allocation9] sm:$0xf] }
 0x983   : > { %15658 = vmatprep.subr.bf16.mxu0 %v19259_v11  ;;  %v14216_v11 = vrot.slane %v14203_v9, %v13877_v26  ;;  %v14220_v13 = vrot.slane %v14203_v9, %v13881_v46 }
 0x984   : > { %15829 = vmatpush1.bf16.msra.mxu1 %v19254_v10  ;;  %v14208_v10 = vrot.slane %v14203_v9, %v13869_v1 }
 0x985   : > { %15830 = vmatprep.subr.bf16.mxu1 %v19262_v12  ;;  %v14212_v12 = vrot.slane %v14203_v9, %v13873_v52 }
 0x986   : > { %15659 = vmatpush1.bf16.msra.mxu0 %v19257_v14 }
 0x987   : > { %15660 = vmatprep.subr.bf16.mxu0 %v19265_v16 }
 0x988   : > { %15831 = vmatpush1.bf16.msra.mxu1 %v19260_v15 }
 0x989   : > { %15832 = vmatprep.subr.bf16.mxu1 %v19268_v17 }
 0x98a   : > { %15661 = vmatpush1.bf16.msra.mxu0 %v19263_v18 }
 0x98b   : > { %15662 = vmatprep.subr.bf16.mxu0 %v19271_v23 }
 0x98c   : > { %15833 = vmatpush1.bf16.msra.mxu1 %v19266_v20 }
 0x98d   : > { %15834 = vmatprep.subr.bf16.mxu1 %v19274_v24 }
 0x98e   : > { %15663 = vmatpush1.bf16.msra.mxu0 %v19269_v28 }
 0x98f   : > { %15664 = vmatprep.subr.bf16.mxu0 %v19277_v30 }
 0x990   : > { %15835 = vmatpush1.bf16.msra.mxu1 %v19272_v29 }
 0x991   : > { %15836 = vmatprep.subr.bf16.mxu1 %v19280_v31 }
 0x992   : > { %15665 = vmatpush1.bf16.msra.mxu0 %v19275_v33 }
 0x993   : > { %18447 = vmatprep.subr.bf16.mxu0 %v19281_v35 }
 0x994   : > { %15837 = vmatpush1.bf16.msra.mxu1 %v19278_v34 }
 0x995   : > { %18469 = vmatprep.subr.bf16.mxu1 %v19282_v36  ;;  %15667 = vmatmul.mubr.bf16.vlgmr.msra.gmra.mrb[0].mxu0 %v13945_v37 }
 0x996   : > { %18448 = vmatpush3.bf16.msra.mxu0 %v19283_v38 }
 0x997   : > { %15839 = vmatmul.mubr.bf16.vlgmr.msra.gmra.mrb[0].mxu1 %v13945_v37  ;;  %18449 = vmatprep.subr.bf16.mxu0 %v19285_v40 }
 0x998   : > { %18470 = vmatpush3.bf16.msra.mxu1 %v19284_v39  ;;  %v18408_v39 = vld [vmem:[#allocation12] ss:$0 sm:$0xff] }
 0x999   : > { %18471 = vmatprep.subr.bf16.mxu1 %v19286_v41 }
 0x99a   : > { %18450 = vmatpush3.bf16.msra.mxu0 %v19287_v42 }
 0x99b   : > { %18451 = vmatprep.subr.bf16.mxu0 %v19289_v44 }
 0x99c   : > { %18472 = vmatpush3.bf16.msra.mxu1 %v19288_v43 }
 0x99d   : > { %18473 = vmatprep.subr.bf16.mxu1 %v19290_v45 }
 0x99e   : > { %18452 = vmatpush3.bf16.msra.mxu0 %v19291_v48 }
 0x99f   : > { %18453 = vmatprep.subr.bf16.mxu0 %v19293_v50 }
 0x9a0   : > { %18474 = vmatpush3.bf16.msra.mxu1 %v19292_v49 }
 0x9a1   : > { %18475 = vmatprep.subr.bf16.mxu1 %v19294_v51 }
 0x9a2   : > { %18454 = vmatpush3.bf16.msra.mxu0 %v19295_v53 }
 0x9a3   : > { %18455 = vmatprep.subr.bf16.mxu0 %v19297_v55 }
 0x9a4   : > { %18476 = vmatpush3.bf16.msra.mxu1 %v19296_v54 }
 0x9a5   : > { %18477 = vmatprep.subr.bf16.mxu1 %v19298_v56 }
 0x9a6   : > { %18456 = vmatpush3.bf16.msra.mxu0 %v19299_v58 }
 0x9a7   : > { %18457 = vmatprep.subr.bf16.mxu0 %v19301_v60 }
 0x9a8   : > { %18478 = vmatpush3.bf16.msra.mxu1 %v19300_v59 }
 0x9a9   : > { %18479 = vmatprep.subr.bf16.mxu1 %v19302_v61 }
 0x9aa   : > { %18458 = vmatpush3.bf16.msra.mxu0 %v19303_v62 }
 0x9ab   : > { %18459 = vmatprep.subr.bf16.mxu0 %v19305_v2 }
 0x9ac   : > { %18480 = vmatpush3.bf16.msra.mxu1 %v19304_v0 }
 0x9ad   : > { %18481 = vmatprep.subr.bf16.mxu1 %v19306_v3 }
 0x9ae   : > { %18460 = vmatpush3.bf16.msra.mxu0 %v19307_v4 }
 0x9af   : > { %18461 = vmatprep.subr.bf16.mxu0 %v19309_v6 }
 0x9b0   : > { %18482 = vmatpush3.bf16.msra.mxu1 %v19308_v5 }
 0x9b1   : > { %18483 = vmatprep.subr.bf16.mxu1 %v19310_v57 }
 0x9b2   : > { %18462 = vmatpush3.bf16.msra.mxu0 %v19311_v7 }
 0x9b4   : > { %18484 = vmatpush3.bf16.msra.mxu1 %v19312_v8 }
 0xa68   : > { %v15668_v14 = vpop.f32.mrb[0].mxu0 }
 0xa69   : > { %v18699_v16 = vadd.f32 %v15668_v14, %v14208_v10  ;;  %v15670_v18 = vpop.f32.mrb[1].mxu0 }
 0xa6a   : > { %v15840_v15 = vpop.f32.mrb[0].mxu1  ;;  %v18700_v20 = vadd.f32 %v15670_v18, %v14212_v12  ;;  %v15672_v22 = vpop.f32.mrb[2].mxu0 }
 0xa6b   : > { %v18703_v17 = vadd.f32 %v15840_v15, %v14216_v11  ;;  %v15842_v19 = vpop.f32.mrb[1].mxu1  ;;  %v18701_v1 = vadd.f32 %v15672_v22, %v14208_v10  ;;  %v15674_v25 = vpop.f32.mrb[3].mxu0  ;;  %v15849_v52 = vmax.f32 %v18699_v16, 0.0 }
 0xa6c   : > { %v18704_v21 = vadd.f32 %v15842_v19, %v14220_v13  ;;  %v15844_v23 = vpop.f32.mrb[2].mxu1  ;;  %v18702_v27 = vadd.f32 %v15674_v25, %v14212_v12  ;;  %v15850_v30 = vmax.f32 %v18700_v20, 0.0 }
 0xa6d   : > { %v18705_v24 = vadd.f32 %v15844_v23, %v14216_v11  ;;  %v15846_v26 = vpop.f32.mrb[3].mxu1  ;;  %v15851_v29 = vmax.f32 %v18703_v17, 0.0  ;;  %v15853_v47 = vmax.f32 %v18701_v1, 0.0 }
 0xa6e   : > { %v18706_v28 = vadd.f32 %v15846_v26, %v14220_v13  ;;  %v15852_v31 = vmax.f32 %v18704_v21, 0.0  ;;  %v15854_v63 = vmax.f32 %v18702_v27, 0.0 }
 0xa6f   : > { %v15855_v46 = vmax.f32 %v18705_v24, 0.0  ;;  %v15857_v33 = vpack.c.bf16 %v15853_v47, %v15849_v52 }
 0xa70   : > { %v15856_v32 = vmax.f32 %v18706_v28, 0.0  ;;  %v15858_v35 = vpack.c.bf16 %v15854_v63, %v15850_v30 }
 0xa71   : > { %v15859_v34 = vpack.c.bf16 %v15855_v46, %v15851_v29 }
 0xa72   : > { %v15860_v36 = vpack.c.bf16 %v15856_v32, %v15852_v31  ;;  %16156 = vmatprep.mubr.bf16.mxu0 %v15858_v35 }
 0xa73   : > { %16157 = vmatmul.mubr.bf16.vlgmr.msra.gmra.mrb[4].mxu0 %v15857_v33 }
 0xa74   : > { %16197 = vmatprep.mubr.bf16.mxu1 %v15860_v36 }
 0xa75   : > { %16198 = vmatmul.mubr.bf16.vlgmr.msra.gmra.mrb[4].mxu1 %v15859_v34 }
 0xb46   : > { %v18463_v37 = vpop.f32.mrb[4].mxu0 }
 0xb47   : > { %v18464_v40 = vpop.f32.mrb[5].mxu0 }
 0xb48   : > { %v18485_v38 = vpop.f32.mrb[4].mxu1  ;;  %v18465_v42 = vadd.f32 %v18464_v40, %v18463_v37  ;;  %v18466_v44 = vpop.f32.mrb[6].mxu0 }
 0xb49   : > { %v18486_v41 = vpop.f32.mrb[5].mxu1  ;;  %v18467_v48 = vpop.f32.mrb[7].mxu0 }
 0xb4a   : > { %v18487_v43 = vadd.f32 %v18486_v41, %v18485_v38  ;;  %v18488_v45 = vpop.f32.mrb[6].mxu1  ;;  %v16159_v50 = vadd.f32 %v18465_v42, %v18408_v39  ;;  %v18468_v51 = vadd.f32 %v18467_v48, %v18466_v44 }
 0xb4b   : > { %v18489_v49 = vpop.f32.mrb[7].mxu1 }
 0xb4c   : > { %v18490_v53 = vadd.f32 %v18489_v49, %v18488_v45  ;;  %v16200_v54 = vadd.f32 %v18487_v43, %v16159_v50  ;;  %v16162_v55 = vadd.f32 %v18468_v51, %v18408_v39 }
 0xb4e   : > { %16206 = vst [vmem:[%s21792_s7] sm:$0xff] %v16200_v54  ;;  %v16203_v56 = vadd.f32 %v18490_v53, %v16162_v55 }
 0xb50   : > { %16207 = vst [vmem:[%s21792_s7 + $0x8] sm:$0xff] %v16203_v56 }
 0xb51 PF: > { %p20_p1 = scmp.ge.s32.totalorder %s19605_s29, 4   ;;  %s21817_s24 = smov %s19520_s25 }
 0xb52   : > { %s21818_s25 = smov %s19524_s26  ;;  %s21819_s26 = smov %s19615_s9 }
 0xb53   : > { %s21820_s27 = smov %s19605_s29  ;;  %22 = sbr.rel (!%p20_p1) target bundleno = 9 (0x9), region = 143 }
 0xb5a   :  { %16219 = vsyncpa [#allocation5], 1 }
 0xb5b   :  { %16221 = vsyncpa [#allocation5 + $0x1], 1 }
 0xb5c   :  { %16222 = vsyncpa [#allocation7], 1 }
 0xb5d   :  { %16223 = vsyncpa [#allocation10], 1 }
 0xb5e   :  { %16224 = vsyncpa [#allocation13], 1 }

</bundles_post_ra>
